<compile_context>
chip_gen: v6e
topology: v6e:2x2x1
jax: 0.10.0
libtpu: 0.0.40
codegen_flags: <defaults>
</compile_context>

<pallas_src>
import functools

import jax
import jax.numpy as jnp
from jax import lax
from jax.experimental import pallas as pl
from jax.experimental.pallas import tpu as pltpu


# ----------------------------------------------------------------------------
# CrossAttention
# ----------------------------------------------------------------------------
def _cross_attention_kernel(x_ref, ctx_ref, wq_ref, wk_ref, wv_ref, wo_ref,
                            bo_ref, o_ref, q_scr, m_scr, l_scr, acc_scr,
                            *, scale):
    hid = pl.program_id(1)          # head index
    s = pl.program_id(2)            # kv-tile index
    n_s = pl.num_programs(2)

    @pl.when(s == 0)
    def _init():
        # q projection for this (batch, head); softmax scale folded into q.
        q = jnp.dot(x_ref[0].astype(jnp.bfloat16), wq_ref[0],
                    preferred_element_type=jnp.float32)               # (T, dh)
        q_scr[...] = (q * scale).astype(jnp.bfloat16)
        m_scr[...] = jnp.full_like(m_scr, -jnp.inf)
        l_scr[...] = jnp.zeros_like(l_scr)
        acc_scr[...] = jnp.zeros_like(acc_scr)

    ctx = ctx_ref[0]                                                  # (Skv, Dctx) bf16
    k = jnp.dot(ctx, wk_ref[0], preferred_element_type=jnp.float32)   # (Skv, dh)
    v = jnp.dot(ctx, wv_ref[0], preferred_element_type=jnp.float32)   # (Skv, dh)

    # scores for this kv tile (only the small k tile is implicitly transposed)
    s_mat = lax.dot_general(q_scr[...], k.astype(jnp.bfloat16),
                            (((1,), (1,)), ((), ())),
                            preferred_element_type=jnp.float32)       # (T, Skv)

    m_prev = m_scr[...]
    m_new = jnp.maximum(m_prev, jnp.max(s_mat, axis=-1, keepdims=True))
    alpha = jnp.exp(m_prev - m_new)
    p = jnp.exp(s_mat - m_new)
    l_scr[...] = alpha * l_scr[...] + jnp.sum(p, axis=-1, keepdims=True)
    acc_scr[...] = alpha * acc_scr[...] + jnp.dot(
        p.astype(jnp.bfloat16), v.astype(jnp.bfloat16),
        preferred_element_type=jnp.float32)
    m_scr[...] = m_new

    @pl.when(s == n_s - 1)
    def _finalize():
        o_h = acc_scr[...] * pl.reciprocal(l_scr[...], approx=True)   # (T, dh)
        contrib = jnp.dot(o_h.astype(jnp.bfloat16), wo_ref[0],
                          preferred_element_type=jnp.float32)         # (T, C)

        @pl.when(hid == 0)
        def _first_head():
            o_ref[0] = x_ref[0] + bo_ref[...] + contrib               # residual + bias

        @pl.when(hid > 0)
        def _other_heads():
            o_ref[0] = o_ref[0] + contrib


def cross_attention_pallas(x, context, params, *, kv_block=512):
    B, C, H, W = x.shape
    T = H * W
    S, d_ctx = context.shape[1], context.shape[2]
    heads = params["heads"]
    inner = params["wq"].shape[0]
    dh = inner // heads
    scale = float(dh) ** -0.5

    x_tc = x.reshape(B, C, T).transpose(0, 2, 1).astype(jnp.float32)  # (B, T, C)
    ctx_bf = context.astype(jnp.bfloat16)                             # matmul operand only

    # per-head, lane-aligned weight blocks; matmul operands pre-cast to bf16
    wq = params["wq"].T.reshape(C, heads, dh).transpose(1, 0, 2).astype(jnp.bfloat16)
    wk = params["wk"].T.reshape(d_ctx, heads, dh).transpose(1, 0, 2).astype(jnp.bfloat16)
    wv = params["wv"].T.reshape(d_ctx, heads, dh).transpose(1, 0, 2).astype(jnp.bfloat16)
    wo = params["wo"].T.reshape(heads, dh, C).astype(jnp.bfloat16)
    bo = params["bo"].reshape(1, C).astype(jnp.float32)

    s_blk = kv_block if (S > kv_block and S % kv_block == 0) else S
    n_s = S // s_blk

    kernel = functools.partial(_cross_attention_kernel, scale=scale)
    out_tc = pl.pallas_call(
        kernel,
        out_shape=jax.ShapeDtypeStruct((B, T, C), jnp.float32),
        grid=(B, heads, n_s),
        in_specs=[
            pl.BlockSpec((1, T, C), lambda b, h, s: (b, 0, 0)),        # x (residual + q)
            pl.BlockSpec((1, s_blk, d_ctx), lambda b, h, s: (b, s, 0)),# context kv tile
            pl.BlockSpec((1, C, dh), lambda b, h, s: (h, 0, 0)),       # Wq (per head)
            pl.BlockSpec((1, d_ctx, dh), lambda b, h, s: (h, 0, 0)),   # Wk
            pl.BlockSpec((1, d_ctx, dh), lambda b, h, s: (h, 0, 0)),   # Wv
            pl.BlockSpec((1, dh, C), lambda b, h, s: (h, 0, 0)),       # Wout (per head)
            pl.BlockSpec((1, C), lambda b, h, s: (0, 0)),              # out bias
        ],
        out_specs=pl.BlockSpec((1, T, C), lambda b, h, s: (b, 0, 0)),
        scratch_shapes=[
            pltpu.VMEM((T, dh), jnp.bfloat16),   # scaled q
            pltpu.VMEM((T, 1), jnp.float32),     # running max
            pltpu.VMEM((T, 1), jnp.float32),     # running denominator
            pltpu.VMEM((T, dh), jnp.float32),    # output accumulator
        ],
        compiler_params=pltpu.CompilerParams(
            dimension_semantics=("parallel", "arbitrary", "arbitrary"),
            vmem_limit_bytes=48 * 1024 * 1024),
    )(x_tc, ctx_bf, wq, wk, wv, wo, bo)

    return out_tc.transpose(0, 2, 1).reshape(B, C, H, W)


# ----------------------------------------------------------------------------
# ResBlock (inference-mode BatchNorm + SiLU + 3x3 conv + FiLM) x2 + skip
# ----------------------------------------------------------------------------
def _resblock_kernel(x_ref, t_ref, m_ext_ref, m_mid_ref, xm1_ref, xm2_ref,
                     bn1s_ref, bn1b_ref, w1_ref, b1_ref,
                     wg_ref, bg_ref, wb_ref, bb_ref,
                     bn2s_ref, bn2b_ref, w2_ref, b2_ref,
                     wsk_ref, bsk_ref, o_ref, *, W, T, use_skip):
    P = W + 1
    L1 = T + 2 * P                          # extended domain of the conv1 output
    c_out = w1_ref.shape[2]

    def silu(z):
        return z * (1.0 / (1.0 + jnp.exp(-z)))

    # ---- BatchNorm1 (inference affine) + SiLU; zero outside the true region ----
    x_ext = x_ref[0]                                                   # (L2, Cin) f32
    a1 = silu(x_ext * bn1s_ref[...] + bn1b_ref[...]) * m_ext_ref[...]

    # ---- conv1 (3x3, pad 1) as 9 shifted matmuls on the extended domain ----
    h1 = jnp.zeros((L1, c_out), jnp.float32)
    for ky in (-1, 0, 1):
        for kx in (-1, 0, 1):
            d = ky * W + kx
            tap = (ky + 1) * 3 + (kx + 1)
            src = a1[P + d:P + d + L1, :].astype(jnp.bfloat16)
            contrib = jnp.dot(src, w1_ref[tap],
                              preferred_element_type=jnp.float32)
            if kx != 0:
                contrib = contrib * xm1_ref[kx + 1]                    # row-wrap mask
            h1 = h1 + contrib
    h1 = h1 + b1_ref[...]

    # ---- FiLM conditioning from the time embedding ----
    t_e = t_ref[0].astype(jnp.bfloat16)                                # (1, Temb)
    gamma = jnp.dot(t_e, wg_ref[...], preferred_element_type=jnp.float32) + bg_ref[...]
    beta = jnp.dot(t_e, wb_ref[...], preferred_element_type=jnp.float32) + bb_ref[...]
    h1 = h1 * gamma + beta

    # ---- BatchNorm2 + SiLU; zero outside the true region ----
    a2 = silu(h1 * bn2s_ref[...] + bn2b_ref[...]) * m_mid_ref[...]

    # ---- conv2 (3x3, pad 1), output restricted to the true T positions ----
    out = jnp.zeros((T, c_out), jnp.float32)
    for ky in (-1, 0, 1):
        for kx in (-1, 0, 1):
            d = ky * W + kx
            tap = (ky + 1) * 3 + (kx + 1)
            src = a2[P + d:P + d + T, :].astype(jnp.bfloat16)
            contrib = jnp.dot(src, w2_ref[tap],
                              preferred_element_type=jnp.float32)
            if kx != 0:
                contrib = contrib * xm2_ref[kx + 1]
            out = out + contrib
    out = out + b2_ref[...]

    # ---- skip connection + residual ----
    x_true = x_ext[2 * P:2 * P + T, :]                                 # (T, Cin)
    if use_skip:
        skip = jnp.dot(x_true.astype(jnp.bfloat16), wsk_ref[...],
                       preferred_element_type=jnp.float32) + bsk_ref[...]
    else:
        skip = x_true
    o_ref[0] = out + skip


def resblock_pallas(x, t_embed, params, *, eps=1e-5):
    B, c_in, H, W = x.shape
    c_out = params["conv1_w"].shape[0]
    T = H * W
    P = W + 1
    L1 = T + 2 * P
    L2 = T + 4 * P
    t_dim = t_embed.shape[1]
    use_skip = "skip_w" in params

    # channel-last flat layout, zero-extended by 2*(W+1) rows on each side
    x_tc = x.reshape(B, c_in, T).transpose(0, 2, 1).astype(jnp.float32)
    x_ext = jnp.pad(x_tc, ((0, 0), (2 * P, 2 * P), (0, 0)))            # (B, L2, Cin)
    t_e = t_embed.reshape(B, 1, t_dim).astype(jnp.float32)

    # validity masks (precomputed: keeps the kernel to static slices + matmuls)
    j_ext = jnp.arange(L2)
    m_ext = ((j_ext >= 2 * P) & (j_ext < 2 * P + T)).astype(jnp.float32).reshape(L2, 1)
    j_mid = jnp.arange(L1)
    m_mid = ((j_mid >= P) & (j_mid < P + T)).astype(jnp.float32).reshape(L1, 1)
    x1 = (j_mid - P) % W
    xm1 = jnp.stack([((x1 + kx >= 0) & (x1 + kx < W)).astype(jnp.float32)
                     for kx in (-1, 0, 1)]).reshape(3, L1, 1)
    x2 = jnp.arange(T) % W
    xm2 = jnp.stack([((x2 + kx >= 0) & (x2 + kx < W)).astype(jnp.float32)
                     for kx in (-1, 0, 1)]).reshape(3, T, 1)

    def bn_affine(p, c):
        s = p["weight"] / jnp.sqrt(p["running_var"] + eps)
        b = p["bias"] - p["running_mean"] * s
        return (s.reshape(1, c).astype(jnp.float32),
                b.reshape(1, c).astype(jnp.float32))

    bn1s, bn1b = bn_affine(params["bn1"], c_in)
    bn2s, bn2b = bn_affine(params["bn2"], c_out)

    # conv taps as (9, Cin, Cout) bf16 matmul operands; tap = (ky+1)*3 + (kx+1)
    w1 = params["conv1_w"].transpose(2, 3, 1, 0).reshape(9, c_in, c_out).astype(jnp.bfloat16)
    b1 = params["conv1_b"].reshape(1, c_out).astype(jnp.float32)
    w2 = params["conv2_w"].transpose(2, 3, 1, 0).reshape(9, c_out, c_out).astype(jnp.bfloat16)
    b2 = params["conv2_b"].reshape(1, c_out).astype(jnp.float32)

    # FiLM weights pre-split (lane-aligned outputs, no in-kernel odd-offset slicing)
    wg = params["film_w"][:c_out].T.astype(jnp.bfloat16)               # (Temb, Cout)
    bg = params["film_b"][:c_out].reshape(1, c_out).astype(jnp.float32)
    wb = params["film_w"][c_out:].T.astype(jnp.bfloat16)
    bb = params["film_b"][c_out:].reshape(1, c_out).astype(jnp.float32)

    if use_skip:
        wsk = params["skip_w"].reshape(c_out, c_in).T.astype(jnp.bfloat16)
        bsk = params["skip_b"].reshape(1, c_out).astype(jnp.float32)
    else:
        wsk = jnp.zeros((c_in, c_out), jnp.bfloat16)
        bsk = jnp.zeros((1, c_out), jnp.float32)

    kernel = functools.partial(_resblock_kernel, W=W, T=T, use_skip=use_skip)

    fix2 = lambda b: (0, 0)
    fix3 = lambda b: (0, 0, 0)

    out_tc = pl.pallas_call(
        kernel,
        out_shape=jax.ShapeDtypeStruct((B, T, c_out), jnp.float32),
        grid=(B,),
        in_specs=[
            pl.BlockSpec((1, L2, c_in), lambda b: (b, 0, 0)),          # x (extended)
            pl.BlockSpec((1, 1, t_dim), lambda b: (b, 0, 0)),          # t_embed
            pl.BlockSpec((L2, 1), fix2),                               # m_ext
            pl.BlockSpec((L1, 1), fix2),                               # m_mid
            pl.BlockSpec((3, L1, 1), fix3),                            # conv1 wrap masks
            pl.BlockSpec((3, T, 1), fix3),                             # conv2 wrap masks
            pl.BlockSpec((1, c_in), fix2),                             # bn1 scale
            pl.BlockSpec((1, c_in), fix2),                             # bn1 shift
            pl.BlockSpec((9, c_in, c_out), fix3),                      # conv1 taps
            pl.BlockSpec((1, c_out), fix2),                            # conv1 bias
            pl.BlockSpec((t_dim, c_out), fix2),                        # film gamma W
            pl.BlockSpec((1, c_out), fix2),                            # film gamma b
            pl.BlockSpec((t_dim, c_out), fix2),                        # film beta W
            pl.BlockSpec((1, c_out), fix2),                            # film beta b
            pl.BlockSpec((1, c_out), fix2),                            # bn2 scale
            pl.BlockSpec((1, c_out), fix2),                            # bn2 shift
            pl.BlockSpec((9, c_out, c_out), fix3),                     # conv2 taps
            pl.BlockSpec((1, c_out), fix2),                            # conv2 bias
            pl.BlockSpec((c_in, c_out), fix2),                         # skip weight
            pl.BlockSpec((1, c_out), fix2),                            # skip bias
        ],
        out_specs=pl.BlockSpec((1, T, c_out), lambda b: (b, 0, 0)),
        compiler_params=pltpu.CompilerParams(
            dimension_semantics=("parallel",),
            vmem_limit_bytes=48 * 1024 * 1024),
    )(x_ext, t_e, m_ext, m_mid, xm1, xm2, bn1s, bn1b, w1, b1,
      wg, bg, wb, bb, bn2s, bn2b, w2, b2, wsk, bsk)

    return out_tc.transpose(0, 2, 1).reshape(B, c_out, H, W)


# ----------------------------------------------------------------------------
# SequentialWithT driver
# ----------------------------------------------------------------------------
def sequential_with_t_pallas(x, t_embed, cond_feat, layers, *, attn_kv_block=512):
    for kind, p in layers:
        if kind == "res":
            x = resblock_pallas(x, t_embed, p)
        elif kind == "attn":
            x = cross_attention_pallas(x, cond_feat, p, kv_block=attn_kv_block)
        else:
            raise ValueError(kind)
    return x


# ----------------------------------------------------------------------------
# Pure-JAX reference (matches the PyTorch forward, inference-mode BatchNorm)
# ----------------------------------------------------------------------------
def _bn_eval_ref(h, p, eps=1e-5):
    s = p["weight"] / jnp.sqrt(p["running_var"] + eps)
    b = p["bias"] - p["running_mean"] * s
    return h * s[None, :, None, None] + b[None, :, None, None]


def _conv_ref(h, w, b, pad):
    out = lax.conv_general_dilated(h, w, (1, 1), ((pad, pad), (pad, pad)),
                                   dimension_numbers=("NCHW", "OIHW", "NCHW"))
    return out + b[None, :, None, None]


def resblock_ref(x, t_embed, p, eps=1e-5):
    c_out = p["conv1_w"].shape[0]
    h = _conv_ref(jax.nn.silu(_bn_eval_ref(x, p["bn1"], eps)),
                  p["conv1_w"], p["conv1_b"], 1)
    film = t_embed @ p["film_w"].T + p["film_b"]
    gamma, beta = film[:, :c_out], film[:, c_out:]
    h = h * gamma[:, :, None, None] + beta[:, :, None, None]
    h = _conv_ref(jax.nn.silu(_bn_eval_ref(h, p["bn2"], eps)),
                  p["conv2_w"], p["conv2_b"], 1)
    skip = _conv_ref(x, p["skip_w"], p["skip_b"], 0) if "skip_w" in p else x
    return h + skip


def cross_attention_ref(x, context, p):
    B, C, H, W = x.shape
    heads = p["heads"]
    xf = x.reshape(B, C, H * W).transpose(0, 2, 1)
    q = xf @ p["wq"].T
    k = context @ p["wk"].T
    v = context @ p["wv"].T
    dh = q.shape[-1] // heads

    def split(z):
        return z.reshape(B, -1, heads, dh).transpose(0, 2, 1, 3)

    q, k, v = split(q), split(k), split(v)
    attn = jax.nn.softmax(jnp.einsum("bhtd,bhsd->bhts", q, k) * dh ** -0.5, axis=-1)
    o = jnp.einsum("bhts,bhsd->bhtd", attn, v)
    o = o.transpose(0, 2, 1, 3).reshape(B, -1, heads * dh)
    o = o @ p["wo"].T + p["bo"]
    return x + o.transpose(0, 2, 1).reshape(B, C, H, W)


def sequential_with_t_ref(x, t_embed, cond_feat, layers):
    for kind, p in layers:
        if kind == "res":
            x = resblock_ref(x, t_embed, p)
        elif kind == "attn":
            x = cross_attention_ref(x, cond_feat, p)
        else:
            raise ValueError(kind)
    return x


# ----------------------------------------------------------------------------
# Test
# ----------------------------------------------------------------------------
def _make_bn(key, c):
    k1, k2, k3, k4 = jax.random.split(key, 4)
    return {
        "weight": 1.0 + 0.1 * jax.random.normal(k1, (c,), jnp.float32),
        "bias": 0.1 * jax.random.normal(k2, (c,), jnp.float32),
        "running_mean": 0.2 * jax.random.normal(k3, (c,), jnp.float32),
        "running_var": 0.5 + jax.random.uniform(k4, (c,), jnp.float32),
    }


def _make_resblock(key, c_in, c_out, t_dim):
    ks = jax.random.split(key, 10)
    p = {
        "bn1": _make_bn(ks[0], c_in),
        "conv1_w": 0.08 * jax.random.normal(ks[1], (c_out, c_in, 3, 3), jnp.float32),
        "conv1_b": 0.05 * jax.random.normal(ks[2], (c_out,), jnp.float32),
        "film_w": 0.05 * jax.random.normal(ks[3], (2 * c_out, t_dim), jnp.float32),
        "film_b": 0.02 * jax.random.normal(ks[4], (2 * c_out,), jnp.float32),
        "bn2": _make_bn(ks[5], c_out),
        "conv2_w": 0.06 * jax.random.normal(ks[6], (c_out, c_out, 3, 3), jnp.float32),
        "conv2_b": 0.05 * jax.random.normal(ks[7], (c_out,), jnp.float32),
    }
    if c_in != c_out:
        p["skip_w"] = 0.1 * jax.random.normal(ks[8], (c_out, c_in, 1, 1), jnp.float32)
        p["skip_b"] = 0.05 * jax.random.normal(ks[9], (c_out,), jnp.float32)
    return p


def _make_attn(key, q_dim, ctx_dim, heads, dim_head):
    inner = heads * dim_head
    ks = jax.random.split(key, 5)
    return {
        "heads": heads,
        "wq": 0.08 * jax.random.normal(ks[0], (inner, q_dim), jnp.float32),
        "wk": 0.08 * jax.random.normal(ks[1], (inner, ctx_dim), jnp.float32),
        "wv": 0.08 * jax.random.normal(ks[2], (inner, ctx_dim), jnp.float32),
        "wo": 0.08 * jax.random.normal(ks[3], (q_dim, inner), jnp.float32),
        "bo": 0.02 * jax.random.normal(ks[4], (q_dim,), jnp.float32),
    }


if __name__ == "__main__":
    B, C_IN, C_MID, H, W = 2, 32, 64, 16, 16
    T_EMB = 128
    S_CTX, D_CTX, HEADS, D_HEAD = 128, 96, 4, 32

    key = jax.random.PRNGKey(0)
    kx, kt, kc, k1, k2, k3 = jax.random.split(key, 6)

    x = jax.random.normal(kx, (B, C_IN, H, W), dtype=jnp.float32)
    t_embed = jax.random.normal(kt, (B, T_EMB), dtype=jnp.float32)
    cond_feat = jax.random.normal(kc, (B, S_CTX, D_CTX), dtype=jnp.float32)

    layers = [
        ("res", _make_resblock(k1, C_IN, C_MID, T_EMB)),
        ("attn", _make_attn(k2, C_MID, D_CTX, HEADS, D_HEAD)),
        ("res", _make_resblock(k3, C_MID, C_MID, T_EMB)),
    ]

    # kv_block=64 with S=128 exercises the 2-tile flash (online-softmax) path.
    out = sequential_with_t_pallas(x, t_embed, cond_feat, layers, attn_kv_block=64)
    out = jax.block_until_ready(out)

    ref = sequential_with_t_ref(x, t_embed, cond_feat, layers)
    assert out.shape == (B, C_MID, H, W)
    err = float(jnp.max(jnp.abs(out - ref)))
    tol = 3e-2 * max(1.0, float(jnp.max(jnp.abs(ref))))   # bf16-matmul tolerance
    assert err <= tol, (err, tol)
    print("KERNEL_OK")
</pallas_src>

<mosaic_0001>
module attributes {stable_mosaic.version = 11 : i64} {
  func.func @_resblock_kernel(%arg0: i32, %arg1: memref<1x324x32xf32, #tpu.memory_space<vmem>>, %arg2: memref<1x1x128xf32, #tpu.memory_space<vmem>>, %arg3: memref<324x1xf32, #tpu.memory_space<vmem>>, %arg4: memref<290x1xf32, #tpu.memory_space<vmem>>, %arg5: memref<3x290x1xf32, #tpu.memory_space<vmem>>, %arg6: memref<3x256x1xf32, #tpu.memory_space<vmem>>, %arg7: memref<1x32xf32, #tpu.memory_space<vmem>>, %arg8: memref<1x32xf32, #tpu.memory_space<vmem>>, %arg9: memref<9x32x64xbf16, #tpu.memory_space<vmem>>, %arg10: memref<1x64xf32, #tpu.memory_space<vmem>>, %arg11: memref<128x64xbf16, #tpu.memory_space<vmem>>, %arg12: memref<1x64xf32, #tpu.memory_space<vmem>>, %arg13: memref<128x64xbf16, #tpu.memory_space<vmem>>, %arg14: memref<1x64xf32, #tpu.memory_space<vmem>>, %arg15: memref<1x64xf32, #tpu.memory_space<vmem>>, %arg16: memref<1x64xf32, #tpu.memory_space<vmem>>, %arg17: memref<9x64x64xbf16, #tpu.memory_space<vmem>>, %arg18: memref<1x64xf32, #tpu.memory_space<vmem>>, %arg19: memref<32x64xbf16, #tpu.memory_space<vmem>>, %arg20: memref<1x64xf32, #tpu.memory_space<vmem>>, %arg21: memref<1x256x64xf32, #tpu.memory_space<vmem>>) attributes {dimension_semantics = [#tpu.dimension_semantics<parallel>], iteration_bounds = array<i64: 2>, scalar_prefetch = 0 : i64, scratch_operands = 0 : i64, tpu.core_type = #tpu.core_type<tc>, window_params = [{transform_indices = @transform_0, window_bounds = array<i64: 1, 324, 32>}, {transform_indices = @transform_1, window_bounds = array<i64: 1, 1, 128>}, {pipeline_mode = #tpu.pipeline_mode<synchronous>, transform_indices = @transform_2, window_bounds = array<i64: 324, 1>}, {pipeline_mode = #tpu.pipeline_mode<synchronous>, transform_indices = @transform_3, window_bounds = array<i64: 290, 1>}, {pipeline_mode = #tpu.pipeline_mode<synchronous>, transform_indices = @transform_4, window_bounds = array<i64: 3, 290, 1>}, {pipeline_mode = #tpu.pipeline_mode<synchronous>, transform_indices = @transform_5, window_bounds = array<i64: 3, 256, 1>}, {pipeline_mode = #tpu.pipeline_mode<synchronous>, transform_indices = @transform_6, window_bounds = array<i64: 1, 32>}, {pipeline_mode = #tpu.pipeline_mode<synchronous>, transform_indices = @transform_7, window_bounds = array<i64: 1, 32>}, {pipeline_mode = #tpu.pipeline_mode<synchronous>, transform_indices = @transform_8, window_bounds = array<i64: 9, 32, 64>}, {pipeline_mode = #tpu.pipeline_mode<synchronous>, transform_indices = @transform_9, window_bounds = array<i64: 1, 64>}, {pipeline_mode = #tpu.pipeline_mode<synchronous>, transform_indices = @transform_10, window_bounds = array<i64: 128, 64>}, {pipeline_mode = #tpu.pipeline_mode<synchronous>, transform_indices = @transform_11, window_bounds = array<i64: 1, 64>}, {pipeline_mode = #tpu.pipeline_mode<synchronous>, transform_indices = @transform_12, window_bounds = array<i64: 128, 64>}, {pipeline_mode = #tpu.pipeline_mode<synchronous>, transform_indices = @transform_13, window_bounds = array<i64: 1, 64>}, {pipeline_mode = #tpu.pipeline_mode<synchronous>, transform_indices = @transform_14, window_bounds = array<i64: 1, 64>}, {pipeline_mode = #tpu.pipeline_mode<synchronous>, transform_indices = @transform_15, window_bounds = array<i64: 1, 64>}, {pipeline_mode = #tpu.pipeline_mode<synchronous>, transform_indices = @transform_16, window_bounds = array<i64: 9, 64, 64>}, {pipeline_mode = #tpu.pipeline_mode<synchronous>, transform_indices = @transform_17, window_bounds = array<i64: 1, 64>}, {pipeline_mode = #tpu.pipeline_mode<synchronous>, transform_indices = @transform_18, window_bounds = array<i64: 32, 64>}, {pipeline_mode = #tpu.pipeline_mode<synchronous>, transform_indices = @transform_19, window_bounds = array<i64: 1, 64>}, {transform_indices = @transform_20, window_bounds = array<i64: 1, 256, 64>}]} {
    %c0 = arith.constant 0 : index
    %c0_0 = arith.constant 0 : index
    %c0_1 = arith.constant 0 : index
    %0 = vector.load %arg1[%c0, %c0_0, %c0_1] : memref<1x324x32xf32, #tpu.memory_space<vmem>>, vector<1x324x32xf32>
    %1 = vector.shape_cast %0 : vector<1x324x32xf32> to vector<324x32xf32>
    %c0_2 = arith.constant 0 : index
    %c0_3 = arith.constant 0 : index
    %2 = vector.load %arg7[%c0_2, %c0_3] : memref<1x32xf32, #tpu.memory_space<vmem>>, vector<1x32xf32>
    %3 = vector.broadcast %2 : vector<1x32xf32> to vector<324x32xf32>
    %4 = arith.mulf %1, %3 : vector<324x32xf32>
    %c0_4 = arith.constant 0 : index
    %c0_5 = arith.constant 0 : index
    %5 = vector.load %arg8[%c0_4, %c0_5] : memref<1x32xf32, #tpu.memory_space<vmem>>, vector<1x32xf32>
    %6 = vector.broadcast %5 : vector<1x32xf32> to vector<324x32xf32>
    %7 = arith.addf %4, %6 : vector<324x32xf32>
    %cst = arith.constant 0.000000e+00 : f32
    %8 = vector.broadcast %cst : f32 to vector<324x32xf32>
    %9 = arith.subf %8, %7 : vector<324x32xf32>
    %10 = math.exp %9 : vector<324x32xf32>
    %cst_6 = arith.constant 1.000000e+00 : f32
    %11 = vector.broadcast %cst_6 : f32 to vector<324x32xf32>
    %12 = arith.addf %11, %10 : vector<324x32xf32>
    %cst_7 = arith.constant 1.000000e+00 : f32
    %13 = vector.broadcast %cst_7 : f32 to vector<324x32xf32>
    %14 = arith.divf %13, %12 : vector<324x32xf32>
    %15 = arith.mulf %7, %14 : vector<324x32xf32>
    %c0_8 = arith.constant 0 : index
    %c0_9 = arith.constant 0 : index
    %16 = vector.load %arg3[%c0_8, %c0_9] : memref<324x1xf32, #tpu.memory_space<vmem>>, vector<324x1xf32>
    %17 = vector.broadcast %16 : vector<324x1xf32> to vector<324x32xf32>
    %18 = arith.mulf %15, %17 : vector<324x32xf32>
    %cst_10 = arith.constant 0.000000e+00 : f32
    %19 = vector.broadcast %cst_10 : f32 to vector<290x64xf32>
    %20 = vector.extract_strided_slice %18 {offsets = [0, 0], sizes = [290, 32], strides = [1, 1]} : vector<324x32xf32> to vector<290x32xf32>
    %21 = arith.truncf %20 : vector<290x32xf32> to vector<290x32xbf16>
    %c0_11 = arith.constant 0 : index
    %c0_12 = arith.constant 0 : index
    %c0_13 = arith.constant 0 : index
    %22 = vector.load %arg9[%c0_11, %c0_12, %c0_13] : memref<9x32x64xbf16, #tpu.memory_space<vmem>>, vector<1x32x64xbf16>
    %23 = vector.shape_cast %22 : vector<1x32x64xbf16> to vector<32x64xbf16>
    %cst_14 = arith.constant dense<0.000000e+00> : vector<290x64xf32>
    %24 = tpu.matmul %21, %23, %cst_14 {dimension_numbers = #tpu.dot_dimension_numbers<[1], [0], [0], [1], [0, 0, 1, 1], [], []>} : vector<290x32xbf16>, vector<32x64xbf16>, vector<290x64xf32> -> vector<290x64xf32>
    %c0_15 = arith.constant 0 : index
    %c0_16 = arith.constant 0 : index
    %c0_17 = arith.constant 0 : index
    %25 = vector.load %arg5[%c0_15, %c0_16, %c0_17] : memref<3x290x1xf32, #tpu.memory_space<vmem>>, vector<1x290x1xf32>
    %26 = vector.shape_cast %25 : vector<1x290x1xf32> to vector<290x1xf32>
    %27 = vector.broadcast %26 : vector<290x1xf32> to vector<290x64xf32>
    %28 = arith.mulf %24, %27 : vector<290x64xf32>
    %29 = arith.addf %19, %28 : vector<290x64xf32>
    %30 = vector.extract_strided_slice %18 {offsets = [1, 0], sizes = [290, 32], strides = [1, 1]} : vector<324x32xf32> to vector<290x32xf32>
    %31 = arith.truncf %30 : vector<290x32xf32> to vector<290x32xbf16>
    %c1 = arith.constant 1 : index
    %c0_18 = arith.constant 0 : index
    %c0_19 = arith.constant 0 : index
    %32 = vector.load %arg9[%c1, %c0_18, %c0_19] : memref<9x32x64xbf16, #tpu.memory_space<vmem>>, vector<1x32x64xbf16>
    %33 = vector.shape_cast %32 : vector<1x32x64xbf16> to vector<32x64xbf16>
    %cst_20 = arith.constant dense<0.000000e+00> : vector<290x64xf32>
    %34 = tpu.matmul %31, %33, %cst_20 {dimension_numbers = #tpu.dot_dimension_numbers<[1], [0], [0], [1], [0, 0, 1, 1], [], []>} : vector<290x32xbf16>, vector<32x64xbf16>, vector<290x64xf32> -> vector<290x64xf32>
    %35 = arith.addf %29, %34 : vector<290x64xf32>
    %36 = vector.extract_strided_slice %18 {offsets = [2, 0], sizes = [290, 32], strides = [1, 1]} : vector<324x32xf32> to vector<290x32xf32>
    %37 = arith.truncf %36 : vector<290x32xf32> to vector<290x32xbf16>
    %c2 = arith.constant 2 : index
    %c0_21 = arith.constant 0 : index
    %c0_22 = arith.constant 0 : index
    %38 = vector.load %arg9[%c2, %c0_21, %c0_22] : memref<9x32x64xbf16, #tpu.memory_space<vmem>>, vector<1x32x64xbf16>
    %39 = vector.shape_cast %38 : vector<1x32x64xbf16> to vector<32x64xbf16>
    %cst_23 = arith.constant dense<0.000000e+00> : vector<290x64xf32>
    %40 = tpu.matmul %37, %39, %cst_23 {dimension_numbers = #tpu.dot_dimension_numbers<[1], [0], [0], [1], [0, 0, 1, 1], [], []>} : vector<290x32xbf16>, vector<32x64xbf16>, vector<290x64xf32> -> vector<290x64xf32>
    %c2_24 = arith.constant 2 : index
    %c0_25 = arith.constant 0 : index
    %c0_26 = arith.constant 0 : index
    %41 = vector.load %arg5[%c2_24, %c0_25, %c0_26] : memref<3x290x1xf32, #tpu.memory_space<vmem>>, vector<1x290x1xf32>
    %42 = vector.shape_cast %41 : vector<1x290x1xf32> to vector<290x1xf32>
    %43 = vector.broadcast %42 : vector<290x1xf32> to vector<290x64xf32>
    %44 = arith.mulf %40, %43 : vector<290x64xf32>
    %45 = arith.addf %35, %44 : vector<290x64xf32>
    %46 = vector.extract_strided_slice %18 {offsets = [16, 0], sizes = [290, 32], strides = [1, 1]} : vector<324x32xf32> to vector<290x32xf32>
    %47 = arith.truncf %46 : vector<290x32xf32> to vector<290x32xbf16>
    %c3 = arith.constant 3 : index
    %c0_27 = arith.constant 0 : index
    %c0_28 = arith.constant 0 : index
    %48 = vector.load %arg9[%c3, %c0_27, %c0_28] : memref<9x32x64xbf16, #tpu.memory_space<vmem>>, vector<1x32x64xbf16>
    %49 = vector.shape_cast %48 : vector<1x32x64xbf16> to vector<32x64xbf16>
    %cst_29 = arith.constant dense<0.000000e+00> : vector<290x64xf32>
    %50 = tpu.matmul %47, %49, %cst_29 {dimension_numbers = #tpu.dot_dimension_numbers<[1], [0], [0], [1], [0, 0, 1, 1], [], []>} : vector<290x32xbf16>, vector<32x64xbf16>, vector<290x64xf32> -> vector<290x64xf32>
    %c0_30 = arith.constant 0 : index
    %c0_31 = arith.constant 0 : index
    %c0_32 = arith.constant 0 : index
    %51 = vector.load %arg5[%c0_30, %c0_31, %c0_32] : memref<3x290x1xf32, #tpu.memory_space<vmem>>, vector<1x290x1xf32>
    %52 = vector.shape_cast %51 : vector<1x290x1xf32> to vector<290x1xf32>
    %53 = vector.broadcast %52 : vector<290x1xf32> to vector<290x64xf32>
    %54 = arith.mulf %50, %53 : vector<290x64xf32>
    %55 = arith.addf %45, %54 : vector<290x64xf32>
    %56 = vector.extract_strided_slice %18 {offsets = [17, 0], sizes = [290, 32], strides = [1, 1]} : vector<324x32xf32> to vector<290x32xf32>
    %57 = arith.truncf %56 : vector<290x32xf32> to vector<290x32xbf16>
    %c4 = arith.constant 4 : index
    %c0_33 = arith.constant 0 : index
    %c0_34 = arith.constant 0 : index
    %58 = vector.load %arg9[%c4, %c0_33, %c0_34] : memref<9x32x64xbf16, #tpu.memory_space<vmem>>, vector<1x32x64xbf16>
    %59 = vector.shape_cast %58 : vector<1x32x64xbf16> to vector<32x64xbf16>
    %cst_35 = arith.constant dense<0.000000e+00> : vector<290x64xf32>
    %60 = tpu.matmul %57, %59, %cst_35 {dimension_numbers = #tpu.dot_dimension_numbers<[1], [0], [0], [1], [0, 0, 1, 1], [], []>} : vector<290x32xbf16>, vector<32x64xbf16>, vector<290x64xf32> -> vector<290x64xf32>
    %61 = arith.addf %55, %60 : vector<290x64xf32>
    %62 = vector.extract_strided_slice %18 {offsets = [18, 0], sizes = [290, 32], strides = [1, 1]} : vector<324x32xf32> to vector<290x32xf32>
    %63 = arith.truncf %62 : vector<290x32xf32> to vector<290x32xbf16>
    %c5 = arith.constant 5 : index
    %c0_36 = arith.constant 0 : index
    %c0_37 = arith.constant 0 : index
    %64 = vector.load %arg9[%c5, %c0_36, %c0_37] : memref<9x32x64xbf16, #tpu.memory_space<vmem>>, vector<1x32x64xbf16>
    %65 = vector.shape_cast %64 : vector<1x32x64xbf16> to vector<32x64xbf16>
    %cst_38 = arith.constant dense<0.000000e+00> : vector<290x64xf32>
    %66 = tpu.matmul %63, %65, %cst_38 {dimension_numbers = #tpu.dot_dimension_numbers<[1], [0], [0], [1], [0, 0, 1, 1], [], []>} : vector<290x32xbf16>, vector<32x64xbf16>, vector<290x64xf32> -> vector<290x64xf32>
    %c2_39 = arith.constant 2 : index
    %c0_40 = arith.constant 0 : index
    %c0_41 = arith.constant 0 : index
    %67 = vector.load %arg5[%c2_39, %c0_40, %c0_41] : memref<3x290x1xf32, #tpu.memory_space<vmem>>, vector<1x290x1xf32>
    %68 = vector.shape_cast %67 : vector<1x290x1xf32> to vector<290x1xf32>
    %69 = vector.broadcast %68 : vector<290x1xf32> to vector<290x64xf32>
    %70 = arith.mulf %66, %69 : vector<290x64xf32>
    %71 = arith.addf %61, %70 : vector<290x64xf32>
    %72 = vector.extract_strided_slice %18 {offsets = [32, 0], sizes = [290, 32], strides = [1, 1]} : vector<324x32xf32> to vector<290x32xf32>
    %73 = arith.truncf %72 : vector<290x32xf32> to vector<290x32xbf16>
    %c6 = arith.constant 6 : index
    %c0_42 = arith.constant 0 : index
    %c0_43 = arith.constant 0 : index
    %74 = vector.load %arg9[%c6, %c0_42, %c0_43] : memref<9x32x64xbf16, #tpu.memory_space<vmem>>, vector<1x32x64xbf16>
    %75 = vector.shape_cast %74 : vector<1x32x64xbf16> to vector<32x64xbf16>
    %cst_44 = arith.constant dense<0.000000e+00> : vector<290x64xf32>
    %76 = tpu.matmul %73, %75, %cst_44 {dimension_numbers = #tpu.dot_dimension_numbers<[1], [0], [0], [1], [0, 0, 1, 1], [], []>} : vector<290x32xbf16>, vector<32x64xbf16>, vector<290x64xf32> -> vector<290x64xf32>
    %c0_45 = arith.constant 0 : index
    %c0_46 = arith.constant 0 : index
    %c0_47 = arith.constant 0 : index
    %77 = vector.load %arg5[%c0_45, %c0_46, %c0_47] : memref<3x290x1xf32, #tpu.memory_space<vmem>>, vector<1x290x1xf32>
    %78 = vector.shape_cast %77 : vector<1x290x1xf32> to vector<290x1xf32>
    %79 = vector.broadcast %78 : vector<290x1xf32> to vector<290x64xf32>
    %80 = arith.mulf %76, %79 : vector<290x64xf32>
    %81 = arith.addf %71, %80 : vector<290x64xf32>
    %82 = vector.extract_strided_slice %18 {offsets = [33, 0], sizes = [290, 32], strides = [1, 1]} : vector<324x32xf32> to vector<290x32xf32>
    %83 = arith.truncf %82 : vector<290x32xf32> to vector<290x32xbf16>
    %c7 = arith.constant 7 : index
    %c0_48 = arith.constant 0 : index
    %c0_49 = arith.constant 0 : index
    %84 = vector.load %arg9[%c7, %c0_48, %c0_49] : memref<9x32x64xbf16, #tpu.memory_space<vmem>>, vector<1x32x64xbf16>
    %85 = vector.shape_cast %84 : vector<1x32x64xbf16> to vector<32x64xbf16>
    %cst_50 = arith.constant dense<0.000000e+00> : vector<290x64xf32>
    %86 = tpu.matmul %83, %85, %cst_50 {dimension_numbers = #tpu.dot_dimension_numbers<[1], [0], [0], [1], [0, 0, 1, 1], [], []>} : vector<290x32xbf16>, vector<32x64xbf16>, vector<290x64xf32> -> vector<290x64xf32>
    %87 = arith.addf %81, %86 : vector<290x64xf32>
    %88 = vector.extract_strided_slice %18 {offsets = [34, 0], sizes = [290, 32], strides = [1, 1]} : vector<324x32xf32> to vector<290x32xf32>
    %89 = arith.truncf %88 : vector<290x32xf32> to vector<290x32xbf16>
    %c8 = arith.constant 8 : index
    %c0_51 = arith.constant 0 : index
    %c0_52 = arith.constant 0 : index
    %90 = vector.load %arg9[%c8, %c0_51, %c0_52] : memref<9x32x64xbf16, #tpu.memory_space<vmem>>, vector<1x32x64xbf16>
    %91 = vector.shape_cast %90 : vector<1x32x64xbf16> to vector<32x64xbf16>
    %cst_53 = arith.constant dense<0.000000e+00> : vector<290x64xf32>
    %92 = tpu.matmul %89, %91, %cst_53 {dimension_numbers = #tpu.dot_dimension_numbers<[1], [0], [0], [1], [0, 0, 1, 1], [], []>} : vector<290x32xbf16>, vector<32x64xbf16>, vector<290x64xf32> -> vector<290x64xf32>
    %c2_54 = arith.constant 2 : index
    %c0_55 = arith.constant 0 : index
    %c0_56 = arith.constant 0 : index
    %93 = vector.load %arg5[%c2_54, %c0_55, %c0_56] : memref<3x290x1xf32, #tpu.memory_space<vmem>>, vector<1x290x1xf32>
    %94 = vector.shape_cast %93 : vector<1x290x1xf32> to vector<290x1xf32>
    %95 = vector.broadcast %94 : vector<290x1xf32> to vector<290x64xf32>
    %96 = arith.mulf %92, %95 : vector<290x64xf32>
    %97 = arith.addf %87, %96 : vector<290x64xf32>
    %c0_57 = arith.constant 0 : index
    %c0_58 = arith.constant 0 : index
    %98 = vector.load %arg10[%c0_57, %c0_58] : memref<1x64xf32, #tpu.memory_space<vmem>>, vector<1x64xf32>
    %99 = vector.broadcast %98 : vector<1x64xf32> to vector<290x64xf32>
    %100 = arith.addf %97, %99 : vector<290x64xf32>
    %c0_59 = arith.constant 0 : index
    %c0_60 = arith.constant 0 : index
    %c0_61 = arith.constant 0 : index
    %101 = vector.load %arg2[%c0_59, %c0_60, %c0_61] : memref<1x1x128xf32, #tpu.memory_space<vmem>>, vector<1x1x128xf32>
    %102 = vector.shape_cast %101 : vector<1x1x128xf32> to vector<1x128xf32>
    %103 = arith.truncf %102 : vector<1x128xf32> to vector<1x128xbf16>
    %c0_62 = arith.constant 0 : index
    %c0_63 = arith.constant 0 : index
    %104 = vector.load %arg11[%c0_62, %c0_63] : memref<128x64xbf16, #tpu.memory_space<vmem>>, vector<128x64xbf16>
    %cst_64 = arith.constant dense<0.000000e+00> : vector<1x64xf32>
    %105 = tpu.matmul %103, %104, %cst_64 {dimension_numbers = #tpu.dot_dimension_numbers<[1], [0], [0], [1], [0, 0, 1, 1], [], []>} : vector<1x128xbf16>, vector<128x64xbf16>, vector<1x64xf32> -> vector<1x64xf32>
    %c0_65 = arith.constant 0 : index
    %c0_66 = arith.constant 0 : index
    %106 = vector.load %arg12[%c0_65, %c0_66] : memref<1x64xf32, #tpu.memory_space<vmem>>, vector<1x64xf32>
    %107 = arith.addf %105, %106 : vector<1x64xf32>
    %c0_67 = arith.constant 0 : index
    %c0_68 = arith.constant 0 : index
    %108 = vector.load %arg13[%c0_67, %c0_68] : memref<128x64xbf16, #tpu.memory_space<vmem>>, vector<128x64xbf16>
    %cst_69 = arith.constant dense<0.000000e+00> : vector<1x64xf32>
    %109 = tpu.matmul %103, %108, %cst_69 {dimension_numbers = #tpu.dot_dimension_numbers<[1], [0], [0], [1], [0, 0, 1, 1], [], []>} : vector<1x128xbf16>, vector<128x64xbf16>, vector<1x64xf32> -> vector<1x64xf32>
    %c0_70 = arith.constant 0 : index
    %c0_71 = arith.constant 0 : index
    %110 = vector.load %arg14[%c0_70, %c0_71] : memref<1x64xf32, #tpu.memory_space<vmem>>, vector<1x64xf32>
    %111 = arith.addf %109, %110 : vector<1x64xf32>
    %112 = vector.broadcast %107 : vector<1x64xf32> to vector<290x64xf32>
    %113 = arith.mulf %100, %112 : vector<290x64xf32>
    %114 = vector.broadcast %111 : vector<1x64xf32> to vector<290x64xf32>
    %115 = arith.addf %113, %114 : vector<290x64xf32>
    %c0_72 = arith.constant 0 : index
    %c0_73 = arith.constant 0 : index
    %116 = vector.load %arg15[%c0_72, %c0_73] : memref<1x64xf32, #tpu.memory_space<vmem>>, vector<1x64xf32>
    %117 = vector.broadcast %116 : vector<1x64xf32> to vector<290x64xf32>
    %118 = arith.mulf %115, %117 : vector<290x64xf32>
    %c0_74 = arith.constant 0 : index
    %c0_75 = arith.constant 0 : index
    %119 = vector.load %arg16[%c0_74, %c0_75] : memref<1x64xf32, #tpu.memory_space<vmem>>, vector<1x64xf32>
    %120 = vector.broadcast %119 : vector<1x64xf32> to vector<290x64xf32>
    %121 = arith.addf %118, %120 : vector<290x64xf32>
    %cst_76 = arith.constant 0.000000e+00 : f32
    %122 = vector.broadcast %cst_76 : f32 to vector<290x64xf32>
    %123 = arith.subf %122, %121 : vector<290x64xf32>
    %124 = math.exp %123 : vector<290x64xf32>
    %cst_77 = arith.constant 1.000000e+00 : f32
    %125 = vector.broadcast %cst_77 : f32 to vector<290x64xf32>
    %126 = arith.addf %125, %124 : vector<290x64xf32>
    %cst_78 = arith.constant 1.000000e+00 : f32
    %127 = vector.broadcast %cst_78 : f32 to vector<290x64xf32>
    %128 = arith.divf %127, %126 : vector<290x64xf32>
    %129 = arith.mulf %121, %128 : vector<290x64xf32>
    %c0_79 = arith.constant 0 : index
    %c0_80 = arith.constant 0 : index
    %130 = vector.load %arg4[%c0_79, %c0_80] : memref<290x1xf32, #tpu.memory_space<vmem>>, vector<290x1xf32>
    %131 = vector.broadcast %130 : vector<290x1xf32> to vector<290x64xf32>
    %132 = arith.mulf %129, %131 : vector<290x64xf32>
    %cst_81 = arith.constant 0.000000e+00 : f32
    %133 = vector.broadcast %cst_81 : f32 to vector<256x64xf32>
    %134 = vector.extract_strided_slice %132 {offsets = [0, 0], sizes = [256, 64], strides = [1, 1]} : vector<290x64xf32> to vector<256x64xf32>
    %135 = arith.truncf %134 : vector<256x64xf32> to vector<256x64xbf16>
    %c0_82 = arith.constant 0 : index
    %c0_83 = arith.constant 0 : index
    %c0_84 = arith.constant 0 : index
    %136 = vector.load %arg17[%c0_82, %c0_83, %c0_84] : memref<9x64x64xbf16, #tpu.memory_space<vmem>>, vector<1x64x64xbf16>
    %137 = vector.shape_cast %136 : vector<1x64x64xbf16> to vector<64x64xbf16>
    %cst_85 = arith.constant dense<0.000000e+00> : vector<256x64xf32>
    %138 = tpu.matmul %135, %137, %cst_85 {dimension_numbers = #tpu.dot_dimension_numbers<[1], [0], [0], [1], [0, 0, 1, 1], [], []>} : vector<256x64xbf16>, vector<64x64xbf16>, vector<256x64xf32> -> vector<256x64xf32>
    %c0_86 = arith.constant 0 : index
    %c0_87 = arith.constant 0 : index
    %c0_88 = arith.constant 0 : index
    %139 = vector.load %arg6[%c0_86, %c0_87, %c0_88] : memref<3x256x1xf32, #tpu.memory_space<vmem>>, vector<1x256x1xf32>
    %140 = vector.shape_cast %139 : vector<1x256x1xf32> to vector<256x1xf32>
    %141 = vector.broadcast %140 : vector<256x1xf32> to vector<256x64xf32>
    %142 = arith.mulf %138, %141 : vector<256x64xf32>
    %143 = arith.addf %133, %142 : vector<256x64xf32>
    %144 = vector.extract_strided_slice %132 {offsets = [1, 0], sizes = [256, 64], strides = [1, 1]} : vector<290x64xf32> to vector<256x64xf32>
    %145 = arith.truncf %144 : vector<256x64xf32> to vector<256x64xbf16>
    %c1_89 = arith.constant 1 : index
    %c0_90 = arith.constant 0 : index
    %c0_91 = arith.constant 0 : index
    %146 = vector.load %arg17[%c1_89, %c0_90, %c0_91] : memref<9x64x64xbf16, #tpu.memory_space<vmem>>, vector<1x64x64xbf16>
    %147 = vector.shape_cast %146 : vector<1x64x64xbf16> to vector<64x64xbf16>
    %cst_92 = arith.constant dense<0.000000e+00> : vector<256x64xf32>
    %148 = tpu.matmul %145, %147, %cst_92 {dimension_numbers = #tpu.dot_dimension_numbers<[1], [0], [0], [1], [0, 0, 1, 1], [], []>} : vector<256x64xbf16>, vector<64x64xbf16>, vector<256x64xf32> -> vector<256x64xf32>
    %149 = arith.addf %143, %148 : vector<256x64xf32>
    %150 = vector.extract_strided_slice %132 {offsets = [2, 0], sizes = [256, 64], strides = [1, 1]} : vector<290x64xf32> to vector<256x64xf32>
    %151 = arith.truncf %150 : vector<256x64xf32> to vector<256x64xbf16>
    %c2_93 = arith.constant 2 : index
    %c0_94 = arith.constant 0 : index
    %c0_95 = arith.constant 0 : index
    %152 = vector.load %arg17[%c2_93, %c0_94, %c0_95] : memref<9x64x64xbf16, #tpu.memory_space<vmem>>, vector<1x64x64xbf16>
    %153 = vector.shape_cast %152 : vector<1x64x64xbf16> to vector<64x64xbf16>
    %cst_96 = arith.constant dense<0.000000e+00> : vector<256x64xf32>
    %154 = tpu.matmul %151, %153, %cst_96 {dimension_numbers = #tpu.dot_dimension_numbers<[1], [0], [0], [1], [0, 0, 1, 1], [], []>} : vector<256x64xbf16>, vector<64x64xbf16>, vector<256x64xf32> -> vector<256x64xf32>
    %c2_97 = arith.constant 2 : index
    %c0_98 = arith.constant 0 : index
    %c0_99 = arith.constant 0 : index
    %155 = vector.load %arg6[%c2_97, %c0_98, %c0_99] : memref<3x256x1xf32, #tpu.memory_space<vmem>>, vector<1x256x1xf32>
    %156 = vector.shape_cast %155 : vector<1x256x1xf32> to vector<256x1xf32>
    %157 = vector.broadcast %156 : vector<256x1xf32> to vector<256x64xf32>
    %158 = arith.mulf %154, %157 : vector<256x64xf32>
    %159 = arith.addf %149, %158 : vector<256x64xf32>
    %160 = vector.extract_strided_slice %132 {offsets = [16, 0], sizes = [256, 64], strides = [1, 1]} : vector<290x64xf32> to vector<256x64xf32>
    %161 = arith.truncf %160 : vector<256x64xf32> to vector<256x64xbf16>
    %c3_100 = arith.constant 3 : index
    %c0_101 = arith.constant 0 : index
    %c0_102 = arith.constant 0 : index
    %162 = vector.load %arg17[%c3_100, %c0_101, %c0_102] : memref<9x64x64xbf16, #tpu.memory_space<vmem>>, vector<1x64x64xbf16>
    %163 = vector.shape_cast %162 : vector<1x64x64xbf16> to vector<64x64xbf16>
    %cst_103 = arith.constant dense<0.000000e+00> : vector<256x64xf32>
    %164 = tpu.matmul %161, %163, %cst_103 {dimension_numbers = #tpu.dot_dimension_numbers<[1], [0], [0], [1], [0, 0, 1, 1], [], []>} : vector<256x64xbf16>, vector<64x64xbf16>, vector<256x64xf32> -> vector<256x64xf32>
    %c0_104 = arith.constant 0 : index
    %c0_105 = arith.constant 0 : index
    %c0_106 = arith.constant 0 : index
    %165 = vector.load %arg6[%c0_104, %c0_105, %c0_106] : memref<3x256x1xf32, #tpu.memory_space<vmem>>, vector<1x256x1xf32>
    %166 = vector.shape_cast %165 : vector<1x256x1xf32> to vector<256x1xf32>
    %167 = vector.broadcast %166 : vector<256x1xf32> to vector<256x64xf32>
    %168 = arith.mulf %164, %167 : vector<256x64xf32>
    %169 = arith.addf %159, %168 : vector<256x64xf32>
    %170 = vector.extract_strided_slice %132 {offsets = [17, 0], sizes = [256, 64], strides = [1, 1]} : vector<290x64xf32> to vector<256x64xf32>
    %171 = arith.truncf %170 : vector<256x64xf32> to vector<256x64xbf16>
    %c4_107 = arith.constant 4 : index
    %c0_108 = arith.constant 0 : index
    %c0_109 = arith.constant 0 : index
    %172 = vector.load %arg17[%c4_107, %c0_108, %c0_109] : memref<9x64x64xbf16, #tpu.memory_space<vmem>>, vector<1x64x64xbf16>
    %173 = vector.shape_cast %172 : vector<1x64x64xbf16> to vector<64x64xbf16>
    %cst_110 = arith.constant dense<0.000000e+00> : vector<256x64xf32>
    %174 = tpu.matmul %171, %173, %cst_110 {dimension_numbers = #tpu.dot_dimension_numbers<[1], [0], [0], [1], [0, 0, 1, 1], [], []>} : vector<256x64xbf16>, vector<64x64xbf16>, vector<256x64xf32> -> vector<256x64xf32>
    %175 = arith.addf %169, %174 : vector<256x64xf32>
    %176 = vector.extract_strided_slice %132 {offsets = [18, 0], sizes = [256, 64], strides = [1, 1]} : vector<290x64xf32> to vector<256x64xf32>
    %177 = arith.truncf %176 : vector<256x64xf32> to vector<256x64xbf16>
    %c5_111 = arith.constant 5 : index
    %c0_112 = arith.constant 0 : index
    %c0_113 = arith.constant 0 : index
    %178 = vector.load %arg17[%c5_111, %c0_112, %c0_113] : memref<9x64x64xbf16, #tpu.memory_space<vmem>>, vector<1x64x64xbf16>
    %179 = vector.shape_cast %178 : vector<1x64x64xbf16> to vector<64x64xbf16>
    %cst_114 = arith.constant dense<0.000000e+00> : vector<256x64xf32>
    %180 = tpu.matmul %177, %179, %cst_114 {dimension_numbers = #tpu.dot_dimension_numbers<[1], [0], [0], [1], [0, 0, 1, 1], [], []>} : vector<256x64xbf16>, vector<64x64xbf16>, vector<256x64xf32> -> vector<256x64xf32>
    %c2_115 = arith.constant 2 : index
    %c0_116 = arith.constant 0 : index
    %c0_117 = arith.constant 0 : index
    %181 = vector.load %arg6[%c2_115, %c0_116, %c0_117] : memref<3x256x1xf32, #tpu.memory_space<vmem>>, vector<1x256x1xf32>
    %182 = vector.shape_cast %181 : vector<1x256x1xf32> to vector<256x1xf32>
    %183 = vector.broadcast %182 : vector<256x1xf32> to vector<256x64xf32>
    %184 = arith.mulf %180, %183 : vector<256x64xf32>
    %185 = arith.addf %175, %184 : vector<256x64xf32>
    %186 = vector.extract_strided_slice %132 {offsets = [32, 0], sizes = [256, 64], strides = [1, 1]} : vector<290x64xf32> to vector<256x64xf32>
    %187 = arith.truncf %186 : vector<256x64xf32> to vector<256x64xbf16>
    %c6_118 = arith.constant 6 : index
    %c0_119 = arith.constant 0 : index
    %c0_120 = arith.constant 0 : index
    %188 = vector.load %arg17[%c6_118, %c0_119, %c0_120] : memref<9x64x64xbf16, #tpu.memory_space<vmem>>, vector<1x64x64xbf16>
    %189 = vector.shape_cast %188 : vector<1x64x64xbf16> to vector<64x64xbf16>
    %cst_121 = arith.constant dense<0.000000e+00> : vector<256x64xf32>
    %190 = tpu.matmul %187, %189, %cst_121 {dimension_numbers = #tpu.dot_dimension_numbers<[1], [0], [0], [1], [0, 0, 1, 1], [], []>} : vector<256x64xbf16>, vector<64x64xbf16>, vector<256x64xf32> -> vector<256x64xf32>
    %c0_122 = arith.constant 0 : index
    %c0_123 = arith.constant 0 : index
    %c0_124 = arith.constant 0 : index
    %191 = vector.load %arg6[%c0_122, %c0_123, %c0_124] : memref<3x256x1xf32, #tpu.memory_space<vmem>>, vector<1x256x1xf32>
    %192 = vector.shape_cast %191 : vector<1x256x1xf32> to vector<256x1xf32>
    %193 = vector.broadcast %192 : vector<256x1xf32> to vector<256x64xf32>
    %194 = arith.mulf %190, %193 : vector<256x64xf32>
    %195 = arith.addf %185, %194 : vector<256x64xf32>
    %196 = vector.extract_strided_slice %132 {offsets = [33, 0], sizes = [256, 64], strides = [1, 1]} : vector<290x64xf32> to vector<256x64xf32>
    %197 = arith.truncf %196 : vector<256x64xf32> to vector<256x64xbf16>
    %c7_125 = arith.constant 7 : index
    %c0_126 = arith.constant 0 : index
    %c0_127 = arith.constant 0 : index
    %198 = vector.load %arg17[%c7_125, %c0_126, %c0_127] : memref<9x64x64xbf16, #tpu.memory_space<vmem>>, vector<1x64x64xbf16>
    %199 = vector.shape_cast %198 : vector<1x64x64xbf16> to vector<64x64xbf16>
    %cst_128 = arith.constant dense<0.000000e+00> : vector<256x64xf32>
    %200 = tpu.matmul %197, %199, %cst_128 {dimension_numbers = #tpu.dot_dimension_numbers<[1], [0], [0], [1], [0, 0, 1, 1], [], []>} : vector<256x64xbf16>, vector<64x64xbf16>, vector<256x64xf32> -> vector<256x64xf32>
    %201 = arith.addf %195, %200 : vector<256x64xf32>
    %202 = vector.extract_strided_slice %132 {offsets = [34, 0], sizes = [256, 64], strides = [1, 1]} : vector<290x64xf32> to vector<256x64xf32>
    %203 = arith.truncf %202 : vector<256x64xf32> to vector<256x64xbf16>
    %c8_129 = arith.constant 8 : index
    %c0_130 = arith.constant 0 : index
    %c0_131 = arith.constant 0 : index
    %204 = vector.load %arg17[%c8_129, %c0_130, %c0_131] : memref<9x64x64xbf16, #tpu.memory_space<vmem>>, vector<1x64x64xbf16>
    %205 = vector.shape_cast %204 : vector<1x64x64xbf16> to vector<64x64xbf16>
    %cst_132 = arith.constant dense<0.000000e+00> : vector<256x64xf32>
    %206 = tpu.matmul %203, %205, %cst_132 {dimension_numbers = #tpu.dot_dimension_numbers<[1], [0], [0], [1], [0, 0, 1, 1], [], []>} : vector<256x64xbf16>, vector<64x64xbf16>, vector<256x64xf32> -> vector<256x64xf32>
    %c2_133 = arith.constant 2 : index
    %c0_134 = arith.constant 0 : index
    %c0_135 = arith.constant 0 : index
    %207 = vector.load %arg6[%c2_133, %c0_134, %c0_135] : memref<3x256x1xf32, #tpu.memory_space<vmem>>, vector<1x256x1xf32>
    %208 = vector.shape_cast %207 : vector<1x256x1xf32> to vector<256x1xf32>
    %209 = vector.broadcast %208 : vector<256x1xf32> to vector<256x64xf32>
    %210 = arith.mulf %206, %209 : vector<256x64xf32>
    %211 = arith.addf %201, %210 : vector<256x64xf32>
    %c0_136 = arith.constant 0 : index
    %c0_137 = arith.constant 0 : index
    %212 = vector.load %arg18[%c0_136, %c0_137] : memref<1x64xf32, #tpu.memory_space<vmem>>, vector<1x64xf32>
    %213 = vector.broadcast %212 : vector<1x64xf32> to vector<256x64xf32>
    %214 = arith.addf %211, %213 : vector<256x64xf32>
    %215 = vector.extract_strided_slice %1 {offsets = [34, 0], sizes = [256, 32], strides = [1, 1]} : vector<324x32xf32> to vector<256x32xf32>
    %216 = arith.truncf %215 : vector<256x32xf32> to vector<256x32xbf16>
    %c0_138 = arith.constant 0 : index
    %c0_139 = arith.constant 0 : index
    %217 = vector.load %arg19[%c0_138, %c0_139] : memref<32x64xbf16, #tpu.memory_space<vmem>>, vector<32x64xbf16>
    %cst_140 = arith.constant dense<0.000000e+00> : vector<256x64xf32>
    %218 = tpu.matmul %216, %217, %cst_140 {dimension_numbers = #tpu.dot_dimension_numbers<[1], [0], [0], [1], [0, 0, 1, 1], [], []>} : vector<256x32xbf16>, vector<32x64xbf16>, vector<256x64xf32> -> vector<256x64xf32>
    %c0_141 = arith.constant 0 : index
    %c0_142 = arith.constant 0 : index
    %219 = vector.load %arg20[%c0_141, %c0_142] : memref<1x64xf32, #tpu.memory_space<vmem>>, vector<1x64xf32>
    %220 = vector.broadcast %219 : vector<1x64xf32> to vector<256x64xf32>
    %221 = arith.addf %218, %220 : vector<256x64xf32>
    %222 = arith.addf %214, %221 : vector<256x64xf32>
    %c0_143 = arith.constant 0 : index
    %c0_144 = arith.constant 0 : index
    %c0_145 = arith.constant 0 : index
    %223 = vector.load %arg21[%c0_143, %c0_144, %c0_145] : memref<1x256x64xf32, #tpu.memory_space<vmem>>, vector<1x256x64xf32>
    %224 = vector.shape_cast %223 : vector<1x256x64xf32> to vector<256x64xf32>
    %225 = vector.shape_cast %222 : vector<256x64xf32> to vector<1x256x64xf32>
    tpu.vector_store %arg21[%c0_143, %c0_144, %c0_145], %225 {strides = array<i32>} : memref<1x256x64xf32, #tpu.memory_space<vmem>>, vector<1x256x64xf32>,
    return
  }
  func.func @transform_0(%arg0: i32) -> (i32, i32, i32) {
    %c0_i32 = arith.constant 0 : i32
    %c0_i32_0 = arith.constant 0 : i32
    %c0_i32_1 = arith.constant 0 : i32
    return %arg0, %c0_i32, %c0_i32_0 : i32, i32, i32
  }
  func.func @transform_1(%arg0: i32) -> (i32, i32, i32) {
    %c0_i32 = arith.constant 0 : i32
    %c0_i32_0 = arith.constant 0 : i32
    %c0_i32_1 = arith.constant 0 : i32
    return %arg0, %c0_i32, %c0_i32_0 : i32, i32, i32
  }
  func.func @transform_2(%arg0: i32) -> (i32, i32) {
    %c0_i32 = arith.constant 0 : i32
    %c0_i32_0 = arith.constant 0 : i32
    %c0_i32_1 = arith.constant 0 : i32
    return %c0_i32, %c0_i32_0 : i32, i32
  }
  func.func @transform_3(%arg0: i32) -> (i32, i32) {
    %c0_i32 = arith.constant 0 : i32
    %c0_i32_0 = arith.constant 0 : i32
    %c0_i32_1 = arith.constant 0 : i32
    return %c0_i32, %c0_i32_0 : i32, i32
  }
  func.func @transform_4(%arg0: i32) -> (i32, i32, i32) {
    %c0_i32 = arith.constant 0 : i32
    %c0_i32_0 = arith.constant 0 : i32
    %c0_i32_1 = arith.constant 0 : i32
    %c0_i32_2 = arith.constant 0 : i32
    return %c0_i32, %c0_i32_0, %c0_i32_1 : i32, i32, i32
  }
  func.func @transform_5(%arg0: i32) -> (i32, i32, i32) {
    %c0_i32 = arith.constant 0 : i32
    %c0_i32_0 = arith.constant 0 : i32
    %c0_i32_1 = arith.constant 0 : i32
    %c0_i32_2 = arith.constant 0 : i32
    return %c0_i32, %c0_i32_0, %c0_i32_1 : i32, i32, i32
  }
  func.func @transform_6(%arg0: i32) -> (i32, i32) {
    %c0_i32 = arith.constant 0 : i32
    %c0_i32_0 = arith.constant 0 : i32
    %c0_i32_1 = arith.constant 0 : i32
    return %c0_i32, %c0_i32_0 : i32, i32
  }
  func.func @transform_7(%arg0: i32) -> (i32, i32) {
    %c0_i32 = arith.constant 0 : i32
    %c0_i32_0 = arith.constant 0 : i32
    %c0_i32_1 = arith.constant 0 : i32
    return %c0_i32, %c0_i32_0 : i32, i32
  }
  func.func @transform_8(%arg0: i32) -> (i32, i32, i32) {
    %c0_i32 = arith.constant 0 : i32
    %c0_i32_0 = arith.constant 0 : i32
    %c0_i32_1 = arith.constant 0 : i32
    %c0_i32_2 = arith.constant 0 : i32
    return %c0_i32, %c0_i32_0, %c0_i32_1 : i32, i32, i32
  }
  func.func @transform_9(%arg0: i32) -> (i32, i32) {
    %c0_i32 = arith.constant 0 : i32
    %c0_i32_0 = arith.constant 0 : i32
    %c0_i32_1 = arith.constant 0 : i32
    return %c0_i32, %c0_i32_0 : i32, i32
  }
  func.func @transform_10(%arg0: i32) -> (i32, i32) {
    %c0_i32 = arith.constant 0 : i32
    %c0_i32_0 = arith.constant 0 : i32
    %c0_i32_1 = arith.constant 0 : i32
    return %c0_i32, %c0_i32_0 : i32, i32
  }
  func.func @transform_11(%arg0: i32) -> (i32, i32) {
    %c0_i32 = arith.constant 0 : i32
    %c0_i32_0 = arith.constant 0 : i32
    %c0_i32_1 = arith.constant 0 : i32
    return %c0_i32, %c0_i32_0 : i32, i32
  }
  func.func @transform_12(%arg0: i32) -> (i32, i32) {
    %c0_i32 = arith.constant 0 : i32
    %c0_i32_0 = arith.constant 0 : i32
    %c0_i32_1 = arith.constant 0 : i32
    return %c0_i32, %c0_i32_0 : i32, i32
  }
  func.func @transform_13(%arg0: i32) -> (i32, i32) {
    %c0_i32 = arith.constant 0 : i32
    %c0_i32_0 = arith.constant 0 : i32
    %c0_i32_1 = arith.constant 0 : i32
    return %c0_i32, %c0_i32_0 : i32, i32
  }
  func.func @transform_14(%arg0: i32) -> (i32, i32) {
    %c0_i32 = arith.constant 0 : i32
    %c0_i32_0 = arith.constant 0 : i32
    %c0_i32_1 = arith.constant 0 : i32
    return %c0_i32, %c0_i32_0 : i32, i32
  }
  func.func @transform_15(%arg0: i32) -> (i32, i32) {
    %c0_i32 = arith.constant 0 : i32
    %c0_i32_0 = arith.constant 0 : i32
    %c0_i32_1 = arith.constant 0 : i32
    return %c0_i32, %c0_i32_0 : i32, i32
  }
  func.func @transform_16(%arg0: i32) -> (i32, i32, i32) {
    %c0_i32 = arith.constant 0 : i32
    %c0_i32_0 = arith.constant 0 : i32
    %c0_i32_1 = arith.constant 0 : i32
    %c0_i32_2 = arith.constant 0 : i32
    return %c0_i32, %c0_i32_0, %c0_i32_1 : i32, i32, i32
  }
  func.func @transform_17(%arg0: i32) -> (i32, i32) {
    %c0_i32 = arith.constant 0 : i32
    %c0_i32_0 = arith.constant 0 : i32
    %c0_i32_1 = arith.constant 0 : i32
    return %c0_i32, %c0_i32_0 : i32, i32
  }
  func.func @transform_18(%arg0: i32) -> (i32, i32) {
    %c0_i32 = arith.constant 0 : i32
    %c0_i32_0 = arith.constant 0 : i32
    %c0_i32_1 = arith.constant 0 : i32
    return %c0_i32, %c0_i32_0 : i32, i32
  }
  func.func @transform_19(%arg0: i32) -> (i32, i32) {
    %c0_i32 = arith.constant 0 : i32
    %c0_i32_0 = arith.constant 0 : i32
    %c0_i32_1 = arith.constant 0 : i32
    return %c0_i32, %c0_i32_0 : i32, i32
  }
  func.func @transform_20(%arg0: i32) -> (i32, i32, i32) {
    %c0_i32 = arith.constant 0 : i32
    %c0_i32_0 = arith.constant 0 : i32
    %c0_i32_1 = arith.constant 0 : i32
    return %arg0, %c0_i32, %c0_i32_0 : i32, i32, i32
  }
}

</mosaic_0001>

<bundles_post_ra>
// kernel: tpu_custom_call.1
= control target key start
LH: loop header
LB: loop body
LE: loop exit
PB: predicated region body
PF: predicated region fallthrough
CT: control target
= control target key end

     0   :  { %s17263_s0 = inlined_call_operand.vmem [shape: f32[2,324,32], index: 0, kind: input, shape index: {}]   ;;  %s17264_s1 = inlined_call_operand.vmem [shape: f32[2,1,128], index: 1, kind: input, shape index: {}]   ;;  %s17265_s2 = inlined_call_operand.vmem [shape: f32[324,1], index: 2, kind: input, shape index: {}]   ;;  %s17266_s3 = inlined_call_operand.vmem [shape: f32[290,1], index: 3, kind: input, shape index: {}]   ;;  %s17267_s4 = inlined_call_operand.vmem [shape: f32[3,290,1], index: 4, kind: input, shape index: {}]   ;;  %s17268_s5 = inlined_call_operand.vmem [shape: f32[3,256,1], index: 5, kind: input, shape index: {}]   ;;  %s17269_s6 = inlined_call_operand.vmem [shape: f32[1,32], index: 6, kind: input, shape index: {}]   ;;  %s17270_s7 = inlined_call_operand.vmem [shape: f32[1,32], index: 7, kind: input, shape index: {}]   ;;  %s17271_s8 = inlined_call_operand.vmem [shape: bf16[9,32,64], index: 8, kind: input, shape index: {}]   ;;  %s17272_s9 = inlined_call_operand.vmem [shape: f32[1,64], index: 9, kind: input, shape index: {}]   ;;  %s17273_s10 = inlined_call_operand.vmem [shape: bf16[128,64], index: 10, kind: input, shape index: {}]   ;;  %s17274_s11 = inlined_call_operand.vmem [shape: f32[1,64], index: 11, kind: input, shape index: {}]   ;;  %s17275_s12 = inlined_call_operand.vmem [shape: bf16[128,64], index: 12, kind: input, shape index: {}]   ;;  %s17276_s13 = inlined_call_operand.vmem [shape: f32[1,64], index: 13, kind: input, shape index: {}]   ;;  %s17277_s14 = inlined_call_operand.vmem [shape: f32[1,64], index: 14, kind: input, shape index: {}]   ;;  %s17278_s15 = inlined_call_operand.vmem [shape: f32[1,64], index: 15, kind: input, shape index: {}]   ;;  %s17279_s16 = inlined_call_operand.vmem [shape: bf16[9,64,64], index: 16, kind: input, shape index: {}]   ;;  %s17280_s17 = inlined_call_operand.vmem [shape: f32[1,64], index: 17, kind: input, shape index: {}]   ;;  %s17281_s18 = inlined_call_operand.vmem [shape: bf16[32,64], index: 18, kind: input, shape index: {}]   ;;  %s17282_s19 = inlined_call_operand.vmem [shape: f32[1,64], index: 19, kind: input, shape index: {}]   ;;  %s17283_s20 = inlined_call_operand.vmem [shape: f32[2,256,64], index: 20, kind: output, shape index: {}]  }
   0x1   :  { %17594 = sst [smem:[#allocation189_spill]] %s17263_s0 }
   0x2   :  { %17595 = sst [smem:[#allocation190_spill]] %s17264_s1  ;;  %s11750_s1 = smov 0  }
   0x3   :  { %17596 = sst [smem:[#allocation191_spill]] %s17265_s2 }
   0x4   :  { %17597 = sst [smem:[#allocation192_spill]] %s17266_s3 }
   0x5   :  { %17598 = sst [smem:[#allocation193_spill]] %s17267_s4 }
   0x6 LB: > { %s9055_s22 = sadd.s32 4294967295, %s11640_s1   ;;  %p9059_p0 = scmp.ge.s32.totalorder %s11640_s1, 1  ;;  %s11640_s1 = sphi %s11750_s1, %s30_s1  }
   0x7   : > { %p570_p1 = scmp.lt.s32.totalorder %s11640_s1, 3 }
   0x9   : > { %p571_p2 = pnand %p9059_p0, %p570_p1 }
   0xb   : > { %574 = sbr.rel (%p571_p2) target bundleno = 1671 (0x687), region = 100 }
  0x10   : > { %s17599_s2 = sld [smem:[#allocation191_spill]]  ;;  %v11642_v2 = vmov 0   ;;  %v17287_v5 = vmov 0.0   ;;  %vm11644_vm0 = vmmov 0   ;;  %p631_p3 = scmp.lt.s32.totalorder %s9055_s22, 1  ;;  %v11220_v14 = vld [vmem:[%s17271_s8 + $0x8] sm:$0xff]  }
  0x11   : > { %11219 = vset.pattern.permute.xlu1 %v11642_v2  ;;  %11218 = vset.pattern.permute.xlu0 %v11642_v2  ;;  %v11221_v17 = vld [vmem:[%s17271_s8] sm:$0xff]   ;;  %v11829_v20 = vld [vmem:[%s17271_s8 + $0x18] sm:$0xff]   ;;  %v11842_v23 = vld [vmem:[%s17271_s8 + $0x10] sm:$0xff]   ;;  %s17600_s21 = sld [smem:[#allocation189_spill]]  ;;  %vm1391_vm1 = vcmask 261120   ;;  %vm2381_vm3 = vcmask 1046528  }
  0x12   : > { %10046 = vmatprep.subr.bf16.mxu0 %v17287_v5  ;;  %11202 = vmatprep.subr.bf16.mxu1 %v17287_v5  ;;  %s18599_s22 = smov (!%p631_p3, %s9055_s22), 1  ;;  %v11944_v56 = vld [vmem:[%s17269_s6] ss:$0 sm:$0xff]  ;;  %s17613_s30 = sld [smem:[#allocation193_spill]]  ;;  %vm1934_vm2 = vsmask.f32 7424 }
  0x13   : > { %10050 = vmatprep.mubr.msk.bf16.mxu0 %vm11644_vm0, %v17287_v5  ;;  %10134 = vmatprep.mubr.msk.bf16.mxu1 %vm11644_vm0, %v17287_v5  ;;  %s11206_s23 = smul.u32 328, %s18599_s22  ;;  %v11957_v61 = vld [vmem:[%s17270_s7] ss:$0 sm:$0xff]  ;;  %s17963_s25 = sld [smem:[#allocation190_spill]]  ;;  %vm5629_vm4 = vcmask 523264  }
  0x14   : > { %10047 = vmatpush3.bf16.msra.mxu0 %v11220_v14  ;;  %11204 = vmatpush3.bf16.msra.mxu1 %v11829_v20  ;;  %s9640_s4 = sshll.u32 %s18599_s22, 8 }
  0x15   : > { %10048 = vmatprep.subr.bf16.mxu0 %v17287_v5  ;;  %11203 = vmatprep.subr.bf16.mxu1 %v17287_v5  ;;  %s16967_s0 = scalar_lea.vmem %s17283_s20, %s9640_s4 }
  0x16   : > { %v1071_v0 = vld [vmem:[%s17599_s2 + $0x10] sm:$0xff]  ;;  %v1069_v1 = vld [vmem:[%s17599_s2] sm:$0xff]  ;;  %v1072_v3 = vld [vmem:[%s17599_s2 + $0x18] sm:$0xff] }
  0x17   : > { %1122 = vperm.xlu1 %11219, %v1071_v0   ;;  %1112 = vperm.xlu0 %11218, %v1069_v1   ;;  %v1070_v4 = vld [vmem:[%s17599_s2 + $0x8] sm:$0xff]  ;;  %v1073_v7 = vld [vmem:[%s17599_s2 + $0x20] sm:$0xff]  ;;  %v1076_v8 = vld [vmem:[%s17599_s2 + $0x38] sm:$0xff]  ;;  %s11847_s24 = scalar_lea.vmem %s17600_s21, %s11206_s23  ;;  %s17639_s23 = sld [smem:[#allocation192_spill]] }
  0x18   : > { %v1074_v6 = vld [vmem:[%s17599_s2 + $0x28] sm:$0xff]  ;;  %v1075_v9 = vld [vmem:[%s17599_s2 + $0x30] sm:$0xff]  ;;  %v1077_v11 = vld [vmem:[%s17599_s2 + $0x40] sm:$0xff]  ;;  %10049 = vmatpush3.bf16.msra.mxu0 %v11221_v17  ;;  %11205 = vmatpush3.bf16.msra.mxu1 %v11842_v23 }
  0x19   : > { %v1078_v10 = vld [vmem:[%s17599_s2 + $0x48] sm:$0xff]  ;;  %v1080_v12 = vld [vmem:[%s17599_s2 + $0x58] sm:$0xff]  ;;  %v1079_v13 = vld [vmem:[%s17599_s2 + $0x50] sm:$0xff]  ;;  %10126 = vmatprep.subr.bf16.mxu0 %v17287_v5  ;;  %10286 = vmatprep.subr.bf16.mxu1 %v17287_v5  ;;  %s638_s3 = scalar_lea.vmem %s17963_s25, %s18599_s22 }
  0x1a   : > { %v1082_v15 = vld [vmem:[%s17599_s2 + $0x68] sm:$0xff]  ;;  %v1081_v16 = vld [vmem:[%s17599_s2 + $0x60] sm:$0xff]  ;;  %v1084_v18 = vld [vmem:[%s17599_s2 + $0x78] sm:$0xff] }
  0x1b   : > { %1127 = vperm.xlu1 %11219, %v1072_v3   ;;  %1117 = vperm.xlu0 %11218, %v1070_v4   ;;  %v1083_v19 = vld [vmem:[%s17599_s2 + $0x70] sm:$0xff]  ;;  %v1086_v21 = vld [vmem:[%s17599_s2 + $0x88] sm:$0xff]  ;;  %v1085_v22 = vld [vmem:[%s17599_s2 + $0x80] sm:$0xff] }
  0x1c   : > { %v11851_v24 = vld [vmem:[%s11847_s24 + $0x48] sm:$0xff]  ;;  %v11854_v25 = vld [vmem:[%s11847_s24 + $0x40] sm:$0xff]  ;;  %v1088_v27 = vld [vmem:[%s17599_s2 + $0x98] sm:$0xff] }
  0x1d   : > { %17601 = vst [vmem:[#allocation2_spill] sm:$0xff] %v11851_v24  ;;  %17602 = vst [vmem:[#allocation3_spill] sm:$0xff] %v11854_v25  ;;  %v1087_v28 = vld [vmem:[%s17599_s2 + $0x90] sm:$0xff]  ;;  %v1090_v29 = vld [vmem:[%s17599_s2 + $0xa8] sm:$0xff] }
  0x1e   : > { %v1089_v30 = vld [vmem:[%s17599_s2 + $0xa0] sm:$0xff]  ;;  %v11873_v31 = vld [vmem:[%s11847_s24 + $0x68] sm:$0xff]  ;;  %v1092_v34 = vld [vmem:[%s17599_s2 + $0xb8] sm:$0xff] }
  0x1f   : > { %1137 = vperm.xlu1 %11219, %v1074_v6   ;;  %1132 = vperm.xlu0 %11218, %v1073_v7   ;;  %17603 = vst [vmem:[#allocation4_spill] sm:$0xff] %v11873_v31  ;;  %v11876_v32 = vld [vmem:[%s11847_s24 + $0x60] sm:$0xff]  ;;  %v1091_v35 = vld [vmem:[%s17599_s2 + $0xb0] sm:$0xff]  ;;  %v11887_v36 = vld [vmem:[%s11847_s24 + $0x88] sm:$0xff] }
  0x20   : > { %17604 = vst [vmem:[#allocation5_spill] sm:$0xff] %v11876_v32  ;;  %17605 = vst [vmem:[#allocation6_spill] sm:$0xff] %v11887_v36  ;;  %v11890_v37 = vld [vmem:[%s11847_s24 + $0x80] sm:$0xff]  ;;  %v1094_v39 = vld [vmem:[%s17599_s2 + $0xc8] sm:$0xff] }
  0x21   : > { %17606 = vst [vmem:[#allocation7_spill] sm:$0xff] %v11890_v37  ;;  %v1093_v40 = vld [vmem:[%s17599_s2 + $0xc0] sm:$0xff]  ;;  %v1096_v41 = vld [vmem:[%s17599_s2 + $0xd8] sm:$0xff]  ;;  %v1095_v42 = vld [vmem:[%s17599_s2 + $0xd0] sm:$0xff] }
  0x22   : > { %v11907_v43 = vld [vmem:[%s11847_s24 + $0xa8] sm:$0xff]  ;;  %v11910_v44 = vld [vmem:[%s11847_s24 + $0xa0] sm:$0xff]  ;;  %v1100_v48 = vld [vmem:[%s17599_s2 + $0xf8] sm:$0xff] }
  0x23   : > { %1147 = vperm.xlu1 %11219, %v1076_v8   ;;  %1142 = vperm.xlu0 %11218, %v1075_v9   ;;  %17607 = vst [vmem:[#allocation8_spill] sm:$0xff] %v11907_v43  ;;  %17608 = vst [vmem:[#allocation9_spill] sm:$0xff] %v11910_v44  ;;  %v1098_v46 = vld [vmem:[%s17599_s2 + $0xe8] sm:$0xff]  ;;  %v1097_v47 = vld [vmem:[%s17599_s2 + $0xe0] sm:$0xff]  ;;  %v714_v45 = vmul.f32 %v11944_v56, %v11907_v43 }
  0x24   : > { %v1099_v49 = vld [vmem:[%s17599_s2 + $0xf0] sm:$0xff]  ;;  %v11927_v50 = vld [vmem:[%s11847_s24 + $0xc8] sm:$0xff]  ;;  %v11930_v51 = vld [vmem:[%s11847_s24 + $0xc0] sm:$0xff] }
  0x25   : > { %17609 = vst [vmem:[#allocation10_spill] sm:$0xff] %v11927_v50  ;;  %17610 = vst [vmem:[#allocation11_spill] sm:$0xff] %v11930_v51  ;;  %v1102_v53 = vld [vmem:[%s17599_s2 + $0x108] sm:$0xff]  ;;  %v1101_v54 = vld [vmem:[%s17599_s2 + $0x100] sm:$0xff] }
  0x26   : > { %v647_v55 = vld [vmem:[%s11847_s24 + $0x10] sm:$0xff]  ;;  %v645_v57 = vld [vmem:[%s11847_s24] sm:$0xff]  ;;  %v1104_v58 = vld [vmem:[%s17599_s2 + $0x118] sm:$0xff] }
  0x27   : > { %1157 = vperm.xlu1 %11219, %v1078_v10   ;;  %1152 = vperm.xlu0 %11218, %v1077_v11   ;;  %v1103_v59 = vld [vmem:[%s17599_s2 + $0x110] sm:$0xff]  ;;  %v695_v60 = vmul.f32 %v11944_v56, %v647_v55  ;;  %v693_v62 = vmul.f32 %v11944_v56, %v645_v57  ;;  %v648_v63 = vld [vmem:[%s11847_s24 + $0x18] sm:$0xff]  ;;  %v1106_v0 = vld [vmem:[%s17599_s2 + $0x128] sm:$0xff] }
  0x28   : > { %v646_v1 = vld [vmem:[%s11847_s24 + $0x8] sm:$0xff]  ;;  %v696_v3 = vmul.f32 %v11944_v56, %v648_v63  ;;  %v11973_v6 = vld [vmem:[%s11847_s24 + $0xe0] sm:$0xff]  ;;  %v1108_v11 = vld [vmem:[%s17599_s2 + $0x138] sm:$0xff] }
  0x29   : > { %v11966_v2 = vadd.f32 %v11957_v61, %v695_v60  ;;  %v11970_v4 = vld [vmem:[%s11847_s24 + $0xe8] sm:$0xff]  ;;  %17612 = vst [vmem:[#allocation13_spill] sm:$0xff] %v11973_v6  ;;  %v1105_v7 = vld [vmem:[%s17599_s2 + $0x120] sm:$0xff]  ;;  %v11979_v8 = vadd.f32 %v11957_v61, %v693_v62  ;;  %v652_v17 = vld [vmem:[%s11847_s24 + $0x38] sm:$0xff] }
  0x2a   : > { %17611 = vst [vmem:[#allocation12_spill] sm:$0xff] %v11970_v4  ;;  %v650_v10 = vld [vmem:[%s11847_s24 + $0x28] sm:$0xff]  ;;  %v655_v62 = vld [vmem:[%s11847_s24 + $0x50] sm:$0xff]  ;;  %v668_v9 = vld [vmem:[%s11847_s24 + $0xb8] sm:$0xff] }
  0x2b   : > { %1167 = vperm.xlu1 %11219, %v1080_v12   ;;  %1162 = vperm.xlu0 %11218, %v1079_v13   ;;  %v694_v12 = vmul.f32 %v11944_v56, %v646_v1  ;;  %v1107_v13 = vld [vmem:[%s17599_s2 + $0x130] sm:$0xff]  ;;  %v784_v14 = vsub.f32 0.0, %v11966_v2  ;;  %v702_v1 = vmul.f32 %v11944_v56, %v11851_v24 }
  0x2f   : > { %1177 = vperm.xlu1 %11219, %v1082_v15   ;;  %1172 = vperm.xlu0 %11218, %v1081_v16   ;;  %v11993_v15 = vadd.f32 %v11957_v61, %v696_v3  ;;  %v649_v16 = vld [vmem:[%s11847_s24 + $0x20] sm:$0xff] }
  0x33   : > { %1187 = vperm.xlu1 %11219, %v1084_v18   ;;  %1182 = vperm.xlu0 %11218, %v1083_v19   ;;  %v782_v18 = vsub.f32 0.0, %v11979_v8  ;;  %v651_v19 = vld [vmem:[%s11847_s24 + $0x30] sm:$0xff] }
  0x37   : > { %1197 = vperm.xlu1 %11219, %v1086_v21   ;;  %1192 = vperm.xlu0 %11218, %v1085_v22   ;;  %v698_v21 = vmul.f32 %v11944_v56, %v650_v10  ;;  %v12001_v22 = vadd.f32 %v11957_v61, %v694_v12  ;;  %v701_v10 = vmul.f32 %v11944_v56, %v11854_v25  ;;  %v9136_v12 = vld [vmem:[%s17613_s30 + $0x250] sm:$0xff] }
  0x3b   : > { %1207 = vperm.xlu1 %11219, %v1088_v27   ;;  %1202 = vperm.xlu0 %11218, %v1087_v28   ;;  %v697_v27 = vmul.f32 %v11944_v56, %v649_v16  ;;  %v1109_v28 = vld [vmem:[%s17599_s2 + $0x140] sm:$0xf] }
  0x3f   : > { %1217 = vperm.xlu1 %11219, %v1090_v29   ;;  %1212 = vperm.xlu0 %11218, %v1089_v30   ;;  %v785_v29 = vsub.f32 0.0, %v11993_v15  ;;  %v700_v30 = vmul.f32 %v11944_v56, %v652_v17 }
  0x41   : > { %v829_v55 = vmul.f32 1.442695, %v785_v29  ;;  %v12035_v57 = vadd.f32 %v11957_v61, %v700_v30  ;;  %v12068_v29 = vadd.f32 %v11957_v61, %v701_v10  ;;  %v705_v10 = vmul.f32 %v11944_v56, %v11876_v32 }
  0x43   : > { %1227 = vperm.xlu1 %11219, %v1092_v34   ;;  %1222 = vperm.xlu0 %11218, %v1091_v35   ;;  %v699_v34 = vmul.f32 %v11944_v56, %v651_v19  ;;  %v1633_v35 = vld [vmem:[%s17613_s30] sm:$0xff]  ;;  %v789_v3 = vsub.f32 0.0, %v12035_v57 }
  0x44   : > { %v9138_v19 = vld [vmem:[%s17613_s30 + $0x260] sm:$0xff] }
  0x47   : > { %1237 = vperm.xlu1 %11219, %v1094_v39   ;;  %1232 = vperm.xlu0 %11218, %v1093_v40   ;;  %v827_v39 = vmul.f32 1.442695, %v784_v14  ;;  %v823_v40 = vmul.f32 1.442695, %v782_v18  ;;  %v703_v14 = vmul.f32 %v11944_v56, %v655_v62  ;;  %v12059_v18 = vadd.f32 %v11957_v61, %v702_v1  ;;  %v1638_v62 = vld [vmem:[%s17613_s30 + $0x28] sm:$0xff] }
  0x49   : > { %11292 = vpow2.f32 %v827_v39  ;;  %v791_v39 = vsub.f32 0.0, %v12059_v18 }
  0x4a   : > { %11294 = vpow2.f32 %v823_v40  ;;  %v706_v40 = vmul.f32 %v11944_v56, %v11873_v31 }
  0x4b   : > { %1247 = vperm.xlu1 %11219, %v1096_v41   ;;  %1242 = vperm.xlu0 %11218, %v1095_v42   ;;  %v12014_v41 = vld [vmem:[%s11847_s24 + $0x108] sm:$0xff]  ;;  %v12017_v42 = vadd.f32 %v11957_v61, %v698_v21  ;;  %11296 = vpow2.f32 %v829_v55  ;;  %v9137_v21 = vld [vmem:[%s17613_s30 + $0x258] sm:$0xff] }
  0x4c   : > { %17614 = vst [vmem:[#allocation14_spill] sm:$0xff] %v12014_v41 }
  0x4d   : > { %v787_v60 = vsub.f32 0.0, %v12017_v42 }
  0x4f   : > { %1257 = vperm.xlu1 %11219, %v1098_v46   ;;  %1252 = vperm.xlu0 %11218, %v1097_v47   ;;  %v12020_v46 = vld [vmem:[%s11847_s24 + $0x100] sm:$0xff]  ;;  %v783_v47 = vsub.f32 0.0, %v12001_v22  ;;  %v833_v16 = vmul.f32 1.442695, %v787_v60  ;;  %v1639_v60 = vld [vmem:[%s17613_s30 + $0x30] sm:$0xff] }
  0x50   : > { %17615 = vst [vmem:[#allocation15_spill] sm:$0xff] %v12020_v46 }
  0x51   : > { %v825_v63 = vmul.f32 1.442695, %v783_v47  ;;  %v790_v47 = vsub.f32 0.0, %v12068_v29 }
  0x53   : > { %1267 = vperm.xlu1 %11219, %v1100_v48   ;;  %1262 = vperm.xlu0 %11218, %v1099_v49   ;;  %v12024_v48 = vadd.f32 %v11957_v61, %v697_v27  ;;  %11298 = vpow2.f32 %v825_v63  ;;  %v837_v27 = vmul.f32 1.442695, %v789_v3  ;;  %v841_v63 = vmul.f32 1.442695, %v791_v39 }
  0x54   : > { %11300 = vpow2.f32 %v833_v16  ;;  %v839_v3 = vmul.f32 1.442695, %v790_v47  ;;  %v1640_v16 = vld [vmem:[%s17613_s30 + $0x38] sm:$0xff] }
  0x55   : > { %v9141_v47 = vld [vmem:[%s17613_s30 + $0x278] sm:$0xff] }
  0x57   : > { %1277 = vperm.xlu1 %11219, %v1102_v53   ;;  %1272 = vperm.xlu0 %11218, %v1101_v54   ;;  %v1635_v53 = vld [vmem:[%s17613_s30 + $0x10] sm:$0xff]  ;;  %v1634_v54 = vld [vmem:[%s17613_s30 + $0x8] sm:$0xff] }
  0x5b   : > { %1287 = vperm.xlu1 %11219, %v1104_v58   ;;  %1282 = vperm.xlu0 %11218, %v1103_v59   ;;  %v12038_v58 = vadd.f32 %v11957_v61, %v699_v34  ;;  %v656_v59 = vld [vmem:[%s11847_s24 + $0x58] sm:$0xff]  ;;  %v12074_v34 = vadd.f32 %v11957_v61, %v703_v14  ;;  %v9140_v14 = vld [vmem:[%s17613_s30 + $0x270] sm:$0xff] }
  0x5d   : > { %v792_v55 = vsub.f32 0.0, %v12074_v34 }
  0x5f   : > { %1297 = vperm.xlu1 %11219, %v1106_v0   ;;  %1292 = vperm.xlu0 %11218, %v1105_v7   ;;  %v786_v0 = vsub.f32 0.0, %v12024_v48  ;;  %v788_v7 = vsub.f32 0.0, %v12038_v58 }
  0x61   : > { %v831_v17 = vmul.f32 1.442695, %v786_v0  ;;  %v12095_v0 = vadd.f32 %v11957_v61, %v706_v40  ;;  %v9142_v40 = vld [vmem:[%s17613_s30 + $0x280] sm:$0xff] }
  0x63   : > { %1307 = vperm.xlu1 %11219, %v1108_v11   ;;  %1302 = vperm.xlu0 %11218, %v1107_v13   ;;  %v704_v11 = vmul.f32 %v11944_v56, %v656_v59  ;;  %v1636_v13 = vld [vmem:[%s17613_s30 + $0x18] sm:$0xff]  ;;  %11302 = vpow2.f32 %v831_v17  ;;  %v11293_v59 = vpop.eup %11292  ;;  %v795_v17 = vsub.f32 0.0, %v12095_v0 }
  0x64   : > { %11304 = vpow2.f32 %v837_v27  ;;  %v11295_v1 = vpop.eup %11294 }
  0x65   : > { %v12071_v30 = vadd.f32 %v11957_v61, %v704_v11  ;;  %v660_v11 = vld [vmem:[%s11847_s24 + $0x78] sm:$0xff]  ;;  %v905_v27 = vadd.f32 1.0, %v11295_v1 }
  0x67   : > { %1672 = vperm.xlu1 %11219, %v1633_v35   ;;  %1312 = vperm.xlu0 %11218, %v1109_v28   ;;  %v835_v28 = vmul.f32 1.442695, %v788_v7  ;;  %v1637_v35 = vld [vmem:[%s17613_s30 + $0x20] sm:$0xff] }
  0x69   : > { %11306 = vpow2.f32 %v835_v28  ;;  %v12108_v28 = vadd.f32 %v11957_v61, %v705_v10 }
  0x6a   : > { %11308 = vpow2.f32 %v841_v63 }
  0x6b   : > { %1682 = vperm.xlu1 %11219, %v1635_v53   ;;  %1677 = vperm.xlu0 %11218, %v1634_v54   ;;  %v793_v53 = vsub.f32 0.0, %v12071_v30  ;;  %v9139_v54 = vld [vmem:[%s17613_s30 + $0x268] sm:$0xff]  ;;  %11310 = vpow2.f32 %v839_v3  ;;  %v1641_v3 = vld [vmem:[%s17613_s30 + $0x40] sm:$0xff] }
  0x6d   : > { %v845_v7 = vmul.f32 1.442695, %v793_v53 }
  0x6f   : > { %2712 = vperm.xlu1 %11219, %v9136_v12   ;;  %1687 = vperm.xlu0 %11218, %v1636_v13   ;;  %v843_v12 = vmul.f32 1.442695, %v792_v55  ;;  %v11297_v13 = vpop.eup %11296  ;;  %11312 = vpow2.f32 %v845_v7 }
  0x70   : > { %v908_v53 = vadd.f32 1.0, %v11297_v13 }
  0x71   : > { %11314 = vpow2.f32 %v843_v12 }
  0x73   : > { %2722 = vperm.xlu1 %11219, %v9138_v19   ;;  %2717 = vperm.xlu0 %11218, %v9137_v21   ;;  %v11299_v19 = vpop.eup %11298  ;;  %v907_v21 = vadd.f32 1.0, %v11293_v59 }
  0x74   : > { %v11301_v39 = vpop.eup %11300  ;;  %v906_v59 = vadd.f32 1.0, %v11299_v19  ;;  %v1643_v19 = vld [vmem:[%s17613_s30 + $0x50] sm:$0xff] }
  0x75   : > { %v11303_v55 = vpop.eup %11302  ;;  %11316 = vrcp.f32 %v907_v21  ;;  %v910_v1 = vadd.f32 1.0, %v11301_v39  ;;  %v1642_v21 = vld [vmem:[%s17613_s30 + $0x48] sm:$0xff]  ;;  %v664_v39 = vld [vmem:[%s11847_s24 + $0x98] sm:$0xff] }
  0x76   : > { %11318 = vrcp.f32 %v905_v27  ;;  %v909_v7 = vadd.f32 1.0, %v11303_v55 }
  0x77   : > { %1692 = vperm.xlu1 %11219, %v1637_v35   ;;  %2727 = vperm.xlu0 %11218, %v9139_v54   ;;  %v708_v35 = vmul.f32 %v11944_v56, %v660_v11  ;;  %v659_v54 = vld [vmem:[%s11847_s24 + $0x70] sm:$0xff]  ;;  %11320 = vrcp.f32 %v908_v53  ;;  %v11305_v11 = vpop.eup %11304  ;;  %v709_v53 = vmul.f32 %v11944_v56, %v11890_v37 }
  0x78   : > { %v707_v10 = vmul.f32 %v11944_v56, %v659_v54  ;;  %11322 = vrcp.f32 %v906_v59  ;;  %v11307_v13 = vpop.eup %11306  ;;  %v912_v27 = vadd.f32 1.0, %v11305_v11  ;;  %v663_v54 = vld [vmem:[%s11847_s24 + $0x90] sm:$0xff] }
  0x79   : > { %v12120_v63 = vadd.f32 %v11957_v61, %v708_v35  ;;  %11324 = vrcp.f32 %v910_v1  ;;  %v9144_v11 = vld [vmem:[%s17613_s30 + $0x290] sm:$0xff] }
  0x7a   : > { %11326 = vrcp.f32 %v909_v7  ;;  %v12139_v35 = vadd.f32 %v11957_v61, %v707_v10  ;;  %v712_v10 = vmul.f32 %v11944_v56, %v664_v39  ;;  %v9145_v39 = vld [vmem:[%s17613_s30 + $0x298] sm:$0xff] }
  0x7b   : > { %1702 = vperm.xlu1 %11219, %v1639_v60   ;;  %1697 = vperm.xlu0 %11218, %v1638_v62   ;;  %v794_v60 = vsub.f32 0.0, %v12108_v28  ;;  %v849_v62 = vmul.f32 1.442695, %v795_v17  ;;  %v710_v17 = vmul.f32 %v11944_v56, %v11887_v36 }
  0x7c   : > { %v796_v7 = vsub.f32 0.0, %v12139_v35 }
  0x7d   : > { %v847_v12 = vmul.f32 1.442695, %v794_v60  ;;  %11328 = vpow2.f32 %v849_v62  ;;  %v12146_v59 = vadd.f32 %v11957_v61, %v710_v17 }
  0x7f   : > { %2732 = vperm.xlu1 %11219, %v9140_v14   ;;  %1707 = vperm.xlu0 %11218, %v1640_v16   ;;  %v9143_v14 = vld [vmem:[%s17613_s30 + $0x288] sm:$0xff]  ;;  %v797_v16 = vsub.f32 0.0, %v12120_v63  ;;  %11330 = vpow2.f32 %v847_v12  ;;  %v711_v12 = vmul.f32 %v11944_v56, %v663_v54  ;;  %v799_v17 = vsub.f32 0.0, %v12146_v59 }
  0x80   : > { %11332 = vrcp.f32 %v912_v27  ;;  %v9146_v27 = vld [vmem:[%s17613_s30 + $0x2a0] sm:$0xff] }
  0x81   : > { %v853_v60 = vmul.f32 1.442695, %v797_v16  ;;  %v1644_v16 = vld [vmem:[%s17613_s30 + $0x58] sm:$0xff]  ;;  %v12172_v49 = vadd.f32 %v11957_v61, %v711_v12 }
  0x83   : > { %2742 = vperm.xlu1 %11219, %v9142_v40   ;;  %2737 = vperm.xlu0 %11218, %v9141_v47   ;;  %v11309_v40 = vpop.eup %11308  ;;  %v911_v47 = vadd.f32 1.0, %v11307_v13  ;;  %v12154_v13 = vadd.f32 %v11957_v61, %v709_v53 }
  0x84   : > { %v11311_v55 = vpop.eup %11310  ;;  %v914_v1 = vadd.f32 1.0, %v11309_v40  ;;  %v851_v40 = vmul.f32 1.442695, %v796_v7 }
  0x85   : > { %11334 = vrcp.f32 %v911_v47  ;;  %v913_v62 = vadd.f32 1.0, %v11311_v55  ;;  %v12168_v47 = vadd.f32 %v11957_v61, %v712_v10  ;;  %v798_v55 = vsub.f32 0.0, %v12154_v13 }
  0x86   : > { %11336 = vrcp.f32 %v914_v1  ;;  %v713_v1 = vmul.f32 %v11944_v56, %v11910_v44 }
  0x87   : > { %1712 = vperm.xlu1 %11219, %v1641_v3   ;;  %2747 = vperm.xlu0 %11218, %v9143_v14   ;;  %v11313_v3 = vpop.eup %11312  ;;  %11338 = vrcp.f32 %v913_v62  ;;  %v1645_v62 = vld [vmem:[%s17613_s30 + $0x60] sm:$0xff] }
  0x88   : > { %v11315_v14 = vpop.eup %11314  ;;  %v916_v54 = vadd.f32 1.0, %v11313_v3  ;;  %11340 = vpow2.f32 %v853_v60 }
  0x89   : > { %v915_v12 = vadd.f32 1.0, %v11315_v14  ;;  %11342 = vpow2.f32 %v851_v40  ;;  %v12192_v14 = vadd.f32 %v11957_v61, %v714_v45  ;;  %v12195_v40 = vadd.f32 %v11957_v61, %v713_v1  ;;  %v667_v45 = vld [vmem:[%s11847_s24 + $0xb0] sm:$0xff] }
  0x8a   : > { %11344 = vrcp.f32 %v916_v54  ;;  %v1647_v54 = vld [vmem:[%s17613_s30 + $0x70] sm:$0xff] }
  0x8b   : > { %1722 = vperm.xlu1 %11219, %v1643_v19   ;;  %1717 = vperm.xlu0 %11218, %v1642_v21   ;;  %v11317_v19 = vpop.eup %11316  ;;  %11346 = vrcp.f32 %v915_v12 }
  0x8c   : > { %v11319_v21 = vpop.eup %11318 }
  0x8d   : > { %v11321_v53 = vpop.eup %11320  ;;  %v1028_v33 = vmul.f32 %v11319_v21, %v11979_v8  ;;  %v716_v8 = vmul.f32 %v11944_v56, %v668_v9 }
  0x8e   : > { %v11323_v52 = vpop.eup %11322  ;;  %v1031_v60 = vmul.f32 %v11321_v53, %v11993_v15  ;;  %v857_v15 = vmul.f32 1.442695, %v799_v17 }
  0x8f   : > { %2752 = vperm.xlu1 %11219, %v9144_v11   ;;  %1727 = vperm.xlu0 %11218, %v1644_v16   ;;  %v11325_v7 = vpop.eup %11324  ;;  %v1030_v11 = vmul.f32 %v11317_v19, %v11966_v2  ;;  %v801_v16 = vsub.f32 0.0, %v12168_v47  ;;  %v1029_v26 = vmul.f32 %v11323_v52, %v12001_v22  ;;  %v9147_v2 = vld [vmem:[%s17613_s30 + $0x2a8] sm:$0xff]  ;;  %v800_v19 = vsub.f32 0.0, %v12172_v49 }
  0x90   : > { %v11327_v38 = vpop.eup %11326  ;;  %v1033_v5 = vmul.f32 %v11325_v7, %v12017_v42  ;;  %v1646_v42 = vld [vmem:[%s17613_s30 + $0x68] sm:$0xff]  ;;  %11348 = vpow2.f32 %v857_v15 }
  0x91   : > { %v11329_v21 = vpop.eup %11328  ;;  %v1032_v46 = vmul.f32 %v11327_v38, %v12024_v48  ;;  %v861_v9 = vmul.f32 1.442695, %v801_v16  ;;  %v859_v38 = vmul.f32 1.442695, %v800_v19  ;;  %v803_v48 = vsub.f32 0.0, %v12192_v14 }
  0x92   : > { %v1123_v10 = vpop.permute.xlu1 %1122  ;;  %v1113_v3 = vpop.permute.xlu0 %1112  ;;  %v918_v7 = vadd.f32 1.0, %v11329_v21  ;;  %v9148_v21 = vld [vmem:[%s17613_s30 + $0x2b0] sm:$0xff] }
  0x93   : > { %2762 = vperm.xlu1 %11219, %v9146_v27   ;;  %2757 = vperm.xlu0 %11218, %v9145_v39   ;;  %v855_v27 = vmul.f32 1.442695, %v798_v55  ;;  %v11331_v52 = vpop.eup %11330  ;;  %v1317_v22 = vmul.f32 %v1123_v10, %v1030_v11  ;;  %v1315_v6 = vmul.f32 %v1113_v3, %v1028_v33  ;;  %v802_v33 = vsub.f32 0.0, %v12195_v40 }
  0x94   : > { %v11333_v41 = vpop.eup %11332  ;;  %v715_v10 = vmul.f32 %v11944_v56, %v667_v45  ;;  %v917_v16 = vadd.f32 1.0, %v11331_v52 }
  0x95   : > { %v11335_v17 = vpop.eup %11334  ;;  %v1035_v12 = vmul.f32 %v11333_v41, %v12035_v57  ;;  %11350 = vpow2.f32 %v855_v27  ;;  %v1648_v41 = vld [vmem:[%s17613_s30 + $0x78] sm:$0xff]  ;;  %v17617_v27 = vmov 0.0  }
  0x96   : > { %v1128_v39 = vpop.permute.xlu1 %1127  ;;  %v1118_v53 = vpop.permute.xlu0 %1117  ;;  %11352 = vpow2.f32 %v861_v9 }
  0x97   : > { %v1318_v1 = vmul.f32 %v1128_v39, %v1031_v60  ;;  %v1316_v4 = vmul.f32 %v1118_v53, %v1029_v26  ;;  %1732 = vperm.xlu1 %11219, %v1645_v62   ;;  %2767 = vperm.xlu0 %11218, %v9147_v2   ;;  %v12210_v26 = vadd.f32 %v11957_v61, %v716_v8  ;;  %v11337_v60 = vpop.eup %11336  ;;  %11354 = vrcp.f32 %v918_v7 }
  0x98   : > { %11356 = vrcp.f32 %v917_v16 }
  0x99   : > { %v12212_v55 = vpack.c.bf16 %v1316_v4, %v1315_v6  ;;  %v12215_v11 = vpack.c.bf16 %v1318_v1, %v1317_v22  ;;  %v1034_v4 = vmul.f32 %v11335_v17, %v12038_v58  ;;  %v11339_v6 = vpop.eup %11338  ;;  %v805_v52 = vsub.f32 0.0, %v12210_v26  ;;  %v682_v17 = vld [vmem:[%s11847_s24 + $0x128] sm:$0xff] }
  0x9a   : > { %v1138_v3 = vpop.permute.xlu1 %1137  ;;  %v1133_v62 = vpop.permute.xlu0 %1132  ;;  %v1037_v1 = vmul.f32 %v11337_v60, %v12059_v18  ;;  %v9149_v18 = vld [vmem:[%s17613_s30 + $0x2b8] sm:$0xff]  ;;  %11358 = vpow2.f32 %v859_v38 }
  0x9b   : > { %v1937_v2 = vshll.u32 %v12212_v55, 16  ;;  %v1320_v19 = vmul.f32 %v1138_v3, %v1033_v5  ;;  %v1319_v8 = vmul.f32 %v1133_v62, %v1032_v46  ;;  %1742 = vperm.xlu1 %11219, %v1647_v54   ;;  %1737 = vperm.xlu0 %11218, %v1646_v42   ;;  %v1941_v57 = vshll.u32 %v12215_v11, 16  ;;  %v11341_v22 = vpop.eup %11340  ;;  %v681_v3 = vld [vmem:[%s11847_s24 + $0x120] sm:$0xff]  ;;  %v11224_v38 = vld [vmem:[%s17271_s8 + $0x38] sm:$0xff]  }
  0x9c   : > { %10051 = vmatmul.mubr.msk.bf16.vlgmr.msra.gmra.mxu0 %vm1391_vm1, %v12212_v55  ;;  %v1945_v5 = vshrl.u32 %v12215_v11, 16  ;;  %v865_v46 = vmul.f32 1.442695, %v803_v48  ;;  %v1935_v39 = vshrl.u32 %v12212_v55, 16  ;;  %v1036_v48 = vmul.f32 %v11339_v6, %v12068_v29  ;;  %v9150_v62 = vld [vmem:[%s17613_s30 + $0x2c0] sm:$0xff] }
  0x9d   : > { %v1939_v58 = vrot.slane %v1937_v2, 1  ;;  %v12230_v15 = vpack.c.bf16 %v1320_v19, %v1319_v8  ;;  %10127 = vmatpush3.bf16.msra.mxu0 %v11829_v20  ;;  %10054 = vmatprep.mubr.msk.bf16.mxu0 %vm11644_vm0, %v17617_v27  ;;  %v1943_v9 = vrot.slane %v1941_v57, 1  ;;  %v11343_v20 = vpop.eup %11342  ;;  %v920_v19 = vadd.f32 1.0, %v11341_v22  ;;  %v684_v57 = vld [vmem:[%s11847_s24 + $0x138] sm:$0xff] }
  0x9e   : > { %v1148_v53 = vpop.permute.xlu1 %1147  ;;  %v1143_v45 = vpop.permute.xlu0 %1142  ;;  %10128 = vmatprep.subr.bf16.mxu0 %v17617_v27  ;;  %v730_v8 = vmul.f32 %v11944_v56, %v682_v17  ;;  %11360 = vpow2.f32 %v865_v46  ;;  %v863_v17 = vmul.f32 1.442695, %v802_v33 }
  0x9f   : > { %17616 = vst [vmem:[#allocation16_spill] sm:$0xff] %v12230_v15  ;;  %v1322_v54 = vmul.f32 %v1148_v53, %v1035_v12  ;;  %v1321_v42 = vmul.f32 %v1143_v45, %v1034_v4  ;;  %2772 = vperm.xlu1 %11219, %v9148_v21   ;;  %1747 = vperm.xlu0 %11218, %v1648_v41   ;;  %v1948_v7 = vshll.u32 %v12230_v15, 16  ;;  %v11345_v4 = vpop.eup %11344  ;;  %v919_v41 = vadd.f32 1.0, %v11343_v20  ;;  %v683_v45 = vld [vmem:[%s11847_s24 + $0x130] sm:$0xff] }
  0xa0   : > { %v1947_v16 = vor.u32 %v1945_v5, %v1943_v9  ;;  %v12250_v12 = vadd.f32 %v11957_v61, %v715_v10  ;;  %v1940_v60 = vor.u32 %v1939_v58, %v1935_v39  ;;  %v729_v10 = vmul.f32 %v11944_v56, %v681_v3  ;;  %v11347_v58 = vpop.eup %11346 }
  0xa1   : > { %v12252_v2 = vpack.c.bf16 %v1322_v54, %v1321_v42  ;;  %v1950_v29 = vrot.slane %v1948_v7, 1  ;;  %10129 = vmatpush3.bf16.msra.mxu0 %v11842_v23  ;;  %11362 = vrcp.f32 %v920_v19  ;;  %v869_v54 = vmul.f32 1.442695, %v805_v52  ;;  %v11349_v7 = vpop.eup %11348  ;;  %v11225_v52 = vld [vmem:[%s17271_s8 + $0x30] sm:$0xff]  }
  0xa2   : > { %v1158_v6 = vpop.permute.xlu1 %1157  ;;  %v1153_v21 = vpop.permute.xlu0 %1152  ;;  %10206 = vmatprep.subr.bf16.mxu0 %v17617_v27  ;;  %v12263_v5 = vsel %vm1934_vm2, %v1940_v60, %v1943_v9  ;;  %v1649_v9 = vld [vmem:[%s17613_s30 + $0x80] sm:$0xff]  ;;  %v804_v20 = vsub.f32 0.0, %v12250_v12  ;;  %v12288_v42 = vadd.f32 %v11957_v61, %v730_v8  ;;  %v1039_v3 = vmul.f32 %v11345_v4, %v12071_v30  ;;  %v1650_v4 = vld [vmem:[%s17613_s30 + $0x88] sm:$0xff] }
  0xa3   : > { %17618 = vst [vmem:[#allocation17_spill] sm:$0xff] %v12252_v2  ;;  %v1324_v22 = vmul.f32 %v1158_v6, %v1037_v1  ;;  %v1323_v23 = vmul.f32 %v1153_v21, %v1036_v48  ;;  %2782 = vperm.xlu1 %11219, %v9150_v62   ;;  %2777 = vperm.xlu0 %11218, %v9149_v18   ;;  %v1955_v53 = vshll.u32 %v12252_v2, 16  ;;  %v9151_v1 = vld [vmem:[%s17613_s30 + $0x2c8] sm:$0xff]  ;;  %v11351_v60 = vpop.eup %11350  ;;  %v1952_v30 = vshrl.u32 %v12230_v15, 16 }
  0xa4   : > { %v12266_v39 = vsel %vm1934_vm2, %v1947_v16, %v1950_v29  ;;  %10055 = vmatmul.mubr.msk.bf16.gmra.mxu0 %vm1391_vm1, %v12215_v11  ;;  %v732_v48 = vmul.f32 %v11944_v56, %v684_v57  ;;  %v1038_v62 = vmul.f32 %v11347_v58, %v12074_v34  ;;  %v12294_v18 = vadd.f32 %v11957_v61, %v729_v10  ;;  %v1651_v34 = vld [vmem:[%s17613_s30 + $0x90] sm:$0xff]  ;;  %v11353_v10 = vpop.eup %11352 }
  0xa5   : > { %17619 = vst [vmem:[#allocation18_spill] sm:$0xff] %v12266_v39  ;;  %10135 = vmatmul.mubr.msk.bf16.vlgmr.msra.gmra.mxu1 %vm1391_vm1, %v12266_v39  ;;  %10058 = vmatprep.mubr.msk.bf16.mxu0 %vm11644_vm0, %v17617_v27  ;;  %v731_v16 = vmul.f32 %v11944_v56, %v683_v45  ;;  %v12300_v19 = vpack.c.bf16 %v1324_v22, %v1323_v23  ;;  %v12303_v8 = vrot.slane %v1955_v53, 1  ;;  %11364 = vrcp.f32 %v919_v41  ;;  %v11355_v23 = vpop.eup %11354 }
  0xa6   : > { %10138 = vmatprep.mubr.msk.bf16.mxu1 %vm11644_vm0, %v17617_v27  ;;  %v1168_v46 = vpop.permute.xlu1 %1167  ;;  %v1163_v33 = vpop.permute.xlu0 %1162  ;;  %10287 = vmatpush3.bf16.msra.mxu1 %v11224_v38  ;;  %11366 = vpow2.f32 %v863_v17  ;;  %v867_v6 = vmul.f32 1.442695, %v804_v20  ;;  %v718_v21 = vmul.f32 %v11944_v56, %v11927_v50  ;;  %v717_v38 = vmul.f32 %v11944_v56, %v11930_v51  ;;  %v11605_v50 = vld [vmem:[%s11847_s24 + $0xe8] sm:$0xff] }
  0xa7   : > { %17620 = vst [vmem:[#allocation19_spill] sm:$0xff] %v12300_v19  ;;  %1752 = vperm.xlu1 %11219, %v1649_v9   ;;  %2787 = vperm.xlu0 %11218, %v9151_v1   ;;  %v1954_v41 = vor.u32 %v1952_v30, %v1950_v29  ;;  %v922_v57 = vadd.f32 1.0, %v11349_v7  ;;  %v819_v58 = vsub.f32 0.0, %v12288_v42  ;;  %v12318_v22 = vadd.f32 %v11957_v61, %v732_v48  ;;  %v11357_v29 = vpop.eup %11356 }
  0xa8   : > { %10288 = vmatprep.subr.bf16.mxu1 %v17617_v27  ;;  %v921_v9 = vadd.f32 1.0, %v11351_v60  ;;  %11368 = vpow2.f32 %v869_v54  ;;  %v818_v1 = vsub.f32 0.0, %v12294_v18  ;;  %v12326_v56 = vadd.f32 %v11957_v61, %v731_v16  ;;  %v9152_v54 = vld [vmem:[%s17613_s30 + $0x2d0] sm:$0xff] }
  0xa9   : > { %v1326_v17 = vmul.f32 %v1168_v46, %v1039_v3  ;;  %v1325_v20 = vmul.f32 %v1163_v33, %v1038_v62  ;;  %v12330_v48 = vsel %vm1934_vm2, %v1954_v41, %v12303_v8  ;;  %v1962_v7 = vshll.u32 %v12300_v19, 16  ;;  %v1652_v46 = vld [vmem:[%s17613_s30 + $0x98] sm:$0xff]  ;;  %v11359_v62 = vpop.eup %11358 }
  0xaa   : > { %v12320_v53 = vpop.permute.xlu1 %1177  ;;  %v12322_v45 = vpop.permute.xlu0 %1172  ;;  %10289 = vmatpush3.bf16.msra.mxu1 %v11225_v52  ;;  %17621 = vst [vmem:[#allocation20_spill] sm:$0xff] %v12330_v48  ;;  %v924_v3 = vadd.f32 1.0, %v11353_v10  ;;  %11370 = vpow2.f32 %v867_v6  ;;  %v12344_v33 = vadd.f32 %v11957_v61, %v718_v21  ;;  %v12351_v16 = vadd.f32 %v11957_v61, %v717_v38  ;;  %v672_v52 = vld [vmem:[%s11847_s24 + $0xd8] sm:$0xff]  ;;  %v671_v21 = vld [vmem:[%s11847_s24 + $0xd0] sm:$0xff] }
  0xab   : > { %1762 = vperm.xlu1 %11219, %v1651_v34   ;;  %1757 = vperm.xlu0 %11218, %v1650_v4   ;;  %11372 = vrcp.f32 %v922_v57  ;;  %v897_v60 = vmul.f32 1.442695, %v819_v58  ;;  %v821_v30 = vsub.f32 0.0, %v12318_v22  ;;  %v1041_v34 = vmul.f32 %v11355_v23, %v12095_v0  ;;  %v9154_v58 = vld [vmem:[%s17613_s30 + $0x2e0] sm:$0xff]  ;;  %v9153_v23 = vld [vmem:[%s17613_s30 + $0x2d8] sm:$0xff] }
  0xac   : > { %10059 = vmatmul.mubr.msk.bf16.gmra.mxu0 %vm1391_vm1, %v12230_v15  ;;  %11374 = vrcp.f32 %v921_v9  ;;  %v895_v10 = vmul.f32 1.442695, %v818_v1  ;;  %v820_v41 = vsub.f32 0.0, %v12326_v56  ;;  %10446 = vmatprep.subr.bf16.mxu1 %v17617_v27  ;;  %v12363_v57 = vpack.c.bf16 %v1326_v17, %v1325_v20  ;;  %v11361_v17 = vpop.eup %11360 }
  0xad   : > { %10139 = vmatmul.mubr.msk.bf16.gmra.mxu1 %vm1391_vm1, %v12330_v48  ;;  %10062 = vmatprep.mubr.msk.bf16.mxu0 %vm11644_vm0, %v17617_v27  ;;  %v1040_v61 = vmul.f32 %v11357_v29, %v12108_v28  ;;  %v1959_v38 = vshrl.u32 %v12252_v2, 16  ;;  %v1964_v0 = vrot.slane %v1962_v7, 1  ;;  %11376 = vrcp.f32 %v924_v3  ;;  %v12377_v28 = vld [vmem:[%s17269_s6] ss:$0 sm:$0xff] }
  0xae   : > { %10142 = vmatprep.mubr.msk.bf16.mxu1 %vm11644_vm0, %v17617_v27  ;;  %v12356_v4 = vpop.permute.xlu1 %1187  ;;  %v12358_v6 = vpop.permute.xlu0 %1182  ;;  %17622 = vst [vmem:[#allocation21_spill] sm:$0xff] %v12363_v57  ;;  %v923_v9 = vadd.f32 1.0, %v11359_v62  ;;  %v807_v1 = vsub.f32 0.0, %v12344_v33  ;;  %v720_v29 = vmul.f32 %v12377_v28, %v672_v52  ;;  %v719_v7 = vmul.f32 %v12377_v28, %v671_v21 }
  0xaf   : > { %2792 = vperm.xlu1 %11219, %v9152_v54   ;;  %1767 = vperm.xlu0 %11218, %v1652_v46   ;;  %v1961_v20 = vor.u32 %v1959_v38, %v12303_v8  ;;  %11378 = vpow2.f32 %v897_v60  ;;  %v901_v54 = vmul.f32 1.442695, %v821_v30  ;;  %v11363_v46 = vpop.eup %11362  ;;  %v806_v62 = vsub.f32 0.0, %v12351_v16 }
  0xb0   : > { %v722_v44 = vmul.f32 %v11605_v50, %v12377_v28  ;;  %11380 = vpow2.f32 %v895_v10  ;;  %v899_v43 = vmul.f32 1.442695, %v820_v41  ;;  %v1328_v52 = vmul.f32 %v12320_v53, %v1041_v34  ;;  %v1653_v50 = vld [vmem:[%s17613_s30 + $0xa0] sm:$0xff]  ;;  %v9155_v53 = vld [vmem:[%s17613_s30 + $0x2e8] sm:$0xff] }
  0xb1   : > { %v1327_v8 = vmul.f32 %v12322_v45, %v1040_v61  ;;  %v12392_v60 = vsel %vm1934_vm2, %v1961_v20, %v1964_v0  ;;  %v1969_v30 = vshll.u32 %v12363_v57, 16  ;;  %11382 = vrcp.f32 %v923_v9  ;;  %v12408_v45 = vld [vmem:[%s17270_s7] ss:$0 sm:$0xff] }
  0xb2   : > { %v12382_v51 = vpop.permute.xlu1 %1197  ;;  %v12384_v3 = vpop.permute.xlu0 %1192  ;;  %17623 = vst [vmem:[#allocation22_spill] sm:$0xff] %v12392_v60  ;;  %v12411_v34 = vadd.f32 %v12408_v45, %v720_v29  ;;  %v873_v41 = vmul.f32 1.442695, %v807_v1  ;;  %v12418_v61 = vadd.f32 %v12408_v45, %v719_v7  ;;  %11384 = vpow2.f32 %v901_v54  ;;  %v1655_v54 = vld [vmem:[%s17613_s30 + $0xb0] sm:$0xff] }
  0xb3   : > { %2802 = vperm.xlu1 %11219, %v9154_v58   ;;  %2797 = vperm.xlu0 %11218, %v9153_v23   ;;  %v11365_v21 = vpop.eup %11364  ;;  %v1043_v38 = vmul.f32 %v11363_v46, %v12120_v63  ;;  %v871_v9 = vmul.f32 1.442695, %v806_v62  ;;  %v12426_v29 = vadd.f32 %v12408_v45, %v722_v44  ;;  %11386 = vpow2.f32 %v899_v43  ;;  %v1654_v44 = vld [vmem:[%s17613_s30 + $0xa8] sm:$0xff]  ;;  %v11607_v46 = vld [vmem:[%s11847_s24 + $0xe0] sm:$0xff] }
  0xb4   : > { %10063 = vmatmul.mubr.msk.bf16.gmra.mxu0 %vm1391_vm1, %v12252_v2  ;;  %v11367_v10 = vpop.eup %11366  ;;  %v12428_v37 = vpack.c.bf16 %v1328_v52, %v1327_v8  ;;  %v1042_v1 = vmul.f32 %v11365_v21, %v12139_v35  ;;  %v1966_v7 = vshrl.u32 %v12300_v19, 16  ;;  %v1971_v63 = vrot.slane %v1969_v30, 1 }
  0xb5   : > { %10143 = vmatmul.mubr.msk.bf16.gmra.mxu1 %vm1391_vm1, %v12392_v60  ;;  %10066 = vmatprep.mubr.msk.bf16.mxu0 %vm11644_vm0, %v17617_v27  ;;  %v11369_v20 = vpop.eup %11368  ;;  %v809_v43 = vsub.f32 0.0, %v12411_v34  ;;  %v721_v62 = vmul.f32 %v11607_v46, %v12377_v28  ;;  %v926_v35 = vadd.f32 1.0, %v11361_v17  ;;  %11388 = vpow2.f32 %v873_v41 }
  0xb6   : > { %10146 = vmatprep.mubr.msk.bf16.mxu1 %vm11644_vm0, %v17617_v27  ;;  %v12421_v58 = vpop.permute.xlu1 %1207  ;;  %v12423_v23 = vpop.permute.xlu0 %1202  ;;  %17624 = vst [vmem:[#allocation23_spill] sm:$0xff] %v12428_v37  ;;  %v1968_v8 = vor.u32 %v1966_v7, %v1964_v0  ;;  %v808_v21 = vsub.f32 0.0, %v12418_v61  ;;  %v925_v36 = vadd.f32 1.0, %v11367_v10  ;;  %11390 = vpow2.f32 %v871_v9 }
  0xb7   : > { %1772 = vperm.xlu1 %11219, %v1653_v50   ;;  %2807 = vperm.xlu0 %11218, %v9155_v53   ;;  %v11371_v52 = vpop.eup %11370  ;;  %v811_v32 = vsub.f32 0.0, %v12426_v29  ;;  %v1330_v25 = vmul.f32 %v12356_v4, %v1043_v38  ;;  %v1329_v46 = vmul.f32 %v12358_v6, %v1042_v1  ;;  %v1976_v17 = vshll.u32 %v12428_v37, 16  ;;  %v9156_v4 = vld [vmem:[%s17613_s30 + $0x2f0] sm:$0xff]  ;;  %v1656_v6 = vld [vmem:[%s17613_s30 + $0xb8] sm:$0xff] }
  0xb8   : > { %v11373_v30 = vpop.eup %11372  ;;  %v12450_v0 = vsel %vm1934_vm2, %v1968_v8, %v1971_v63  ;;  %v877_v10 = vmul.f32 1.442695, %v809_v43  ;;  %v12464_v41 = vadd.f32 %v12408_v45, %v721_v62  ;;  %11392 = vrcp.f32 %v926_v35  ;;  %v676_v1 = vld [vmem:[%s11847_s24 + $0xf8] sm:$0xff]  ;;  %v675_v8 = vld [vmem:[%s11847_s24 + $0xf0] sm:$0xff] }
  0xb9   : > { %v11375_v31 = vpop.eup %11374  ;;  %17625 = vst [vmem:[#allocation24_spill] sm:$0xff] %v12450_v0  ;;  %v875_v9 = vmul.f32 1.442695, %v808_v21  ;;  %11394 = vrcp.f32 %v925_v36  ;;  %v881_v62 = vmul.f32 1.442695, %v811_v32  ;;  %v12477_v35 = vpack.c.bf16 %v1330_v25, %v1329_v46  ;;  %v9158_v36 = vld [vmem:[%s17613_s30 + $0x300] sm:$0xff] }
  0xba   : > { %v12442_v50 = vpop.permute.xlu1 %1217  ;;  %v12444_v53 = vpop.permute.xlu0 %1212  ;;  %v1973_v21 = vshrl.u32 %v12363_v57, 16  ;;  %v1978_v60 = vrot.slane %v1976_v17, 1  ;;  %v928_v48 = vadd.f32 1.0, %v11369_v20  ;;  %v9157_v32 = vld [vmem:[%s17613_s30 + $0x2f8] sm:$0xff]  ;;  %11396 = vpow2.f32 %v877_v10 }
  0xbb   : > { %1782 = vperm.xlu1 %11219, %v1655_v54   ;;  %1777 = vperm.xlu0 %11218, %v1654_v44   ;;  %v11377_v38 = vpop.eup %11376  ;;  %v1045_v54 = vmul.f32 %v11373_v30, %v12146_v59  ;;  %17626 = vst [vmem:[#allocation25_spill] sm:$0xff] %v12477_v35  ;;  %v810_v25 = vsub.f32 0.0, %v12464_v41  ;;  %v724_v59 = vmul.f32 %v12377_v28, %v676_v1  ;;  %11398 = vpow2.f32 %v875_v9 }
  0xbc   : > { %10067 = vmatmul.mubr.msk.bf16.gmra.mxu0 %vm1391_vm1, %v12300_v19  ;;  %v11379_v7 = vpop.eup %11378  ;;  %v1975_v30 = vor.u32 %v1973_v21, %v1971_v63  ;;  %v723_v46 = vmul.f32 %v12377_v28, %v675_v8  ;;  %11400 = vpow2.f32 %v881_v62 }
  0xbd   : > { %10147 = vmatmul.mubr.msk.bf16.gmra.mxu1 %vm1391_vm1, %v12450_v0  ;;  %10070 = vmatprep.mubr.msk.bf16.mxu0 %vm11644_vm0, %v17617_v27  ;;  %v11381_v24 = vpop.eup %11380  ;;  %v1044_v0 = vmul.f32 %v11375_v31, %v12154_v13  ;;  %v927_v13 = vadd.f32 1.0, %v11371_v52  ;;  %v1332_v10 = vmul.f32 %v12382_v51, %v1045_v54  ;;  %v1983_v52 = vshll.u32 %v12477_v35, 16  ;;  %v9159_v51 = vld [vmem:[%s17613_s30 + $0x308] sm:$0xff] }
  0xbe   : > { %10150 = vmatprep.mubr.msk.bf16.mxu1 %vm11644_vm0, %v17617_v27  ;;  %v12472_v44 = vpop.permute.xlu1 %1227  ;;  %v12474_v43 = vpop.permute.xlu0 %1222  ;;  %v941_v39 = vadd.f32 1.0, %v11381_v24  ;;  %v12497_v63 = vsel %vm1934_vm2, %v1975_v30, %v1978_v60  ;;  %11402 = vrcp.f32 %v928_v48  ;;  %v1657_v24 = vld [vmem:[%s17613_s30 + $0xc0] sm:$0xff]  ;;  %v12515_v48 = vadd.f32 %v12408_v45, %v724_v59 }
  0xbf   : > { %2812 = vperm.xlu1 %11219, %v9156_v4   ;;  %1787 = vperm.xlu0 %11218, %v1656_v6   ;;  %v11383_v31 = vpop.eup %11382  ;;  %v942_v6 = vadd.f32 1.0, %v11379_v7  ;;  %v1331_v2 = vmul.f32 %v12384_v3, %v1044_v0  ;;  %17627 = vst [vmem:[#allocation26_spill] sm:$0xff] %v12497_v63  ;;  %v879_v3 = vmul.f32 1.442695, %v810_v25  ;;  %11404 = vrcp.f32 %v927_v13 }
  0xc0   : > { %v11385_v20 = vpop.eup %11384  ;;  %v12518_v0 = vadd.f32 %v12408_v45, %v723_v46  ;;  %v1047_v7 = vmul.f32 %v11377_v38, %v12168_v47  ;;  %v1046_v54 = vmul.f32 %v11383_v31, %v12172_v49  ;;  %v1980_v25 = vshrl.u32 %v12428_v37, 16  ;;  %v1659_v49 = vld [vmem:[%s17613_s30 + $0xd0] sm:$0xff]  ;;  %v1658_v47 = vld [vmem:[%s17613_s30 + $0xc8] sm:$0xff] }
  0xc1   : > { %v11387_v19 = vpop.eup %11386  ;;  %v944_v9 = vadd.f32 1.0, %v11385_v20  ;;  %11406 = vrcp.f32 %v942_v6  ;;  %v1985_v59 = vrot.slane %v1983_v52, 1  ;;  %v11608_v38 = vld [vmem:[%s11847_s24 + $0x108] sm:$0xff]  ;;  %v813_v46 = vsub.f32 0.0, %v12515_v48 }
  0xc2   : > { %v12490_v17 = vpop.permute.xlu1 %1237  ;;  %v12492_v4 = vpop.permute.xlu0 %1232  ;;  %v943_v21 = vadd.f32 1.0, %v11387_v19  ;;  %11408 = vrcp.f32 %v941_v39  ;;  %v726_v19 = vmul.f32 %v11608_v38, %v12377_v28  ;;  %v1982_v30 = vor.u32 %v1980_v25, %v1978_v60  ;;  %v679_v25 = vld [vmem:[%s11847_s24 + $0x110] sm:$0xff] }
  0xc3   : > { %2822 = vperm.xlu1 %11219, %v9158_v36   ;;  %2817 = vperm.xlu0 %11218, %v9157_v32   ;;  %v11389_v1 = vpop.eup %11388  ;;  %v12526_v32 = vpack.c.bf16 %v1332_v10, %v1331_v2  ;;  %11410 = vpow2.f32 %v879_v3  ;;  %v11609_v2 = vld [vmem:[%s11847_s24 + $0x100] sm:$0xff]  ;;  %v812_v52 = vsub.f32 0.0, %v12518_v0  ;;  %v1333_v3 = vmul.f32 %v12423_v23, %v1046_v54  ;;  %v1660_v23 = vld [vmem:[%s17613_s30 + $0xd8] sm:$0xff] }
  0xc4   : > { %10071 = vmatmul.mubr.msk.bf16.gmra.mxu0 %vm1391_vm1, %v12363_v57  ;;  %v11391_v36 = vpop.eup %11390  ;;  %v725_v31 = vmul.f32 %v11609_v2, %v12377_v28  ;;  %v930_v13 = vadd.f32 1.0, %v11389_v1  ;;  %11412 = vrcp.f32 %v944_v9  ;;  %v12548_v60 = vsel %vm1934_vm2, %v1982_v30, %v1985_v59 }
  0xc5   : > { %10151 = vmatmul.mubr.msk.bf16.gmra.mxu1 %vm1391_vm1, %v12497_v63  ;;  %10074 = vmatprep.mubr.msk.bf16.mxu0 %vm11644_vm0, %v17617_v27  ;;  %17628 = vst [vmem:[#allocation27_spill] sm:$0xff] %v12526_v32  ;;  %v11393_v39 = vpop.eup %11392  ;;  %v929_v20 = vadd.f32 1.0, %v11391_v36  ;;  %11414 = vrcp.f32 %v943_v21  ;;  %17629 = vst [vmem:[#allocation28_spill] sm:$0xff] %v12548_v60  ;;  %v1990_v9 = vshll.u32 %v12526_v32, 16  ;;  %v12562_v1 = vadd.f32 %v12408_v45, %v726_v19  ;;  %v680_v36 = vld [vmem:[%s11847_s24 + $0x118] sm:$0xff] }
  0xc6   : > { %10154 = vmatprep.mubr.msk.bf16.mxu1 %vm11644_vm0, %v17617_v27  ;;  %v12522_v62 = vpop.permute.xlu1 %1247  ;;  %v12524_v8 = vpop.permute.xlu0 %1242  ;;  %11416 = vrcp.f32 %v930_v13  ;;  %v885_v54 = vmul.f32 1.442695, %v813_v46  ;;  %v12565_v21 = vadd.f32 %v12408_v45, %v725_v31  ;;  %v883_v2 = vmul.f32 1.442695, %v812_v52 }
  0xc7   : > { %1792 = vperm.xlu1 %11219, %v1657_v24   ;;  %2827 = vperm.xlu0 %11218, %v9159_v51   ;;  %v11395_v24 = vpop.eup %11394  ;;  %v1334_v51 = vmul.f32 %v12421_v58, %v1047_v7  ;;  %v9160_v58 = vld [vmem:[%s17613_s30 + $0x310] sm:$0xff]  ;;  %11418 = vrcp.f32 %v929_v20  ;;  %v1987_v46 = vshrl.u32 %v12477_v35, 16  ;;  %v815_v63 = vsub.f32 0.0, %v12562_v1 }
  0xc8   : > { %v11397_v7 = vpop.eup %11396  ;;  %v1048_v30 = vmul.f32 %v11395_v24, %v12195_v40  ;;  %v728_v20 = vmul.f32 %v12377_v28, %v680_v36  ;;  %v727_v52 = vmul.f32 %v12377_v28, %v679_v25  ;;  %11420 = vpow2.f32 %v885_v54 }
  0xc9   : > { %v12578_v31 = vpack.c.bf16 %v1334_v51, %v1333_v3  ;;  %v932_v24 = vadd.f32 1.0, %v11397_v7  ;;  %v814_v51 = vsub.f32 0.0, %v12565_v21  ;;  %v1989_v3 = vor.u32 %v1987_v46, %v1985_v59 }
  0xca   : > { %v12540_v6 = vpop.permute.xlu1 %1257  ;;  %v12542_v10 = vpop.permute.xlu0 %1252  ;;  %11422 = vpow2.f32 %v883_v2  ;;  %v1335_v36 = vmul.f32 %v12444_v53, %v1048_v30  ;;  %v889_v54 = vmul.f32 1.442695, %v815_v63  ;;  %v12607_v25 = vadd.f32 %v12408_v45, %v728_v20  ;;  %v1661_v53 = vld [vmem:[%s17613_s30 + $0xe0] sm:$0xff]  ;;  %v9163_v63 = vld [vmem:[%s17613_s30 + $0x328] sm:$0xff] }
  0xcb   : > { %1802 = vperm.xlu1 %11219, %v1659_v49   ;;  %1797 = vperm.xlu0 %11218, %v1658_v47   ;;  %v11399_v49 = vpop.eup %11398  ;;  %v1049_v47 = vmul.f32 %v11393_v39, %v12192_v14  ;;  %17630 = vst [vmem:[#allocation29_spill] sm:$0xff] %v12578_v31  ;;  %v9162_v14 = vld [vmem:[%s17613_s30 + $0x320] sm:$0xff]  ;;  %v9161_v39 = vld [vmem:[%s17613_s30 + $0x318] sm:$0xff]  ;;  %v1997_v7 = vshll.u32 %v12578_v31, 16  ;;  %11424 = vrcp.f32 %v932_v24 }
  0xcc   : > { %10075 = vmatmul.mubr.msk.bf16.gmra.mxu0 %vm1391_vm1, %v12428_v37  ;;  %v11401_v13 = vpop.eup %11400 }
  0xcd   : > { %10155 = vmatmul.mubr.msk.bf16.gmra.mxu1 %vm1391_vm1, %v12548_v60  ;;  %10078 = vmatprep.mubr.msk.bf16.mxu0 %vm11644_vm0, %v17617_v27  ;;  %v1992_v60 = vrot.slane %v1990_v9, 1  ;;  %v11403_v40 = vpop.eup %11402  ;;  %v1336_v15 = vmul.f32 %v12442_v50, %v1049_v47  ;;  %v12610_v50 = vadd.f32 %v12408_v45, %v727_v52  ;;  %v887_v47 = vmul.f32 1.442695, %v814_v51 }
  0xce   : > { %10158 = vmatprep.mubr.msk.bf16.mxu1 %vm11644_vm0, %v17617_v27  ;;  %v12574_v38 = vpop.permute.xlu1 %1267  ;;  %v12576_v19 = vpop.permute.xlu0 %1262  ;;  %v1051_v45 = vmul.f32 %v11403_v40, %v12210_v26  ;;  %v1994_v51 = vshrl.u32 %v12526_v32, 16  ;;  %v817_v26 = vsub.f32 0.0, %v12607_v25  ;;  %v1663_v40 = vld [vmem:[%s17613_s30 + $0xf0] sm:$0xff] }
  0xcf   : > { %2832 = vperm.xlu1 %11219, %v9160_v58   ;;  %1807 = vperm.xlu0 %11218, %v1660_v23   ;;  %v11405_v9 = vpop.eup %11404  ;;  %v931_v58 = vadd.f32 1.0, %v11399_v49  ;;  %v12599_v28 = vsel %vm1934_vm2, %v1989_v3, %v1992_v60  ;;  %v12629_v52 = vpack.c.bf16 %v1336_v15, %v1335_v36  ;;  %v1999_v3 = vrot.slane %v1997_v7, 1  ;;  %v1662_v15 = vld [vmem:[%s17613_s30 + $0xe8] sm:$0xff] }
  0xd0   : > { %v11407_v57 = vpop.eup %11406  ;;  %17631 = vst [vmem:[#allocation30_spill] sm:$0xff] %v12599_v28  ;;  %v1050_v30 = vmul.f32 %v11405_v9, %v12250_v12  ;;  %v816_v12 = vsub.f32 0.0, %v12610_v50 }
  0xd1   : > { %v11409_v59 = vpop.eup %11408  ;;  %11426 = vrcp.f32 %v931_v58  ;;  %17632 = vst [vmem:[#allocation31_spill] sm:$0xff] %v12629_v52  ;;  %v1338_v58 = vmul.f32 %v12472_v44, %v1051_v45  ;;  %v893_v44 = vmul.f32 1.442695, %v817_v26 }
  0xd2   : > { %v12592_v23 = vpop.permute.xlu1 %1277  ;;  %v12594_v37 = vpop.permute.xlu0 %1272  ;;  %v1064_v24 = vmul.f32 %v11409_v59, %v12294_v18  ;;  %11428 = vpow2.f32 %v889_v54  ;;  %v1996_v18 = vor.u32 %v1994_v51, %v1992_v60  ;;  %v1337_v36 = vmul.f32 %v12474_v43, %v1050_v30 }
  0xd3   : > { %2842 = vperm.xlu1 %11219, %v9162_v14   ;;  %2837 = vperm.xlu0 %11218, %v9161_v39   ;;  %v11411_v49 = vpop.eup %11410  ;;  %v1065_v39 = vmul.f32 %v11407_v57, %v12288_v42  ;;  %v934_v42 = vadd.f32 1.0, %v11401_v13  ;;  %11430 = vpow2.f32 %v887_v47  ;;  %v2004_v60 = vshll.u32 %v12629_v52, 16 }
  0xd4   : > { %10079 = vmatmul.mubr.msk.bf16.gmra.mxu0 %vm1391_vm1, %v12477_v35  ;;  %v11413_v2 = vpop.eup %11412  ;;  %v933_v57 = vadd.f32 1.0, %v11411_v49  ;;  %v12648_v13 = vsel %vm1934_vm2, %v1996_v18, %v1999_v3  ;;  %v891_v43 = vmul.f32 1.442695, %v816_v12  ;;  %v12671_v51 = vpack.c.bf16 %v1338_v58, %v1337_v36 }
  0xd5   : > { %10159 = vmatmul.mubr.msk.bf16.gmra.mxu1 %vm1391_vm1, %v12599_v28  ;;  %10082 = vmatprep.mubr.msk.bf16.mxu0 %vm11644_vm0, %v17617_v27  ;;  %v11415_v20 = vpop.eup %11414  ;;  %v1067_v54 = vmul.f32 %v11413_v2, %v12318_v22  ;;  %17633 = vst [vmem:[#allocation32_spill] sm:$0xff] %v12648_v13  ;;  %v9164_v22 = vld [vmem:[%s17613_s30 + $0x330] sm:$0xff]  ;;  %11432 = vrcp.f32 %v934_v42  ;;  %v2006_v12 = vrot.slane %v2004_v60, 1 }
  0xd6   : > { %10162 = vmatprep.mubr.msk.bf16.mxu1 %vm11644_vm0, %v17617_v27  ;;  %v12624_v46 = vpop.permute.xlu1 %1287  ;;  %v12626_v14 = vpop.permute.xlu0 %1282  ;;  %11434 = vrcp.f32 %v933_v57  ;;  %17634 = vst [vmem:[#allocation33_spill] sm:$0xff] %v12671_v51 }
  0xd7   : > { %1812 = vperm.xlu1 %11219, %v1661_v53   ;;  %2847 = vperm.xlu0 %11218, %v9163_v63   ;;  %v11417_v9 = vpop.eup %11416  ;;  %v1066_v53 = vmul.f32 %v11415_v20, %v12326_v56  ;;  %v1664_v56 = vld [vmem:[%s17613_s30 + $0xf8] sm:$0xff]  ;;  %v2001_v20 = vshrl.u32 %v12578_v31, 16  ;;  %11436 = vpow2.f32 %v893_v44 }
  0xd8   : > { %v11419_v63 = vpop.eup %11418  ;;  %v1053_v2 = vmul.f32 %v11417_v9, %v12344_v33  ;;  %v9166_v33 = vld [vmem:[%s17613_s30 + $0x340] sm:$0xff]  ;;  %11438 = vpow2.f32 %v891_v43 }
  0xd9   : > { %v11421_v47 = vpop.eup %11420  ;;  %v1052_v45 = vmul.f32 %v11419_v63, %v12351_v16  ;;  %v9165_v16 = vld [vmem:[%s17613_s30 + $0x338] sm:$0xff] }
  0xda   : > { %v1298_v7 = vpop.permute.xlu1 %1297  ;;  %v1293_v59 = vpop.permute.xlu0 %1292  ;;  %v936_v57 = vadd.f32 1.0, %v11421_v47  ;;  %v2008_v47 = vshrl.u32 %v12629_v52, 16 }
  0xdb   : > { %v1352_v28 = vmul.f32 %v1298_v7, %v1065_v39  ;;  %v12645_v35 = vmul.f32 %v1293_v59, %v1064_v24  ;;  %1822 = vperm.xlu1 %11219, %v1663_v40   ;;  %1817 = vperm.xlu0 %11218, %v1662_v15   ;;  %v11423_v24 = vpop.eup %11422  ;;  %v2003_v15 = vor.u32 %v2001_v20, %v1999_v3  ;;  %v2011_v3 = vshll.u32 %v12671_v51, 16 }
  0xdc   : > { %10083 = vmatmul.mubr.msk.bf16.gmra.mxu0 %vm1391_vm1, %v12526_v32  ;;  %v11425_v42 = vpop.eup %11424  ;;  %v935_v18 = vadd.f32 1.0, %v11423_v24  ;;  %v1340_v7 = vmul.f32 %v12490_v17, %v1053_v2  ;;  %v1339_v59 = vmul.f32 %v12492_v4, %v1052_v45  ;;  %v9167_v17 = vld [vmem:[%s17613_s30 + $0x348] sm:$0xff]  ;;  %11440 = vrcp.f32 %v936_v57  ;;  %v5324_v45 = vld [vmem:[%s17639_s23 + $0x10] sm:$0xff] }
  0xdd   : > { %10163 = vmatmul.mubr.msk.bf16.gmra.mxu1 %vm1391_vm1, %v12648_v13  ;;  %v12662_v49 = vpack.c.bf16 %v1352_v28, %v12645_v35  ;;  %10086 = vmatprep.mubr.msk.bf16.mxu0 %vm11644_vm0, %v17617_v27  ;;  %v1055_v60 = vmul.f32 %v11425_v42, %v12411_v34  ;;  %v2013_v2 = vrot.slane %v2011_v3, 1  ;;  %v5323_v34 = vld [vmem:[%s17639_s23 + $0x8] sm:$0xff]  ;;  %v5853_v13 = vld [vmem:[%s17268_s5 + $0x70] sm:$0xff] }
  0xde   : > { %10166 = vmatprep.mubr.msk.bf16.mxu1 %vm11644_vm0, %v17617_v27  ;;  %v1308_v30 = vpop.permute.xlu1 %1307  ;;  %v1303_v39 = vpop.permute.xlu0 %1302  ;;  %v12714_v43 = vpack.c.bf16 %v1340_v7, %v1339_v59  ;;  %11442 = vrcp.f32 %v935_v18 }
  0xdf   : > { %v1354_v28 = vmul.f32 %v1308_v30, %v1067_v54  ;;  %v12673_v26 = vmul.f32 %v1303_v39, %v1066_v53  ;;  %2852 = vperm.xlu1 %11219, %v9164_v22   ;;  %1827 = vperm.xlu0 %11218, %v1664_v56   ;;  %v11427_v36 = vpop.eup %11426  ;;  %v12691_v54 = vsel %vm1934_vm2, %v2003_v15, %v2006_v12  ;;  %v5322_v53 = vld [vmem:[%s17639_s23] sm:$0xff] }
  0xe0   : > { %17638 = vst [vmem:[#allocation37_spill] sm:$0xff] %v12691_v54  ;;  %v11429_v4 = vpop.eup %11428  ;;  %v1054_v22 = vmul.f32 %v11427_v36, %v12418_v61  ;;  %17642 = vst [vmem:[#allocation40_spill] sm:$0xff] %v12714_v43  ;;  %v2010_v30 = vor.u32 %v2008_v47, %v2006_v12  ;;  %v2018_v57 = vshll.u32 %v12714_v43, 16  ;;  %v5326_v12 = vld [vmem:[%s17639_s23 + $0x20] sm:$0xff] }
  0xe1   : > { %v12682_v40 = vpack.c.bf16 %v1354_v28, %v12673_v26  ;;  %v11431_v63 = vpop.eup %11430  ;;  %v938_v61 = vadd.f32 1.0, %v11429_v4 }
  0xe2   : > { %v12684_v9 = vpop.permute.xlu1 %1672  ;;  %v12686_v58 = vpop.permute.xlu0 %1312  ;;  %v937_v20 = vadd.f32 1.0, %v11431_v63  ;;  %v1341_v15 = vmul.f32 %v12524_v8, %v1054_v22  ;;  %v12730_v42 = vsel %vm1934_vm2, %v2010_v30, %v2013_v2  ;;  %v2020_v4 = vrot.slane %v2018_v57, 1  ;;  %v5328_v63 = vld [vmem:[%s17639_s23 + $0x30] sm:$0xff] }
  0xe3   : > { %17635 = vst [vmem:[#allocation34_spill] sm:$0xff] %v12682_v40  ;;  %17636 = vst [vmem:[#allocation35_spill] sm:$0xff] %v12684_v9  ;;  %2862 = vperm.xlu1 %11219, %v9166_v33   ;;  %2857 = vperm.xlu0 %11218, %v9165_v16   ;;  %v11433_v39 = vpop.eup %11432  ;;  %v1342_v16 = vmul.f32 %v12522_v62, %v1055_v60  ;;  %v5325_v62 = vld [vmem:[%s17639_s23 + $0x18] sm:$0xff]  ;;  %11444 = vrcp.f32 %v938_v61 }
  0xe4   : > { %17637 = vst [vmem:[#allocation36_spill] sm:$0xff] %v12686_v58  ;;  %10087 = vmatmul.mubr.msk.bf16.gmra.mxu0 %vm1391_vm1, %v12578_v31  ;;  %v11435_v33 = vpop.eup %11434  ;;  %17645 = vst [vmem:[#allocation43_spill] sm:$0xff] %v12730_v42  ;;  %v1057_v18 = vmul.f32 %v11433_v39, %v12426_v29  ;;  %11446 = vrcp.f32 %v937_v20  ;;  %v5327_v29 = vld [vmem:[%s17639_s23 + $0x28] sm:$0xff] }
  0xe5   : > { %10167 = vmatmul.mubr.msk.bf16.gmra.mxu1 %vm1391_vm1, %v12691_v54  ;;  %10090 = vmatprep.mubr.msk.bf16.mxu0 %vm11644_vm0, %v17617_v27  ;;  %v11437_v8 = vpop.eup %11436  ;;  %v12752_v3 = vpack.c.bf16 %v1342_v16, %v1341_v15 }
  0xe6   : > { %10170 = vmatprep.mubr.msk.bf16.mxu1 %vm11644_vm0, %v17617_v27  ;;  %v12710_v56 = vpop.permute.xlu1 %1682  ;;  %v12712_v44 = vpop.permute.xlu0 %1677  ;;  %v940_v60 = vadd.f32 1.0, %v11437_v8  ;;  %v1344_v61 = vmul.f32 %v12540_v6, %v1057_v18  ;;  %v5330_v6 = vld [vmem:[%s17639_s23 + $0x40] sm:$0xff]  ;;  %v5332_v18 = vld [vmem:[%s17639_s23 + $0x50] sm:$0xff] }
  0xe7   : > { %17640 = vst [vmem:[#allocation38_spill] sm:$0xff] %v12710_v56  ;;  %17641 = vst [vmem:[#allocation39_spill] sm:$0xff] %v12712_v44  ;;  %5361 = vperm.xlu1 %11219, %v5322_v53   ;;  %2867 = vperm.xlu0 %11218, %v9167_v17   ;;  %v11439_v59 = vpop.eup %11438  ;;  %v1056_v53 = vmul.f32 %v11435_v33, %v12464_v41  ;;  %v2015_v17 = vshrl.u32 %v12671_v51, 16  ;;  %v2025_v20 = vshll.u32 %v12752_v3, 16 }
  0xe8   : > { %17648 = vst [vmem:[#allocation46_spill] sm:$0xff] %v12752_v3  ;;  %v939_v47 = vadd.f32 1.0, %v11439_v59  ;;  %11448 = vrcp.f32 %v940_v60 }
  0xe9   : > { %v2017_v22 = vor.u32 %v2015_v17, %v2013_v2  ;;  %v11441_v41 = vpop.eup %11440  ;;  %v1343_v30 = vmul.f32 %v12542_v10, %v1056_v53  ;;  %v5329_v10 = vld [vmem:[%s17639_s23 + $0x38] sm:$0xff]  ;;  %v2027_v8 = vrot.slane %v2025_v20, 1 }
  0xea   : > { %v12723_v24 = vpop.permute.xlu1 %2712  ;;  %v12725_v28 = vpop.permute.xlu0 %1687  ;;  %v1059_v2 = vmul.f32 %v11441_v41, %v12515_v48  ;;  %11450 = vrcp.f32 %v939_v47  ;;  %v5331_v48 = vld [vmem:[%s17639_s23 + $0x48] sm:$0xff] }
  0xeb   : > { %17643 = vst [vmem:[#allocation41_spill] sm:$0xff] %v12723_v24  ;;  %17644 = vst [vmem:[#allocation42_spill] sm:$0xff] %v12725_v28  ;;  %5371 = vperm.xlu1 %11219, %v5324_v45   ;;  %5366 = vperm.xlu0 %11218, %v5323_v34   ;;  %v12769_v39 = vsel %vm1934_vm2, %v2017_v22, %v2020_v4  ;;  %v11443_v33 = vpop.eup %11442  ;;  %v12791_v57 = vpack.c.bf16 %v1344_v61, %v1343_v30 }
  0xec   : > { %10091 = vmatmul.mubr.msk.bf16.gmra.mxu0 %vm1391_vm1, %v12629_v52  ;;  %17651 = vst [vmem:[#allocation49_spill] sm:$0xff] %v12769_v39 }
  0xed   : > { %10171 = vmatmul.mubr.msk.bf16.gmra.mxu1 %vm1391_vm1, %v12730_v42  ;;  %10094 = vmatprep.mubr.msk.bf16.mxu0 %vm11644_vm0, %v17617_v27  ;;  %17654 = vst [vmem:[#allocation52_spill] sm:$0xff] %v12791_v57  ;;  %v2032_v47 = vshll.u32 %v12791_v57, 16 }
  0xee   : > { %10174 = vmatprep.mubr.msk.bf16.mxu1 %vm11644_vm0, %v17617_v27  ;;  %v12748_v36 = vpop.permute.xlu1 %2722  ;;  %v12750_v7 = vpop.permute.xlu0 %2717 }
  0xef   : > { %17646 = vst [vmem:[#allocation44_spill] sm:$0xff] %v12748_v36  ;;  %17647 = vst [vmem:[#allocation45_spill] sm:$0xff] %v12750_v7  ;;  %5381 = vperm.xlu1 %11219, %v5326_v12   ;;  %5376 = vperm.xlu0 %11218, %v5325_v62   ;;  %v1058_v12 = vmul.f32 %v11443_v33, %v12518_v0  ;;  %v2022_v62 = vshrl.u32 %v12714_v43, 16  ;;  %v2029_v33 = vshrl.u32 %v12752_v3, 16 }
  0xf0   : > { %v11445_v53 = vpop.eup %11444 }
  0xf1   : > { %v2024_v59 = vor.u32 %v2022_v62, %v2020_v4  ;;  %v11447_v0 = vpop.eup %11446  ;;  %v1345_v60 = vmul.f32 %v12576_v19, %v1058_v12  ;;  %v5334_v4 = vld [vmem:[%s17639_s23 + $0x60] sm:$0xff]  ;;  %v1061_v19 = vmul.f32 %v11445_v53, %v12562_v1  ;;  %v5335_v1 = vld [vmem:[%s17639_s23 + $0x68] sm:$0xff] }
  0xf2   : > { %v12762_v45 = vpop.permute.xlu1 %1692  ;;  %v12764_v34 = vpop.permute.xlu0 %2727  ;;  %v1060_v20 = vmul.f32 %v11447_v0, %v12565_v21 }
  0xf3   : > { %17649 = vst [vmem:[#allocation47_spill] sm:$0xff] %v12762_v45  ;;  %17650 = vst [vmem:[#allocation48_spill] sm:$0xff] %v12764_v34  ;;  %5391 = vperm.xlu1 %11219, %v5328_v63   ;;  %5386 = vperm.xlu0 %11218, %v5327_v29   ;;  %v1346_v29 = vmul.f32 %v12574_v38, %v1059_v2  ;;  %v12808_v22 = vsel %vm1934_vm2, %v2024_v59, %v2027_v8  ;;  %v5333_v38 = vld [vmem:[%s17639_s23 + $0x58] sm:$0xff] }
  0xf4   : > { %10095 = vmatmul.mubr.msk.bf16.gmra.mxu0 %vm1391_vm1, %v12671_v51  ;;  %17657 = vst [vmem:[#allocation55_spill] sm:$0xff] %v12808_v22  ;;  %v2031_v2 = vor.u32 %v2029_v33, %v2027_v8  ;;  %v1347_v59 = vmul.f32 %v12594_v37, %v1060_v20  ;;  %v5338_v8 = vld [vmem:[%s17639_s23 + $0x80] sm:$0xff]  ;;  %v5337_v37 = vld [vmem:[%s17639_s23 + $0x78] sm:$0xff]  ;;  %v5340_v20 = vld [vmem:[%s17639_s23 + $0x90] sm:$0xff] }
  0xf5   : > { %10175 = vmatmul.mubr.msk.bf16.gmra.mxu1 %vm1391_vm1, %v12769_v39  ;;  %10098 = vmatprep.mubr.msk.bf16.mxu0 %vm11644_vm0, %v17617_v27  ;;  %v12830_v30 = vpack.c.bf16 %v1346_v29, %v1345_v60  ;;  %v11449_v12 = vpop.eup %11448 }
  0xf6   : > { %10178 = vmatprep.mubr.msk.bf16.mxu1 %vm11644_vm0, %v17617_v27  ;;  %v12787_v16 = vpop.permute.xlu1 %1702  ;;  %v12789_v15 = vpop.permute.xlu0 %1697 }
  0xf7   : > { %17652 = vst [vmem:[#allocation50_spill] sm:$0xff] %v12787_v16  ;;  %17653 = vst [vmem:[#allocation51_spill] sm:$0xff] %v12789_v15  ;;  %5401 = vperm.xlu1 %11219, %v5330_v6   ;;  %5396 = vperm.xlu0 %11218, %v5329_v10   ;;  %v2034_v6 = vrot.slane %v2032_v47, 1  ;;  %v5336_v10 = vld [vmem:[%s17639_s23 + $0x70] sm:$0xff]  ;;  %v11451_v21 = vpop.eup %11450  ;;  %v2039_v0 = vshll.u32 %v12830_v30, 16 }
  0xf8   : > { %17660 = vst [vmem:[#allocation58_spill] sm:$0xff] %v12830_v30 }
  0xf9   : > { %v12847_v53 = vsel %vm1934_vm2, %v2031_v2, %v2034_v6 }
  0xfa   : > { %v12801_v17 = vpop.permute.xlu1 %2732  ;;  %v12803_v63 = vpop.permute.xlu0 %1707  ;;  %17663 = vst [vmem:[#allocation61_spill] sm:$0xff] %v12847_v53 }
  0xfb   : > { %17655 = vst [vmem:[#allocation53_spill] sm:$0xff] %v12801_v17  ;;  %17656 = vst [vmem:[#allocation54_spill] sm:$0xff] %v12803_v63  ;;  %5411 = vperm.xlu1 %11219, %v5332_v18   ;;  %5406 = vperm.xlu0 %11218, %v5331_v48   ;;  %v1348_v48 = vmul.f32 %v12592_v23, %v1061_v19  ;;  %v1063_v23 = vmul.f32 %v11449_v12, %v12607_v25  ;;  %v2041_v19 = vrot.slane %v2039_v0, 1  ;;  %v5339_v25 = vld [vmem:[%s17639_s23 + $0x88] sm:$0xff]  ;;  %v5854_v17 = vld [vmem:[%s17268_s5 + $0x78] sm:$0xff] }
  0xfc   : > { %10099 = vmatmul.mubr.msk.bf16.gmra.mxu0 %vm1391_vm1, %v12714_v43  ;;  %v2043_v0 = vshrl.u32 %v12830_v30, 16 }
  0xfd   : > { %10179 = vmatmul.mubr.msk.bf16.gmra.mxu1 %vm1391_vm1, %v12808_v22  ;;  %10102 = vmatprep.mubr.msk.bf16.mxu0 %vm11644_vm0, %v17617_v27  ;;  %v12869_v47 = vpack.c.bf16 %v1348_v48, %v1347_v59  ;;  %v5358_v22 = vld [vmem:[%s17639_s23 + $0x120] sm:$0x3] }
  0xfe   : > { %10182 = vmatprep.mubr.msk.bf16.mxu1 %vm11644_vm0, %v17617_v27  ;;  %v12826_v41 = vpop.permute.xlu1 %2742  ;;  %v12828_v61 = vpop.permute.xlu0 %2737 }
  0xff   : > { %17658 = vst [vmem:[#allocation56_spill] sm:$0xff] %v12826_v41  ;;  %17659 = vst [vmem:[#allocation57_spill] sm:$0xff] %v12828_v61  ;;  %5421 = vperm.xlu1 %11219, %v5334_v4   ;;  %5416 = vperm.xlu0 %11218, %v5333_v38   ;;  %v1062_v4 = vmul.f32 %v11451_v21, %v12610_v50  ;;  %v2036_v38 = vshrl.u32 %v12791_v57, 16  ;;  %v1350_v50 = vmul.f32 %v12624_v46, %v1063_v23  ;;  %v5341_v46 = vld [vmem:[%s17639_s23 + $0x98] sm:$0xff]  ;;  %v5343_v23 = vld [vmem:[%s17639_s23 + $0xa8] sm:$0xff] }
 0x100   : > { %17666 = vst [vmem:[#allocation64_spill] sm:$0xff] %v12869_v47  ;;  %v2046_v21 = vshll.u32 %v12869_v47, 16 }
 0x101   : > { %v2038_v33 = vor.u32 %v2036_v38, %v2034_v6  ;;  %v1349_v2 = vmul.f32 %v12626_v14, %v1062_v4  ;;  %v5342_v6 = vld [vmem:[%s17639_s23 + $0xa0] sm:$0xff]  ;;  %v2045_v4 = vor.u32 %v2043_v0, %v2041_v19 }
 0x102   : > { %v12840_v62 = vpop.permute.xlu1 %1712  ;;  %v12842_v18 = vpop.permute.xlu0 %2747 }
 0x103   : > { %17661 = vst [vmem:[#allocation59_spill] sm:$0xff] %v12840_v62  ;;  %17662 = vst [vmem:[#allocation60_spill] sm:$0xff] %v12842_v18  ;;  %5431 = vperm.xlu1 %11219, %v5336_v10   ;;  %5426 = vperm.xlu0 %11218, %v5335_v1   ;;  %v12886_v12 = vsel %vm1934_vm2, %v2038_v33, %v2041_v19  ;;  %v12907_v59 = vpack.c.bf16 %v1350_v50, %v1349_v2  ;;  %v5346_v19 = vld [vmem:[%s17639_s23 + $0xc0] sm:$0xff]  ;;  %v5345_v50 = vld [vmem:[%s17639_s23 + $0xb8] sm:$0xff] }
 0x104   : > { %10103 = vmatmul.mubr.msk.bf16.gmra.mxu0 %vm1391_vm1, %v12752_v3  ;;  %17669 = vst [vmem:[#allocation67_spill] sm:$0xff] %v12886_v12 }
 0x105   : > { %10183 = vmatmul.mubr.msk.bf16.gmra.mxu1 %vm1391_vm1, %v12847_v53  ;;  %10106 = vmatprep.mubr.msk.bf16.mxu0 %vm11644_vm0, %v17617_v27  ;;  %17672 = vst [vmem:[#allocation70_spill] sm:$0xff] %v12907_v59  ;;  %v2053_v33 = vshll.u32 %v12907_v59, 16 }
 0x106   : > { %10186 = vmatprep.mubr.msk.bf16.mxu1 %vm11644_vm0, %v17617_v27  ;;  %v12865_v29 = vpop.permute.xlu1 %1722  ;;  %v12867_v60 = vpop.permute.xlu0 %1717 }
 0x107   : > { %17664 = vst [vmem:[#allocation62_spill] sm:$0xff] %v12865_v29  ;;  %17665 = vst [vmem:[#allocation63_spill] sm:$0xff] %v12867_v60  ;;  %5441 = vperm.xlu1 %11219, %v5338_v8   ;;  %5436 = vperm.xlu0 %11218, %v5337_v37   ;;  %v2048_v8 = vrot.slane %v2046_v21, 1  ;;  %v5344_v37 = vld [vmem:[%s17639_s23 + $0xb0] sm:$0xff]  ;;  %v2055_v0 = vrot.slane %v2053_v33, 1 }
 0x10a   : > { %v12879_v10 = vpop.permute.xlu1 %2752  ;;  %v12881_v1 = vpop.permute.xlu0 %1727 }
 0x10b   : > { %17667 = vst [vmem:[#allocation65_spill] sm:$0xff] %v12879_v10  ;;  %17668 = vst [vmem:[#allocation66_spill] sm:$0xff] %v12881_v1  ;;  %5451 = vperm.xlu1 %11219, %v5340_v20   ;;  %5446 = vperm.xlu0 %11218, %v5339_v25   ;;  %v12921_v25 = vsel %vm1934_vm2, %v2045_v4, %v2048_v8  ;;  %v5845_v10 = vld [vmem:[%s17268_s5 + $0x30] sm:$0xff] }
 0x10c   : > { %10107 = vmatmul.mubr.msk.bf16.gmra.mxu0 %vm1391_vm1, %v12791_v57  ;;  %17675 = vst [vmem:[#allocation73_spill] sm:$0xff] %v12921_v25 }
 0x10d   : > { %10187 = vmatmul.mubr.msk.bf16.gmra.mxu1 %vm1391_vm1, %v12886_v12  ;;  %10110 = vmatprep.mubr.msk.bf16.mxu0 %vm11644_vm0, %v17617_v27 }
 0x10e   : > { %10190 = vmatprep.mubr.msk.bf16.mxu1 %vm11644_vm0, %v17617_v27  ;;  %v12903_v14 = vpop.permute.xlu1 %2762  ;;  %v12905_v48 = vpop.permute.xlu0 %2757 }
 0x10f   : > { %17670 = vst [vmem:[#allocation68_spill] sm:$0xff] %v12903_v14  ;;  %17671 = vst [vmem:[#allocation69_spill] sm:$0xff] %v12905_v48  ;;  %5461 = vperm.xlu1 %11219, %v5342_v6   ;;  %5456 = vperm.xlu0 %11218, %v5341_v46   ;;  %v12944_v6 = vpack.c.bf16 %v12645_v35, %v12645_v35  ;;  %v2050_v46 = vshrl.u32 %v12869_v47, 16 }
 0x111   : > { %v2052_v4 = vor.u32 %v2050_v46, %v2048_v8  ;;  %v2060_v33 = vshll.u32 %v12944_v6, 16  ;;  %v1665_v8 = vld [vmem:[%s17613_s30 + $0x100] sm:$0xff] }
 0x112   : > { %v12916_v38 = vpop.permute.xlu1 %1732  ;;  %v12918_v20 = vpop.permute.xlu0 %2767 }
 0x113   : > { %17673 = vst [vmem:[#allocation71_spill] sm:$0xff] %v12916_v38  ;;  %17674 = vst [vmem:[#allocation72_spill] sm:$0xff] %v12918_v20  ;;  %5471 = vperm.xlu1 %11219, %v5344_v37   ;;  %5466 = vperm.xlu0 %11218, %v5343_v23   ;;  %v5348_v37 = vld [vmem:[%s17639_s23 + $0xd0] sm:$0xff]  ;;  %v5347_v23 = vld [vmem:[%s17639_s23 + $0xc8] sm:$0xff]  ;;  %v12958_v35 = vsel %vm1934_vm2, %v2052_v4, %v2055_v0 }
 0x114   : > { %10111 = vmatmul.mubr.msk.bf16.gmra.mxu0 %vm1391_vm1, %v12830_v30  ;;  %17680 = vst [vmem:[#allocation78_spill] sm:$0xff] %v12958_v35  ;;  %v5350_v4 = vld [vmem:[%s17639_s23 + $0xe0] sm:$0xff]  ;;  %v5357_v20 = vld [vmem:[%s17639_s23 + $0x118] sm:$0xff] }
 0x115   : > { %10191 = vmatmul.mubr.msk.bf16.gmra.mxu1 %vm1391_vm1, %v12921_v25  ;;  %10114 = vmatprep.mubr.msk.bf16.mxu0 %vm11644_vm0, %v17617_v27 }
 0x116   : > { %10194 = vmatprep.mubr.msk.bf16.mxu1 %vm11644_vm0, %v17617_v27  ;;  %v12938_v2 = vpop.permute.xlu1 %1742  ;;  %v12940_v21 = vpop.permute.xlu0 %1737 }
 0x117   : > { %17676 = vst [vmem:[#allocation74_spill] sm:$0xff] %v12938_v2  ;;  %17677 = vst [vmem:[#allocation75_spill] sm:$0xff] %v12940_v21  ;;  %5481 = vperm.xlu1 %11219, %v5346_v19   ;;  %5476 = vperm.xlu0 %11218, %v5345_v50   ;;  %v5349_v19 = vld [vmem:[%s17639_s23 + $0xd8] sm:$0xff] }
 0x11a   : > { %v12953_v40 = vpop.permute.xlu1 %2772  ;;  %v12955_v58 = vpop.permute.xlu0 %1747 }
 0x11b   : > { %17678 = vst [vmem:[#allocation76_spill] sm:$0xff] %v12953_v40  ;;  %17679 = vst [vmem:[#allocation77_spill] sm:$0xff] %v12955_v58  ;;  %5491 = vperm.xlu1 %11219, %v5348_v37   ;;  %5486 = vperm.xlu0 %11218, %v5347_v23   ;;  %v2057_v37 = vshrl.u32 %v12907_v59, 16  ;;  %v2062_v23 = vrot.slane %v2060_v33, 1  ;;  %v5352_v33 = vld [vmem:[%s17639_s23 + $0xf0] sm:$0xff]  ;;  %v1668_v40 = vld [vmem:[%s17613_s30 + $0x118] sm:$0xff] }
 0x11c   : > { %10115 = vmatmul.mubr.msk.bf16.gmra.mxu0 %vm1391_vm1, %v12869_v47 }
 0x11d   : > { %10195 = vmatmul.mubr.msk.bf16.gmra.mxu1 %vm1391_vm1, %v12958_v35  ;;  %10118 = vmatprep.mubr.msk.bf16.mxu0 %vm11644_vm0, %v17617_v27  ;;  %v9168_v35 = vld [vmem:[%s17613_s30 + $0x350] sm:$0xff]  ;;  %v12986_v25 = vor.u32 %v2057_v37, %v2055_v0  ;;  %v5351_v0 = vld [vmem:[%s17639_s23 + $0xe8] sm:$0xff]  ;;  %v5354_v37 = vld [vmem:[%s17639_s23 + $0x100] sm:$0xff] }
 0x11e   : > { %10198 = vmatprep.mubr.msk.bf16.mxu1 %vm11644_vm0, %v17617_v27  ;;  %v12975_v50 = vpop.permute.xlu1 %2782  ;;  %v12977_v46 = vpop.permute.xlu0 %2777 }
 0x11f   : > { %17681 = vst [vmem:[#allocation79_spill] sm:$0xff] %v12975_v50  ;;  %17682 = vst [vmem:[#allocation80_spill] sm:$0xff] %v12977_v46  ;;  %1832 = vperm.xlu1 %11219, %v1665_v8   ;;  %5496 = vperm.xlu0 %11218, %v5349_v19   ;;  %v2063_v8 = vsel %vm1934_vm2, %v12986_v25, %v2062_v23 }
 0x120   : > { %17683 = vst [vmem:[#allocation81_spill] sm:$0xff] %v12986_v25 }
 0x122   : > { %v12988_v12 = vpop.permute.xlu1 %1752  ;;  %v12990_v50 = vpop.permute.xlu0 %2787 }
 0x123   : > { %17684 = vst [vmem:[#allocation82_spill] sm:$0xff] %v12988_v12  ;;  %17685 = vst [vmem:[#allocation83_spill] sm:$0xff] %v12990_v50  ;;  %5501 = vperm.xlu1 %11219, %v5350_v4   ;;  %2872 = vperm.xlu0 %11218, %v9168_v35   ;;  %v5353_v4 = vld [vmem:[%s17639_s23 + $0xf8] sm:$0xff] }
 0x124   : > { %10119 = vmatmul.mubr.msk.bf16.gmra.mxu0 %vm1391_vm1, %v12907_v59 }
 0x125   : > { %10199 = vmatmul.mubr.msk.bf16.gmra.mxu1 %vm1391_vm1, %v2063_v8  ;;  %10122 = vmatprep.mubr.msk.bf16.mxu0 %vm11644_vm0, %v17617_v27  ;;  %v2064_v8 = vshrl.u32 %v12944_v6, 16 }
 0x126   : > { %10202 = vmatprep.mubr.msk.bf16.mxu1 %vm11644_vm0, %v17617_v27  ;;  %v13007_v35 = vpop.permute.xlu1 %1762  ;;  %v13009_v19 = vpop.permute.xlu0 %1757 }
 0x127   : > { %17686 = vst [vmem:[#allocation84_spill] sm:$0xff] %v13007_v35  ;;  %17687 = vst [vmem:[#allocation85_spill] sm:$0xff] %v13009_v19  ;;  %5511 = vperm.xlu1 %11219, %v5352_v33   ;;  %5506 = vperm.xlu0 %11218, %v5351_v0   ;;  %v2066_v53 = vor.u32 %v2064_v8, %v2062_v23  ;;  %v9169_v33 = vld [vmem:[%s17613_s30 + $0x358] sm:$0xff]  ;;  %v1666_v0 = vld [vmem:[%s17613_s30 + $0x108] sm:$0xff] }
 0x128   : > { %v11226_v8 = vld [vmem:[%s17271_s8 + $0x28] sm:$0xff]  }
 0x12a   : > { %v13018_v25 = vpop.permute.xlu1 %2792  ;;  %v13020_v50 = vpop.permute.xlu0 %1767 }
 0x12b   : > { %17688 = vst [vmem:[#allocation86_spill] sm:$0xff] %v13018_v25  ;;  %17689 = vst [vmem:[#allocation87_spill] sm:$0xff] %v13020_v50  ;;  %5521 = vperm.xlu1 %11219, %v5354_v37   ;;  %5516 = vperm.xlu0 %11218, %v5353_v4   ;;  %v1667_v4 = vld [vmem:[%s17613_s30 + $0x110] sm:$0xff] }
 0x12c   : > { %10123 = vmatmul.mubr.msk.bf16.gmra.mxu0 %vm1391_vm1, %v12944_v6 }
 0x12d   : > { %10203 = vmatmul.mubr.msk.bf16.gmra.mxu1 %vm1391_vm1, %v2066_v53  ;;  %10130 = vmatprep.mubr.msk.bf16.mxu0 %vm11644_vm0, %v17617_v27  ;;  %v9170_v53 = vld [vmem:[%s17613_s30 + $0x360] sm:$0xff] }
 0x12e   : > { %10290 = vmatprep.mubr.msk.bf16.mxu1 %vm11644_vm0, %v17617_v27  ;;  %v13035_v23 = vpop.permute.xlu1 %2802  ;;  %v13037_v37 = vpop.permute.xlu0 %2797 }
 0x12f   : > { %17690 = vst [vmem:[#allocation88_spill] sm:$0xff] %v13035_v23  ;;  %17691 = vst [vmem:[#allocation89_spill] sm:$0xff] %v13037_v37  ;;  %2877 = vperm.xlu1 %11219, %v9169_v33   ;;  %1837 = vperm.xlu0 %11218, %v1666_v0   ;;  %v5356_v33 = vld [vmem:[%s17639_s23 + $0x110] sm:$0xff]  ;;  %v5355_v0 = vld [vmem:[%s17639_s23 + $0x108] sm:$0xff]  ;;  %v2383_v23 = vrot.slane %v12215_v11, 1 }
 0x130   : > { %v1669_v37 = vld [vmem:[%s17613_s30 + $0x120] sm:$0x3] }
 0x132   : > { %v13048_v25 = vpop.permute.xlu1 %1772  ;;  %v13050_v46 = vpop.permute.xlu0 %2807 }
 0x133   : > { %17692 = vst [vmem:[#allocation90_spill] sm:$0xff] %v13048_v25  ;;  %17693 = vst [vmem:[#allocation91_spill] sm:$0xff] %v13050_v46  ;;  %2882 = vperm.xlu1 %11219, %v9170_v53   ;;  %1842 = vperm.xlu0 %11218, %v1667_v4   ;;  %v11229_v46 = vld [vmem:[%s17271_s8 + $0x58] sm:$0xff]  }
 0x134   : > { %10131 = vmatmul.mubr.msk.bf16.vlgmr.msra.gmra.mxu0 %vm1391_vm1, %v12263_v5  ;;  %v11227_v5 = vld [vmem:[%s17271_s8 + $0x20] sm:$0xff]  }
 0x135   : > { %10291 = vmatmul.mubr.msk.bf16.vlgmr.msra.gmra.mxu1 %vm1391_vm1, %v12215_v11  ;;  %10207 = vmatpush3.bf16.msra.mxu0 %v11226_v8  ;;  %v2382_v8 = vrot.slane %v12212_v55, 1 }
 0x136   : > { %10210 = vmatprep.mubr.msk.bf16.mxu0 %vm11644_vm0, %v17617_v27  ;;  %v13070_v53 = vpop.permute.xlu1 %1782  ;;  %v13072_v4 = vpop.permute.xlu0 %1777  ;;  %10208 = vmatprep.subr.bf16.mxu0 %v17617_v27 }
 0x137   : > { %17694 = vst [vmem:[#allocation92_spill] sm:$0xff] %v13070_v53  ;;  %17695 = vst [vmem:[#allocation93_spill] sm:$0xff] %v13072_v4  ;;  %10294 = vmatprep.mubr.msk.bf16.mxu1 %vm11644_vm0, %v17617_v27  ;;  %5531 = vperm.xlu1 %11219, %v5356_v33   ;;  %v11228_v33 = vld [vmem:[%s17271_s8 + $0x48] sm:$0xff]  }
 0x138   : > { %5526 = vperm.xlu0 %11218, %v5355_v0   ;;  %10447 = vmatpush3.bf16.msra.mxu1 %v11229_v46  ;;  %v2384_v0 = vsel %vm2381_vm3, %v2382_v8, %v2383_v23  ;;  %v17698_v46 = vld [vmem:[#allocation16_spill] sm:$0xff] }
 0x139   : > { %10209 = vmatpush3.bf16.msra.mxu0 %v11227_v5  ;;  %10448 = vmatprep.subr.bf16.mxu1 %v17617_v27  ;;  %v9172_v5 = vld [vmem:[%s17613_s30 + $0x370] sm:$0x3] }
 0x13a   : > { %v13089_v55 = vpop.permute.xlu1 %2812  ;;  %v13091_v11 = vpop.permute.xlu0 %1787  ;;  %10366 = vmatprep.subr.bf16.mxu0 %v17617_v27 }
 0x13b   : > { %17696 = vst [vmem:[#allocation94_spill] sm:$0xff] %v13089_v55  ;;  %17697 = vst [vmem:[#allocation95_spill] sm:$0xff] %v13091_v11  ;;  %1852 = vperm.xlu1 %11219, %v1669_v37   ;;  %v9171_v55 = vld [vmem:[%s17613_s30 + $0x368] sm:$0xff]  ;;  %v11231_v37 = vld [vmem:[%s17271_s8 + $0x50] sm:$0xff]  }
 0x13c   : > { %1847 = vperm.xlu0 %11218, %v1668_v40   ;;  %10211 = vmatmul.mubr.msk.bf16.vlgmr.msra.gmra.mxu0 %vm1391_vm1, %v2384_v0  ;;  %v11230_v40 = vld [vmem:[%s17271_s8 + $0x40] sm:$0xff]  }
 0x13d   : > { %10295 = vmatmul.mubr.msk.bf16.gmra.mxu1 %vm1391_vm1, %v17698_v46  ;;  %10367 = vmatpush3.bf16.msra.mxu0 %v11228_v33  ;;  %v2385_v33 = vrot.slane %v17698_v46, 1  ;;  %v5842_v46 = vld [vmem:[%s17268_s5 + $0x18] sm:$0xff] }
 0x13e   : > { %10214 = vmatprep.mubr.msk.bf16.mxu0 %vm11644_vm0, %v17617_v27  ;;  %v13112_v8 = vpop.permute.xlu1 %2822  ;;  %v13114_v0 = vpop.permute.xlu0 %2817  ;;  %10298 = vmatprep.mubr.msk.bf16.mxu1 %vm11644_vm0, %v17617_v27 }
 0x13f   : > { %17699 = vst [vmem:[#allocation96_spill] sm:$0xff] %v13112_v8  ;;  %17700 = vst [vmem:[#allocation97_spill] sm:$0xff] %v13114_v0  ;;  %10368 = vmatprep.subr.bf16.mxu0 %v17617_v27  ;;  %2892 = vperm.xlu1 %11219, %v9172_v5   ;;  %v17703_v5 = vld [vmem:[#allocation17_spill] sm:$0xff] }
 0x140   : > { %2887 = vperm.xlu0 %11218, %v9171_v55   ;;  %10449 = vmatpush3.bf16.msra.mxu1 %v11231_v37  ;;  %v13133_v55 = vsel %vm2381_vm3, %v2383_v23, %v2385_v33  ;;  %v5840_v37 = vld [vmem:[%s17268_s5 + $0x8] sm:$0xff]  ;;  %v2387_v23 = vrot.slane %v17703_v5, 1 }
 0x141   : > { %10369 = vmatpush3.bf16.msra.mxu0 %v11230_v40  ;;  %10606 = vmatprep.subr.bf16.mxu1 %v17617_v27  ;;  %v5839_v40 = vld [vmem:[%s17268_s5] sm:$0xff] }
 0x142   : > { %v13127_v8 = vpop.permute.xlu1 %1792  ;;  %v13129_v0 = vpop.permute.xlu0 %2827  ;;  %10526 = vmatprep.subr.bf16.mxu0 %v17617_v27  ;;  %v13165_v48 = vsel %vm2381_vm3, %v2385_v33, %v2387_v23 }
 0x143   : > { %17701 = vst [vmem:[#allocation98_spill] sm:$0xff] %v13127_v8  ;;  %17702 = vst [vmem:[#allocation99_spill] sm:$0xff] %v13129_v0  ;;  %5541 = vperm.xlu1 %11219, %v5358_v22   ;;  %v5841_v0 = vld [vmem:[%s17268_s5 + $0x10] sm:$0xff] }
 0x144   : > { %5536 = vperm.xlu0 %11218, %v5357_v20   ;;  %10215 = vmatmul.mubr.msk.bf16.gmra.mxu0 %vm1391_vm1, %v13133_v55  ;;  %17708 = vst [vmem:[#allocation104_spill] sm:$0xff] %v13165_v48 }
 0x145   : > { %10299 = vmatmul.mubr.msk.bf16.gmra.mxu1 %vm1391_vm1, %v17703_v5  ;;  %10218 = vmatprep.mubr.msk.bf16.mxu0 %vm11644_vm0, %v17617_v27  ;;  %v5843_v5 = vld [vmem:[%s17268_s5 + $0x20] sm:$0xff] }
 0x146   : > { %10302 = vmatprep.mubr.msk.bf16.mxu1 %vm11644_vm0, %v17617_v27  ;;  %v13149_v22 = vpop.permute.xlu1 %1802  ;;  %v13151_v20 = vpop.permute.xlu0 %1797 }
 0x147   : > { %17704 = vst [vmem:[#allocation100_spill] sm:$0xff] %v13149_v22  ;;  %17705 = vst [vmem:[#allocation101_spill] sm:$0xff] %v13151_v20  ;;  %5878 = vperm.xlu1 %11219, %v5840_v37   ;;  %v17709_v37 = vld [vmem:[#allocation19_spill] sm:$0xff] }
 0x148   : > { %5873 = vperm.xlu0 %11218, %v5839_v40   ;;  %v5844_v40 = vld [vmem:[%s17268_s5 + $0x28] sm:$0xff] }
 0x14a   : > { %v13160_v14 = vpop.permute.xlu1 %2832  ;;  %v13162_v39 = vpop.permute.xlu0 %1807 }
 0x14b   : > { %17706 = vst [vmem:[#allocation102_spill] sm:$0xff] %v13160_v14  ;;  %17707 = vst [vmem:[#allocation103_spill] sm:$0xff] %v13162_v39  ;;  %5888 = vperm.xlu1 %11219, %v5842_v46   ;;  %v5846_v14 = vld [vmem:[%s17268_s5 + $0x38] sm:$0xff] }
 0x14c   : > { %5883 = vperm.xlu0 %11218, %v5841_v0   ;;  %10219 = vmatmul.mubr.msk.bf16.gmra.mxu0 %vm1391_vm1, %v13165_v48  ;;  %v2389_v0 = vrot.slane %v17709_v37, 1 }
 0x14d   : > { %10303 = vmatmul.mubr.msk.bf16.gmra.mxu1 %vm1391_vm1, %v17709_v37  ;;  %10222 = vmatprep.mubr.msk.bf16.mxu0 %vm11644_vm0, %v17617_v27  ;;  %v5847_v37 = vld [vmem:[%s17268_s5 + $0x40] sm:$0xff] }
 0x14e   : > { %10306 = vmatprep.mubr.msk.bf16.mxu1 %vm11644_vm0, %v17617_v27  ;;  %v13181_v46 = vpop.permute.xlu0 %2837  ;;  %v13184_v33 = vpop.permute.xlu1 %2842 }
 0x14f   : > { %17710 = vst [vmem:[#allocation105_spill] sm:$0xff] %v13181_v46  ;;  %5898 = vperm.xlu1 %11219, %v5844_v40   ;;  %17711 = vst [vmem:[#allocation106_spill] sm:$0xff] %v13184_v33  ;;  %v13195_v46 = vsel %vm2381_vm3, %v2387_v23, %v2389_v0  ;;  %v5848_v40 = vld [vmem:[%s17268_s5 + $0x48] sm:$0xff]  ;;  %v5849_v33 = vld [vmem:[%s17268_s5 + $0x50] sm:$0xff] }
 0x150   : > { %5893 = vperm.xlu0 %11218, %v5843_v5   ;;  %17713 = vst [vmem:[#allocation108_spill] sm:$0xff] %v13195_v46  ;;  %v17714_v5 = vld [vmem:[#allocation21_spill] sm:$0xff] }
 0x151   : > { %v2391_v23 = vrot.slane %v17714_v5, 1 }
 0x152   : > { %v13192_v42 = vpop.permute.xlu0 %2847 }
 0x153   : > { %17712 = vst [vmem:[#allocation107_spill] sm:$0xff] %v13192_v42  ;;  %5908 = vperm.xlu1 %11219, %v5846_v14   ;;  %v5850_v42 = vld [vmem:[%s17268_s5 + $0x58] sm:$0xff]  ;;  %v13223_v18 = vsel %vm2381_vm3, %v2389_v0, %v2391_v23 }
 0x154   : > { %5903 = vperm.xlu0 %11218, %v5845_v10   ;;  %10223 = vmatmul.mubr.msk.bf16.gmra.mxu0 %vm1391_vm1, %v13195_v46  ;;  %v13211_v10 = vpop.permute.xlu1 %1812  ;;  %17717 = vst [vmem:[#allocation111_spill] sm:$0xff] %v13223_v18 }
 0x155   : > { %10307 = vmatmul.mubr.msk.bf16.gmra.mxu1 %vm1391_vm1, %v17714_v5  ;;  %10226 = vmatprep.mubr.msk.bf16.mxu0 %vm11644_vm0, %v17617_v27  ;;  %17715 = vst [vmem:[#allocation109_spill] sm:$0xff] %v13211_v10 }
 0x156   : > { %10310 = vmatprep.mubr.msk.bf16.mxu1 %vm11644_vm0, %v17617_v27  ;;  %v13213_v14 = vpop.permute.xlu0 %1817 }
 0x157   : > { %17716 = vst [vmem:[#allocation110_spill] sm:$0xff] %v13213_v14  ;;  %5918 = vperm.xlu1 %11219, %v5848_v40   ;;  %v5852_v40 = vld [vmem:[%s17268_s5 + $0x68] sm:$0xff] }
 0x158   : > { %5913 = vperm.xlu0 %11218, %v5847_v37   ;;  %v13225_v41 = vpop.permute.xlu1 %1822  ;;  %v17719_v37 = vld [vmem:[#allocation23_spill] sm:$0xff] }
 0x159   : > { %17718 = vst [vmem:[#allocation112_spill] sm:$0xff] %v13225_v41  ;;  %v2393_v5 = vrot.slane %v17719_v37, 1 }
 0x15a   : > { %v13239_v0 = vpop.permute.xlu0 %1827 }
 0x15b   : > { %5928 = vperm.xlu1 %11219, %v5850_v42   ;;  %v5851_v42 = vld [vmem:[%s17268_s5 + $0x60] sm:$0xff]  ;;  %17720 = vst [vmem:[#allocation113_spill] sm:$0xff] %v13239_v0 }
 0x15c   : > { %5923 = vperm.xlu0 %11218, %v5849_v33   ;;  %v13227_v54 = vpop.f32.mrf.mxu0  ;;  %10227 = vmatmul.mubr.msk.bf16.gmra.mxu0 %vm1391_vm1, %v13223_v18  ;;  %v13254_v34 = vpop.permute.xlu1 %2852 }
 0x15d   : > { %10311 = vmatmul.mubr.msk.bf16.gmra.mxu1 %vm1391_vm1, %v17719_v37  ;;  %10230 = vmatprep.mubr.msk.bf16.mxu0 %vm11644_vm0, %v17617_v27  ;;  %17722 = vst [vmem:[#allocation115_spill] sm:$0xff] %v13254_v34  ;;  %v17725_v37 = vld [vmem:[#allocation25_spill] sm:$0xff]  ;;  %v5856_v34 = vld [vmem:[%s17268_s5 + $0x88] sm:$0xff] }
 0x15e   : > { %10314 = vmatprep.mubr.msk.bf16.mxu1 %vm11644_vm0, %v17617_v27  ;;  %v10052_v33 = vpop.f32.mrf.mxu0  ;;  %v13256_v7 = vpop.permute.xlu0 %2857  ;;  %v2395_v24 = vrot.slane %v17725_v37, 1 }
 0x15f   : > { %5938 = vperm.xlu1 %11219, %v5852_v40   ;;  %17723 = vst [vmem:[#allocation116_spill] sm:$0xff] %v13256_v7  ;;  %v13259_v40 = vsel %vm2381_vm3, %v2391_v23, %v2393_v5 }
 0x160   : > { %5933 = vperm.xlu0 %11218, %v5851_v42   ;;  %v13246_v61 = vpop.f32.mrf.mxu0  ;;  %17724 = vst [vmem:[#allocation117_spill] sm:$0xff] %v13259_v40  ;;  %v13279_v44 = vpop.permute.xlu1 %2862 }
 0x161   : > { %17721 = vst [vmem:[#allocation114_spill] sm:$0xff] %v13246_v61  ;;  %17726 = vst [vmem:[#allocation118_spill] sm:$0xff] %v13279_v44 }
 0x162   : > { %v10053_v36 = vpop.f32.mrf.mxu0 }
 0x163   : > { %5948 = vperm.xlu1 %11219, %v5854_v17   ;;  %v5855_v36 = vld [vmem:[%s17268_s5 + $0x80] sm:$0xff] }
 0x164   : > { %5943 = vperm.xlu0 %11218, %v5853_v13   ;;  %v1491_v42 = vpop.f32.mrf.mxu0  ;;  %10231 = vmatmul.mubr.msk.bf16.gmra.mxu0 %vm1391_vm1, %v13259_v40 }
 0x165   : > { %v2178_v33 = vpop.f32.mrf.mxu1  ;;  %10315 = vmatmul.mubr.msk.bf16.gmra.mxu1 %vm1391_vm1, %v17725_v37  ;;  %v1857_v13 = vmul.f32 %v12710_v56, %v1491_v42  ;;  %10234 = vmatprep.mubr.msk.bf16.mxu0 %vm11644_vm0, %v17617_v27  ;;  %v5858_v42 = vld [vmem:[%s17268_s5 + $0x98] sm:$0xff]  ;;  %v5857_v56 = vld [vmem:[%s17268_s5 + $0x90] sm:$0xff]  ;;  %v13293_v37 = vsel %vm2381_vm3, %v2393_v5, %v2395_v24  ;;  %v13310_v5 = vpop.permute.xlu1 %5361 }
 0x166   : > { %10318 = vmatprep.mubr.msk.bf16.mxu1 %vm11644_vm0, %v17617_v27  ;;  %v10056_v17 = vpop.f32.mrf.mxu0  ;;  %17729 = vst [vmem:[#allocation121_spill] sm:$0xff] %v13293_v37  ;;  %17730 = vst [vmem:[#allocation122_spill] sm:$0xff] %v13310_v5 }
 0x167   : > { %v13276_v23 = vadd.f32 %v2178_v33, %v1857_v13  ;;  %v10136_v7 = vpop.f32.mrf.mxu1  ;;  %5958 = vperm.xlu1 %11219, %v5856_v34   ;;  %v13288_v13 = vpop.permute.xlu0 %2867 }
 0x168   : > { %5953 = vperm.xlu0 %11218, %v5855_v36   ;;  %v1494_v61 = vpop.f32.mrf.mxu0  ;;  %17727 = vst [vmem:[#allocation119_spill] sm:$0xff] %v13288_v13  ;;  %v2397_v13 = vrot.slane %v12526_v32, 1 }
 0x169   : > { %v1858_v17 = vmul.f32 %v12725_v28, %v1494_v61  ;;  %v2181_v33 = vpop.f32.mrf.mxu1  ;;  %v5860_v61 = vld [vmem:[%s17268_s5 + $0xa8] sm:$0xff]  ;;  %v5861_v28 = vld [vmem:[%s17268_s5 + $0xb0] sm:$0xff] }
 0x16a   : > { %v10057_v7 = vpop.f32.mrf.mxu0 }
 0x16b   : > { %v13290_v34 = vadd.f32 %v2181_v33, %v1858_v17  ;;  %v10137_v36 = vpop.f32.mrf.mxu1  ;;  %5968 = vperm.xlu1 %11219, %v5858_v42   ;;  %v5859_v17 = vld [vmem:[%s17268_s5 + $0xa0] sm:$0xff] }
 0x16c   : > { %5963 = vperm.xlu0 %11218, %v5857_v56   ;;  %v1499_v44 = vpop.f32.mrf.mxu0  ;;  %10235 = vmatmul.mubr.msk.bf16.gmra.mxu0 %vm1391_vm1, %v13293_v37 }
 0x16d   : > { %17728 = vst [vmem:[#allocation120_spill] sm:$0xff] %v13290_v34  ;;  %10319 = vmatmul.mubr.msk.bf16.gmra.mxu1 %vm1391_vm1, %v12526_v32  ;;  %v1859_v56 = vmul.f32 %v12762_v45, %v1499_v44  ;;  %v2186_v42 = vpop.f32.mrf.mxu1  ;;  %10238 = vmatprep.mubr.msk.bf16.mxu0 %vm11644_vm0, %v17617_v27  ;;  %v13315_v34 = vpop.permute.xlu0 %5366  ;;  %v5862_v45 = vld [vmem:[%s17268_s5 + $0xb8] sm:$0xff] }
 0x16e   : > { %10322 = vmatprep.mubr.msk.bf16.mxu1 %vm11644_vm0, %v17617_v27  ;;  %v10060_v33 = vpop.f32.mrf.mxu0  ;;  %17731 = vst [vmem:[#allocation123_spill] sm:$0xff] %v13315_v34  ;;  %v13329_v34 = vpop.permute.xlu1 %5371 }
 0x16f   : > { %v13312_v7 = vadd.f32 %v2186_v42, %v1859_v56  ;;  %v10140_v36 = vpop.f32.mrf.mxu1  ;;  %5978 = vperm.xlu1 %11219, %v5860_v61   ;;  %17734 = vst [vmem:[#allocation126_spill] sm:$0xff] %v13329_v34  ;;  %v2399_v34 = vrot.slane %v12578_v31, 1 }
 0x170   : > { %5973 = vperm.xlu0 %11218, %v5859_v17   ;;  %v1502_v44 = vpop.f32.mrf.mxu0  ;;  %v13327_v17 = vsel %vm2381_vm3, %v2395_v24, %v2397_v13 }
 0x171   : > { %v1860_v33 = vmul.f32 %v12789_v15, %v1502_v44  ;;  %v2189_v56 = vpop.f32.mrf.mxu1  ;;  %17733 = vst [vmem:[#allocation125_spill] sm:$0xff] %v13327_v17  ;;  %v5864_v44 = vld [vmem:[%s17268_s5 + $0xc8] sm:$0xff] }
 0x172   : > { %v10061_v42 = vpop.f32.mrf.mxu0 }
 0x173   : > { %v13324_v36 = vadd.f32 %v2189_v56, %v1860_v33  ;;  %v10141_v61 = vpop.f32.mrf.mxu1  ;;  %5988 = vperm.xlu1 %11219, %v5862_v45   ;;  %v13346_v33 = vpop.permute.xlu0 %5376 }
 0x174   : > { %5983 = vperm.xlu0 %11218, %v5861_v28   ;;  %v1507_v5 = vpop.f32.mrf.mxu0  ;;  %10239 = vmatmul.mubr.msk.bf16.gmra.mxu0 %vm1391_vm1, %v13327_v17  ;;  %v5863_v28 = vld [vmem:[%s17268_s5 + $0xc0] sm:$0xff]  ;;  %17735 = vst [vmem:[#allocation127_spill] sm:$0xff] %v13346_v33 }
 0x175   : > { %17732 = vst [vmem:[#allocation124_spill] sm:$0xff] %v13324_v36  ;;  %10323 = vmatmul.mubr.msk.bf16.gmra.mxu1 %vm1391_vm1, %v12578_v31  ;;  %v1861_v24 = vmul.f32 %v12787_v16, %v1507_v5  ;;  %v2194_v45 = vpop.f32.mrf.mxu1  ;;  %10242 = vmatprep.mubr.msk.bf16.mxu0 %vm11644_vm0, %v17617_v27  ;;  %v5866_v5 = vld [vmem:[%s17268_s5 + $0xd8] sm:$0xff]  ;;  %v5865_v16 = vld [vmem:[%s17268_s5 + $0xd0] sm:$0xff] }
 0x176   : > { %10326 = vmatprep.mubr.msk.bf16.mxu1 %vm11644_vm0, %v17617_v27  ;;  %v10064_v56 = vpop.f32.mrf.mxu0 }
 0x177   : > { %v13348_v42 = vadd.f32 %v2194_v45, %v1861_v24  ;;  %v10144_v61 = vpop.f32.mrf.mxu1  ;;  %5998 = vperm.xlu1 %11219, %v5864_v44   ;;  %v13358_v56 = vpop.permute.xlu1 %5381 }
 0x178   : > { %5993 = vperm.xlu0 %11218, %v5863_v28   ;;  %v1510_v32 = vpop.f32.mrf.mxu0  ;;  %17736 = vst [vmem:[#allocation128_spill] sm:$0xff] %v13358_v56  ;;  %v13363_v28 = vsel %vm2381_vm3, %v2397_v13, %v2399_v34  ;;  %v13365_v61 = vpop.permute.xlu0 %5386 }
 0x179   : > { %v1862_v36 = vmul.f32 %v12803_v63, %v1510_v32  ;;  %v2197_v33 = vpop.f32.mrf.mxu1  ;;  %17737 = vst [vmem:[#allocation129_spill] sm:$0xff] %v13363_v28  ;;  %17738 = vst [vmem:[#allocation130_spill] sm:$0xff] %v13365_v61  ;;  %v5868_v32 = vld [vmem:[%s17268_s5 + $0xe8] sm:$0xff] }
 0x17a   : > { %v10065_v24 = vpop.f32.mrf.mxu0 }
 0x17b   : > { %v13360_v45 = vadd.f32 %v2197_v33, %v1862_v36  ;;  %v10145_v44 = vpop.f32.mrf.mxu1  ;;  %6008 = vperm.xlu1 %11219, %v5866_v5   ;;  %v13385_v61 = vpop.permute.xlu1 %5391 }
 0x17c   : > { %6003 = vperm.xlu0 %11218, %v5865_v16   ;;  %v1515_v31 = vpop.f32.mrf.mxu0  ;;  %10243 = vmatmul.mubr.msk.bf16.gmra.mxu0 %vm1391_vm1, %v13363_v28  ;;  %v5867_v16 = vld [vmem:[%s17268_s5 + $0xe0] sm:$0xff]  ;;  %v2401_v44 = vrot.slane %v12629_v52, 1  ;;  %17739 = vst [vmem:[#allocation131_spill] sm:$0xff] %v13385_v61 }
 0x17d   : > { %10327 = vmatmul.mubr.msk.bf16.gmra.mxu1 %vm1391_vm1, %v12629_v52  ;;  %v1863_v13 = vmul.f32 %v12840_v62, %v1515_v31  ;;  %v2202_v36 = vpop.f32.mrf.mxu1  ;;  %10246 = vmatprep.mubr.msk.bf16.mxu0 %vm11644_vm0, %v17617_v27  ;;  %v5870_v31 = vld [vmem:[%s17268_s5 + $0xf8] sm:$0xff]  ;;  %v5869_v62 = vld [vmem:[%s17268_s5 + $0xf0] sm:$0xff] }
 0x17e   : > { %10330 = vmatprep.mubr.msk.bf16.mxu1 %vm11644_vm0, %v17617_v27  ;;  %v10068_v33 = vpop.f32.mrf.mxu0  ;;  %v13399_v61 = vsel %vm2381_vm3, %v2399_v34, %v2401_v44 }
 0x17f   : > { %v13382_v5 = vadd.f32 %v2202_v36, %v1863_v13  ;;  %v10148_v24 = vpop.f32.mrf.mxu1  ;;  %6018 = vperm.xlu1 %11219, %v5868_v32   ;;  %v13394_v36 = vpop.permute.xlu0 %5396  ;;  %17742 = vst [vmem:[#allocation134_spill] sm:$0xff] %v13399_v61 }
 0x180   : > { %6013 = vperm.xlu0 %11218, %v5867_v16   ;;  %v1518_v56 = vpop.f32.mrf.mxu0  ;;  %17740 = vst [vmem:[#allocation132_spill] sm:$0xff] %v13394_v36  ;;  %v13416_v34 = vpop.permute.xlu1 %5401  ;;  %v2403_v36 = vrot.slane %v12671_v51, 1 }
 0x181   : > { %v1864_v33 = vmul.f32 %v12867_v60, %v1518_v56  ;;  %v2205_v13 = vpop.f32.mrf.mxu1  ;;  %v9419_v56 = vld [vmem:[%s17268_s5 + $0x208] sm:$0xff]  ;;  %17743 = vst [vmem:[#allocation135_spill] sm:$0xff] %v13416_v34  ;;  %v9420_v60 = vld [vmem:[%s17268_s5 + $0x210] sm:$0xff] }
 0x182   : > { %v10069_v32 = vpop.f32.mrf.mxu0 }
 0x183   : > { %v13396_v16 = vadd.f32 %v2205_v13, %v1864_v33  ;;  %v10149_v24 = vpop.f32.mrf.mxu1  ;;  %6028 = vperm.xlu1 %11219, %v5870_v31   ;;  %v9418_v33 = vld [vmem:[%s17268_s5 + $0x200] sm:$0xff] }
 0x184   : > { %6023 = vperm.xlu0 %11218, %v5869_v62   ;;  %v1523_v52 = vpop.f32.mrf.mxu0  ;;  %10247 = vmatmul.mubr.msk.bf16.gmra.mxu0 %vm1391_vm1, %v13399_v61 }
 0x185   : > { %17741 = vst [vmem:[#allocation133_spill] sm:$0xff] %v13396_v16  ;;  %10331 = vmatmul.mubr.msk.bf16.gmra.mxu1 %vm1391_vm1, %v12671_v51  ;;  %v1865_v62 = vmul.f32 %v12865_v29, %v1523_v52  ;;  %v2210_v31 = vpop.f32.mrf.mxu1  ;;  %10250 = vmatprep.mubr.msk.bf16.mxu0 %vm11644_vm0, %v17617_v27  ;;  %v13421_v16 = vpop.permute.xlu0 %5406  ;;  %v9421_v29 = vld [vmem:[%s17268_s5 + $0x218] sm:$0xff] }
 0x186   : > { %10334 = vmatprep.mubr.msk.bf16.mxu1 %vm11644_vm0, %v17617_v27  ;;  %v10072_v13 = vpop.f32.mrf.mxu0  ;;  %17744 = vst [vmem:[#allocation136_spill] sm:$0xff] %v13421_v16  ;;  %v13435_v16 = vpop.permute.xlu1 %5411 }
 0x187   : > { %v13418_v32 = vadd.f32 %v2210_v31, %v1865_v62  ;;  %v10152_v24 = vpop.f32.mrf.mxu1  ;;  %6818 = vperm.xlu1 %11219, %v9419_v56   ;;  %17747 = vst [vmem:[#allocation139_spill] sm:$0xff] %v13435_v16  ;;  %v2405_v16 = vrot.slane %v12714_v43, 1 }
 0x188   : > { %6813 = vperm.xlu0 %11218, %v9418_v33   ;;  %v1526_v52 = vpop.f32.mrf.mxu0  ;;  %v13433_v33 = vsel %vm2381_vm3, %v2401_v44, %v2403_v36 }
 0x189   : > { %v1866_v13 = vmul.f32 %v12881_v1, %v1526_v52  ;;  %v2213_v62 = vpop.f32.mrf.mxu1  ;;  %17746 = vst [vmem:[#allocation138_spill] sm:$0xff] %v13433_v33  ;;  %v9423_v52 = vld [vmem:[%s17268_s5 + $0x228] sm:$0xff] }
 0x18a   : > { %v10073_v31 = vpop.f32.mrf.mxu0 }
 0x18b   : > { %v13430_v24 = vadd.f32 %v2213_v62, %v1866_v13  ;;  %v10153_v56 = vpop.f32.mrf.mxu1  ;;  %6828 = vperm.xlu1 %11219, %v9421_v29   ;;  %v9422_v29 = vld [vmem:[%s17268_s5 + $0x220] sm:$0xff]  ;;  %v13452_v13 = vpop.permute.xlu0 %5416 }
 0x18c   : > { %6823 = vperm.xlu0 %11218, %v9420_v60   ;;  %v1531_v34 = vpop.f32.mrf.mxu0  ;;  %10251 = vmatmul.mubr.msk.bf16.gmra.mxu0 %vm1391_vm1, %v13433_v33  ;;  %17748 = vst [vmem:[#allocation140_spill] sm:$0xff] %v13452_v13 }
 0x18d   : > { %17745 = vst [vmem:[#allocation137_spill] sm:$0xff] %v13430_v24  ;;  %10335 = vmatmul.mubr.msk.bf16.gmra.mxu1 %vm1391_vm1, %v12714_v43  ;;  %v1867_v60 = vmul.f32 %v12916_v38, %v1531_v34  ;;  %v2218_v44 = vpop.f32.mrf.mxu1  ;;  %10254 = vmatprep.mubr.msk.bf16.mxu0 %vm11644_vm0, %v17617_v27  ;;  %v9425_v34 = vld [vmem:[%s17268_s5 + $0x238] sm:$0xff]  ;;  %v9424_v38 = vld [vmem:[%s17268_s5 + $0x230] sm:$0xff] }
 0x18e   : > { %10338 = vmatprep.mubr.msk.bf16.mxu1 %vm11644_vm0, %v17617_v27  ;;  %v10076_v62 = vpop.f32.mrf.mxu0 }
 0x18f   : > { %v13454_v31 = vadd.f32 %v2218_v44, %v1867_v60  ;;  %v10156_v56 = vpop.f32.mrf.mxu1  ;;  %6838 = vperm.xlu1 %11219, %v9423_v52   ;;  %v13464_v62 = vpop.permute.xlu1 %5421 }
 0x190   : > { %6833 = vperm.xlu0 %11218, %v9422_v29   ;;  %v1534_v51 = vpop.f32.mrf.mxu0  ;;  %17749 = vst [vmem:[#allocation141_spill] sm:$0xff] %v13464_v62  ;;  %v13469_v29 = vsel %vm2381_vm3, %v2403_v36, %v2405_v16  ;;  %v13471_v56 = vpop.permute.xlu0 %5426 }
 0x191   : > { %v1868_v24 = vmul.f32 %v12940_v21, %v1534_v51  ;;  %v2221_v13 = vpop.f32.mrf.mxu1  ;;  %17750 = vst [vmem:[#allocation142_spill] sm:$0xff] %v13469_v29  ;;  %17751 = vst [vmem:[#allocation143_spill] sm:$0xff] %v13471_v56  ;;  %v9427_v51 = vld [vmem:[%s17268_s5 + $0x248] sm:$0xff] }
 0x192   : > { %v10077_v60 = vpop.f32.mrf.mxu0 }
 0x193   : > { %v13466_v44 = vadd.f32 %v2221_v13, %v1868_v24  ;;  %v10157_v52 = vpop.f32.mrf.mxu1  ;;  %6848 = vperm.xlu1 %11219, %v9425_v34   ;;  %v13491_v56 = vpop.permute.xlu1 %5431 }
 0x194   : > { %6843 = vperm.xlu0 %11218, %v9424_v38   ;;  %v1539_v43 = vpop.f32.mrf.mxu0  ;;  %10255 = vmatmul.mubr.msk.bf16.gmra.mxu0 %vm1391_vm1, %v13469_v29  ;;  %v9426_v38 = vld [vmem:[%s17268_s5 + $0x240] sm:$0xff]  ;;  %v2407_v52 = vrot.slane %v12752_v3, 1  ;;  %17752 = vst [vmem:[#allocation144_spill] sm:$0xff] %v13491_v56 }
 0x195   : > { %10339 = vmatmul.mubr.msk.bf16.gmra.mxu1 %vm1391_vm1, %v12752_v3  ;;  %v1869_v36 = vmul.f32 %v12938_v2, %v1539_v43  ;;  %v2226_v24 = vpop.f32.mrf.mxu1  ;;  %10258 = vmatprep.mubr.msk.bf16.mxu0 %vm11644_vm0, %v17617_v27  ;;  %v9429_v43 = vld [vmem:[%s17268_s5 + $0x258] sm:$0xff]  ;;  %v9428_v2 = vld [vmem:[%s17268_s5 + $0x250] sm:$0xff] }
 0x196   : > { %10342 = vmatprep.mubr.msk.bf16.mxu1 %vm11644_vm0, %v17617_v27  ;;  %v10080_v13 = vpop.f32.mrf.mxu0  ;;  %v13505_v56 = vsel %vm2381_vm3, %v2405_v16, %v2407_v52 }
 0x197   : > { %v13488_v34 = vadd.f32 %v2226_v24, %v1869_v36  ;;  %v10160_v60 = vpop.f32.mrf.mxu1  ;;  %6858 = vperm.xlu1 %11219, %v9427_v51   ;;  %v13500_v24 = vpop.permute.xlu0 %5436  ;;  %17755 = vst [vmem:[#allocation147_spill] sm:$0xff] %v13505_v56 }
 0x198   : > { %6853 = vperm.xlu0 %11218, %v9426_v38   ;;  %v1542_v62 = vpop.f32.mrf.mxu0  ;;  %17753 = vst [vmem:[#allocation145_spill] sm:$0xff] %v13500_v24  ;;  %v13522_v16 = vpop.permute.xlu1 %5441  ;;  %v2409_v24 = vrot.slane %v12791_v57, 1 }
 0x199   : > { %v1870_v13 = vmul.f32 %v12955_v58, %v1542_v62  ;;  %v2229_v36 = vpop.f32.mrf.mxu1  ;;  %v9431_v62 = vld [vmem:[%s17268_s5 + $0x268] sm:$0xff]  ;;  %17756 = vst [vmem:[#allocation148_spill] sm:$0xff] %v13522_v16  ;;  %v9432_v58 = vld [vmem:[%s17268_s5 + $0x270] sm:$0xff] }
 0x19a   : > { %v10081_v51 = vpop.f32.mrf.mxu0 }
 0x19b   : > { %v13502_v38 = vadd.f32 %v2229_v36, %v1870_v13  ;;  %v10161_v60 = vpop.f32.mrf.mxu1  ;;  %6868 = vperm.xlu1 %11219, %v9429_v43   ;;  %v9430_v13 = vld [vmem:[%s17268_s5 + $0x260] sm:$0xff] }
 0x19c   : > { %6863 = vperm.xlu0 %11218, %v9428_v2   ;;  %v1547_v3 = vpop.f32.mrf.mxu0  ;;  %10259 = vmatmul.mubr.msk.bf16.gmra.mxu0 %vm1391_vm1, %v13505_v56 }
 0x19d   : > { %17754 = vst [vmem:[#allocation146_spill] sm:$0xff] %v13502_v38  ;;  %10343 = vmatmul.mubr.msk.bf16.gmra.mxu1 %vm1391_vm1, %v12791_v57  ;;  %v1871_v2 = vmul.f32 %v12988_v12, %v1547_v3  ;;  %v2234_v43 = vpop.f32.mrf.mxu1  ;;  %10262 = vmatprep.mubr.msk.bf16.mxu0 %vm11644_vm0, %v17617_v27  ;;  %v13527_v38 = vpop.permute.xlu0 %5446  ;;  %v9433_v12 = vld [vmem:[%s17268_s5 + $0x278] sm:$0xff] }
 0x19e   : > { %10346 = vmatprep.mubr.msk.bf16.mxu1 %vm11644_vm0, %v17617_v27  ;;  %v10084_v36 = vpop.f32.mrf.mxu0  ;;  %17757 = vst [vmem:[#allocation149_spill] sm:$0xff] %v13527_v38  ;;  %v13541_v38 = vpop.permute.xlu1 %5451 }
 0x19f   : > { %v13524_v51 = vadd.f32 %v2234_v43, %v1871_v2  ;;  %v10164_v60 = vpop.f32.mrf.mxu1  ;;  %6878 = vperm.xlu1 %11219, %v9431_v62   ;;  %17760 = vst [vmem:[#allocation152_spill] sm:$0xff] %v13541_v38  ;;  %v2411_v38 = vrot.slane %v12830_v30, 1 }
 0x1a0   : > { %6873 = vperm.xlu0 %11218, %v9430_v13   ;;  %v1550_v3 = vpop.f32.mrf.mxu0  ;;  %v13539_v13 = vsel %vm2381_vm3, %v2407_v52, %v2409_v24 }
 0x1a1   : > { %v1872_v36 = vmul.f32 %v13009_v19, %v1550_v3  ;;  %v2237_v2 = vpop.f32.mrf.mxu1  ;;  %17759 = vst [vmem:[#allocation151_spill] sm:$0xff] %v13539_v13  ;;  %v9435_v3 = vld [vmem:[%s17268_s5 + $0x288] sm:$0xff] }
 0x1a2   : > { %v10085_v43 = vpop.f32.mrf.mxu0 }
 0x1a3   : > { %v13536_v60 = vadd.f32 %v2237_v2, %v1872_v36  ;;  %v10165_v62 = vpop.f32.mrf.mxu1  ;;  %6888 = vperm.xlu1 %11219, %v9433_v12   ;;  %v13558_v36 = vpop.permute.xlu0 %5456 }
 0x1a4   : > { %6883 = vperm.xlu0 %11218, %v9432_v58   ;;  %v1555_v16 = vpop.f32.mrf.mxu0  ;;  %10263 = vmatmul.mubr.msk.bf16.gmra.mxu0 %vm1391_vm1, %v13539_v13  ;;  %v9434_v58 = vld [vmem:[%s17268_s5 + $0x280] sm:$0xff]  ;;  %17761 = vst [vmem:[#allocation153_spill] sm:$0xff] %v13558_v36 }
 0x1a5   : > { %17758 = vst [vmem:[#allocation150_spill] sm:$0xff] %v13536_v60  ;;  %10347 = vmatmul.mubr.msk.bf16.gmra.mxu1 %vm1391_vm1, %v12830_v30  ;;  %v1873_v12 = vmul.f32 %v13007_v35, %v1555_v16  ;;  %v2242_v52 = vpop.f32.mrf.mxu1  ;;  %10266 = vmatprep.mubr.msk.bf16.mxu0 %vm11644_vm0, %v17617_v27  ;;  %v9437_v16 = vld [vmem:[%s17268_s5 + $0x298] sm:$0xff]  ;;  %v9436_v35 = vld [vmem:[%s17268_s5 + $0x290] sm:$0xff] }
 0x1a6   : > { %10350 = vmatprep.mubr.msk.bf16.mxu1 %vm11644_vm0, %v17617_v27  ;;  %v10088_v2 = vpop.f32.mrf.mxu0 }
 0x1a7   : > { %v13560_v43 = vadd.f32 %v2242_v52, %v1873_v12  ;;  %v10168_v62 = vpop.f32.mrf.mxu1  ;;  %6898 = vperm.xlu1 %11219, %v9435_v3   ;;  %v13570_v2 = vpop.permute.xlu1 %5461 }
 0x1a8   : > { %6893 = vperm.xlu0 %11218, %v9434_v58   ;;  %v1558_v57 = vpop.f32.mrf.mxu0  ;;  %17762 = vst [vmem:[#allocation154_spill] sm:$0xff] %v13570_v2  ;;  %v13575_v58 = vsel %vm2381_vm3, %v2409_v24, %v2411_v38  ;;  %v13577_v62 = vpop.permute.xlu0 %5466 }
 0x1a9   : > { %v1874_v60 = vmul.f32 %v13020_v50, %v1558_v57  ;;  %v2245_v36 = vpop.f32.mrf.mxu1  ;;  %17763 = vst [vmem:[#allocation155_spill] sm:$0xff] %v13575_v58  ;;  %17764 = vst [vmem:[#allocation156_spill] sm:$0xff] %v13577_v62  ;;  %v9439_v57 = vld [vmem:[%s17268_s5 + $0x2a8] sm:$0xff] }
 0x1aa   : > { %v10089_v12 = vpop.f32.mrf.mxu0 }
 0x1ab   : > { %v13572_v52 = vadd.f32 %v2245_v36, %v1874_v60  ;;  %v10169_v3 = vpop.f32.mrf.mxu1  ;;  %6908 = vperm.xlu1 %11219, %v9437_v16   ;;  %v13597_v62 = vpop.permute.xlu1 %5471 }
 0x1ac   : > { %6903 = vperm.xlu0 %11218, %v9436_v35   ;;  %v1563_v30 = vpop.f32.mrf.mxu0  ;;  %10267 = vmatmul.mubr.msk.bf16.gmra.mxu0 %vm1391_vm1, %v13575_v58  ;;  %v9438_v35 = vld [vmem:[%s17268_s5 + $0x2a0] sm:$0xff]  ;;  %v2413_v3 = vrot.slane %v12869_v47, 1  ;;  %17765 = vst [vmem:[#allocation157_spill] sm:$0xff] %v13597_v62 }
 0x1ad   : > { %10351 = vmatmul.mubr.msk.bf16.gmra.mxu1 %vm1391_vm1, %v12869_v47  ;;  %v1875_v24 = vmul.f32 %v13048_v25, %v1563_v30  ;;  %v2250_v60 = vpop.f32.mrf.mxu1  ;;  %10270 = vmatprep.mubr.msk.bf16.mxu0 %vm11644_vm0, %v17617_v27  ;;  %v9441_v30 = vld [vmem:[%s17268_s5 + $0x2b8] sm:$0xff]  ;;  %v9440_v25 = vld [vmem:[%s17268_s5 + $0x2b0] sm:$0xff] }
 0x1ae   : > { %10354 = vmatprep.mubr.msk.bf16.mxu1 %vm11644_vm0, %v17617_v27  ;;  %v10092_v36 = vpop.f32.mrf.mxu0  ;;  %v13611_v62 = vsel %vm2381_vm3, %v2411_v38, %v2413_v3 }
 0x1af   : > { %v13594_v16 = vadd.f32 %v2250_v60, %v1875_v24  ;;  %v10172_v12 = vpop.f32.mrf.mxu1  ;;  %6918 = vperm.xlu1 %11219, %v9439_v57   ;;  %v13606_v60 = vpop.permute.xlu0 %5476  ;;  %17768 = vst [vmem:[#allocation160_spill] sm:$0xff] %v13611_v62 }
 0x1b0   : > { %6913 = vperm.xlu0 %11218, %v9438_v35   ;;  %v1566_v2 = vpop.f32.mrf.mxu0  ;;  %17766 = vst [vmem:[#allocation158_spill] sm:$0xff] %v13606_v60  ;;  %v13628_v38 = vpop.permute.xlu1 %5481  ;;  %v13633_v60 = vrot.slane %v12907_v59, 1 }
 0x1b1   : > { %v1876_v36 = vmul.f32 %v13072_v4, %v1566_v2  ;;  %v2253_v24 = vpop.f32.mrf.mxu1  ;;  %v9443_v2 = vld [vmem:[%s17268_s5 + $0x2c8] sm:$0xff]  ;;  %17769 = vst [vmem:[#allocation161_spill] sm:$0xff] %v13628_v38  ;;  %v9444_v38 = vld [vmem:[%s17268_s5 + $0x2d0] sm:$0xff] }
 0x1b2   : > { %v10093_v57 = vpop.f32.mrf.mxu0 }
 0x1b3   : > { %v13608_v35 = vadd.f32 %v2253_v24, %v1876_v36  ;;  %v10173_v12 = vpop.f32.mrf.mxu1  ;;  %6928 = vperm.xlu1 %11219, %v9441_v30   ;;  %v9442_v36 = vld [vmem:[%s17268_s5 + $0x2c0] sm:$0xff] }
 0x1b4   : > { %6923 = vperm.xlu0 %11218, %v9440_v25   ;;  %v1571_v47 = vpop.f32.mrf.mxu0  ;;  %10271 = vmatmul.mubr.msk.bf16.gmra.mxu0 %vm1391_vm1, %v13611_v62 }
 0x1b5   : > { %17767 = vst [vmem:[#allocation159_spill] sm:$0xff] %v13608_v35  ;;  %10355 = vmatmul.mubr.msk.bf16.gmra.mxu1 %vm1391_vm1, %v12907_v59  ;;  %v1877_v25 = vmul.f32 %v13070_v53, %v1571_v47  ;;  %v2258_v30 = vpop.f32.mrf.mxu1  ;;  %10274 = vmatprep.mubr.msk.bf16.mxu0 %vm11644_vm0, %v17617_v27  ;;  %v13635_v35 = vpop.permute.xlu0 %5486  ;;  %v9445_v53 = vld [vmem:[%s17268_s5 + $0x2d8] sm:$0xff] }
 0x1b6   : > { %10358 = vmatprep.mubr.msk.bf16.mxu1 %vm11644_vm0, %v17617_v27  ;;  %v10096_v24 = vpop.f32.mrf.mxu0  ;;  %17770 = vst [vmem:[#allocation162_spill] sm:$0xff] %v13635_v35  ;;  %v13650_v35 = vpop.permute.xlu1 %5491 }
 0x1b7   : > { %v13630_v57 = vadd.f32 %v2258_v30, %v1877_v25  ;;  %v10176_v12 = vpop.f32.mrf.mxu1  ;;  %6938 = vperm.xlu1 %11219, %v9443_v2   ;;  %17773 = vst [vmem:[#allocation165_spill] sm:$0xff] %v13650_v35  ;;  %v2417_v35 = vrot.slane %v12944_v6, 1 }
 0x1b8   : > { %6933 = vperm.xlu0 %11218, %v9442_v36   ;;  %v1574_v47 = vpop.f32.mrf.mxu0  ;;  %v13648_v12 = vsel %vm2381_vm3, %v2413_v3, %v13633_v60 }
 0x1b9   : > { %v1878_v25 = vmul.f32 %v13091_v11, %v1574_v47  ;;  %v2261_v30 = vpop.f32.mrf.mxu1  ;;  %17772 = vst [vmem:[#allocation164_spill] sm:$0xff] %v13648_v12  ;;  %v9447_v47 = vld [vmem:[%s17268_s5 + $0x2e8] sm:$0xff] }
 0x1ba   : > { %v10097_v24 = vpop.f32.mrf.mxu0 }
 0x1bb   : > { %v13644_v2 = vadd.f32 %v2261_v30, %v1878_v25  ;;  %v10177_v36 = vpop.f32.mrf.mxu1  ;;  %6948 = vperm.xlu1 %11219, %v9445_v53   ;;  %v9446_v53 = vld [vmem:[%s17268_s5 + $0x2e0] sm:$0xff]  ;;  %v13667_v25 = vpop.permute.xlu0 %5496 }
 0x1bc   : > { %6943 = vperm.xlu0 %11218, %v9444_v38   ;;  %v1579_v59 = vpop.f32.mrf.mxu0  ;;  %10275 = vmatmul.mubr.msk.bf16.gmra.mxu0 %vm1391_vm1, %v13648_v12  ;;  %17774 = vst [vmem:[#allocation166_spill] sm:$0xff] %v13667_v25 }
 0x1bd   : > { %17771 = vst [vmem:[#allocation163_spill] sm:$0xff] %v13644_v2  ;;  %10359 = vmatmul.mubr.msk.bf16.gmra.mxu1 %vm1391_vm1, %v12662_v49  ;;  %v1879_v3 = vmul.f32 %v13127_v8, %v1579_v59  ;;  %v2266_v38 = vpop.f32.mrf.mxu1  ;;  %10278 = vmatprep.mubr.msk.bf16.mxu0 %vm11644_vm0, %v17617_v27  ;;  %v9449_v59 = vld [vmem:[%s17268_s5 + $0x2f8] sm:$0xff]  ;;  %v9448_v8 = vld [vmem:[%s17268_s5 + $0x2f0] sm:$0xff] }
 0x1be   : > { %10362 = vmatprep.mubr.msk.bf16.mxu1 %vm11644_vm0, %v17617_v27  ;;  %v10100_v30 = vpop.f32.mrf.mxu0 }
 0x1bf   : > { %v13669_v24 = vadd.f32 %v2266_v38, %v1879_v3  ;;  %v10180_v36 = vpop.f32.mrf.mxu1  ;;  %6958 = vperm.xlu1 %11219, %v9447_v47   ;;  %v13681_v3 = vpack.c.bf16 %v12673_v26, %v12673_v26  ;;  %v13683_v47 = vpop.permute.xlu1 %1832  ;;  %v2418_v30 = vsel %vm2381_vm3, %v13633_v60, %v2417_v35 }
 0x1c0   : > { %6953 = vperm.xlu0 %11218, %v9446_v53   ;;  %v1582_v2 = vpop.f32.mrf.mxu0  ;;  %17776 = vst [vmem:[#allocation168_spill] sm:$0xff] %v13683_v47  ;;  %v13689_v36 = vpop.permute.xlu0 %2872 }
 0x1c1   : > { %17775 = vst [vmem:[#allocation167_spill] sm:$0xff] %v13669_v24  ;;  %v1880_v11 = vmul.f32 %v13151_v20, %v1582_v2  ;;  %v2269_v25 = vpop.f32.mrf.mxu1  ;;  %17778 = vst [vmem:[#allocation170_spill] sm:$0xff] %v13689_v36 }
 0x1c2   : > { %v10101_v53 = vpop.f32.mrf.mxu0 }
 0x1c3   : > { %v13685_v6 = vadd.f32 %v2269_v25, %v1880_v11  ;;  %v10181_v38 = vpop.f32.mrf.mxu1  ;;  %6968 = vperm.xlu1 %11219, %v9449_v59   ;;  %v13701_v59 = vpop.permute.xlu1 %5501 }
 0x1c4   : > { %6963 = vperm.xlu0 %11218, %v9448_v8   ;;  %v1587_v24 = vpop.f32.mrf.mxu0  ;;  %10279 = vmatmul.mubr.msk.bf16.gmra.mxu0 %vm1391_vm1, %v2418_v30  ;;  %17779 = vst [vmem:[#allocation171_spill] sm:$0xff] %v13701_v59  ;;  %v13704_v36 = vpop.permute.xlu0 %5506 }
 0x1c5   : > { %17777 = vst [vmem:[#allocation169_spill] sm:$0xff] %v13685_v6  ;;  %10363 = vmatmul.mubr.msk.bf16.gmra.mxu1 %vm1391_vm1, %v13681_v3  ;;  %v1881_v26 = vmul.f32 %v13149_v22, %v1587_v24  ;;  %v2274_v2 = vpop.f32.mrf.mxu1  ;;  %10282 = vmatprep.mubr.msk.bf16.mxu0 %vm11644_vm0, %v17617_v27  ;;  %17780 = vst [vmem:[#allocation172_spill] sm:$0xff] %v13704_v36  ;;  %v11233_v22 = vld [vmem:[%s17271_s8 + $0x78] sm:$0xff]  }
 0x1c6   : > { %10450 = vmatprep.mubr.msk.bf16.mxu1 %vm11644_vm0, %v17617_v27  ;;  %v10104_v11 = vpop.f32.mrf.mxu0 }
 0x1c7   : > { %v13699_v8 = vadd.f32 %v2274_v2, %v1881_v26  ;;  %v10184_v25 = vpop.f32.mrf.mxu1 }
 0x1c8   : > { %v1590_v53 = vpop.f32.mrf.mxu0  ;;  %v13719_v25 = vpop.permute.xlu1 %5511 }
 0x1c9   : > { %v1882_v38 = vmul.f32 %v13162_v39, %v1590_v53  ;;  %v2277_v30 = vpop.f32.mrf.mxu1  ;;  %17781 = vst [vmem:[#allocation173_spill] sm:$0xff] %v13719_v25 }
 0x1ca   : > { %v10105_v24 = vpop.f32.mrf.mxu0 }
 0x1cb   : > { %v13709_v6 = vadd.f32 %v2277_v30, %v1882_v38  ;;  %v10185_v20 = vpop.f32.mrf.mxu1  ;;  %v13727_v38 = vpop.permute.xlu0 %5516 }
 0x1cc   : > { %v1595_v11 = vpop.f32.mrf.mxu0  ;;  %10283 = vmatmul.mubr.msk.bf16.gmra.mxu0 %vm1391_vm1, %v2417_v35  ;;  %v11235_v20 = vld [vmem:[%s17271_s8 + $0x70] sm:$0xff]   ;;  %17782 = vst [vmem:[#allocation174_spill] sm:$0xff] %v13727_v38 }
 0x1cd   : > { %10451 = vmatmul.mubr.msk.bf16.vlgmr.msra.gmra.mxu1 %vm1391_vm1, %v13133_v55  ;;  %v1883_v26 = vmul.f32 %v13211_v10, %v1595_v11  ;;  %v2282_v2 = vpop.f32.mrf.mxu1  ;;  %10370 = vmatprep.mubr.msk.bf16.mxu0 %vm11644_vm0, %v17617_v27 }
 0x1ce   : > { %10454 = vmatprep.mubr.msk.bf16.mxu1 %vm11644_vm0, %v17617_v27  ;;  %v10108_v53 = vpop.f32.mrf.mxu0  ;;  %10607 = vmatpush3.bf16.msra.mxu1 %v11233_v22 }
 0x1cf   : > { %v13724_v35 = vadd.f32 %v2282_v2, %v1883_v26  ;;  %v10188_v55 = vpop.f32.mrf.mxu1  ;;  %10608 = vmatprep.subr.bf16.mxu1 %v17617_v27  ;;  %v11232_v53 = vld [vmem:[%s17271_s8 + $0x68] sm:$0xff]   ;;  %v13736_v26 = vpop.permute.xlu1 %5521 }
 0x1d0   : > { %v1598_v30 = vpop.f32.mrf.mxu0  ;;  %17784 = vst [vmem:[#allocation176_spill] sm:$0xff] %v13736_v26  ;;  %v17785_v55 = vld [vmem:[#allocation18_spill] sm:$0xff] }
 0x1d1   : > { %v1884_v24 = vmul.f32 %v13213_v14, %v1598_v30  ;;  %v2285_v11 = vpop.f32.mrf.mxu1  ;;  %v17791_v14 = vld [vmem:[#allocation20_spill] sm:$0xff] }
 0x1d2   : > { %v10109_v22 = vpop.f32.mrf.mxu0  ;;  %10609 = vmatpush3.bf16.msra.mxu1 %v11235_v20  ;;  %v13748_v20 = vpop.permute.xlu0 %1837 }
 0x1d3   : > { %v13733_v25 = vadd.f32 %v2285_v11, %v1884_v24  ;;  %v10189_v36 = vpop.f32.mrf.mxu1  ;;  %10766 = vmatprep.subr.bf16.mxu1 %v17617_v27  ;;  %17786 = vst [vmem:[#allocation18_spill] sm:$0xff] %v13748_v20  ;;  %v13756_v26 = vpop.permute.xlu1 %2877 }
 0x1d4   : > { %v1603_v2 = vpop.f32.mrf.mxu0  ;;  %10371 = vmatmul.mubr.msk.bf16.vlgmr.msra.gmra.mxu0 %vm1391_vm1, %v17785_v55  ;;  %v11234_v36 = vld [vmem:[%s17271_s8 + $0x60] sm:$0xff]   ;;  %17788 = vst [vmem:[#allocation178_spill] sm:$0xff] %v13756_v26 }
 0x1d5   : > { %17783 = vst [vmem:[#allocation175_spill] sm:$0xff] %v13733_v25  ;;  %10455 = vmatmul.mubr.msk.bf16.gmra.mxu1 %vm1391_vm1, %v13165_v48  ;;  %v1885_v30 = vmul.f32 %v13225_v41, %v1603_v2  ;;  %10527 = vmatpush3.bf16.msra.mxu0 %v11232_v53  ;;  %v2290_v38 = vpop.f32.mrf.mxu1 }
 0x1d6   : > { %10374 = vmatprep.mubr.msk.bf16.mxu0 %vm11644_vm0, %v17617_v27  ;;  %v10112_v24 = vpop.f32.mrf.mxu0  ;;  %10458 = vmatprep.mubr.msk.bf16.mxu1 %vm11644_vm0, %v17617_v27  ;;  %v13761_v41 = vpop.permute.xlu0 %1842 }
 0x1d7   : > { %10528 = vmatprep.subr.bf16.mxu0 %v17617_v27  ;;  %v13753_v11 = vadd.f32 %v2290_v38, %v1885_v30  ;;  %v10192_v22 = vpop.f32.mrf.mxu1  ;;  %17790 = vst [vmem:[#allocation180_spill] sm:$0xff] %v13761_v41 }
 0x1d8   : > { %v1606_v53 = vpop.f32.mrf.mxu0 }
 0x1d9   : > { %17787 = vst [vmem:[#allocation177_spill] sm:$0xff] %v13753_v11  ;;  %v1886_v2 = vmul.f32 %v13239_v0, %v1606_v53  ;;  %v2293_v55 = vpop.f32.mrf.mxu1  ;;  %10529 = vmatpush3.bf16.msra.mxu0 %v11234_v36  ;;  %v13774_v53 = vpop.permute.xlu1 %2882  ;;  %v17796_v0 = vld [vmem:[#allocation22_spill] sm:$0xff] }
 0x1da   : > { %v10113_v59 = vpop.f32.mrf.mxu0  ;;  %10686 = vmatprep.subr.bf16.mxu0 %v17617_v27  ;;  %17793 = vst [vmem:[#allocation181_spill] sm:$0xff] %v13774_v53 }
 0x1db   : > { %v13759_v48 = vadd.f32 %v2293_v55, %v1886_v2  ;;  %v10193_v24 = vpop.f32.mrf.mxu1 }
 0x1dc   : > { %v1611_v25 = vpop.f32.mrf.mxu0  ;;  %10375 = vmatmul.mubr.msk.bf16.gmra.mxu0 %vm1391_vm1, %v17791_v14 }
 0x1dd   : > { %17789 = vst [vmem:[#allocation179_spill] sm:$0xff] %v13759_v48  ;;  %10459 = vmatmul.mubr.msk.bf16.gmra.mxu1 %vm1391_vm1, %v13195_v46  ;;  %v1887_v38 = vmul.f32 %v13683_v47, %v1611_v25  ;;  %v2298_v30 = vpop.f32.mrf.mxu1  ;;  %10378 = vmatprep.mubr.msk.bf16.mxu0 %vm11644_vm0, %v17617_v27  ;;  %v13777_v46 = vpop.permute.xlu0 %5526 }
 0x1de   : > { %10462 = vmatprep.mubr.msk.bf16.mxu1 %vm11644_vm0, %v17617_v27  ;;  %v10116_v59 = vpop.f32.mrf.mxu0  ;;  %17794 = vst [vmem:[#allocation182_spill] sm:$0xff] %v13777_v46 }
 0x1df   : > { %v13772_v36 = vadd.f32 %v2298_v30, %v1887_v38  ;;  %v10196_v22 = vpop.f32.mrf.mxu1  ;;  %v13790_v59 = vpop.permute.xlu1 %5531 }
 0x1e0   : > { %v1614_v2 = vpop.f32.mrf.mxu0  ;;  %17797 = vst [vmem:[#allocation22_spill] sm:$0xff] %v13790_v59 }
 0x1e1   : > { %17792 = vst [vmem:[#allocation20_spill] sm:$0xff] %v13772_v36  ;;  %v1888_v55 = vmul.f32 %v13748_v20, %v1614_v2  ;;  %v2301_v24 = vpop.f32.mrf.mxu1  ;;  %v17802_v20 = vld [vmem:[#allocation24_spill] sm:$0xff] }
 0x1e2   : > { %v10117_v25 = vpop.f32.mrf.mxu0 }
 0x1e3   : > { %v13779_v26 = vadd.f32 %v2301_v24, %v1888_v55  ;;  %v10197_v47 = vpop.f32.mrf.mxu1  ;;  %v13794_v55 = vpop.permute.xlu0 %1847 }
 0x1e4   : > { %v1619_v48 = vpop.f32.mrf.mxu0  ;;  %10379 = vmatmul.mubr.msk.bf16.gmra.mxu0 %vm1391_vm1, %v17796_v0  ;;  %17799 = vst [vmem:[#allocation185_spill] sm:$0xff] %v13794_v55  ;;  %v13799_v53 = vpop.permute.xlu1 %1852 }
 0x1e5   : > { %17795 = vst [vmem:[#allocation183_spill] sm:$0xff] %v13779_v26  ;;  %10463 = vmatmul.mubr.msk.bf16.gmra.mxu1 %vm1391_vm1, %v13223_v18  ;;  %v1889_v38 = vmul.f32 %v13761_v41, %v1619_v48  ;;  %v2306_v30 = vpop.f32.mrf.mxu1  ;;  %10382 = vmatprep.mubr.msk.bf16.mxu0 %vm11644_vm0, %v17617_v27  ;;  %17801 = vst [vmem:[#allocation187_spill] sm:$0xff] %v13799_v53 }
 0x1e6   : > { %10466 = vmatprep.mubr.msk.bf16.mxu1 %vm11644_vm0, %v17617_v27  ;;  %v10120_v22 = vpop.f32.mrf.mxu0 }
 0x1e7   : > { %v13792_v47 = vadd.f32 %v2306_v30, %v1889_v38  ;;  %v10200_v2 = vpop.f32.mrf.mxu1 }
 0x1e8   : > { %v1622_v24 = vpop.f32.mrf.mxu0 }
 0x1e9   : > { %17798 = vst [vmem:[#allocation184_spill] sm:$0xff] %v13792_v47  ;;  %v1890_v25 = vmul.f32 %v13794_v55, %v1622_v24  ;;  %v2309_v46 = vpop.f32.mrf.mxu1 }
 0x1ea   : > { %v10121_v48 = vpop.f32.mrf.mxu0 }
 0x1eb   : > { %v13797_v18 = vadd.f32 %v2309_v46, %v1890_v25  ;;  %v10201_v41 = vpop.f32.mrf.mxu1  ;;  %v1855_v48 = vmul.f32 %v12684_v9, %v13227_v54 }
 0x1ec   : > { %v1627_v26 = vpop.f32.mrf.mxu0  ;;  %10383 = vmatmul.mubr.msk.bf16.gmra.mxu0 %vm1391_vm1, %v17802_v20  ;;  %v17811_v20 = vld [vmem:[#allocation30_spill] sm:$0xff] }
 0x1ed   : > { %17800 = vst [vmem:[#allocation186_spill] sm:$0xff] %v13797_v18  ;;  %10467 = vmatmul.mubr.msk.bf16.gmra.mxu1 %vm1391_vm1, %v13259_v40  ;;  %v1891_v38 = vmul.f32 %v13799_v53, %v1627_v26  ;;  %v2314_v30 = vpop.f32.mrf.mxu1  ;;  %10386 = vmatprep.mubr.msk.bf16.mxu0 %vm11644_vm0, %v17617_v27  ;;  %v17804_v26 = vld [vmem:[#allocation26_spill] sm:$0xff] }
 0x1ee   : > { %10470 = vmatprep.mubr.msk.bf16.mxu1 %vm11644_vm0, %v17617_v27  ;;  %v10124_v46 = vpop.f32.mrf.mxu0 }
 0x1ef   : > { %v13810_v41 = vadd.f32 %v2314_v30, %v1891_v38  ;;  %v10204_v22 = vpop.f32.mrf.mxu1  ;;  %v17805_v30 = vld [vmem:[#allocation114_spill] sm:$0xff]  ;;  %v17806_v46 = vld [vmem:[#allocation39_spill] sm:$0xff] }
 0x1f0   : > { %v1630_v2 = vpop.f32.mrf.mxu0  ;;  %v1856_v54 = vmul.f32 %v17806_v46, %v17805_v30 }
 0x1f1   : > { %17803 = vst [vmem:[#allocation188_spill] sm:$0xff] %v13810_v41  ;;  %v2317_v24 = vpop.f32.mrf.mxu1 }
 0x1f2   : > { %v10125_v25 = vpop.f32.mrf.mxu0 }
 0x1f3   : > { %v10205_v59 = vpop.f32.mrf.mxu1 }
 0x1f4   : > { %v2170_v40 = vpop.f32.mrf.mxu0  ;;  %10387 = vmatmul.mubr.msk.bf16.gmra.mxu0 %vm1391_vm1, %v17804_v26 }
 0x1f5   : > { %10471 = vmatmul.mubr.msk.bf16.gmra.mxu1 %vm1391_vm1, %v13293_v37  ;;  %v2320_v53 = vadd.f32 %v2170_v40, %v1855_v48  ;;  %v3028_v18 = vpop.f32.mrf.mxu1  ;;  %10390 = vmatprep.mubr.msk.bf16.mxu0 %vm11644_vm0, %v17617_v27  ;;  %v17807_v37 = vld [vmem:[#allocation28_spill] sm:$0xff]  ;;  %v17808_v40 = vld [vmem:[#allocation41_spill] sm:$0xff] }
 0x1f6   : > { %10474 = vmatprep.mubr.msk.bf16.mxu1 %vm11644_vm0, %v17617_v27  ;;  %v10132_v38 = vpop.f32.mrf.mxu0  ;;  %v3178_v30 = vmul.f32 %v3028_v18, %v12684_v9  ;;  %v17812_v18 = vld [vmem:[#allocation44_spill] sm:$0xff] }
 0x1f7   : > { %v10292_v59 = vpop.f32.mrf.mxu1 }
 0x1f8   : > { %v2173_v22 = vpop.f32.mrf.mxu0 }
 0x1f9   : > { %v2321_v2 = vadd.f32 %v2173_v22, %v1856_v54  ;;  %v3031_v24 = vpop.f32.mrf.mxu1  ;;  %v17809_v22 = vld [vmem:[#allocation45_spill] sm:$0xff] }
 0x1fa   : > { %v10133_v25 = vpop.f32.mrf.mxu0 }
 0x1fb   : > { %v10293_v41 = vpop.f32.mrf.mxu1 }
 0x1fc   : > { %v2522_v55 = vpop.f32.mrf.mxu0  ;;  %10391 = vmatmul.mubr.msk.bf16.gmra.mxu0 %vm1391_vm1, %v17807_v37 }
 0x1fd   : > { %10475 = vmatmul.mubr.msk.bf16.gmra.mxu1 %vm1391_vm1, %v13327_v17  ;;  %v2895_v48 = vmul.f32 %v17808_v40, %v2522_v55  ;;  %v3036_v47 = vpop.f32.mrf.mxu1  ;;  %10394 = vmatprep.mubr.msk.bf16.mxu0 %vm11644_vm0, %v17617_v27  ;;  %v3179_v55 = vmul.f32 %v3031_v24, %v17806_v46  ;;  %v17815_v46 = vld [vmem:[#allocation42_spill] sm:$0xff] }
 0x1fe   : > { %10478 = vmatprep.mubr.msk.bf16.mxu1 %vm11644_vm0, %v17617_v27  ;;  %v10212_v38 = vpop.f32.mrf.mxu0 }
 0x1ff   : > { %v2932_v41 = vadd.f32 %v2895_v48, %v2320_v53  ;;  %v10296_v54 = vpop.f32.mrf.mxu1 }
 0x200   : > { %v2525_v59 = vpop.f32.mrf.mxu0  ;;  %v17814_v54 = vld [vmem:[#allocation48_spill] sm:$0xff] }
 0x201   : > { %v2896_v25 = vmul.f32 %v17809_v22, %v2525_v59  ;;  %v3039_v37 = vpop.f32.mrf.mxu1  ;;  %v13835_v36 = vadd.f32 %v3178_v30, %v2932_v41 }
 0x202   : > { %v10213_v17 = vpop.f32.mrf.mxu0  ;;  %v3181_v9 = vmul.f32 %v3039_v37, %v17815_v46 }
 0x203   : > { %17810 = vst [vmem:[#allocation114_spill] sm:$0xff] %v13835_v36  ;;  %v2933_v40 = vadd.f32 %v2896_v25, %v2321_v2  ;;  %v10297_v26 = vpop.f32.mrf.mxu1 }
 0x204   : > { %v2530_v11 = vpop.f32.mrf.mxu0  ;;  %10395 = vmatmul.mubr.msk.bf16.gmra.mxu0 %vm1391_vm1, %v17811_v20  ;;  %v17813_v26 = vld [vmem:[#allocation38_spill] sm:$0xff] }
 0x205   : > { %10479 = vmatmul.mubr.msk.bf16.gmra.mxu1 %vm1391_vm1, %v13363_v28  ;;  %v2897_v53 = vmul.f32 %v17812_v18, %v2530_v11  ;;  %v3044_v48 = vpop.f32.mrf.mxu1  ;;  %10398 = vmatprep.mubr.msk.bf16.mxu0 %vm11644_vm0, %v17617_v27  ;;  %v13847_v17 = vadd.f32 %v3179_v55, %v2933_v40  ;;  %v3180_v24 = vmul.f32 %v3036_v47, %v17813_v26  ;;  %v17816_v18 = vld [vmem:[#allocation120_spill] sm:$0xff] }
 0x206   : > { %10482 = vmatprep.mubr.msk.bf16.mxu1 %vm11644_vm0, %v17617_v27  ;;  %v10216_v2 = vpop.f32.mrf.mxu0  ;;  %v17817_v55 = vld [vmem:[#allocation32_spill] sm:$0xff] }
 0x207   : > { %v2934_v38 = vadd.f32 %v2897_v53, %v13276_v23  ;;  %v10300_v30 = vpop.f32.mrf.mxu1  ;;  %v17818_v23 = vld [vmem:[#allocation53_spill] sm:$0xff]  ;;  %v17821_v26 = vld [vmem:[#allocation124_spill] sm:$0xff] }
 0x208   : > { %v2533_v41 = vpop.f32.mrf.mxu0  ;;  %v17820_v30 = vld [vmem:[#allocation57_spill] sm:$0xff] }
 0x209   : > { %v2898_v59 = vmul.f32 %v17814_v54, %v2533_v41  ;;  %v3047_v25 = vpop.f32.mrf.mxu1  ;;  %v13852_v11 = vadd.f32 %v3180_v24, %v2934_v38 }
 0x20a   : > { %v10217_v28 = vpop.f32.mrf.mxu0  ;;  %v3183_v46 = vmul.f32 %v3047_v25, %v12789_v15 }
 0x20b   : > { %v2935_v22 = vadd.f32 %v2898_v59, %v17816_v18  ;;  %v10301_v36 = vpop.f32.mrf.mxu1 }
 0x20c   : > { %v2538_v40 = vpop.f32.mrf.mxu0  ;;  %10399 = vmatmul.mubr.msk.bf16.gmra.mxu0 %vm1391_vm1, %v17817_v55  ;;  %v17819_v36 = vld [vmem:[#allocation47_spill] sm:$0xff] }
 0x20d   : > { %10483 = vmatmul.mubr.msk.bf16.gmra.mxu1 %vm1391_vm1, %v13399_v61  ;;  %v2899_v47 = vmul.f32 %v17818_v23, %v2538_v40  ;;  %v3052_v53 = vpop.f32.mrf.mxu1  ;;  %10402 = vmatprep.mubr.msk.bf16.mxu0 %vm11644_vm0, %v17617_v27  ;;  %v13865_v37 = vadd.f32 %v3181_v9, %v2935_v22  ;;  %v3182_v18 = vmul.f32 %v3044_v48, %v17819_v36  ;;  %v17822_v22 = vld [vmem:[#allocation37_spill] sm:$0xff] }
 0x20e   : > { %10486 = vmatprep.mubr.msk.bf16.mxu1 %vm11644_vm0, %v17617_v27  ;;  %v10220_v28 = vpop.f32.mrf.mxu0 }
 0x20f   : > { %v2936_v2 = vadd.f32 %v2899_v47, %v13312_v7  ;;  %v10304_v24 = vpop.f32.mrf.mxu1  ;;  %v17823_v7 = vld [vmem:[#allocation56_spill] sm:$0xff] }
 0x210   : > { %v2541_v38 = vpop.f32.mrf.mxu0  ;;  %v17825_v24 = vld [vmem:[#allocation60_spill] sm:$0xff] }
 0x211   : > { %v2900_v41 = vmul.f32 %v17820_v30, %v2541_v38  ;;  %v3055_v59 = vpop.f32.mrf.mxu1  ;;  %v13870_v40 = vadd.f32 %v3182_v18, %v2936_v2 }
 0x212   : > { %v10221_v61 = vpop.f32.mrf.mxu0  ;;  %v3185_v15 = vmul.f32 %v3055_v59, %v12803_v63  ;;  %v17829_v59 = vld [vmem:[#allocation59_spill] sm:$0xff] }
 0x213   : > { %v2937_v23 = vadd.f32 %v2900_v41, %v17821_v26  ;;  %v10305_v54 = vpop.f32.mrf.mxu1  ;;  %v17831_v63 = vld [vmem:[#allocation63_spill] sm:$0xff] }
 0x214   : > { %v2546_v9 = vpop.f32.mrf.mxu0  ;;  %10403 = vmatmul.mubr.msk.bf16.gmra.mxu0 %vm1391_vm1, %v17822_v22  ;;  %v17824_v54 = vld [vmem:[#allocation50_spill] sm:$0xff] }
 0x215   : > { %10487 = vmatmul.mubr.msk.bf16.gmra.mxu1 %vm1391_vm1, %v13433_v33  ;;  %v2901_v48 = vmul.f32 %v17823_v7, %v2546_v9  ;;  %v3060_v47 = vpop.f32.mrf.mxu1  ;;  %10406 = vmatprep.mubr.msk.bf16.mxu0 %vm11644_vm0, %v17617_v27  ;;  %v13883_v61 = vadd.f32 %v3183_v46, %v2937_v23  ;;  %v3184_v25 = vmul.f32 %v3052_v53, %v17824_v54  ;;  %v17827_v23 = vld [vmem:[#allocation43_spill] sm:$0xff] }
 0x216   : > { %10490 = vmatprep.mubr.msk.bf16.mxu1 %vm11644_vm0, %v17617_v27  ;;  %v10224_v26 = vpop.f32.mrf.mxu0 }
 0x217   : > { %v2938_v28 = vadd.f32 %v2901_v48, %v13348_v42  ;;  %v10308_v18 = vpop.f32.mrf.mxu1  ;;  %v17828_v42 = vld [vmem:[#allocation65_spill] sm:$0xff] }
 0x218   : > { %v2549_v2 = vpop.f32.mrf.mxu0  ;;  %v17830_v18 = vld [vmem:[#allocation69_spill] sm:$0xff] }
 0x219   : > { %v2902_v38 = vmul.f32 %v17825_v24, %v2549_v2  ;;  %v3063_v41 = vpop.f32.mrf.mxu1  ;;  %v13888_v9 = vadd.f32 %v3184_v25, %v2938_v28 }
 0x21a   : > { %v10225_v33 = vpop.f32.mrf.mxu0  ;;  %v3187_v54 = vmul.f32 %v3063_v41, %v17831_v63 }
 0x21b   : > { %17826 = vst [vmem:[#allocation30_spill] sm:$0xff] %v13888_v9  ;;  %v2939_v36 = vadd.f32 %v2902_v38, %v13360_v45  ;;  %v10309_v7 = vpop.f32.mrf.mxu1 }
 0x21c   : > { %v2554_v46 = vpop.f32.mrf.mxu0  ;;  %10407 = vmatmul.mubr.msk.bf16.gmra.mxu0 %vm1391_vm1, %v17827_v23  ;;  %v3186_v7 = vmul.f32 %v3060_v47, %v17829_v59  ;;  %v17837_v59 = vld [vmem:[#allocation137_spill] sm:$0xff] }
 0x21d   : > { %10491 = vmatmul.mubr.msk.bf16.gmra.mxu1 %vm1391_vm1, %v13469_v29  ;;  %v2903_v53 = vmul.f32 %v17828_v42, %v2554_v46  ;;  %v3068_v48 = vpop.f32.mrf.mxu1  ;;  %10410 = vmatprep.mubr.msk.bf16.mxu0 %vm11644_vm0, %v17617_v27  ;;  %v13901_v33 = vadd.f32 %v3185_v15, %v2939_v36  ;;  %v17832_v42 = vld [vmem:[#allocation133_spill] sm:$0xff] }
 0x21e   : > { %10494 = vmatprep.mubr.msk.bf16.mxu1 %vm11644_vm0, %v17617_v27  ;;  %v10228_v45 = vpop.f32.mrf.mxu0  ;;  %v17833_v36 = vld [vmem:[#allocation49_spill] sm:$0xff] }
 0x21f   : > { %v2940_v26 = vadd.f32 %v2903_v53, %v13382_v5  ;;  %v10312_v25 = vpop.f32.mrf.mxu1  ;;  %v17834_v5 = vld [vmem:[#allocation68_spill] sm:$0xff] }
 0x220   : > { %v2557_v28 = vpop.f32.mrf.mxu0  ;;  %v17836_v25 = vld [vmem:[#allocation72_spill] sm:$0xff] }
 0x221   : > { %v2904_v2 = vmul.f32 %v17830_v18, %v2557_v28  ;;  %v3071_v38 = vpop.f32.mrf.mxu1  ;;  %v13906_v46 = vadd.f32 %v3186_v7, %v2940_v26 }
 0x222   : > { %v10229_v29 = vpop.f32.mrf.mxu0  ;;  %v3189_v63 = vmul.f32 %v3071_v38, %v12881_v1 }
 0x223   : > { %v2941_v24 = vadd.f32 %v2904_v2, %v17832_v42  ;;  %v10313_v9 = vpop.f32.mrf.mxu1 }
 0x224   : > { %v2562_v15 = vpop.f32.mrf.mxu0  ;;  %10411 = vmatmul.mubr.msk.bf16.gmra.mxu0 %vm1391_vm1, %v17833_v36  ;;  %v17835_v9 = vld [vmem:[#allocation62_spill] sm:$0xff] }
 0x225   : > { %10495 = vmatmul.mubr.msk.bf16.gmra.mxu1 %vm1391_vm1, %v13505_v56  ;;  %v2905_v47 = vmul.f32 %v17834_v5, %v2562_v15  ;;  %v3076_v53 = vpop.f32.mrf.mxu1  ;;  %10414 = vmatprep.mubr.msk.bf16.mxu0 %vm11644_vm0, %v17617_v27  ;;  %v13919_v29 = vadd.f32 %v3187_v54, %v2941_v24  ;;  %v3188_v42 = vmul.f32 %v3068_v48, %v17835_v9  ;;  %v17838_v24 = vld [vmem:[#allocation55_spill] sm:$0xff] }
 0x226   : > { %10498 = vmatprep.mubr.msk.bf16.mxu1 %vm11644_vm0, %v17617_v27  ;;  %v10232_v41 = vpop.f32.mrf.mxu0 }
 0x227   : > { %v2942_v45 = vadd.f32 %v2905_v47, %v13418_v32  ;;  %v10316_v7 = vpop.f32.mrf.mxu1  ;;  %v17839_v32 = vld [vmem:[#allocation76_spill] sm:$0xff] }
 0x228   : > { %v2565_v26 = vpop.f32.mrf.mxu0  ;;  %v17841_v7 = vld [vmem:[#allocation80_spill] sm:$0xff] }
 0x229   : > { %v2906_v28 = vmul.f32 %v17836_v25, %v2565_v26  ;;  %v3079_v2 = vpop.f32.mrf.mxu1  ;;  %v13924_v15 = vadd.f32 %v3188_v42, %v2942_v45 }
 0x22a   : > { %v10233_v56 = vpop.f32.mrf.mxu0  ;;  %v3191_v1 = vmul.f32 %v3079_v2, %v12940_v21  ;;  %v17845_v2 = vld [vmem:[#allocation74_spill] sm:$0xff]  ;;  %v17847_v21 = vld [vmem:[#allocation77_spill] sm:$0xff] }
 0x22b   : > { %v2943_v5 = vadd.f32 %v2906_v28, %v17837_v59  ;;  %v10317_v18 = vpop.f32.mrf.mxu1 }
 0x22c   : > { %v2570_v54 = vpop.f32.mrf.mxu0  ;;  %10415 = vmatmul.mubr.msk.bf16.gmra.mxu0 %vm1391_vm1, %v17838_v24  ;;  %v17840_v18 = vld [vmem:[#allocation71_spill] sm:$0xff] }
 0x22d   : > { %10499 = vmatmul.mubr.msk.bf16.gmra.mxu1 %vm1391_vm1, %v13539_v13  ;;  %v2907_v48 = vmul.f32 %v17839_v32, %v2570_v54  ;;  %v3084_v47 = vpop.f32.mrf.mxu1  ;;  %10418 = vmatprep.mubr.msk.bf16.mxu0 %vm11644_vm0, %v17617_v27  ;;  %v13937_v56 = vadd.f32 %v3189_v63, %v2943_v5  ;;  %v3190_v38 = vmul.f32 %v3076_v53, %v17840_v18  ;;  %v17843_v5 = vld [vmem:[#allocation61_spill] sm:$0xff] }
 0x22e   : > { %10502 = vmatprep.mubr.msk.bf16.mxu1 %vm11644_vm0, %v17617_v27  ;;  %v10236_v59 = vpop.f32.mrf.mxu0 }
 0x22f   : > { %v2944_v41 = vadd.f32 %v2907_v48, %v13454_v31  ;;  %v10320_v42 = vpop.f32.mrf.mxu1  ;;  %v17844_v31 = vld [vmem:[#allocation79_spill] sm:$0xff] }
 0x230   : > { %v2573_v45 = vpop.f32.mrf.mxu0  ;;  %v17846_v42 = vld [vmem:[#allocation83_spill] sm:$0xff] }
 0x231   : > { %v2908_v26 = vmul.f32 %v17841_v7, %v2573_v45  ;;  %v3087_v28 = vpop.f32.mrf.mxu1  ;;  %v13942_v54 = vadd.f32 %v3190_v38, %v2944_v41 }
 0x232   : > { %v10237_v13 = vpop.f32.mrf.mxu0  ;;  %v3193_v18 = vmul.f32 %v3087_v28, %v17847_v21 }
 0x233   : > { %17842 = vst [vmem:[#allocation120_spill] sm:$0xff] %v13942_v54  ;;  %v2945_v9 = vadd.f32 %v2908_v26, %v13466_v44  ;;  %v10321_v32 = vpop.f32.mrf.mxu1 }
 0x234   : > { %v2578_v63 = vpop.f32.mrf.mxu0  ;;  %10419 = vmatmul.mubr.msk.bf16.gmra.mxu0 %vm1391_vm1, %v17843_v5  ;;  %v3192_v32 = vmul.f32 %v3084_v47, %v17845_v2  ;;  %v17853_v2 = vld [vmem:[#allocation150_spill] sm:$0xff] }
 0x235   : > { %10503 = vmatmul.mubr.msk.bf16.gmra.mxu1 %vm1391_vm1, %v13575_v58  ;;  %v2909_v53 = vmul.f32 %v17844_v31, %v2578_v63  ;;  %v3092_v48 = vpop.f32.mrf.mxu1  ;;  %10422 = vmatprep.mubr.msk.bf16.mxu0 %vm11644_vm0, %v17617_v27  ;;  %v13955_v13 = vadd.f32 %v3191_v1, %v2945_v9  ;;  %v17848_v31 = vld [vmem:[#allocation146_spill] sm:$0xff]  ;;  %v17849_v9 = vld [vmem:[#allocation67_spill] sm:$0xff] }
 0x236   : > { %10506 = vmatprep.mubr.msk.bf16.mxu1 %vm11644_vm0, %v17617_v27  ;;  %v10240_v44 = vpop.f32.mrf.mxu0 }
 0x237   : > { %v2946_v59 = vadd.f32 %v2909_v53, %v13488_v34  ;;  %v10324_v38 = vpop.f32.mrf.mxu1  ;;  %v17850_v34 = vld [vmem:[#allocation86_spill] sm:$0xff] }
 0x238   : > { %v2581_v41 = vpop.f32.mrf.mxu0  ;;  %v17852_v38 = vld [vmem:[#allocation89_spill] sm:$0xff] }
 0x239   : > { %v2910_v45 = vmul.f32 %v17846_v42, %v2581_v41  ;;  %v3095_v26 = vpop.f32.mrf.mxu1  ;;  %v13960_v63 = vadd.f32 %v3192_v32, %v2946_v59 }
 0x23a   : > { %v10241_v58 = vpop.f32.mrf.mxu0  ;;  %v3195_v21 = vmul.f32 %v3095_v26, %v13009_v19 }
 0x23b   : > { %v2947_v7 = vadd.f32 %v2910_v45, %v17848_v31  ;;  %v10325_v54 = vpop.f32.mrf.mxu1 }
 0x23c   : > { %v2586_v1 = vpop.f32.mrf.mxu0  ;;  %10423 = vmatmul.mubr.msk.bf16.gmra.mxu0 %vm1391_vm1, %v17849_v9  ;;  %v17851_v54 = vld [vmem:[#allocation82_spill] sm:$0xff] }
 0x23d   : > { %10507 = vmatmul.mubr.msk.bf16.gmra.mxu1 %vm1391_vm1, %v13611_v62  ;;  %v2911_v47 = vmul.f32 %v17850_v34, %v2586_v1  ;;  %v3100_v53 = vpop.f32.mrf.mxu1  ;;  %10426 = vmatprep.mubr.msk.bf16.mxu0 %vm11644_vm0, %v17617_v27  ;;  %v13973_v58 = vadd.f32 %v3193_v18, %v2947_v7  ;;  %v3194_v31 = vmul.f32 %v3092_v48, %v17851_v54  ;;  %v17854_v7 = vld [vmem:[#allocation73_spill] sm:$0xff] }
 0x23e   : > { %10510 = vmatprep.mubr.msk.bf16.mxu1 %vm11644_vm0, %v17617_v27  ;;  %v10244_v28 = vpop.f32.mrf.mxu0 }
 0x23f   : > { %v2948_v44 = vadd.f32 %v2911_v47, %v13524_v51  ;;  %v10328_v32 = vpop.f32.mrf.mxu1  ;;  %v17855_v51 = vld [vmem:[#allocation88_spill] sm:$0xff] }
 0x240   : > { %v2589_v59 = vpop.f32.mrf.mxu0 }
 0x241   : > { %v2912_v41 = vmul.f32 %v17852_v38, %v2589_v59  ;;  %v3103_v45 = vpop.f32.mrf.mxu1  ;;  %v13978_v1 = vadd.f32 %v3194_v31, %v2948_v44  ;;  %v13996_v44 = vrot.slane %v12662_v49, 1  ;;  %v17858_v59 = vld [vmem:[#allocation91_spill] sm:$0xff] }
 0x242   : > { %v10245_v62 = vpop.f32.mrf.mxu0  ;;  %v3197_v54 = vmul.f32 %v3103_v45, %v13020_v50 }
 0x243   : > { %v2949_v34 = vadd.f32 %v2912_v41, %v17853_v2  ;;  %v10329_v42 = vpop.f32.mrf.mxu1  ;;  %17857 = vst [vmem:[#allocation32_spill] sm:$0xff] %v13996_v44 }
 0x244   : > { %v2594_v18 = vpop.f32.mrf.mxu0  ;;  %10427 = vmatmul.mubr.msk.bf16.gmra.mxu0 %vm1391_vm1, %v17854_v7  ;;  %v17856_v42 = vld [vmem:[#allocation84_spill] sm:$0xff] }
 0x245   : > { %10511 = vmatmul.mubr.msk.bf16.gmra.mxu1 %vm1391_vm1, %v13648_v12  ;;  %v2913_v48 = vmul.f32 %v17855_v51, %v2594_v18  ;;  %v3108_v47 = vpop.f32.mrf.mxu1  ;;  %10430 = vmatprep.mubr.msk.bf16.mxu0 %vm11644_vm0, %v17617_v27  ;;  %v13991_v62 = vadd.f32 %v3195_v21, %v2949_v34  ;;  %v3196_v26 = vmul.f32 %v3100_v53, %v17856_v42  ;;  %v3257_v53 = vshll.u32 %v12662_v49, 16 }
 0x246   : > { %10514 = vmatprep.mubr.msk.bf16.mxu1 %vm11644_vm0, %v17617_v27  ;;  %v10248_v2 = vpop.f32.mrf.mxu0  ;;  %v3264_v51 = vshll.u32 %v13681_v3, 16 }
 0x247   : > { %v2950_v28 = vadd.f32 %v2913_v48, %v13560_v43  ;;  %v10332_v31 = vpop.f32.mrf.mxu1  ;;  %v14006_v43 = vsel %vm2381_vm3, %v13633_v60, %v13996_v44  ;;  %v17861_v2 = vld [vmem:[#allocation78_spill] sm:$0xff] }
 0x248   : > { %v2597_v32 = vpop.f32.mrf.mxu0  ;;  %17860 = vst [vmem:[#allocation37_spill] sm:$0xff] %v14006_v43 }
 0x249   : > { %v2914_v41 = vmul.f32 %v17858_v59, %v2597_v32  ;;  %v3111_v18 = vpop.f32.mrf.mxu1  ;;  %v13999_v12 = vadd.f32 %v3196_v26, %v2950_v28  ;;  %v17864_v28 = vld [vmem:[#allocation90_spill] sm:$0xff] }
 0x24a   : > { %v10249_v19 = vpop.f32.mrf.mxu0  ;;  %v3198_v31 = vmul.f32 %v3108_v47, %v17864_v28  ;;  %v17868_v28 = vld [vmem:[#allocation81_spill] sm:$0xff] }
 0x24b   : > { %17859 = vst [vmem:[#allocation124_spill] sm:$0xff] %v13999_v12  ;;  %v2951_v21 = vadd.f32 %v2914_v41, %v13572_v52  ;;  %v10333_v34 = vpop.f32.mrf.mxu1  ;;  %v17862_v19 = vld [vmem:[#allocation94_spill] sm:$0xff] }
 0x24c   : > { %v2602_v48 = vpop.f32.mrf.mxu0  ;;  %10431 = vmatmul.mubr.msk.bf16.gmra.mxu0 %vm1391_vm1, %v17861_v2  ;;  %v3259_v34 = vrot.slane %v3257_v53, 1 }
 0x24d   : > { %10515 = vmatmul.mubr.msk.bf16.gmra.mxu1 %vm1391_vm1, %v14006_v43  ;;  %v2915_v26 = vmul.f32 %v17862_v19, %v2602_v48  ;;  %v3116_v45 = vpop.f32.mrf.mxu1  ;;  %10434 = vmatprep.mubr.msk.bf16.mxu0 %vm11644_vm0, %v17617_v27  ;;  %v14018_v52 = vadd.f32 %v3197_v54, %v2951_v21  ;;  %v3522_v43 = vrot.slane %v13681_v3, 1  ;;  %v17865_v48 = vld [vmem:[#allocation97_spill] sm:$0xff]  ;;  %v3199_v54 = vmul.f32 %v3111_v18, %v13072_v4  ;;  %v17867_v21 = vld [vmem:[#allocation159_spill] sm:$0xff] }
 0x24e   : > { %10518 = vmatprep.mubr.msk.bf16.mxu1 %vm11644_vm0, %v17617_v27  ;;  %v10252_v60 = vpop.f32.mrf.mxu0 }
 0x24f   : > { %17863 = vst [vmem:[#allocation43_spill] sm:$0xff] %v14018_v52  ;;  %v2952_v32 = vadd.f32 %v2915_v26, %v13594_v16  ;;  %v10336_v41 = vpop.f32.mrf.mxu1  ;;  %v14031_v16 = vsel %vm1934_vm2, %v17868_v28, %v3259_v34  ;;  %v3523_v53 = vsel %vm2381_vm3, %v13996_v44, %v3522_v43  ;;  %v17871_v28 = vld [vmem:[#allocation92_spill] sm:$0xff] }
 0x250   : > { %v2605_v50 = vpop.f32.mrf.mxu0 }
 0x251   : > { %v2916_v42 = vmul.f32 %v17865_v48, %v2605_v50  ;;  %v3119_v19 = vpop.f32.mrf.mxu1  ;;  %v14024_v59 = vadd.f32 %v3198_v31, %v2952_v32  ;;  %v17869_v50 = vld [vmem:[#allocation96_spill] sm:$0xff]  ;;  %v3200_v32 = vmul.f32 %v3116_v45, %v17871_v28 }
 0x252   : > { %v10253_v12 = vpop.f32.mrf.mxu0 }
 0x253   : > { %17866 = vst [vmem:[#allocation133_spill] sm:$0xff] %v14024_v59  ;;  %v2953_v60 = vadd.f32 %v2916_v42, %v17867_v21  ;;  %v10337_v47 = vpop.f32.mrf.mxu1 }
 0x254   : > { %v2610_v26 = vpop.f32.mrf.mxu0  ;;  %10435 = vmatmul.mubr.msk.bf16.gmra.mxu0 %vm1391_vm1, %v14031_v16  ;;  %v3261_v47 = vshrl.u32 %v12662_v49, 16 }
 0x255   : > { %10519 = vmatmul.mubr.msk.bf16.gmra.mxu1 %vm1391_vm1, %v3523_v53  ;;  %v2917_v12 = vmul.f32 %v17869_v50, %v2610_v26  ;;  %v3124_v31 = vpop.f32.mrf.mxu1  ;;  %10438 = vmatprep.mubr.msk.bf16.mxu0 %vm11644_vm0, %v17617_v27  ;;  %v14043_v42 = vadd.f32 %v3199_v54, %v2953_v60  ;;  %v3266_v53 = vrot.slane %v3264_v51, 1  ;;  %v17872_v26 = vld [vmem:[#allocation99_spill] sm:$0xff]  ;;  %v17875_v51 = vld [vmem:[#allocation102_spill] sm:$0xff] }
 0x256   : > { %10522 = vmatprep.mubr.msk.bf16.mxu1 %vm11644_vm0, %v17617_v27  ;;  %v10256_v18 = vpop.f32.mrf.mxu0  ;;  %v14049_v48 = vor.u32 %v3261_v47, %v3259_v34  ;;  %v17873_v54 = vld [vmem:[#allocation95_spill] sm:$0xff] }
 0x257   : > { %17870 = vst [vmem:[#allocation49_spill] sm:$0xff] %v14043_v42  ;;  %v2954_v41 = vadd.f32 %v2917_v12, %v13630_v57  ;;  %v10340_v21 = vpop.f32.mrf.mxu1  ;;  %v3201_v60 = vmul.f32 %v3119_v19, %v17873_v54  ;;  %v17874_v18 = vld [vmem:[#allocation163_spill] sm:$0xff] }
 0x258   : > { %v2613_v44 = vpop.f32.mrf.mxu0  ;;  %v3267_v57 = vsel %vm1934_vm2, %v14049_v48, %v3266_v53 }
 0x259   : > { %v2918_v4 = vmul.f32 %v17872_v26, %v2613_v44  ;;  %v3127_v50 = vpop.f32.mrf.mxu1  ;;  %v14051_v59 = vadd.f32 %v3200_v32, %v2954_v41  ;;  %v17877_v41 = vld [vmem:[#allocation167_spill] sm:$0xff] }
 0x25a   : > { %v10257_v52 = vpop.f32.mrf.mxu0 }
 0x25b   : > { %v2955_v42 = vadd.f32 %v2918_v4, %v17874_v18  ;;  %v10341_v45 = vpop.f32.mrf.mxu1  ;;  %v17876_v52 = vld [vmem:[#allocation98_spill] sm:$0xff]  ;;  %v3268_v18 = vshrl.u32 %v13681_v3, 16 }
 0x25c   : > { %v2618_v12 = vpop.f32.mrf.mxu0  ;;  %10439 = vmatmul.mubr.msk.bf16.gmra.mxu0 %vm1391_vm1, %v3267_v57  ;;  %v3202_v32 = vmul.f32 %v3124_v31, %v17876_v52  ;;  %v17878_v45 = vld [vmem:[#allocation105_spill] sm:$0xff]  ;;  %v17881_v3 = vld [vmem:[#allocation106_spill] sm:$0xff] }
 0x25d   : > { %10523 = vmatmul.mubr.msk.bf16.gmra.mxu1 %vm1391_vm1, %v3522_v43  ;;  %v2919_v44 = vmul.f32 %v17875_v51, %v2618_v12  ;;  %v3132_v34 = vpop.f32.mrf.mxu1  ;;  %10442 = vmatprep.mubr.msk.bf16.mxu0 %vm11644_vm0, %v17617_v27  ;;  %v14064_v19 = vadd.f32 %v3201_v60, %v2955_v42  ;;  %v3270_v51 = vor.u32 %v3268_v18, %v3266_v53  ;;  %v11237_v42 = vld [vmem:[%s17273_s10 + $0x38] sm:$0xff]   ;;  %v11238_v53 = vld [vmem:[%s17273_s10 + $0x30] sm:$0xff]  }
 0x25e   : > { %10610 = vmatprep.mubr.msk.bf16.mxu1 %vm11644_vm0, %v17617_v27  ;;  %v10260_v4 = vpop.f32.mrf.mxu0  ;;  %v17879_v60 = vld [vmem:[#allocation101_spill] sm:$0xff] }
 0x25f   : > { %v2956_v21 = vadd.f32 %v2919_v44, %v17877_v41  ;;  %v10344_v47 = vpop.f32.mrf.mxu1  ;;  %v3203_v4 = vmul.f32 %v3127_v50, %v17879_v60  ;;  %v17880_v31 = vld [vmem:[#allocation169_spill] sm:$0xff] }
 0x260   : > { %v2621_v43 = vpop.f32.mrf.mxu0 }
 0x261   : > { %v2920_v57 = vmul.f32 %v17878_v45, %v2621_v43  ;;  %v3135_v12 = vpop.f32.mrf.mxu1  ;;  %v14070_v54 = vadd.f32 %v3202_v32, %v2956_v21 }
 0x262   : > { %v10261_v28 = vpop.f32.mrf.mxu0 }
 0x263   : > { %v2957_v52 = vadd.f32 %v2920_v57, %v17880_v31  ;;  %v10345_v44 = vpop.f32.mrf.mxu1  ;;  %v17883_v57 = vld [vmem:[#allocation107_spill] sm:$0xff] }
 0x264   : > { %v2626_v41 = vpop.f32.mrf.mxu0  ;;  %10443 = vmatmul.mubr.msk.bf16.gmra.mxu0 %vm1391_vm1, %v3270_v51  ;;  %v17882_v51 = vld [vmem:[#allocation100_spill] sm:$0xff] }
 0x265   : > { %10611 = vmatmul.mubr.msk.bf16.vlgmr.msra.gmra.mxu1 %vm1391_vm1, %v17791_v14  ;;  %v2921_v32 = vmul.f32 %v17881_v3, %v2626_v41  ;;  %v3140_v21 = vpop.f32.mrf.mxu1  ;;  %10530 = vmatprep.mubr.msk.bf16.mxu0 %vm11644_vm0, %v17617_v27  ;;  %v14085_v28 = vadd.f32 %v3203_v4, %v2957_v52  ;;  %v3204_v47 = vmul.f32 %v3132_v34, %v17882_v51  ;;  %v11236_v52 = vld [vmem:[%s17271_s8 + $0x88] sm:$0xff]   ;;  %v17890_v51 = vld [vmem:[#allocation17_spill] sm:$0xff] }
 0x266   : > { %10614 = vmatprep.mubr.msk.bf16.mxu1 %vm11644_vm0, %v17617_v27  ;;  %v10264_v50 = vpop.f32.mrf.mxu0  ;;  %10767 = vmatpush3.bf16.msra.mxu1 %v11237_v42  ;;  %v3205_v41 = vmul.f32 %v3135_v12, %v13162_v39  ;;  %v17888_v39 = vld [vmem:[#allocation110_spill] sm:$0xff] }
 0x267   : > { %v2958_v14 = vadd.f32 %v2921_v32, %v13699_v8  ;;  %v10348_v18 = vpop.f32.mrf.mxu1  ;;  %10768 = vmatprep.subr.bf16.mxu1 %v17617_v27  ;;  %v11240_v32 = vld [vmem:[%s17273_s10 + $0x28] sm:$0xff]  }
 0x268   : > { %v2629_v43 = vpop.f32.mrf.mxu0  ;;  %v17884_v18 = vld [vmem:[#allocation16_spill] sm:$0xff] }
 0x269   : > { %v2922_v31 = vmul.f32 %v17883_v57, %v2629_v43  ;;  %v3143_v44 = vpop.f32.mrf.mxu1  ;;  %v14097_v42 = vadd.f32 %v3204_v47, %v2958_v14  ;;  %v17885_v47 = vld [vmem:[#allocation115_spill] sm:$0xff] }
 0x26a   : > { %v10265_v4 = vpop.f32.mrf.mxu0  ;;  %10769 = vmatpush3.bf16.msra.mxu1 %v11238_v53 }
 0x26b   : > { %v2959_v34 = vadd.f32 %v2922_v31, %v13709_v6  ;;  %v10349_v8 = vpop.f32.mrf.mxu1  ;;  %10770 = vmatprep.subr.bf16.mxu1 %v17617_v27  ;;  %v11239_v6 = vld [vmem:[%s17271_s8 + $0x80] sm:$0xff]  }
 0x26c   : > { %v2634_v50 = vpop.f32.mrf.mxu0  ;;  %10531 = vmatmul.mubr.msk.bf16.vlgmr.msra.gmra.mxu0 %vm1391_vm1, %v17884_v18  ;;  %v11241_v4 = vld [vmem:[%s17273_s10 + $0x20] sm:$0xff]  }
 0x26d   : > { %10615 = vmatmul.mubr.msk.bf16.gmra.mxu1 %vm1391_vm1, %v17796_v0  ;;  %v2923_v53 = vmul.f32 %v17885_v47, %v2634_v50  ;;  %10687 = vmatpush3.bf16.msra.mxu0 %v11236_v52  ;;  %v3148_v12 = vpop.f32.mrf.mxu1  ;;  %v14115_v14 = vadd.f32 %v3205_v41, %v2959_v34  ;;  %v3206_v0 = vmul.f32 %v3140_v21, %v13211_v10  ;;  %v17886_v41 = vld [vmem:[#allocation116_spill] sm:$0xff]  ;;  %v17889_v10 = vld [vmem:[#allocation175_spill] sm:$0xff] }
 0x26e   : > { %10534 = vmatprep.mubr.msk.bf16.mxu0 %vm11644_vm0, %v17617_v27  ;;  %v10268_v43 = vpop.f32.mrf.mxu0  ;;  %10618 = vmatprep.mubr.msk.bf16.mxu1 %vm11644_vm0, %v17617_v27  ;;  %v3207_v21 = vmul.f32 %v3143_v44, %v17888_v39  ;;  %v17896_v39 = vld [vmem:[#allocation119_spill] sm:$0xff] }
 0x26f   : > { %10688 = vmatprep.subr.bf16.mxu0 %v17617_v27  ;;  %v2960_v31 = vadd.f32 %v2923_v53, %v13724_v35  ;;  %v10352_v52 = vpop.f32.mrf.mxu1  ;;  %10771 = vmatpush3.bf16.msra.mxu1 %v11240_v32  ;;  %v11242_v32 = vld [vmem:[%s17273_s10 + $0x18] sm:$0xff]  }
 0x270   : > { %v2637_v8 = vpop.f32.mrf.mxu0  ;;  %10772 = vmatprep.subr.bf16.mxu1 %v17617_v27 }
 0x271   : > { %v2924_v34 = vmul.f32 %v17886_v41, %v2637_v8  ;;  %v3151_v50 = vpop.f32.mrf.mxu1  ;;  %10689 = vmatpush3.bf16.msra.mxu0 %v11239_v6  ;;  %v14127_v18 = vadd.f32 %v3206_v0, %v2960_v31  ;;  %v17891_v8 = vld [vmem:[#allocation24_spill] sm:$0xff]  ;;  %v17892_v6 = vld [vmem:[#allocation118_spill] sm:$0xff] }
 0x272   : > { %v10269_v43 = vpop.f32.mrf.mxu0  ;;  %v17901_v41 = vld [vmem:[#allocation26_spill] sm:$0xff] }
 0x273   : > { %17887 = vst [vmem:[#allocation137_spill] sm:$0xff] %v14127_v18  ;;  %v2961_v35 = vadd.f32 %v2924_v34, %v17889_v10  ;;  %v10353_v53 = vpop.f32.mrf.mxu1  ;;  %10773 = vmatpush3.bf16.msra.mxu1 %v11241_v4  ;;  %v17894_v4 = vld [vmem:[#allocation112_spill] sm:$0xff] }
 0x274   : > { %v2642_v52 = vpop.f32.mrf.mxu0  ;;  %10535 = vmatmul.mubr.msk.bf16.gmra.mxu0 %vm1391_vm1, %v17890_v51  ;;  %10774 = vmatprep.subr.bf16.mxu1 %v17617_v27  ;;  %v3208_v34 = vmul.f32 %v3148_v12, %v17894_v4  ;;  %v17895_v51 = vld [vmem:[#allocation177_spill] sm:$0xff]  ;;  %v17899_v12 = vld [vmem:[#allocation179_spill] sm:$0xff] }
 0x275   : > { %10619 = vmatmul.mubr.msk.bf16.gmra.mxu1 %vm1391_vm1, %v17891_v8  ;;  %v2925_v0 = vmul.f32 %v17892_v6, %v2642_v52  ;;  %v3156_v31 = vpop.f32.mrf.mxu1  ;;  %10538 = vmatprep.mubr.msk.bf16.mxu0 %vm11644_vm0, %v17617_v27  ;;  %v14143_v10 = vadd.f32 %v3207_v21, %v2961_v35  ;;  %v11243_v52 = vld [vmem:[%s17273_s10 + $0x10] sm:$0xff]   ;;  %v17898_v6 = vld [vmem:[#allocation113_spill] sm:$0xff] }
 0x276   : > { %10622 = vmatprep.mubr.msk.bf16.mxu1 %vm11644_vm0, %v17617_v27  ;;  %v10272_v44 = vpop.f32.mrf.mxu0 }
 0x277   : > { %17893 = vst [vmem:[#allocation55_spill] sm:$0xff] %v14143_v10  ;;  %v2962_v43 = vadd.f32 %v2925_v0, %v17895_v51  ;;  %v10356_v53 = vpop.f32.mrf.mxu1  ;;  %10775 = vmatpush3.bf16.msra.mxu1 %v11242_v32  ;;  %v3209_v10 = vmul.f32 %v3151_v50, %v17898_v6  ;;  %v11244_v32 = vld [vmem:[%s17273_s10 + $0x8] sm:$0xff]   ;;  %v17906_v6 = vld [vmem:[#allocation178_spill] sm:$0xff] }
 0x278   : > { %v2645_v8 = vpop.f32.mrf.mxu0  ;;  %10776 = vmatprep.subr.bf16.mxu1 %v17617_v27  ;;  %v17900_v53 = vld [vmem:[#allocation19_spill] sm:$0xff] }
 0x279   : > { %v2926_v60 = vmul.f32 %v17896_v39, %v2645_v8  ;;  %v3159_v21 = vpop.f32.mrf.mxu1  ;;  %v14153_v35 = vadd.f32 %v3208_v34, %v2962_v43  ;;  %v17902_v34 = vld [vmem:[#allocation170_spill] sm:$0xff] }
 0x27a   : > { %v10273_v44 = vpop.f32.mrf.mxu0 }
 0x27b   : > { %17897 = vst [vmem:[#allocation61_spill] sm:$0xff] %v14153_v35  ;;  %v2963_v4 = vadd.f32 %v2926_v60, %v17899_v12  ;;  %v10357_v0 = vpop.f32.mrf.mxu1  ;;  %10777 = vmatpush3.bf16.msra.mxu1 %v11243_v52  ;;  %v17904_v52 = vld [vmem:[#allocation168_spill] sm:$0xff]  ;;  %v17912_v35 = vld [vmem:[#allocation181_spill] sm:$0xff] }
 0x27c   : > { %v2650_v51 = vpop.f32.mrf.mxu0  ;;  %10539 = vmatmul.mubr.msk.bf16.gmra.mxu0 %vm1391_vm1, %v17900_v53  ;;  %10778 = vmatprep.subr.bf16.mxu1 %v17617_v27  ;;  %v3210_v44 = vmul.f32 %v3156_v31, %v17904_v52  ;;  %v17905_v12 = vld [vmem:[#allocation20_spill] sm:$0xff]  ;;  %v17909_v31 = vld [vmem:[#allocation183_spill] sm:$0xff] }
 0x27d   : > { %10623 = vmatmul.mubr.msk.bf16.gmra.mxu1 %vm1391_vm1, %v17901_v41  ;;  %v2927_v43 = vmul.f32 %v17902_v34, %v2650_v51  ;;  %v3164_v8 = vpop.f32.mrf.mxu1  ;;  %10542 = vmatprep.mubr.msk.bf16.mxu0 %vm11644_vm0, %v17617_v27  ;;  %v14169_v60 = vadd.f32 %v3209_v10, %v2963_v4  ;;  %v11245_v41 = vld [vmem:[%s17273_s10] sm:$0xff]  }
 0x27e   : > { %10626 = vmatprep.mubr.msk.bf16.mxu1 %vm11644_vm0, %v17617_v27  ;;  %v10276_v50 = vpop.f32.mrf.mxu0 }
 0x27f   : > { %17903 = vst [vmem:[#allocation146_spill] sm:$0xff] %v14169_v60  ;;  %v2964_v0 = vadd.f32 %v2927_v43, %v17905_v12  ;;  %v10360_v53 = vpop.f32.mrf.mxu1  ;;  %10779 = vmatpush3.bf16.msra.mxu1 %v11244_v32  ;;  %v17908_v60 = vld [vmem:[#allocation18_spill] sm:$0xff]  ;;  %v17910_v12 = vld [vmem:[#allocation21_spill] sm:$0xff] }
 0x280   : > { %v2653_v51 = vpop.f32.mrf.mxu0  ;;  %10780 = vmatprep.subr.bf16.mxu1 %v17617_v27  ;;  %v3211_v39 = vmul.f32 %v3159_v21, %v17908_v60  ;;  %v17911_v53 = vld [vmem:[#allocation28_spill] sm:$0xff] }
 0x281   : > { %v2928_v34 = vmul.f32 %v17906_v6, %v2653_v51  ;;  %v3167_v10 = vpop.f32.mrf.mxu1  ;;  %v14179_v4 = vadd.f32 %v3210_v44, %v2964_v0  ;;  %v17914_v44 = vld [vmem:[#allocation180_spill] sm:$0xff]  ;;  %v17917_v6 = vld [vmem:[#allocation185_spill] sm:$0xff] }
 0x282   : > { %v10277_v50 = vpop.f32.mrf.mxu0  ;;  %v3212_v0 = vmul.f32 %v3164_v8, %v17914_v44  ;;  %v17920_v44 = vld [vmem:[#allocation23_spill] sm:$0xff] }
 0x283   : > { %17907 = vst [vmem:[#allocation67_spill] sm:$0xff] %v14179_v4  ;;  %v2965_v52 = vadd.f32 %v2928_v34, %v17909_v31  ;;  %v10361_v43 = vpop.f32.mrf.mxu1  ;;  %10781 = vmatpush3.bf16.msra.mxu1 %v11245_v41  ;;  %v17915_v41 = vld [vmem:[#allocation184_spill] sm:$0xff]  ;;  %v14204_v4 = vpop.permute.xlu1 %2892 }
 0x284   : > { %v2658_v32 = vpop.f32.mrf.mxu0  ;;  %10543 = vmatmul.mubr.msk.bf16.gmra.mxu0 %vm1391_vm1, %v17910_v12  ;;  %10786 = vmatprep.subr.bf16.mxu1 %v17617_v27  ;;  %v14197_v43 = vpop.permute.xlu0 %2887  ;;  %17919 = vst [vmem:[#allocation78_spill] sm:$0xff] %v14204_v4 }
 0x285   : > { %10627 = vmatmul.mubr.msk.bf16.gmra.mxu1 %vm1391_vm1, %v17911_v53  ;;  %v2929_v18 = vmul.f32 %v17912_v35, %v2658_v32  ;;  %v3172_v51 = vpop.f32.mrf.mxu1  ;;  %10546 = vmatprep.mubr.msk.bf16.mxu0 %vm11644_vm0, %v17617_v27  ;;  %v14192_v21 = vadd.f32 %v3211_v39, %v2965_v52  ;;  %17916 = vst [vmem:[#allocation73_spill] sm:$0xff] %v14197_v43  ;;  %v17918_v52 = vld [vmem:[#allocation186_spill] sm:$0xff] }
 0x286   : > { %10630 = vmatprep.mubr.msk.bf16.mxu1 %vm11644_vm0, %v17617_v27  ;;  %v10280_v34 = vpop.f32.mrf.mxu0  ;;  %v3213_v39 = vmul.f32 %v3167_v10, %v17917_v6  ;;  %v17923_v6 = vld [vmem:[#allocation25_spill] sm:$0xff] }
 0x287   : > { %17913 = vst [vmem:[#allocation150_spill] sm:$0xff] %v14192_v21  ;;  %v2966_v50 = vadd.f32 %v2929_v18, %v17915_v41  ;;  %v10364_v31 = vpop.f32.mrf.mxu1 }
 0x288   : > { %v2661_v32 = vpop.f32.mrf.mxu0 }
 0x289   : > { %v2930_v12 = vmul.f32 %v14197_v43, %v2661_v32  ;;  %v3175_v53 = vpop.f32.mrf.mxu1  ;;  %v14200_v60 = vadd.f32 %v3212_v0, %v2966_v50  ;;  %v17922_v50 = vld [vmem:[#allocation188_spill] sm:$0xff] }
 0x28a   : > { %v10281_v35 = vpop.f32.mrf.mxu0 }
 0x28b   : > { %v2967_v34 = vadd.f32 %v2930_v12, %v17918_v52  ;;  %v10365_v21 = vpop.f32.mrf.mxu1 }
 0x28c   : > { %v2666_v8 = vpop.f32.mrf.mxu0  ;;  %10547 = vmatmul.mubr.msk.bf16.gmra.mxu0 %vm1391_vm1, %v17920_v44  ;;  %v17921_v21 = vld [vmem:[#allocation187_spill] sm:$0xff] }
 0x28d   : > { %10631 = vmatmul.mubr.msk.bf16.gmra.mxu1 %vm1391_vm1, %v17811_v20  ;;  %v2931_v18 = vmul.f32 %v14204_v4, %v2666_v8  ;;  %v3579_v41 = vpop.f32.mrf.mxu1  ;;  %10550 = vmatprep.mubr.msk.bf16.mxu0 %vm11644_vm0, %v17617_v27  ;;  %v14215_v35 = vadd.f32 %v3213_v39, %v2967_v34  ;;  %v3214_v0 = vmul.f32 %v3172_v51, %v17921_v21  ;;  %v17924_v39 = vld [vmem:[#allocation41_spill] sm:$0xff] }
 0x28e   : > { %10634 = vmatprep.mubr.msk.bf16.mxu1 %vm11644_vm0, %v17617_v27  ;;  %v10284_v10 = vpop.f32.mrf.mxu0  ;;  %v3729_v34 = vmul.f32 %v3579_v41, %v17924_v39 }
 0x28f   : > { %v2968_v31 = vadd.f32 %v2931_v18, %v17922_v50  ;;  %v10452_v44 = vpop.f32.mrf.mxu1  ;;  %v17925_v10 = vld [vmem:[#allocation114_spill] sm:$0xff] }
 0x290   : > { %v2669_v32 = vpop.f32.mrf.mxu0 }
 0x291   : > { %v3582_v12 = vpop.f32.mrf.mxu1  ;;  %v14219_v20 = vadd.f32 %v3214_v0, %v2968_v31 }
 0x292   : > { %v10285_v53 = vpop.f32.mrf.mxu0 }
 0x293   : > { %v10453_v52 = vpop.f32.mrf.mxu1 }
 0x294   : > { %v3326_v8 = vpop.f32.mrf.mxu0  ;;  %10551 = vmatmul.mubr.msk.bf16.gmra.mxu0 %vm1391_vm1, %v17923_v6  ;;  %v17926_v6 = vld [vmem:[#allocation45_spill] sm:$0xff] }
 0x295   : > { %10635 = vmatmul.mubr.msk.bf16.gmra.mxu1 %vm1391_vm1, %v17817_v55  ;;  %v3476_v51 = vadd.f32 %v3326_v8, %v17925_v10  ;;  %v3587_v21 = vpop.f32.mrf.mxu1  ;;  %10554 = vmatprep.mubr.msk.bf16.mxu0 %vm11644_vm0, %v17617_v27  ;;  %v3730_v44 = vmul.f32 %v3582_v12, %v17926_v6  ;;  %v17927_v10 = vld [vmem:[#allocation27_spill] sm:$0xff] }
 0x296   : > { %10638 = vmatprep.mubr.msk.bf16.mxu1 %vm11644_vm0, %v17617_v27  ;;  %v10372_v18 = vpop.f32.mrf.mxu0 }
 0x297   : > { %v14231_v0 = vadd.f32 %v3729_v34, %v3476_v51  ;;  %v10456_v50 = vpop.f32.mrf.mxu1  ;;  %v17928_v34 = vld [vmem:[#allocation44_spill] sm:$0xff] }
 0x298   : > { %v3329_v31 = vpop.f32.mrf.mxu0  ;;  %v3731_v51 = vmul.f32 %v3587_v21, %v17928_v34 }
 0x299   : > { %v3477_v55 = vadd.f32 %v3329_v31, %v13847_v17  ;;  %v3590_v41 = vpop.f32.mrf.mxu1 }
 0x29a   : > { %v10373_v32 = vpop.f32.mrf.mxu0 }
 0x29b   : > { %v14235_v53 = vadd.f32 %v3730_v44, %v3477_v55  ;;  %v10457_v52 = vpop.f32.mrf.mxu1  ;;  %v685_v44 = vld [vmem:[%s11847_s24 + $0x140] sm:$0xf]  ;;  %v17929_v32 = vld [vmem:[#allocation48_spill] sm:$0xff] }
 0x29c   : > { %v3334_v8 = vpop.f32.mrf.mxu0  ;;  %10555 = vmatmul.mubr.msk.bf16.gmra.mxu0 %vm1391_vm1, %v17927_v10  ;;  %v3732_v52 = vmul.f32 %v3590_v41, %v17929_v32  ;;  %v17931_v41 = vld [vmem:[#allocation53_spill] sm:$0xff]  ;;  %v17932_v32 = vld [vmem:[#allocation31_spill] sm:$0xff] }
 0x29d   : > { %10639 = vmatmul.mubr.msk.bf16.gmra.mxu1 %vm1391_vm1, %v17822_v22  ;;  %v3478_v18 = vadd.f32 %v3334_v8, %v13852_v11  ;;  %v3595_v12 = vpop.f32.mrf.mxu1  ;;  %10558 = vmatprep.mubr.msk.bf16.mxu0 %vm11644_vm0, %v17617_v27  ;;  %v11610_v11 = vld [vmem:[%s17269_s6] ss:$0 sm:$0xff] }
 0x29e   : > { %10642 = vmatprep.mubr.msk.bf16.mxu1 %vm11644_vm0, %v17617_v27  ;;  %v10376_v17 = vpop.f32.mrf.mxu0  ;;  %v733_v8 = vmul.f32 %v11610_v11, %v685_v44 }
 0x29f   : > { %v14247_v50 = vadd.f32 %v3731_v51, %v3478_v18  ;;  %v10460_v31 = vpop.f32.mrf.mxu1  ;;  %v17930_v51 = vld [vmem:[#allocation29_spill] sm:$0xff]  ;;  %v3733_v18 = vmul.f32 %v3595_v12, %v17931_v41 }
 0x2a0   : > { %v3337_v55 = vpop.f32.mrf.mxu0 }
 0x2a1   : > { %v3479_v22 = vadd.f32 %v3337_v55, %v13865_v37  ;;  %v3598_v21 = vpop.f32.mrf.mxu1 }
 0x2a2   : > { %v10377_v10 = vpop.f32.mrf.mxu0 }
 0x2a3   : > { %v14255_v34 = vadd.f32 %v3732_v52, %v3479_v22  ;;  %v10461_v6 = vpop.f32.mrf.mxu1 }
 0x2a4   : > { %v3342_v17 = vpop.f32.mrf.mxu0  ;;  %10559 = vmatmul.mubr.msk.bf16.gmra.mxu0 %vm1391_vm1, %v17930_v51  ;;  %v11611_v6 = vld [vmem:[%s17270_s7] ss:$0 sm:$0xff] }
 0x2a5   : > { %10643 = vmatmul.mubr.msk.bf16.gmra.mxu1 %vm1391_vm1, %v17827_v23  ;;  %v3480_v37 = vadd.f32 %v3342_v17, %v13870_v40  ;;  %v3603_v31 = vpop.f32.mrf.mxu1  ;;  %10562 = vmatprep.mubr.msk.bf16.mxu0 %vm11644_vm0, %v17617_v27  ;;  %v14270_v55 = vadd.f32 %v11611_v6, %v733_v8  ;;  %v3734_v40 = vmul.f32 %v3598_v21, %v17820_v30  ;;  %v17933_v8 = vld [vmem:[#allocation56_spill] sm:$0xff]  ;;  %v17936_v30 = vld [vmem:[#allocation33_spill] sm:$0xff] }
 0x2a6   : > { %10646 = vmatprep.mubr.msk.bf16.mxu1 %vm11644_vm0, %v17617_v27  ;;  %v10380_v44 = vpop.f32.mrf.mxu0 }
 0x2a7   : > { %v14272_v52 = vadd.f32 %v3733_v18, %v3480_v37  ;;  %v10464_v23 = vpop.f32.mrf.mxu1  ;;  %v822_v17 = vsub.f32 0.0, %v14270_v55  ;;  %v3735_v18 = vmul.f32 %v3603_v31, %v17933_v8  ;;  %v17934_v37 = vld [vmem:[#allocation30_spill] sm:$0xff] }
 0x2a8   : > { %v3345_v12 = vpop.f32.mrf.mxu0 }
 0x2a9   : > { %v3481_v22 = vadd.f32 %v3345_v12, %v13883_v61  ;;  %v3606_v10 = vpop.f32.mrf.mxu1  ;;  %v903_v23 = vmul.f32 1.442695, %v822_v17  ;;  %v17937_v17 = vld [vmem:[#allocation65_spill] sm:$0xff] }
 0x2aa   : > { %v10381_v11 = vpop.f32.mrf.mxu0 }
 0x2ab   : > { %v14277_v51 = vadd.f32 %v3734_v40, %v3481_v22  ;;  %v10465_v44 = vpop.f32.mrf.mxu1  ;;  %v17935_v22 = vld [vmem:[#allocation60_spill] sm:$0xff]  ;;  %11452 = vpow2.f32 %v903_v23 }
 0x2ac   : > { %v3350_v41 = vpop.f32.mrf.mxu0  ;;  %10563 = vmatmul.mubr.msk.bf16.gmra.mxu0 %vm1391_vm1, %v17932_v32  ;;  %v3736_v11 = vmul.f32 %v3606_v10, %v17935_v22 }
 0x2ad   : > { %10647 = vmatmul.mubr.msk.bf16.gmra.mxu1 %vm1391_vm1, %v17833_v36  ;;  %v3482_v21 = vadd.f32 %v3350_v41, %v17934_v37  ;;  %v3611_v6 = vpop.f32.mrf.mxu1  ;;  %10566 = vmatprep.mubr.msk.bf16.mxu0 %vm11644_vm0, %v17617_v27 }
 0x2ae   : > { %10650 = vmatprep.mubr.msk.bf16.mxu1 %vm11644_vm0, %v17617_v27  ;;  %v10384_v61 = vpop.f32.mrf.mxu0 }
 0x2af   : > { %v14289_v12 = vadd.f32 %v3735_v18, %v3482_v21  ;;  %v10468_v40 = vpop.f32.mrf.mxu1  ;;  %v3737_v18 = vmul.f32 %v3611_v6, %v17937_v17 }
 0x2b0   : > { %v3353_v32 = vpop.f32.mrf.mxu0 }
 0x2b1   : > { %v3483_v36 = vadd.f32 %v3353_v32, %v13901_v33  ;;  %v3614_v31 = vpop.f32.mrf.mxu1 }
 0x2b2   : > { %v10385_v44 = vpop.f32.mrf.mxu0 }
 0x2b3   : > { %v14293_v41 = vadd.f32 %v3736_v11, %v3483_v36  ;;  %v10469_v37 = vpop.f32.mrf.mxu1  ;;  %v17939_v44 = vld [vmem:[#allocation40_spill] sm:$0xff] }
 0x2b4   : > { %v3358_v8 = vpop.f32.mrf.mxu0  ;;  %10567 = vmatmul.mubr.msk.bf16.gmra.mxu0 %vm1391_vm1, %v17936_v30  ;;  %v17938_v30 = vld [vmem:[#allocation69_spill] sm:$0xff]  ;;  %v17940_v37 = vld [vmem:[#allocation68_spill] sm:$0xff] }
 0x2b5   : > { %10651 = vmatmul.mubr.msk.bf16.gmra.mxu1 %vm1391_vm1, %v17838_v24  ;;  %v3484_v21 = vadd.f32 %v3358_v8, %v13906_v46  ;;  %v3619_v10 = vpop.f32.mrf.mxu1  ;;  %10570 = vmatprep.mubr.msk.bf16.mxu0 %vm11644_vm0, %v17617_v27  ;;  %v3738_v32 = vmul.f32 %v3614_v31, %v17938_v30 }
 0x2b6   : > { %10654 = vmatprep.mubr.msk.bf16.mxu1 %vm11644_vm0, %v17617_v27  ;;  %v10388_v33 = vpop.f32.mrf.mxu0 }
 0x2b7   : > { %v14305_v61 = vadd.f32 %v3737_v18, %v3484_v21  ;;  %v10472_v23 = vpop.f32.mrf.mxu1  ;;  %v3739_v18 = vmul.f32 %v3619_v10, %v17940_v37  ;;  %v17941_v37 = vld [vmem:[#allocation46_spill] sm:$0xff] }
 0x2b8   : > { %v3361_v40 = vpop.f32.mrf.mxu0 }
 0x2b9   : > { %v3485_v24 = vadd.f32 %v3361_v40, %v13919_v29  ;;  %v3622_v11 = vpop.f32.mrf.mxu1  ;;  %v11453_v40 = vpop.eup %11452 }
 0x2ba   : > { %v10389_v6 = vpop.f32.mrf.mxu0 }
 0x2bb   : > { %v14309_v36 = vadd.f32 %v3738_v32, %v3485_v24  ;;  %v10473_v46 = vpop.f32.mrf.mxu1  ;;  %v3740_v24 = vmul.f32 %v3622_v11, %v17836_v25  ;;  %v17952_v25 = vld [vmem:[#allocation64_spill] sm:$0xff] }
 0x2bc   : > { %v3366_v8 = vpop.f32.mrf.mxu0  ;;  %10571 = vmatmul.mubr.msk.bf16.gmra.mxu0 %vm1391_vm1, %v17939_v44 }
 0x2bd   : > { %10655 = vmatmul.mubr.msk.bf16.gmra.mxu1 %vm1391_vm1, %v17843_v5  ;;  %v3486_v21 = vadd.f32 %v3366_v8, %v13924_v15  ;;  %v3627_v33 = vpop.f32.mrf.mxu1  ;;  %10574 = vmatprep.mubr.msk.bf16.mxu0 %vm11644_vm0, %v17617_v27  ;;  %v945_v15 = vadd.f32 1.0, %v11453_v40 }
 0x2be   : > { %10658 = vmatprep.mubr.msk.bf16.mxu1 %vm11644_vm0, %v17617_v27  ;;  %v10392_v29 = vpop.f32.mrf.mxu0 }
 0x2bf   : > { %v14321_v31 = vadd.f32 %v3739_v18, %v3486_v21  ;;  %v10476_v23 = vpop.f32.mrf.mxu1  ;;  %v17942_v18 = vld [vmem:[#allocation76_spill] sm:$0xff]  ;;  %11454 = vrcp.f32 %v945_v15  ;;  %v17946_v15 = vld [vmem:[#allocation79_spill] sm:$0xff] }
 0x2c0   : > { %v3369_v32 = vpop.f32.mrf.mxu0  ;;  %v3741_v21 = vmul.f32 %v3627_v33, %v17942_v18  ;;  %v17943_v29 = vld [vmem:[#allocation120_spill] sm:$0xff] }
 0x2c1   : > { %v3487_v5 = vadd.f32 %v3369_v32, %v13937_v56  ;;  %v3630_v10 = vpop.f32.mrf.mxu1  ;;  %v17945_v18 = vld [vmem:[#allocation52_spill] sm:$0xff] }
 0x2c2   : > { %v10393_v6 = vpop.f32.mrf.mxu0 }
 0x2c3   : > { %v14325_v46 = vadd.f32 %v3740_v24, %v3487_v5  ;;  %v10477_v8 = vpop.f32.mrf.mxu1  ;;  %v17944_v24 = vld [vmem:[#allocation80_spill] sm:$0xff] }
 0x2c4   : > { %v3374_v44 = vpop.f32.mrf.mxu0  ;;  %10575 = vmatmul.mubr.msk.bf16.gmra.mxu0 %vm1391_vm1, %v17941_v37  ;;  %v3742_v5 = vmul.f32 %v3630_v10, %v17944_v24 }
 0x2c5   : > { %10659 = vmatmul.mubr.msk.bf16.gmra.mxu1 %vm1391_vm1, %v17849_v9  ;;  %v3488_v23 = vadd.f32 %v3374_v44, %v17943_v29  ;;  %v3635_v11 = vpop.f32.mrf.mxu1  ;;  %10578 = vmatprep.mubr.msk.bf16.mxu0 %vm11644_vm0, %v17617_v27 }
 0x2c6   : > { %10662 = vmatprep.mubr.msk.bf16.mxu1 %vm11644_vm0, %v17617_v27  ;;  %v10396_v56 = vpop.f32.mrf.mxu0 }
 0x2c7   : > { %v14337_v40 = vadd.f32 %v3741_v21, %v3488_v23  ;;  %v10480_v32 = vpop.f32.mrf.mxu1  ;;  %v3743_v21 = vmul.f32 %v3635_v11, %v17946_v15  ;;  %v17948_v15 = vld [vmem:[#allocation58_spill] sm:$0xff] }
 0x2c8   : > { %v3377_v37 = vpop.f32.mrf.mxu0 }
 0x2c9   : > { %v3489_v9 = vadd.f32 %v3377_v37, %v13955_v13  ;;  %v3638_v33 = vpop.f32.mrf.mxu1 }
 0x2ca   : > { %v10397_v6 = vpop.f32.mrf.mxu0 }
 0x2cb   : > { %v14341_v8 = vadd.f32 %v3742_v5, %v3489_v9  ;;  %v10481_v44 = vpop.f32.mrf.mxu1 }
 0x2cc   : > { %v3382_v29 = vpop.f32.mrf.mxu0  ;;  %10579 = vmatmul.mubr.msk.bf16.gmra.mxu0 %vm1391_vm1, %v17945_v18  ;;  %v17947_v18 = vld [vmem:[#allocation83_spill] sm:$0xff]  ;;  %v11455_v44 = vpop.eup %11454 }
 0x2cd   : > { %10663 = vmatmul.mubr.msk.bf16.gmra.mxu1 %vm1391_vm1, %v17854_v7  ;;  %v3490_v23 = vadd.f32 %v3382_v29, %v13960_v63  ;;  %v3643_v56 = vpop.f32.mrf.mxu1  ;;  %10582 = vmatprep.mubr.msk.bf16.mxu0 %vm11644_vm0, %v17617_v27  ;;  %v3744_v5 = vmul.f32 %v3638_v33, %v17947_v18  ;;  %v17951_v18 = vld [vmem:[#allocation34_spill] sm:$0xff] }
 0x2ce   : > { %10666 = vmatprep.mubr.msk.bf16.mxu1 %vm11644_vm0, %v17617_v27  ;;  %v10400_v13 = vpop.f32.mrf.mxu0  ;;  %v4091_v24 = vshll.u32 %v17951_v18, 16 }
 0x2cf   : > { %v14353_v10 = vadd.f32 %v3743_v21, %v3490_v23  ;;  %v10484_v32 = vpop.f32.mrf.mxu1  ;;  %v17949_v21 = vld [vmem:[#allocation86_spill] sm:$0xff] }
 0x2d0   : > { %v3385_v37 = vpop.f32.mrf.mxu0  ;;  %v3745_v23 = vmul.f32 %v3643_v56, %v17949_v21  ;;  %v1068_v32 = vmul.f32 %v11455_v44, %v14270_v55  ;;  %v17953_v55 = vld [vmem:[#allocation88_spill] sm:$0xff] }
 0x2d1   : > { %v3491_v7 = vadd.f32 %v3385_v37, %v13973_v58  ;;  %v3646_v9 = vpop.f32.mrf.mxu1  ;;  %v17954_v44 = vld [vmem:[#allocation124_spill] sm:$0xff] }
 0x2d2   : > { %v10401_v11 = vpop.f32.mrf.mxu0 }
 0x2d3   : > { %v14357_v6 = vadd.f32 %v3744_v5, %v3491_v7  ;;  %v10485_v63 = vpop.f32.mrf.mxu1  ;;  %v17950_v11 = vld [vmem:[#allocation36_spill] sm:$0xff] }
 0x2d4   : > { %v3390_v29 = vpop.f32.mrf.mxu0  ;;  %10583 = vmatmul.mubr.msk.bf16.gmra.mxu0 %vm1391_vm1, %v17948_v15  ;;  %v1355_v63 = vmul.f32 %v17950_v11, %v1068_v32 }
 0x2d5   : > { %10667 = vmatmul.mubr.msk.bf16.gmra.mxu1 %vm1391_vm1, %v17861_v2  ;;  %v3492_v13 = vadd.f32 %v3390_v29, %v13978_v1  ;;  %v3651_v33 = vpop.f32.mrf.mxu1  ;;  %10586 = vmatprep.mubr.msk.bf16.mxu0 %vm11644_vm0, %v17617_v27  ;;  %v3746_v2 = vmul.f32 %v3646_v9, %v17852_v38 }
 0x2d6   : > { %10670 = vmatprep.mubr.msk.bf16.mxu1 %vm11644_vm0, %v17617_v27  ;;  %v10404_v58 = vpop.f32.mrf.mxu0  ;;  %v3747_v9 = vmul.f32 %v3651_v33, %v17953_v55  ;;  %v17956_v33 = vld [vmem:[#allocation43_spill] sm:$0xff] }
 0x2d7   : > { %v14370_v37 = vadd.f32 %v3745_v23, %v3492_v13  ;;  %v10488_v15 = vpop.f32.mrf.mxu1  ;;  %v14388_v13 = vpack.c.bf16 %v1355_v63, %v1355_v63 }
 0x2d8   : > { %v3393_v5 = vpop.f32.mrf.mxu0  ;;  %v4093_v15 = vrot.slane %v4091_v24, 1  ;;  %v17958_v24 = vld [vmem:[#allocation94_spill] sm:$0xff] }
 0x2d9   : > { %v3493_v56 = vadd.f32 %v3393_v5, %v13991_v62  ;;  %v3654_v7 = vpop.f32.mrf.mxu1 }
 0x2da   : > { %v10405_v1 = vpop.f32.mrf.mxu0  ;;  %v4094_v63 = vsel %vm1934_vm2, %v14049_v48, %v4093_v15  ;;  %v4095_v48 = vshrl.u32 %v17951_v18, 16 }
 0x2db   : > { %v14375_v29 = vadd.f32 %v3746_v2, %v3493_v56  ;;  %v10489_v21 = vpop.f32.mrf.mxu1 }
 0x2dc   : > { %v3398_v58 = vpop.f32.mrf.mxu0  ;;  %10587 = vmatmul.mubr.msk.bf16.gmra.mxu0 %vm1391_vm1, %v17952_v25 }
 0x2dd   : > { %10671 = vmatmul.mubr.msk.bf16.gmra.mxu1 %vm1391_vm1, %v14031_v16  ;;  %v3494_v62 = vadd.f32 %v3398_v58, %v17954_v44  ;;  %v3659_v23 = vpop.f32.mrf.mxu1  ;;  %10590 = vmatprep.mubr.msk.bf16.mxu0 %vm11644_vm0, %v17617_v27  ;;  %v17955_v16 = vld [vmem:[#allocation91_spill] sm:$0xff]  ;;  %v4098_v58 = vshll.u32 %v14388_v13, 16 }
 0x2de   : > { %10674 = vmatprep.mubr.msk.bf16.mxu1 %vm11644_vm0, %v17617_v27  ;;  %v10408_v21 = vpop.f32.mrf.mxu0  ;;  %v3748_v2 = vmul.f32 %v3654_v7, %v17955_v16  ;;  %v3749_v7 = vmul.f32 %v3659_v23, %v17958_v24  ;;  %v17961_v23 = vld [vmem:[#allocation49_spill] sm:$0xff] }
 0x2df   : > { %v14390_v32 = vadd.f32 %v3747_v9, %v3494_v62  ;;  %v10492_v25 = vpop.f32.mrf.mxu1  ;;  %v17957_v9 = vld [vmem:[#allocation70_spill] sm:$0xff]  ;;  %v17959_v62 = vld [vmem:[#allocation133_spill] sm:$0xff] }
 0x2e0   : > { %v3401_v5 = vpop.f32.mrf.mxu0 }
 0x2e1   : > { %v3495_v56 = vadd.f32 %v3401_v5, %v17956_v33  ;;  %v3662_v1 = vpop.f32.mrf.mxu1 }
 0x2e2   : > { %v10409_v11 = vpop.f32.mrf.mxu0 }
 0x2e3   : > { %v14395_v44 = vadd.f32 %v3748_v2, %v3495_v56  ;;  %v10493_v55 = vpop.f32.mrf.mxu1  ;;  %v4100_v56 = vrot.slane %v4098_v58, 1  ;;  %v17962_v58 = vld [vmem:[#allocation96_spill] sm:$0xff] }
 0x2e4   : > { %v3406_v21 = vpop.f32.mrf.mxu0  ;;  %10591 = vmatmul.mubr.msk.bf16.gmra.mxu0 %vm1391_vm1, %v17957_v9 }
 0x2e5   : > { %10675 = vmatmul.mubr.msk.bf16.gmra.mxu1 %vm1391_vm1, %v4094_v63  ;;  %v3496_v25 = vadd.f32 %v3406_v21, %v17959_v62  ;;  %v3667_v5 = vpop.f32.mrf.mxu1  ;;  %10594 = vmatprep.mubr.msk.bf16.mxu0 %vm11644_vm0, %v17617_v27  ;;  %v17960_v63 = vld [vmem:[#allocation97_spill] sm:$0xff]  ;;  %v4097_v62 = vor.u32 %v4095_v48, %v4093_v15 }
 0x2e6   : > { %10678 = vmatprep.mubr.msk.bf16.mxu1 %vm11644_vm0, %v17617_v27  ;;  %v10412_v55 = vpop.f32.mrf.mxu0  ;;  %v3750_v9 = vmul.f32 %v3662_v1, %v17960_v63 }
 0x2e7   : > { %v14409_v2 = vadd.f32 %v3749_v7, %v3496_v25  ;;  %v10496_v33 = vpop.f32.mrf.mxu1  ;;  %v4101_v17 = vsel %vm1934_vm2, %v4097_v62, %v4100_v56  ;;  %v3751_v7 = vmul.f32 %v3667_v5, %v17962_v58  ;;  %v17964_v62 = vld [vmem:[#allocation102_spill] sm:$0xff] }
 0x2e8   : > { %v3409_v11 = vpop.f32.mrf.mxu0 }
 0x2e9   : > { %v3497_v24 = vadd.f32 %v3409_v11, %v17961_v23  ;;  %v3670_v21 = vpop.f32.mrf.mxu1 }
 0x2ea   : > { %v10413_v16 = vpop.f32.mrf.mxu0 }
 0x2eb   : > { %v14413_v38 = vadd.f32 %v3750_v9, %v3497_v24  ;;  %v10497_v30 = vpop.f32.mrf.mxu1 }
 0x2ec   : > { %v3414_v55 = vpop.f32.mrf.mxu0  ;;  %10595 = vmatmul.mubr.msk.bf16.gmra.mxu0 %vm1391_vm1, %v12662_v49  ;;  %v4102_v49 = vshrl.u32 %v14388_v13, 16 }
 0x2ed   : > { %10679 = vmatmul.mubr.msk.bf16.gmra.mxu1 %vm1391_vm1, %v4101_v17  ;;  %v3498_v1 = vadd.f32 %v3414_v55, %v14051_v59  ;;  %v3675_v25 = vpop.f32.mrf.mxu1  ;;  %10598 = vmatprep.mubr.msk.bf16.mxu0 %vm11644_vm0, %v17617_v27  ;;  %v3752_v17 = vmul.f32 %v3670_v21, %v17872_v26  ;;  %v17979_v26 = vld [vmem:[#allocation117_spill] sm:$0xff] }
 0x2ee   : > { %10682 = vmatprep.mubr.msk.bf16.mxu1 %vm11644_vm0, %v17617_v27  ;;  %v10416_v30 = vpop.f32.mrf.mxu0  ;;  %v4104_v33 = vor.u32 %v4102_v49, %v4100_v56  ;;  %v3753_v21 = vmul.f32 %v3675_v25, %v17964_v62  ;;  %v4681_v56 = vld [vmem:[%s638_s3] sm:$0x1] }
 0x2ef   : > { %v14425_v15 = vadd.f32 %v3751_v7, %v3498_v1  ;;  %v10500_v16 = vpop.f32.mrf.mxu1  ;;  %v14447_v49 = vpack.c.bf16 %v4681_v56, %v4681_v56 }
 0x2f0   : > { %v3417_v24 = vpop.f32.mrf.mxu0 }
 0x2f1   : > { %v3499_v5 = vadd.f32 %v3417_v24, %v14064_v19  ;;  %v3678_v48 = vpop.f32.mrf.mxu1 }
 0x2f2   : > { %v10417_v59 = vpop.f32.mrf.mxu0  ;;  %v3754_v24 = vmul.f32 %v3678_v48, %v17878_v45 }
 0x2f3   : > { %v14434_v11 = vadd.f32 %v3752_v17, %v3499_v5  ;;  %v10501_v9 = vpop.f32.mrf.mxu1  ;;  %v11246_v17 = vld [vmem:[%s17275_s12 + $0x38] sm:$0xff]  }
 0x2f4   : > { %v3422_v23 = vpop.f32.mrf.mxu0  ;;  %10599 = vmatmul.mubr.msk.bf16.gmra.mxu0 %vm1391_vm1, %v17951_v18 }
 0x2f5   : > { %10683 = vmatmul.mubr.msk.bf16.gmra.mxu1 %vm1391_vm1, %v4104_v33  ;;  %v3500_v19 = vadd.f32 %v3422_v23, %v14070_v54  ;;  %v3683_v55 = vpop.f32.mrf.mxu1  ;;  %10602 = vmatprep.mubr.msk.bf16.mxu0 %vm11644_vm0, %v17617_v27 }
 0x2f6   : > { %10782 = vmatprep.mubr.msk.bf16.mxu1 %vm11644_vm0, %v17617_v27  ;;  %v10420_v7 = vpop.f32.mrf.mxu0  ;;  %v3755_v23 = vmul.f32 %v3683_v55, %v17881_v3 }
 0x2f7   : > { %v14445_v1 = vadd.f32 %v3753_v21, %v3500_v19  ;;  %v10504_v30 = vpop.f32.mrf.mxu1  ;;  %v11247_v21 = vld [vmem:[%s17275_s12 + $0x30] sm:$0xff]  }
 0x2f8   : > { %v3425_v16 = vpop.f32.mrf.mxu0 }
 0x2f9   : > { %v3501_v25 = vadd.f32 %v3425_v16, %v14085_v28  ;;  %v3686_v54 = vpop.f32.mrf.mxu1 }
 0x2fa   : > { %v10421_v5 = vpop.f32.mrf.mxu0 }
 0x2fb   : > { %v14454_v59 = vadd.f32 %v3754_v24, %v3501_v25  ;;  %v10505_v33 = vpop.f32.mrf.mxu1  ;;  %v11248_v24 = vld [vmem:[%s17275_s12 + $0x28] sm:$0xff]  }
 0x2fc   : > { %v3430_v9 = vpop.f32.mrf.mxu0  ;;  %10603 = vmatmul.mubr.msk.bf16.gmra.mxu0 %vm1391_vm1, %v14388_v13 }
 0x2fd   : > { %10783 = vmatmul.mubr.bf16.vlgmr.msra.gmra.mxu1 %v14447_v49  ;;  %v3502_v48 = vadd.f32 %v3430_v9, %v14097_v42  ;;  %v3691_v28 = vpop.f32.mrf.mxu1  ;;  %10690 = vmatprep.mubr.msk.bf16.mxu0 %vm11644_vm0, %v17617_v27  ;;  %v3756_v42 = vmul.f32 %v3686_v54, %v17883_v57  ;;  %v17965_v9 = vld [vmem:[#allocation104_spill] sm:$0xff] }
 0x2fe   : > { %10787 = vmatpush3.bf16.msra.mxu1 %v11246_v17  ;;  %v10424_v19 = vpop.f32.mrf.mxu0  ;;  %10802 = vmatprep.mubr.msk.bf16.mxu1 %vm11644_vm0, %v17617_v27  ;;  %v3757_v54 = vmul.f32 %v3691_v28, %v17885_v47 }
 0x2ff   : > { %10788 = vmatprep.subr.bf16.mxu1 %v17617_v27  ;;  %v14469_v56 = vadd.f32 %v3755_v23, %v3502_v48  ;;  %v10508_v55 = vpop.f32.mrf.mxu1  ;;  %v17966_v23 = vld [vmem:[#allocation137_spill] sm:$0xff] }
 0x300   : > { %v3433_v7 = vpop.f32.mrf.mxu0 }
 0x301   : > { %v3503_v30 = vadd.f32 %v3433_v7, %v14115_v14  ;;  %v3694_v16 = vpop.f32.mrf.mxu1 }
 0x302   : > { %10789 = vmatpush3.bf16.msra.mxu1 %v11247_v21  ;;  %v10425_v25 = vpop.f32.mrf.mxu0  ;;  %v11249_v21 = vld [vmem:[%s17275_s12 + $0x20] sm:$0xff]  }
 0x303   : > { %10790 = vmatprep.subr.bf16.mxu1 %v17617_v27  ;;  %v14477_v17 = vadd.f32 %v3756_v42, %v3503_v30  ;;  %v10509_v5 = vpop.f32.mrf.mxu1  ;;  %v17967_v30 = vld [vmem:[#allocation116_spill] sm:$0xff]  ;;  %v17968_v25 = vld [vmem:[#allocation55_spill] sm:$0xff] }
 0x304   : > { %v3438_v33 = vpop.f32.mrf.mxu0  ;;  %10691 = vmatmul.mubr.msk.bf16.vlgmr.msra.gmra.mxu0 %vm1391_vm1, %v17965_v9  ;;  %v3758_v28 = vmul.f32 %v3694_v16, %v17967_v30  ;;  %v17971_v30 = vld [vmem:[#allocation61_spill] sm:$0xff] }
 0x305   : > { %v3504_v14 = vadd.f32 %v3438_v33, %v17966_v23  ;;  %v3699_v48 = vpop.f32.mrf.mxu1  ;;  %10694 = vmatprep.mubr.msk.bf16.mxu0 %vm11644_vm0, %v17617_v27 }
 0x306   : > { %10791 = vmatpush3.bf16.msra.mxu1 %v11248_v24  ;;  %v10428_v19 = vpop.f32.mrf.mxu0  ;;  %v11250_v24 = vld [vmem:[%s17275_s12 + $0x18] sm:$0xff]  }
 0x307   : > { %10792 = vmatprep.subr.bf16.mxu1 %v17617_v27  ;;  %v14489_v55 = vadd.f32 %v3757_v54, %v3504_v14  ;;  %v10512_v7 = vpop.f32.mrf.mxu1  ;;  %v17969_v14 = vld [vmem:[#allocation108_spill] sm:$0xff] }
 0x308   : > { %v3441_v42 = vpop.f32.mrf.mxu0  ;;  %v17970_v7 = vld [vmem:[#allocation118_spill] sm:$0xff] }
 0x309   : > { %v3505_v5 = vadd.f32 %v3441_v42, %v17968_v25  ;;  %v3702_v33 = vpop.f32.mrf.mxu1  ;;  %v3759_v16 = vmul.f32 %v3699_v48, %v17970_v7  ;;  %v17973_v7 = vld [vmem:[#allocation146_spill] sm:$0xff] }
 0x30a   : > { %10793 = vmatpush3.bf16.msra.mxu1 %v11249_v21  ;;  %v10429_v9 = vpop.f32.mrf.mxu0  ;;  %v11251_v21 = vld [vmem:[%s17275_s12 + $0x10] sm:$0xff]  }
 0x30b   : > { %10794 = vmatprep.subr.bf16.mxu1 %v17617_v27  ;;  %v14497_v23 = vadd.f32 %v3758_v28, %v3505_v5  ;;  %v10513_v19 = vpop.f32.mrf.mxu1 }
 0x30c   : > { %v3446_v54 = vpop.f32.mrf.mxu0  ;;  %10695 = vmatmul.mubr.msk.bf16.gmra.mxu0 %vm1391_vm1, %v17969_v14  ;;  %v17972_v14 = vld [vmem:[#allocation119_spill] sm:$0xff] }
 0x30d   : > { %v3506_v42 = vadd.f32 %v3446_v54, %v17971_v30  ;;  %v3707_v25 = vpop.f32.mrf.mxu1  ;;  %10698 = vmatprep.mubr.msk.bf16.mxu0 %vm11644_vm0, %v17617_v27  ;;  %v3760_v48 = vmul.f32 %v3702_v33, %v17972_v14  ;;  %v17976_v14 = vld [vmem:[#allocation67_spill] sm:$0xff] }
 0x30e   : > { %10795 = vmatpush3.bf16.msra.mxu1 %v11250_v24  ;;  %v10432_v28 = vpop.f32.mrf.mxu0  ;;  %v11252_v24 = vld [vmem:[%s17275_s12 + $0x8] sm:$0xff]  }
 0x30f   : > { %10796 = vmatprep.subr.bf16.mxu1 %v17617_v27  ;;  %v14509_v5 = vadd.f32 %v3759_v16, %v3506_v42  ;;  %v10516_v9 = vpop.f32.mrf.mxu1  ;;  %v17974_v42 = vld [vmem:[#allocation111_spill] sm:$0xff] }
 0x310   : > { %v3449_v19 = vpop.f32.mrf.mxu0  ;;  %v17975_v9 = vld [vmem:[#allocation170_spill] sm:$0xff] }
 0x311   : > { %v3507_v30 = vadd.f32 %v3449_v19, %v17973_v7  ;;  %v3710_v54 = vpop.f32.mrf.mxu1  ;;  %v3761_v33 = vmul.f32 %v3707_v25, %v17975_v9  ;;  %v17978_v9 = vld [vmem:[#allocation150_spill] sm:$0xff] }
 0x312   : > { %10797 = vmatpush3.bf16.msra.mxu1 %v11251_v21  ;;  %v10433_v47 = vpop.f32.mrf.mxu0  ;;  %v11253_v21 = vld [vmem:[%s17275_s12] sm:$0xff]  }
 0x313   : > { %10798 = vmatprep.subr.bf16.mxu1 %v17617_v27  ;;  %v14517_v28 = vadd.f32 %v3760_v48, %v3507_v30  ;;  %v10517_v57 = vpop.f32.mrf.mxu1 }
 0x314   : > { %v3454_v16 = vpop.f32.mrf.mxu0  ;;  %10699 = vmatmul.mubr.msk.bf16.gmra.mxu0 %vm1391_vm1, %v17974_v42  ;;  %v17977_v42 = vld [vmem:[#allocation178_spill] sm:$0xff] }
 0x315   : > { %v3508_v7 = vadd.f32 %v3454_v16, %v17976_v14  ;;  %v3715_v19 = vpop.f32.mrf.mxu1  ;;  %10702 = vmatprep.mubr.msk.bf16.mxu0 %vm11644_vm0, %v17617_v27  ;;  %v3762_v25 = vmul.f32 %v3710_v54, %v17977_v42 }
 0x316   : > { %10799 = vmatpush3.bf16.msra.mxu1 %v11252_v24  ;;  %v10436_v47 = vpop.f32.mrf.mxu0 }
 0x317   : > { %10800 = vmatprep.subr.bf16.mxu1 %v17617_v27  ;;  %v14529_v57 = vadd.f32 %v3761_v33, %v3508_v7  ;;  %v10520_v48 = vpop.f32.mrf.mxu1  ;;  %v17980_v33 = vld [vmem:[#allocation181_spill] sm:$0xff] }
 0x318   : > { %v3457_v30 = vpop.f32.mrf.mxu0  ;;  %v3763_v7 = vmul.f32 %v3715_v19, %v17980_v33 }
 0x319   : > { %v3509_v14 = vadd.f32 %v3457_v30, %v17978_v9  ;;  %v3718_v16 = vpop.f32.mrf.mxu1 }
 0x31a   : > { %10801 = vmatpush3.bf16.msra.mxu1 %v11253_v21  ;;  %v10437_v24 = vpop.f32.mrf.mxu0 }
 0x31b   : > { %v14533_v3 = vadd.f32 %v3762_v25, %v3509_v14  ;;  %v10521_v45 = vpop.f32.mrf.mxu1 }
 0x31c   : > { %v3462_v62 = vpop.f32.mrf.mxu0  ;;  %10703 = vmatmul.mubr.msk.bf16.gmra.mxu0 %vm1391_vm1, %v17979_v26  ;;  %v3764_v45 = vmul.f32 %v3718_v16, %v14197_v43 }
 0x31d   : > { %10803 = vmatmul.mubr.bf16.vlgmr.msra.gmra.mxu1 %v14447_v49  ;;  %v3510_v47 = vadd.f32 %v3462_v62, %v14200_v60  ;;  %v3723_v48 = vpop.f32.mrf.mxu1  ;;  %10706 = vmatprep.mubr.msk.bf16.mxu0 %vm11644_vm0, %v17617_v27  ;;  %v17981_v60 = vld [vmem:[#allocation121_spill] sm:$0xff] }
 0x31e   : > { %v10440_v54 = vpop.f32.mrf.mxu0  ;;  %v3765_v62 = vmul.f32 %v3723_v48, %v14204_v4 }
 0x31f   : > { %v14542_v9 = vadd.f32 %v3763_v7, %v3510_v47  ;;  %v10524_v21 = vpop.f32.mrf.mxu1 }
 0x320   : > { %v3465_v30 = vpop.f32.mrf.mxu0 }
 0x321   : > { %v3511_v25 = vadd.f32 %v3465_v30, %v14215_v35  ;;  %v3726_v26 = vpop.f32.mrf.mxu1 }
 0x322   : > { %v10441_v14 = vpop.f32.mrf.mxu0 }
 0x323   : > { %v14546_v49 = vadd.f32 %v3764_v45, %v3511_v25  ;;  %v10525_v19 = vpop.f32.mrf.mxu1  ;;  %v17982_v14 = vld [vmem:[#allocation125_spill] sm:$0xff] }
 0x324   : > { %v3470_v24 = vpop.f32.mrf.mxu0  ;;  %10707 = vmatmul.mubr.msk.bf16.gmra.mxu0 %vm1391_vm1, %v17981_v60  ;;  %v17983_v19 = vld [vmem:[#allocation35_spill] sm:$0xff] }
 0x325   : > { %v3512_v7 = vadd.f32 %v3470_v24, %v14219_v20  ;;  %v4160_v47 = vpop.f32.mrf.mxu1  ;;  %10710 = vmatprep.mubr.msk.bf16.mxu0 %vm11644_vm0, %v17617_v27 }
 0x326   : > { %v10444_v16 = vpop.f32.mrf.mxu0 }
 0x327   : > { %v14554_v54 = vadd.f32 %v3765_v62, %v3512_v7  ;;  %v10612_v35 = vpop.f32.mrf.mxu1  ;;  %v17984_v16 = vld [vmem:[#allocation39_spill] sm:$0xff] }
 0x328   : > { %v3473_v21 = vpop.f32.mrf.mxu0 }
 0x329   : > { %v4163_v30 = vpop.f32.mrf.mxu1 }
 0x32a   : > { %v10445_v45 = vpop.f32.mrf.mxu0 }
 0x32b   : > { %v10613_v25 = vpop.f32.mrf.mxu1 }
 0x32c   : > { %v3862_v26 = vpop.f32.mrf.mxu0  ;;  %10711 = vmatmul.mubr.msk.bf16.gmra.mxu0 %vm1391_vm1, %v17982_v14 }
 0x32d   : > { %v4012_v48 = vmul.f32 %v3862_v26, %v17983_v19  ;;  %v4168_v60 = vpop.f32.mrf.mxu1  ;;  %10714 = vmatprep.mubr.msk.bf16.mxu0 %vm11644_vm0, %v17617_v27  ;;  %v17985_v26 = vld [vmem:[#allocation129_spill] sm:$0xff]  ;;  %v17986_v19 = vld [vmem:[#allocation38_spill] sm:$0xff] }
 0x32e   : > { %v10532_v20 = vpop.f32.mrf.mxu0 }
 0x32f   : > { %v4049_v24 = vadd.f32 %v4012_v48, %v14231_v0  ;;  %v10616_v62 = vpop.f32.mrf.mxu1 }
 0x330   : > { %v3865_v7 = vpop.f32.mrf.mxu0 }
 0x331   : > { %v4013_v35 = vmul.f32 %v3865_v7, %v17984_v16  ;;  %v4171_v21 = vpop.f32.mrf.mxu1  ;;  %v14563_v45 = vadd.f32 %v4160_v47, %v4049_v24  ;;  %v17987_v7 = vld [vmem:[#allocation42_spill] sm:$0xff] }
 0x332   : > { %v10533_v25 = vpop.f32.mrf.mxu0 }
 0x333   : > { %v4050_v4 = vadd.f32 %v4013_v35, %v14235_v53  ;;  %v10617_v14 = vpop.f32.mrf.mxu1 }
 0x334   : > { %v3870_v43 = vpop.f32.mrf.mxu0  ;;  %10715 = vmatmul.mubr.msk.bf16.gmra.mxu0 %vm1391_vm1, %v17985_v26 }
 0x335   : > { %v4014_v33 = vmul.f32 %v3870_v43, %v17986_v19  ;;  %v4176_v20 = vpop.f32.mrf.mxu1  ;;  %10718 = vmatprep.mubr.msk.bf16.mxu0 %vm11644_vm0, %v17617_v27  ;;  %v14571_v0 = vadd.f32 %v4163_v30, %v4050_v4  ;;  %v17988_v19 = vld [vmem:[#allocation134_spill] sm:$0xff]  ;;  %v17989_v4 = vld [vmem:[#allocation47_spill] sm:$0xff] }
 0x336   : > { %v10536_v48 = vpop.f32.mrf.mxu0 }
 0x337   : > { %v4051_v47 = vadd.f32 %v4014_v33, %v14247_v50  ;;  %v10620_v24 = vpop.f32.mrf.mxu1 }
 0x338   : > { %v3873_v62 = vpop.f32.mrf.mxu0 }
 0x339   : > { %v4015_v53 = vmul.f32 %v3873_v62, %v17987_v7  ;;  %v4179_v16 = vpop.f32.mrf.mxu1  ;;  %v14575_v35 = vadd.f32 %v4168_v60, %v4051_v47  ;;  %v17990_v62 = vld [vmem:[#allocation51_spill] sm:$0xff] }
 0x33a   : > { %v10537_v25 = vpop.f32.mrf.mxu0 }
 0x33b   : > { %v4052_v14 = vadd.f32 %v4015_v53, %v14255_v34  ;;  %v10621_v43 = vpop.f32.mrf.mxu1 }
 0x33c   : > { %v3878_v26 = vpop.f32.mrf.mxu0  ;;  %10719 = vmatmul.mubr.msk.bf16.gmra.mxu0 %vm1391_vm1, %v17988_v19 }
 0x33d   : > { %v4016_v30 = vmul.f32 %v3878_v26, %v17989_v4  ;;  %v4184_v48 = vpop.f32.mrf.mxu1  ;;  %10722 = vmatprep.mubr.msk.bf16.mxu0 %vm11644_vm0, %v17617_v27  ;;  %v14583_v50 = vadd.f32 %v4171_v21, %v4052_v14  ;;  %v17991_v4 = vld [vmem:[#allocation138_spill] sm:$0xff] }
 0x33e   : > { %v10540_v33 = vpop.f32.mrf.mxu0  ;;  %v17992_v21 = vld [vmem:[#allocation50_spill] sm:$0xff] }
 0x33f   : > { %v4053_v60 = vadd.f32 %v4016_v30, %v14272_v52  ;;  %v10624_v47 = vpop.f32.mrf.mxu1 }
 0x340   : > { %v3881_v24 = vpop.f32.mrf.mxu0 }
 0x341   : > { %v4017_v34 = vmul.f32 %v3881_v24, %v17990_v62  ;;  %v4187_v7 = vpop.f32.mrf.mxu1  ;;  %v14587_v53 = vadd.f32 %v4176_v20, %v4053_v60  ;;  %v17993_v24 = vld [vmem:[#allocation54_spill] sm:$0xff] }
 0x342   : > { %v10541_v25 = vpop.f32.mrf.mxu0 }
 0x343   : > { %v4054_v43 = vadd.f32 %v4017_v34, %v14277_v51  ;;  %v10625_v26 = vpop.f32.mrf.mxu1 }
 0x344   : > { %v3886_v19 = vpop.f32.mrf.mxu0  ;;  %10723 = vmatmul.mubr.msk.bf16.gmra.mxu0 %vm1391_vm1, %v17991_v4 }
 0x345   : > { %v4018_v14 = vmul.f32 %v3886_v19, %v17992_v21  ;;  %v4192_v33 = vpop.f32.mrf.mxu1  ;;  %10726 = vmatprep.mubr.msk.bf16.mxu0 %vm11644_vm0, %v17617_v27  ;;  %v14595_v52 = vadd.f32 %v4179_v16, %v4054_v43  ;;  %v17994_v21 = vld [vmem:[#allocation142_spill] sm:$0xff]  ;;  %v17995_v16 = vld [vmem:[#allocation59_spill] sm:$0xff] }
 0x346   : > { %v10544_v30 = vpop.f32.mrf.mxu0 }
 0x347   : > { %v4055_v20 = vadd.f32 %v4018_v14, %v14289_v12  ;;  %v10628_v60 = vpop.f32.mrf.mxu1 }
 0x348   : > { %v3889_v47 = vpop.f32.mrf.mxu0 }
 0x349   : > { %v4019_v51 = vmul.f32 %v3889_v47, %v17993_v24  ;;  %v4195_v62 = vpop.f32.mrf.mxu1  ;;  %v14599_v34 = vadd.f32 %v4184_v48, %v4055_v20  ;;  %v17996_v47 = vld [vmem:[#allocation63_spill] sm:$0xff] }
 0x34a   : > { %v10545_v25 = vpop.f32.mrf.mxu0 }
 0x34b   : > { %v4056_v26 = vadd.f32 %v4019_v51, %v14293_v41  ;;  %v10629_v19 = vpop.f32.mrf.mxu1 }
 0x34c   : > { %v3894_v4 = vpop.f32.mrf.mxu0  ;;  %10727 = vmatmul.mubr.msk.bf16.gmra.mxu0 %vm1391_vm1, %v17994_v21 }
 0x34d   : > { %v4020_v43 = vmul.f32 %v3894_v4, %v17995_v16  ;;  %v4200_v30 = vpop.f32.mrf.mxu1  ;;  %10730 = vmatprep.mubr.msk.bf16.mxu0 %vm11644_vm0, %v17617_v27  ;;  %v14607_v12 = vadd.f32 %v4187_v7, %v4056_v26  ;;  %v17997_v16 = vld [vmem:[#allocation147_spill] sm:$0xff]  ;;  %v17998_v7 = vld [vmem:[#allocation62_spill] sm:$0xff] }
 0x34e   : > { %v10548_v14 = vpop.f32.mrf.mxu0 }
 0x34f   : > { %v4057_v48 = vadd.f32 %v4020_v43, %v14305_v61  ;;  %v10632_v20 = vpop.f32.mrf.mxu1 }
 0x350   : > { %v3897_v60 = vpop.f32.mrf.mxu0 }
 0x351   : > { %v4021_v41 = vmul.f32 %v3897_v60, %v17996_v47  ;;  %v4203_v24 = vpop.f32.mrf.mxu1  ;;  %v14611_v51 = vadd.f32 %v4192_v33, %v4057_v48  ;;  %v17999_v60 = vld [vmem:[#allocation66_spill] sm:$0xff] }
 0x352   : > { %v10549_v25 = vpop.f32.mrf.mxu0 }
 0x353   : > { %v4058_v19 = vadd.f32 %v4021_v41, %v14309_v36  ;;  %v10633_v4 = vpop.f32.mrf.mxu1 }
 0x354   : > { %v3902_v21 = vpop.f32.mrf.mxu0  ;;  %10731 = vmatmul.mubr.msk.bf16.gmra.mxu0 %vm1391_vm1, %v17997_v16 }
 0x355   : > { %v4022_v26 = vmul.f32 %v3902_v21, %v17998_v7  ;;  %v4208_v14 = vpop.f32.mrf.mxu1  ;;  %10734 = vmatprep.mubr.msk.bf16.mxu0 %vm11644_vm0, %v17617_v27  ;;  %v14619_v61 = vadd.f32 %v4195_v62, %v4058_v19  ;;  %v18000_v7 = vld [vmem:[#allocation151_spill] sm:$0xff] }
 0x356   : > { %v10552_v43 = vpop.f32.mrf.mxu0  ;;  %v18001_v62 = vld [vmem:[#allocation71_spill] sm:$0xff] }
 0x357   : > { %v4059_v33 = vadd.f32 %v4022_v26, %v14321_v31  ;;  %v10636_v48 = vpop.f32.mrf.mxu1 }
 0x358   : > { %v3905_v20 = vpop.f32.mrf.mxu0 }
 0x359   : > { %v4023_v36 = vmul.f32 %v3905_v20, %v17999_v60  ;;  %v4211_v47 = vpop.f32.mrf.mxu1  ;;  %v14623_v41 = vadd.f32 %v4200_v30, %v4059_v33  ;;  %v18002_v20 = vld [vmem:[#allocation75_spill] sm:$0xff] }
 0x35a   : > { %v10553_v25 = vpop.f32.mrf.mxu0 }
 0x35b   : > { %v4060_v4 = vadd.f32 %v4023_v36, %v14325_v46  ;;  %v10637_v21 = vpop.f32.mrf.mxu1 }
 0x35c   : > { %v3910_v16 = vpop.f32.mrf.mxu0  ;;  %10735 = vmatmul.mubr.msk.bf16.gmra.mxu0 %vm1391_vm1, %v18000_v7 }
 0x35d   : > { %v4024_v19 = vmul.f32 %v3910_v16, %v18001_v62  ;;  %v4216_v43 = vpop.f32.mrf.mxu1  ;;  %10738 = vmatprep.mubr.msk.bf16.mxu0 %vm11644_vm0, %v17617_v27  ;;  %v14631_v31 = vadd.f32 %v4203_v24, %v4060_v4  ;;  %v18003_v62 = vld [vmem:[#allocation155_spill] sm:$0xff]  ;;  %v18004_v24 = vld [vmem:[#allocation74_spill] sm:$0xff] }
 0x35e   : > { %v10556_v26 = vpop.f32.mrf.mxu0 }
 0x35f   : > { %v4061_v30 = vadd.f32 %v4024_v19, %v14337_v40  ;;  %v10640_v33 = vpop.f32.mrf.mxu1 }
 0x360   : > { %v3913_v48 = vpop.f32.mrf.mxu0 }
 0x361   : > { %v4025_v46 = vmul.f32 %v3913_v48, %v18002_v20  ;;  %v4219_v60 = vpop.f32.mrf.mxu1  ;;  %v14635_v36 = vadd.f32 %v4208_v14, %v4061_v30  ;;  %v18005_v48 = vld [vmem:[#allocation77_spill] sm:$0xff] }
 0x362   : > { %v10557_v25 = vpop.f32.mrf.mxu0 }
 0x363   : > { %v4062_v21 = vadd.f32 %v4025_v46, %v14341_v8  ;;  %v10641_v16 = vpop.f32.mrf.mxu1 }
 0x364   : > { %v3918_v7 = vpop.f32.mrf.mxu0  ;;  %10739 = vmatmul.mubr.msk.bf16.gmra.mxu0 %vm1391_vm1, %v18003_v62 }
 0x365   : > { %v4026_v4 = vmul.f32 %v3918_v7, %v18004_v24  ;;  %v4224_v26 = vpop.f32.mrf.mxu1  ;;  %10742 = vmatprep.mubr.msk.bf16.mxu0 %vm11644_vm0, %v17617_v27  ;;  %v14643_v40 = vadd.f32 %v4211_v47, %v4062_v21  ;;  %v18006_v24 = vld [vmem:[#allocation160_spill] sm:$0xff]  ;;  %v18007_v47 = vld [vmem:[#allocation82_spill] sm:$0xff] }
 0x366   : > { %v10560_v19 = vpop.f32.mrf.mxu0 }
 0x367   : > { %v4063_v14 = vadd.f32 %v4026_v4, %v14353_v10  ;;  %v10644_v30 = vpop.f32.mrf.mxu1 }
 0x368   : > { %v3921_v33 = vpop.f32.mrf.mxu0 }
 0x369   : > { %v4027_v8 = vmul.f32 %v3921_v33, %v18005_v48  ;;  %v4227_v20 = vpop.f32.mrf.mxu1  ;;  %v14647_v46 = vadd.f32 %v4216_v43, %v4063_v14  ;;  %v18008_v33 = vld [vmem:[#allocation85_spill] sm:$0xff] }
 0x36a   : > { %v10561_v25 = vpop.f32.mrf.mxu0 }
 0x36b   : > { %v4064_v16 = vadd.f32 %v4027_v8, %v14357_v6  ;;  %v10645_v7 = vpop.f32.mrf.mxu1 }
 0x36c   : > { %v3926_v62 = vpop.f32.mrf.mxu0  ;;  %10743 = vmatmul.mubr.msk.bf16.gmra.mxu0 %vm1391_vm1, %v18006_v24 }
 0x36d   : > { %v4028_v21 = vmul.f32 %v3926_v62, %v18007_v47  ;;  %v4232_v19 = vpop.f32.mrf.mxu1  ;;  %10746 = vmatprep.mubr.msk.bf16.mxu0 %vm11644_vm0, %v17617_v27  ;;  %v14655_v10 = vadd.f32 %v4219_v60, %v4064_v16  ;;  %v18009_v47 = vld [vmem:[#allocation164_spill] sm:$0xff] }
 0x36e   : > { %v10564_v4 = vpop.f32.mrf.mxu0  ;;  %v18010_v60 = vld [vmem:[#allocation84_spill] sm:$0xff] }
 0x36f   : > { %v4065_v43 = vadd.f32 %v4028_v21, %v14370_v37  ;;  %v10648_v14 = vpop.f32.mrf.mxu1 }
 0x370   : > { %v3929_v30 = vpop.f32.mrf.mxu0 }
 0x371   : > { %v4029_v6 = vmul.f32 %v3929_v30, %v18008_v33  ;;  %v4235_v48 = vpop.f32.mrf.mxu1  ;;  %v14659_v8 = vadd.f32 %v4224_v26, %v4065_v43  ;;  %v18011_v30 = vld [vmem:[#allocation87_spill] sm:$0xff] }
 0x372   : > { %v10565_v25 = vpop.f32.mrf.mxu0 }
 0x373   : > { %v4066_v7 = vadd.f32 %v4029_v6, %v14375_v29  ;;  %v10649_v62 = vpop.f32.mrf.mxu1 }
 0x374   : > { %v3934_v24 = vpop.f32.mrf.mxu0  ;;  %10747 = vmatmul.mubr.msk.bf16.gmra.mxu0 %vm1391_vm1, %v18009_v47 }
 0x375   : > { %v4030_v16 = vmul.f32 %v3934_v24, %v18010_v60  ;;  %v4240_v4 = vpop.f32.mrf.mxu1  ;;  %10750 = vmatprep.mubr.msk.bf16.mxu0 %vm11644_vm0, %v17617_v27  ;;  %v14667_v37 = vadd.f32 %v4227_v20, %v4066_v7  ;;  %v18012_v60 = vld [vmem:[#allocation37_spill] sm:$0xff]  ;;  %v18013_v20 = vld [vmem:[#allocation90_spill] sm:$0xff] }
 0x376   : > { %v10568_v21 = vpop.f32.mrf.mxu0 }
 0x377   : > { %v4067_v26 = vadd.f32 %v4030_v16, %v14390_v32  ;;  %v10652_v43 = vpop.f32.mrf.mxu1 }
 0x378   : > { %v3937_v14 = vpop.f32.mrf.mxu0  ;;  %v4354_v43 = vrot.slane %v17951_v18, 1  ;;  %v11254_v18 = vld [vmem:[%s17279_s16 + $0x18] sm:$0xff]  }
 0x379   : > { %v4031_v29 = vmul.f32 %v3937_v14, %v18011_v30  ;;  %v4243_v33 = vpop.f32.mrf.mxu1  ;;  %v14671_v6 = vadd.f32 %v4232_v19, %v4067_v26  ;;  %v18014_v14 = vld [vmem:[#allocation93_spill] sm:$0xff]  ;;  %10806 = vmatprep.subr.bf16.mxu1 %v11254_v18 }
 0x37a   : > { %v10569_v25 = vpop.f32.mrf.mxu0  ;;  %10807 = vmatpush3.bf16.msra.mxu1 %v11254_v18  ;;  %v18018_v18 = vld [vmem:[#allocation98_spill] sm:$0xff] }
 0x37b   : > { %v4068_v62 = vadd.f32 %v4031_v29, %v14395_v44  ;;  %v10653_v24 = vpop.f32.mrf.mxu1 }
 0x37c   : > { %v3942_v47 = vpop.f32.mrf.mxu0  ;;  %10751 = vmatmul.mubr.msk.bf16.gmra.mxu0 %vm1391_vm1, %v18012_v60 }
 0x37d   : > { %v4032_v7 = vmul.f32 %v3942_v47, %v18013_v20  ;;  %v4248_v21 = vpop.f32.mrf.mxu1  ;;  %10754 = vmatprep.mubr.msk.bf16.mxu0 %vm11644_vm0, %v17617_v27  ;;  %v14679_v32 = vadd.f32 %v4235_v48, %v4068_v62  ;;  %v18015_v20 = vld [vmem:[#allocation32_spill] sm:$0xff] }
 0x37e   : > { %v10572_v16 = vpop.f32.mrf.mxu0  ;;  %v4355_v48 = vsel %vm2381_vm3, %v18015_v20, %v4354_v43 }
 0x37f   : > { %v4069_v19 = vadd.f32 %v4032_v7, %v14409_v2  ;;  %v10656_v26 = vpop.f32.mrf.mxu1  ;;  %v18016_v2 = vld [vmem:[#allocation92_spill] sm:$0xff] }
 0x380   : > { %v3945_v44 = vpop.f32.mrf.mxu0 }
 0x381   : > { %v4033_v30 = vmul.f32 %v3945_v44, %v18014_v14  ;;  %v4251_v29 = vpop.f32.mrf.mxu1  ;;  %v14684_v25 = vadd.f32 %v4240_v4, %v4069_v19  ;;  %v4356_v44 = vrot.slane %v14388_v13, 1 }
 0x382   : > { %v10573_v24 = vpop.f32.mrf.mxu0 }
 0x383   : > { %v4070_v47 = vadd.f32 %v4033_v30, %v14413_v38  ;;  %v10657_v60 = vpop.f32.mrf.mxu1  ;;  %v11255_v30 = vld [vmem:[%s17279_s16 + $0x58] sm:$0xff]   ;;  %v18017_v24 = vld [vmem:[#allocation95_spill] sm:$0xff] }
 0x384   : > { %v3950_v62 = vpop.f32.mrf.mxu0  ;;  %10755 = vmatmul.mubr.msk.bf16.gmra.mxu0 %vm1391_vm1, %v4355_v48  ;;  %10886 = vmatprep.subr.bf16.mxu0 %v11255_v30 }
 0x385   : > { %v4034_v7 = vmul.f32 %v3950_v62, %v18016_v2  ;;  %v4256_v16 = vpop.f32.mrf.mxu1  ;;  %10758 = vmatprep.mubr.msk.bf16.mxu0 %vm11644_vm0, %v17617_v27  ;;  %v14696_v4 = vadd.f32 %v4243_v33, %v4070_v47  ;;  %v11256_v33 = vld [vmem:[%s17279_s16 + $0x10] sm:$0xff]   ;;  %v4357_v62 = vsel %vm2381_vm3, %v4354_v43, %v4356_v44  ;;  %10887 = vmatpush3.bf16.msra.mxu0 %v11255_v30 }
 0x386   : > { %v10576_v38 = vpop.f32.mrf.mxu0  ;;  %10808 = vmatprep.subr.bf16.mxu1 %v11256_v33 }
 0x387   : > { %v4071_v19 = vadd.f32 %v4034_v7, %v14425_v15  ;;  %v10660_v26 = vpop.f32.mrf.mxu1  ;;  %10809 = vmatpush3.bf16.msra.mxu1 %v11256_v33  ;;  %v11257_v7 = vld [vmem:[%s17279_s16 + $0x50] sm:$0xff]  }
 0x388   : > { %v3953_v14 = vpop.f32.mrf.mxu0  ;;  %10888 = vmatprep.subr.bf16.mxu0 %v11257_v7 }
 0x389   : > { %v4035_v60 = vmul.f32 %v3953_v14, %v18017_v24  ;;  %v4259_v20 = vpop.f32.mrf.mxu1  ;;  %v14707_v47 = vadd.f32 %v4248_v21, %v4071_v19  ;;  %10889 = vmatpush3.bf16.msra.mxu0 %v11257_v7  ;;  %v11259_v24 = vld [vmem:[%s17279_s16 + $0x48] sm:$0xff]  }
 0x38a   : > { %v10577_v15 = vpop.f32.mrf.mxu0  ;;  %10890 = vmatprep.subr.bf16.mxu0 %v11259_v24 }
 0x38b   : > { %v4072_v13 = vadd.f32 %v4035_v60, %v14434_v11  ;;  %v10661_v48 = vpop.f32.mrf.mxu1  ;;  %v11258_v11 = vld [vmem:[%s17279_s16 + $0x8] sm:$0xff]  }
 0x38c   : > { %v3958_v2 = vpop.f32.mrf.mxu0  ;;  %10759 = vmatmul.mubr.msk.bf16.gmra.mxu0 %vm1391_vm1, %v4357_v62  ;;  %10810 = vmatprep.subr.bf16.mxu1 %v11258_v11 }
 0x38d   : > { %v4036_v21 = vmul.f32 %v3958_v2, %v18018_v18  ;;  %v4264_v38 = vpop.f32.mrf.mxu1  ;;  %10762 = vmatprep.mubr.msk.bf16.mxu0 %vm11644_vm0, %v17617_v27  ;;  %v14721_v43 = vadd.f32 %v4251_v29, %v4072_v13  ;;  %10811 = vmatpush3.bf16.msra.mxu1 %v11258_v11  ;;  %v18019_v27 = vld [vmem:[#allocation101_spill] sm:$0xff]  ;;  %v11260_v29 = vld [vmem:[%s17279_s16] sm:$0xff]   ;;  %v18020_v2 = vld [vmem:[#allocation100_spill] sm:$0xff] }
 0x38e   : > { %v10580_v19 = vpop.f32.mrf.mxu0  ;;  %10812 = vmatprep.subr.bf16.mxu1 %v11260_v29  ;;  %10891 = vmatpush3.bf16.msra.mxu0 %v11259_v24 }
 0x38f   : > { %v4073_v26 = vadd.f32 %v4036_v21, %v14445_v1  ;;  %v10664_v14 = vpop.f32.mrf.mxu1 }
 0x390   : > { %v3961_v30 = vpop.f32.mrf.mxu0  ;;  %v18021_v14 = vld [vmem:[#allocation103_spill] sm:$0xff] }
 0x391   : > { %v4037_v60 = vmul.f32 %v3961_v30, %v18019_v27  ;;  %v4267_v33 = vpop.f32.mrf.mxu1  ;;  %v14731_v15 = vadd.f32 %v4256_v16, %v4073_v26  ;;  %10813 = vmatpush3.bf16.msra.mxu1 %v11260_v29 }
 0x392   : > { %v10581_v13 = vpop.f32.mrf.mxu0 }
 0x393   : > { %v4074_v1 = vadd.f32 %v4037_v60, %v14454_v59  ;;  %v10665_v48 = vpop.f32.mrf.mxu1  ;;  %v11261_v59 = vld [vmem:[%s17279_s16 + $0x40] sm:$0xff]   ;;  %v18022_v13 = vld [vmem:[#allocation109_spill] sm:$0xff] }
 0x394   : > { %v3966_v62 = vpop.f32.mrf.mxu0  ;;  %10763 = vmatmul.mubr.msk.bf16.gmra.mxu0 %vm1391_vm1, %v4356_v44  ;;  %10892 = vmatprep.subr.bf16.mxu0 %v11261_v59 }
 0x395   : > { %v4038_v7 = vmul.f32 %v3966_v62, %v18020_v2  ;;  %v4272_v18 = vpop.f32.mrf.mxu1  ;;  %v14736_v21 = vadd.f32 %v4259_v20, %v4074_v1  ;;  %10893 = vmatpush3.bf16.msra.mxu0 %v11261_v59 }
 0x396   : > { %v10584_v11 = vpop.f32.mrf.mxu0 }
 0x397   : > { %v4075_v16 = vadd.f32 %v4038_v7, %v14469_v56  ;;  %v10668_v19 = vpop.f32.mrf.mxu1 }
 0x398   : > { %v3969_v26 = vpop.f32.mrf.mxu0  ;;  %v18023_v19 = vld [vmem:[#allocation110_spill] sm:$0xff] }
 0x399   : > { %v4039_v30 = vmul.f32 %v3969_v26, %v18021_v14  ;;  %v4275_v24 = vpop.f32.mrf.mxu1  ;;  %v14743_v27 = vadd.f32 %v4264_v38, %v4075_v16 }
 0x39a   : > { %v10585_v44 = vpop.f32.mrf.mxu0 }
 0x39b   : > { %v4076_v60 = vadd.f32 %v4039_v30, %v14477_v17  ;;  %v10669_v20 = vpop.f32.mrf.mxu1  ;;  %v18024_v44 = vld [vmem:[#allocation112_spill] sm:$0xff] }
 0x39c   : > { %v3974_v29 = vpop.f32.mrf.mxu0 }
 0x39d   : > { %v4040_v56 = vmul.f32 %v3974_v29, %v18022_v13  ;;  %v4280_v1 = vpop.f32.mrf.mxu1  ;;  %v14747_v48 = vadd.f32 %v4267_v33, %v4076_v60 }
 0x39e   : > { %v10588_v62 = vpop.f32.mrf.mxu0 }
 0x39f   : > { %v4077_v2 = vadd.f32 %v4040_v56, %v14489_v55  ;;  %v10672_v7 = vpop.f32.mrf.mxu1  ;;  %v18025_v62 = vld [vmem:[#allocation113_spill] sm:$0xff] }
 0x3a0   : > { %v3977_v11 = vpop.f32.mrf.mxu0 }
 0x3a1   : > { %v4041_v38 = vmul.f32 %v3977_v11, %v18023_v19  ;;  %v4283_v16 = vpop.f32.mrf.mxu1  ;;  %v14751_v26 = vadd.f32 %v4272_v18, %v4077_v2 }
 0x3a2   : > { %v10589_v14 = vpop.f32.mrf.mxu0 }
 0x3a3   : > { %v4078_v17 = vadd.f32 %v4041_v38, %v14497_v23  ;;  %v10673_v59 = vpop.f32.mrf.mxu1  ;;  %v18026_v14 = vld [vmem:[#allocation168_spill] sm:$0xff] }
 0x3a4   : > { %v3982_v30 = vpop.f32.mrf.mxu0 }
 0x3a5   : > { %v4042_v20 = vmul.f32 %v3982_v30, %v18024_v44  ;;  %v4288_v29 = vpop.f32.mrf.mxu1  ;;  %v14755_v33 = vadd.f32 %v4275_v24, %v4078_v17 }
 0x3a6   : > { %v10592_v60 = vpop.f32.mrf.mxu0 }
 0x3a7   : > { %v4079_v55 = vadd.f32 %v4042_v20, %v14509_v5  ;;  %v10676_v13 = vpop.f32.mrf.mxu1  ;;  %v18027_v60 = vld [vmem:[#allocation18_spill] sm:$0xff] }
 0x3a8   : > { %v3985_v56 = vpop.f32.mrf.mxu0 }
 0x3a9   : > { %v4043_v7 = vmul.f32 %v3985_v56, %v18025_v62  ;;  %v4291_v11 = vpop.f32.mrf.mxu1  ;;  %v14759_v18 = vadd.f32 %v4280_v1, %v4079_v55 }
 0x3aa   : > { %v10593_v2 = vpop.f32.mrf.mxu0 }
 0x3ab   : > { %v4080_v23 = vadd.f32 %v4043_v7, %v14517_v28  ;;  %v10677_v19 = vpop.f32.mrf.mxu1  ;;  %v18028_v2 = vld [vmem:[#allocation180_spill] sm:$0xff] }
 0x3ac   : > { %v3990_v38 = vpop.f32.mrf.mxu0 }
 0x3ad   : > { %v4044_v59 = vmul.f32 %v3990_v38, %v18026_v14  ;;  %v4296_v30 = vpop.f32.mrf.mxu1  ;;  %v14763_v24 = vadd.f32 %v4283_v16, %v4080_v23 }
 0x3ae   : > { %v10596_v17 = vpop.f32.mrf.mxu0 }
 0x3af   : > { %v4081_v5 = vadd.f32 %v4044_v59, %v14529_v57  ;;  %v10680_v44 = vpop.f32.mrf.mxu1  ;;  %v18030_v17 = vld [vmem:[#allocation185_spill] sm:$0xff] }
 0x3b0   : > { %v3993_v20 = vpop.f32.mrf.mxu0 }
 0x3b1   : > { %v4045_v13 = vmul.f32 %v3993_v20, %v18027_v60  ;;  %v4299_v56 = vpop.f32.mrf.mxu1  ;;  %v14767_v1 = vadd.f32 %v4288_v29, %v4081_v5 }
 0x3b2   : > { %v10597_v55 = vpop.f32.mrf.mxu0 }
 0x3b3   : > { %v4082_v28 = vadd.f32 %v4045_v13, %v14533_v3  ;;  %v10681_v62 = vpop.f32.mrf.mxu1  ;;  %v18032_v55 = vld [vmem:[#allocation187_spill] sm:$0xff] }
 0x3b4   : > { %v3998_v7 = vpop.f32.mrf.mxu0 }
 0x3b5   : > { %v4046_v19 = vmul.f32 %v3998_v7, %v18028_v2  ;;  %v4304_v38 = vpop.f32.mrf.mxu1  ;;  %v14771_v16 = vadd.f32 %v4291_v11, %v4082_v28 }
 0x3b6   : > { %v10600_v23 = vpop.f32.mrf.mxu0 }
 0x3b7   : > { %18029 = vst [vmem:[#allocation159_spill] sm:$0xff] %v14771_v16  ;;  %v4083_v57 = vadd.f32 %v4046_v19, %v14542_v9  ;;  %v10684_v14 = vpop.f32.mrf.mxu1 }
 0x3b8   : > { %v4001_v59 = vpop.f32.mrf.mxu0 }
 0x3b9   : > { %v4047_v44 = vmul.f32 %v4001_v59, %v18030_v17  ;;  %v4307_v20 = vpop.f32.mrf.mxu1  ;;  %v14775_v29 = vadd.f32 %v4296_v30, %v4083_v57 }
 0x3ba   : > { %v10601_v5 = vpop.f32.mrf.mxu0 }
 0x3bb   : > { %18031 = vst [vmem:[#allocation81_spill] sm:$0xff] %v14775_v29  ;;  %v4084_v3 = vadd.f32 %v4047_v44, %v14546_v49  ;;  %v10685_v60 = vpop.f32.mrf.mxu1  ;;  %v4893_v5 = vlaneseq }
 0x3bc   : > { %v4006_v13 = vpop.f32.mrf.mxu0 }
 0x3bd   : > { %v4048_v62 = vmul.f32 %v4006_v13, %v18032_v55  ;;  %v4782_v7 = vpop.f32.mrf.mxu1  ;;  %v14779_v11 = vadd.f32 %v4299_v56, %v4084_v3  ;;  %v4894_v3 = vshrl.u32 %v4893_v5, 7  ;;  %v18035_v55 = vld [vmem:[#allocation45_spill] sm:$0xff] }
 0x3be   : > { %v10604_v28 = vpop.f32.mrf.mxu0 }
 0x3bf   : > { %18033 = vst [vmem:[#allocation163_spill] sm:$0xff] %v14779_v11  ;;  %v4085_v9 = vadd.f32 %v4048_v62, %v14554_v54  ;;  %v10784_v2 = vpop.f32.mrf.mxu1  ;;  %v18036_v28 = vld [vmem:[#allocation44_spill] sm:$0xff] }
 0x3c0   : > { %v4009_v19 = vpop.f32.mrf.mxu0  ;;  %v18037_v2 = vld [vmem:[#allocation48_spill] sm:$0xff] }
 0x3c1   : > { %v4785_v23 = vpop.f32.mrf.mxu1  ;;  %v14782_v14 = vadd.f32 %v4304_v38, %v4085_v9  ;;  %v4699_v38 = vld [vmem:[%s17274_s11] sm:$0x1] }
 0x3c2   : > { %v10605_v30 = vpop.f32.mrf.mxu0 }
 0x3c3   : > { %18034 = vst [vmem:[#allocation167_spill] sm:$0xff] %v14782_v14  ;;  %v10785_v57 = vpop.f32.mrf.mxu1  ;;  %v18038_v30 = vld [vmem:[#allocation53_spill] sm:$0xff] }
 0x3c4   : > { %v4413_v59 = vpop.f32.mrf.mxu0 }
 0x3c5   : > { %v4563_v56 = vmul.f32 %v4413_v59, %v17924_v39 }
 0x3c6   : > { %v10692_v17 = vpop.f32.mrf.mxu0 }
 0x3c7   : > { %v4600_v17 = vadd.f32 %v4563_v56, %v14563_v45 }
 0x3c8   : > { %v4416_v49 = vpop.f32.mrf.mxu0 }
 0x3c9   : > { %v4564_v54 = vmul.f32 %v4416_v49, %v18035_v55  ;;  %v14797_v49 = vld [vmem:[%s17272_s9] ss:$0 sm:$0xff] }
 0x3ca   : > { %v10693_v44 = vpop.f32.mrf.mxu0  ;;  %v4644_v45 = vadd.f32 %v14797_v49, %v4600_v17 }
 0x3cb   : > { %v4783_v44 = vadd.f32 %v4782_v7, %v4699_v38  ;;  %v4601_v39 = vadd.f32 %v4564_v54, %v14571_v0 }
 0x3cc   : > { %v4421_v20 = vpop.f32.mrf.mxu0 }
 0x3cd   : > { %v4565_v9 = vmul.f32 %v4421_v20, %v18036_v28  ;;  %v4645_v0 = vadd.f32 %v14797_v49, %v4601_v39 }
 0x3ce   : > { %v10696_v60 = vpop.f32.mrf.mxu0 }
 0x3cf   : > { %v4895_v60 = vsub.s32 0, %v4894_v3  ;;  %v4602_v5 = vadd.f32 %v4565_v9, %v14575_v35  ;;  %v4804_v3 = vld [vmem:[%s17276_s13] sm:$0x1] }
 0x3d0   : > { %v4424_v13 = vpop.f32.mrf.mxu0 }
 0x3d1   : > { %v4566_v19 = vmul.f32 %v4424_v13, %v18037_v2  ;;  %v14804_v7 = vrot.slane %v4783_v44, %v4895_v60  ;;  %v4646_v35 = vadd.f32 %v14797_v49, %v4602_v5 }
 0x3d2   : > { %v10697_v62 = vpop.f32.mrf.mxu0 }
 0x3d3   : > { %v4603_v20 = vadd.f32 %v4566_v19, %v14583_v50  ;;  %v18039_v62 = vld [vmem:[#allocation57_spill] sm:$0xff]  ;;  %v18040_v19 = vld [vmem:[#allocation56_spill] sm:$0xff]  ;;  %v4898_v17 = vmul.f32 %v14804_v7, %v4645_v0 }
 0x3d4   : > { %v4429_v23 = vpop.f32.mrf.mxu0 }
 0x3d5   : > { %v4567_v57 = vmul.f32 %v4429_v23, %v18038_v30 }
 0x3d6   : > { %v10700_v59 = vpop.f32.mrf.mxu0 }
 0x3d7   : > { %v4604_v13 = vadd.f32 %v4567_v57, %v14587_v53  ;;  %v4647_v53 = vadd.f32 %v14797_v49, %v4603_v20  ;;  %v4897_v57 = vmul.f32 %v14804_v7, %v4644_v45  ;;  %v4899_v59 = vmul.f32 %v14804_v7, %v4646_v35 }
 0x3d8   : > { %v4432_v55 = vpop.f32.mrf.mxu0 }
 0x3d9   : > { %v4568_v28 = vmul.f32 %v4432_v55, %v18039_v62  ;;  %v4648_v54 = vadd.f32 %v14797_v49, %v4604_v13  ;;  %v14826_v13 = vld [vmem:[%s17277_s14] ss:$0 sm:$0xff]  ;;  %v4900_v55 = vmul.f32 %v14804_v7, %v4647_v53 }
 0x3da   : > { %v10701_v56 = vpop.f32.mrf.mxu0 }
 0x3db   : > { %v4605_v50 = vadd.f32 %v4568_v28, %v14595_v52  ;;  %v4901_v62 = vmul.f32 %v14804_v7, %v4648_v54 }
 0x3dc   : > { %v4437_v38 = vpop.f32.mrf.mxu0 }
 0x3dd   : > { %v4887_v9 = vpop.f32.mrf.mxu1  ;;  %v4649_v2 = vadd.f32 %v14797_v49, %v4605_v50  ;;  %v4569_v23 = vmul.f32 %v4437_v38, %v18040_v19 }
 0x3de   : > { %v4888_v30 = vadd.f32 %v4887_v9, %v4804_v3  ;;  %v10704_v44 = vpop.f32.mrf.mxu0 }
 0x3df   : > { %v10804_v39 = vpop.f32.mrf.mxu1  ;;  %v4902_v52 = vmul.f32 %v14804_v7, %v4649_v2  ;;  %v4606_v5 = vadd.f32 %v4569_v23, %v14599_v34 }
 0x3e0   : > { %v14821_v20 = vrot.slane %v4888_v30, %v4895_v60  ;;  %v4440_v28 = vpop.f32.mrf.mxu0  ;;  %v14837_v60 = vld [vmem:[%s17278_s15] ss:$0 sm:$0xff] }
 0x3e1   : > { %v4890_v45 = vpop.f32.mrf.mxu1  ;;  %v4650_v0 = vadd.f32 %v14797_v49, %v4606_v5  ;;  %v4570_v54 = vmul.f32 %v4440_v28, %v17935_v22 }
 0x3e2   : > { %v4938_v56 = vadd.f32 %v14821_v20, %v4897_v57  ;;  %v4939_v3 = vadd.f32 %v14821_v20, %v4898_v17  ;;  %v4940_v34 = vadd.f32 %v14821_v20, %v4899_v59  ;;  %v4941_v35 = vadd.f32 %v14821_v20, %v4900_v55  ;;  %v10705_v38 = vpop.f32.mrf.mxu0 }
 0x3e3   : > { %v4942_v50 = vadd.f32 %v14821_v20, %v4901_v62  ;;  %v4943_v53 = vadd.f32 %v14821_v20, %v4902_v52  ;;  %v10805_v9 = vpop.f32.mrf.mxu1  ;;  %v4903_v2 = vmul.f32 %v14804_v7, %v4650_v0  ;;  %v4607_v39 = vadd.f32 %v4570_v54, %v14607_v12 }
 0x3e4   : > { %v4982_v19 = vmul.f32 %v14826_v13, %v4938_v56  ;;  %v4983_v23 = vmul.f32 %v14826_v13, %v4939_v3  ;;  %v4984_v30 = vmul.f32 %v14826_v13, %v4940_v34  ;;  %v4985_v57 = vmul.f32 %v14826_v13, %v4941_v35  ;;  %v4445_v59 = vpop.f32.mrf.mxu0 }
 0x3e5   : > { %v4986_v17 = vmul.f32 %v14826_v13, %v4942_v50  ;;  %v4987_v44 = vmul.f32 %v14826_v13, %v4943_v53  ;;  %v4944_v22 = vadd.f32 %v14821_v20, %v4903_v2  ;;  %v4651_v62 = vadd.f32 %v14797_v49, %v4607_v39 }
 0x3e6   : > { %v14853_v52 = vadd.f32 %v14837_v60, %v4982_v19  ;;  %v14856_v5 = vadd.f32 %v14837_v60, %v4983_v23  ;;  %v14859_v55 = vadd.f32 %v14837_v60, %v4984_v30  ;;  %v14863_v28 = vadd.f32 %v14837_v60, %v4985_v57  ;;  %v10708_v0 = vpop.f32.mrf.mxu0  ;;  %v18041_v19 = vld [vmem:[#allocation65_spill] sm:$0xff] }
 0x3e7   : > { %v14866_v45 = vadd.f32 %v14837_v60, %v4986_v17  ;;  %v14869_v12 = vadd.f32 %v14837_v60, %v4987_v44  ;;  %v4988_v56 = vmul.f32 %v14826_v13, %v4944_v22  ;;  %v4904_v50 = vmul.f32 %v14804_v7, %v4651_v62 }
 0x3e8   : > { %v5063_v3 = vsub.f32 0.0, %v14853_v52  ;;  %v5064_v34 = vsub.f32 0.0, %v14856_v5  ;;  %v5065_v35 = vsub.f32 0.0, %v14859_v55  ;;  %v5066_v53 = vsub.f32 0.0, %v14863_v28  ;;  %v4448_v9 = vpop.f32.mrf.mxu0 }
 0x3e9   : > { %v5067_v54 = vsub.f32 0.0, %v14866_v45  ;;  %v5068_v38 = vsub.f32 0.0, %v14869_v12  ;;  %v14880_v2 = vadd.f32 %v14837_v60, %v4988_v56  ;;  %v4571_v23 = vmul.f32 %v4445_v59, %v18041_v19  ;;  %v18042_v56 = vld [vmem:[#allocation69_spill] sm:$0xff] }
 0x3ea   : > { %v5100_v30 = vmul.f32 1.442695, %v5063_v3  ;;  %v5102_v57 = vmul.f32 1.442695, %v5064_v34  ;;  %v4945_v17 = vadd.f32 %v14821_v20, %v4904_v50  ;;  %v5104_v44 = vmul.f32 1.442695, %v5065_v35  ;;  %v10709_v22 = vpop.f32.mrf.mxu0 }
 0x3eb   : > { %v5106_v39 = vmul.f32 1.442695, %v5066_v53  ;;  %v5069_v62 = vsub.f32 0.0, %v14880_v2  ;;  %v4608_v0 = vadd.f32 %v4571_v23, %v14611_v51  ;;  %v5108_v14 = vmul.f32 1.442695, %v5067_v54  ;;  %v18043_v35 = vld [vmem:[#allocation68_spill] sm:$0xff] }
 0x3ec   : > { %11456 = vpow2.f32 %v5100_v30  ;;  %v4989_v11 = vmul.f32 %v14826_v13, %v4945_v17  ;;  %v5110_v29 = vmul.f32 1.442695, %v5068_v38  ;;  %v4572_v16 = vmul.f32 %v4448_v9, %v18042_v56  ;;  %v4453_v59 = vpop.f32.mrf.mxu0  ;;  %v18044_v17 = vld [vmem:[#allocation72_spill] sm:$0xff] }
 0x3ed   : > { %11458 = vpow2.f32 %v5102_v57  ;;  %v4652_v3 = vadd.f32 %v14797_v49, %v4608_v0  ;;  %v5112_v34 = vmul.f32 1.442695, %v5069_v62  ;;  %v4573_v50 = vmul.f32 %v4453_v59, %v18043_v35 }
 0x3ee   : > { %11460 = vpow2.f32 %v5104_v44  ;;  %v14891_v53 = vadd.f32 %v14837_v60, %v4989_v11  ;;  %v4609_v51 = vadd.f32 %v4572_v16, %v14619_v61  ;;  %v10712_v54 = vpop.f32.mrf.mxu0  ;;  %v14904_v61 = vld [vmem:[%s17279_s16 + $0x38] sm:$0xff]  }
 0x3ef   : > { %11462 = vpow2.f32 %v5106_v39  ;;  %v4905_v19 = vmul.f32 %v14804_v7, %v4652_v3  ;;  %v4610_v38 = vadd.f32 %v4573_v50, %v14623_v41  ;;  %10846 = vmatprep.subr.bf16.mxu1 %v14904_v61 }
 0x3f0   : > { %11464 = vpow2.f32 %v5108_v14  ;;  %v5070_v9 = vsub.f32 0.0, %v14891_v53  ;;  %v4653_v23 = vadd.f32 %v14797_v49, %v4609_v51  ;;  %v4456_v30 = vpop.f32.mrf.mxu0 }
 0x3f1   : > { %11466 = vpow2.f32 %v5110_v29  ;;  %v4946_v57 = vadd.f32 %v14821_v20, %v4905_v19  ;;  %v4654_v11 = vadd.f32 %v14797_v49, %v4610_v38  ;;  %v4574_v44 = vmul.f32 %v4456_v30, %v18044_v17 }
 0x3f2   : > { %11468 = vpow2.f32 %v5112_v34  ;;  %v5114_v16 = vmul.f32 1.442695, %v5070_v9  ;;  %v4906_v41 = vmul.f32 %v14804_v7, %v4653_v23  ;;  %v10713_v14 = vpop.f32.mrf.mxu0  ;;  %v18045_v34 = vld [vmem:[#allocation76_spill] sm:$0xff] }
 0x3f3   : > { %v4990_v29 = vmul.f32 %v14826_v13, %v4946_v57  ;;  %v4907_v39 = vmul.f32 %v14804_v7, %v4654_v11  ;;  %v4611_v22 = vadd.f32 %v4574_v44, %v14631_v31 }
 0x3f4   : > { %11470 = vpow2.f32 %v5114_v16  ;;  %v4947_v62 = vadd.f32 %v14821_v20, %v4906_v41  ;;  %v4461_v0 = vpop.f32.mrf.mxu0 }
 0x3f5   : > { %v14913_v56 = vadd.f32 %v14837_v60, %v4990_v29  ;;  %v4948_v59 = vadd.f32 %v14821_v20, %v4907_v39  ;;  %v4655_v3 = vadd.f32 %v14797_v49, %v4611_v22  ;;  %v4575_v35 = vmul.f32 %v4461_v0, %v18045_v34 }
 0x3f6   : > { %v4991_v50 = vmul.f32 %v14826_v13, %v4947_v62  ;;  %v10716_v51 = vpop.f32.mrf.mxu0 }
 0x3f7   : > { %v5071_v31 = vsub.f32 0.0, %v14913_v56  ;;  %v4992_v54 = vmul.f32 %v14826_v13, %v4948_v59  ;;  %v4908_v19 = vmul.f32 %v14804_v7, %v4655_v3  ;;  %v4612_v38 = vadd.f32 %v4575_v35, %v14635_v36  ;;  %v18046_v36 = vld [vmem:[#allocation80_spill] sm:$0xff] }
 0x3f8   : > { %v14924_v23 = vadd.f32 %v14837_v60, %v4991_v50  ;;  %v4464_v30 = vpop.f32.mrf.mxu0 }
 0x3f9   : > { %v11457_v9 = vpop.eup %11456  ;;  %v5116_v11 = vmul.f32 1.442695, %v5071_v31  ;;  %v14927_v44 = vadd.f32 %v14837_v60, %v4992_v54  ;;  %v4949_v16 = vadd.f32 %v14821_v20, %v4908_v19  ;;  %v4656_v39 = vadd.f32 %v14797_v49, %v4612_v38 }
 0x3fa   : > { %v11459_v57 = vpop.eup %11458  ;;  %v5174_v17 = vadd.f32 1.0, %v11457_v9  ;;  %v5072_v14 = vsub.f32 0.0, %v14924_v23  ;;  %v4576_v22 = vmul.f32 %v4464_v30, %v18046_v36  ;;  %v10717_v62 = vpop.f32.mrf.mxu0 }
 0x3fb   : > { %v11461_v41 = vpop.eup %11460  ;;  %v5175_v29 = vadd.f32 1.0, %v11459_v57  ;;  %11472 = vpow2.f32 %v5116_v11  ;;  %v5073_v3 = vsub.f32 0.0, %v14927_v44  ;;  %v4993_v34 = vmul.f32 %v14826_v13, %v4949_v16 }
 0x3fc   : > { %v11463_v0 = vpop.eup %11462  ;;  %v5176_v59 = vadd.f32 1.0, %v11461_v41  ;;  %v5118_v50 = vmul.f32 1.442695, %v5072_v14  ;;  %11474 = vrcp.f32 %v5174_v17  ;;  %v4909_v31 = vmul.f32 %v14804_v7, %v4656_v39  ;;  %v4469_v54 = vpop.f32.mrf.mxu0  ;;  %v18047_v39 = vld [vmem:[#allocation79_spill] sm:$0xff] }
 0x3fd   : > { %v11465_v35 = vpop.eup %11464  ;;  %v5177_v51 = vadd.f32 1.0, %v11463_v0  ;;  %11476 = vrcp.f32 %v5175_v29  ;;  %v14937_v38 = vadd.f32 %v14837_v60, %v4993_v34  ;;  %v4613_v16 = vadd.f32 %v4576_v22, %v14643_v40  ;;  %v14946_v29 = vld [vmem:[%s17279_s16 + $0x98] sm:$0xff]  }
 0x3fe   : > { %v11467_v19 = vpop.eup %11466  ;;  %v5178_v9 = vadd.f32 1.0, %v11465_v35  ;;  %11478 = vpow2.f32 %v5118_v50  ;;  %v4950_v11 = vadd.f32 %v14821_v20, %v4909_v31  ;;  %v10720_v41 = vpop.f32.mrf.mxu0  ;;  %v4577_v36 = vmul.f32 %v4469_v54, %v18047_v39  ;;  %v18048_v50 = vld [vmem:[#allocation83_spill] sm:$0xff]  ;;  %10966 = vmatprep.subr.bf16.mxu0 %v14946_v29 }
 0x3ff   : > { %v11469_v30 = vpop.eup %11468  ;;  %v5179_v57 = vadd.f32 1.0, %v11467_v19  ;;  %11480 = vrcp.f32 %v5176_v59  ;;  %v5074_v17 = vsub.f32 0.0, %v14937_v38  ;;  %v5120_v62 = vmul.f32 1.442695, %v5073_v3 }
 0x400   : > { %v5180_v14 = vadd.f32 1.0, %v11469_v30  ;;  %11482 = vrcp.f32 %v5177_v51  ;;  %v4994_v0 = vmul.f32 %v14826_v13, %v4950_v11  ;;  %v4657_v34 = vadd.f32 %v14797_v49, %v4613_v16  ;;  %v4472_v35 = vpop.f32.mrf.mxu0 }
 0x401   : > { %v11471_v40 = vpop.eup %11470  ;;  %11484 = vrcp.f32 %v5178_v9  ;;  %v5122_v22 = vmul.f32 1.442695, %v5074_v17  ;;  %v4614_v59 = vadd.f32 %v4577_v36, %v14647_v46  ;;  %v4578_v31 = vmul.f32 %v4472_v35, %v18048_v50  ;;  %v18049_v17 = vld [vmem:[#allocation86_spill] sm:$0xff] }
 0x402   : > { %v5181_v54 = vadd.f32 1.0, %v11471_v40  ;;  %11486 = vrcp.f32 %v5179_v57  ;;  %v14954_v19 = vadd.f32 %v14837_v60, %v4994_v0  ;;  %v4910_v3 = vmul.f32 %v14804_v7, %v4657_v34  ;;  %v10721_v51 = vpop.f32.mrf.mxu0 }
 0x403   : > { %11488 = vrcp.f32 %v5180_v14  ;;  %v4658_v30 = vadd.f32 %v14797_v49, %v4614_v59  ;;  %v4615_v9 = vadd.f32 %v4578_v31, %v14655_v10 }
 0x404   : > { %11490 = vrcp.f32 %v5181_v54  ;;  %v5075_v46 = vsub.f32 0.0, %v14954_v19  ;;  %v4951_v11 = vadd.f32 %v14821_v20, %v4910_v3  ;;  %v4477_v16 = vpop.f32.mrf.mxu0 }
 0x405   : > { %11492 = vpow2.f32 %v5120_v62  ;;  %v4911_v57 = vmul.f32 %v14804_v7, %v4658_v30  ;;  %v4659_v41 = vadd.f32 %v14797_v49, %v4615_v9  ;;  %v4579_v39 = vmul.f32 %v4477_v16, %v18049_v17  ;;  %v18050_v9 = vld [vmem:[#allocation89_spill] sm:$0xff] }
 0x406   : > { %11494 = vpow2.f32 %v5122_v22  ;;  %v5124_v36 = vmul.f32 1.442695, %v5075_v46  ;;  %v4995_v14 = vmul.f32 %v14826_v13, %v4951_v11  ;;  %v10724_v0 = vpop.f32.mrf.mxu0 }
 0x407   : > { %v4952_v10 = vadd.f32 %v14821_v20, %v4911_v57  ;;  %v4912_v34 = vmul.f32 %v14804_v7, %v4659_v41  ;;  %v4616_v35 = vadd.f32 %v4579_v39, %v14659_v8 }
 0x408   : > { %v11473_v40 = vpop.eup %11472  ;;  %11496 = vpow2.f32 %v5124_v36  ;;  %v14969_v62 = vadd.f32 %v14837_v60, %v4995_v14  ;;  %v4480_v59 = vpop.f32.mrf.mxu0 }
 0x409   : > { %v11475_v50 = vpop.eup %11474  ;;  %v5182_v31 = vadd.f32 1.0, %v11473_v40  ;;  %v4996_v22 = vmul.f32 %v14826_v13, %v4952_v10  ;;  %v4953_v54 = vadd.f32 %v14821_v20, %v4912_v34  ;;  %v4660_v3 = vadd.f32 %v14797_v49, %v4616_v35 }
 0x40a   : > { %v11477_v51 = vpop.eup %11476  ;;  %v5076_v30 = vsub.f32 0.0, %v14969_v62  ;;  %v4580_v46 = vmul.f32 %v4480_v59, %v18050_v9  ;;  %v10725_v8 = vpop.f32.mrf.mxu0  ;;  %v5285_v11 = vmul.f32 %v11475_v50, %v14853_v52 }
 0x40b   : > { %v11479_v16 = vpop.eup %11478  ;;  %11498 = vrcp.f32 %v5182_v31  ;;  %v14978_v57 = vadd.f32 %v14837_v60, %v4996_v22  ;;  %v4997_v41 = vmul.f32 %v14826_v13, %v4953_v54  ;;  %v4913_v17 = vmul.f32 %v14804_v7, %v4660_v3 }
 0x40c   : > { %v11481_v39 = vpop.eup %11480  ;;  %v5183_v36 = vadd.f32 1.0, %v11479_v16  ;;  %v5126_v14 = vmul.f32 1.442695, %v5076_v30  ;;  %v4617_v0 = vadd.f32 %v4580_v46, %v14667_v37  ;;  %v4485_v10 = vpop.f32.mrf.mxu0  ;;  %v5286_v34 = vmul.f32 %v11477_v51, %v14856_v5  ;;  %v18051_v37 = vld [vmem:[#allocation88_spill] sm:$0xff] }
 0x40d   : > { %v11483_v35 = vpop.eup %11482  ;;  %v5287_v52 = vmul.f32 %v11481_v39, %v14859_v55  ;;  %v5077_v40 = vsub.f32 0.0, %v14978_v57  ;;  %v14987_v59 = vadd.f32 %v14837_v60, %v4997_v41  ;;  %v4954_v50 = vadd.f32 %v14821_v20, %v4913_v17  ;;  %v18052_v55 = vld [vmem:[#allocation126_spill] sm:$0xff]  ;;  %v18053_v41 = vld [vmem:[#allocation127_spill] sm:$0xff] }
 0x40e   : > { %v11485_v31 = vpop.eup %11484  ;;  %11500 = vrcp.f32 %v5183_v36  ;;  %v5288_v22 = vmul.f32 %v11483_v35, %v14863_v28  ;;  %v4661_v54 = vadd.f32 %v14797_v49, %v4617_v0  ;;  %v4581_v3 = vmul.f32 %v4485_v10, %v18051_v37  ;;  %v10728_v30 = vpop.f32.mrf.mxu0  ;;  %v18054_v35 = vld [vmem:[#allocation128_spill] sm:$0xff] }
 0x40f   : > { %v11487_v5 = vpop.eup %11486  ;;  %v5289_v51 = vmul.f32 %v11485_v31, %v14866_v45  ;;  %v5546_v9 = vmul.f32 %v18052_v55, %v5287_v52  ;;  %11502 = vpow2.f32 %v5126_v14  ;;  %v5128_v46 = vmul.f32 1.442695, %v5077_v40  ;;  %v18055_v31 = vld [vmem:[#allocation130_spill] sm:$0xff]  ;;  %v18056_v55 = vld [vmem:[#allocation131_spill] sm:$0xff] }
 0x410   : > { %v11489_v8 = vpop.eup %11488  ;;  %v5290_v16 = vmul.f32 %v11487_v5, %v14869_v12  ;;  %v5547_v17 = vmul.f32 %v18053_v41, %v5288_v22  ;;  %v5078_v28 = vsub.f32 0.0, %v14987_v59  ;;  %v4998_v39 = vmul.f32 %v14826_v13, %v4954_v50  ;;  %v4488_v36 = vpop.f32.mrf.mxu0 }
 0x411   : > { %v11491_v0 = vpop.eup %11490  ;;  %v5291_v10 = vmul.f32 %v11489_v8, %v14880_v2  ;;  %v5548_v45 = vmul.f32 %v18054_v35, %v5289_v51  ;;  %11504 = vpow2.f32 %v5128_v46  ;;  %v4914_v14 = vmul.f32 %v14804_v7, %v4661_v54  ;;  %v18057_v54 = vld [vmem:[#allocation132_spill] sm:$0xff]  ;;  %v18058_v35 = vld [vmem:[#allocation122_spill] sm:$0xff] }
 0x412   : > { %v11493_v52 = vpop.eup %11492  ;;  %v5292_v40 = vmul.f32 %v11491_v0, %v14891_v53  ;;  %v5549_v12 = vmul.f32 %v18055_v31, %v5290_v16  ;;  %v5130_v37 = vmul.f32 1.442695, %v5078_v28  ;;  %v15005_v22 = vadd.f32 %v14837_v60, %v4998_v39  ;;  %v10729_v30 = vpop.f32.mrf.mxu0  ;;  %v18059_v31 = vld [vmem:[#allocation123_spill] sm:$0xff] }
 0x413   : > { %v11495_v50 = vpop.eup %11494  ;;  %v5184_v5 = vadd.f32 1.0, %v11493_v52  ;;  %v15008_v41 = vmul.f32 %v18056_v55, %v5291_v10  ;;  %v4955_v2 = vadd.f32 %v14821_v20, %v4914_v14  ;;  %v4618_v51 = vadd.f32 %v4581_v3, %v14671_v6  ;;  %v18060_v30 = vld [vmem:[#allocation91_spill] sm:$0xff] }
 0x414   : > { %v5551_v46 = vmul.f32 %v18057_v54, %v5292_v40  ;;  %v5185_v8 = vadd.f32 1.0, %v11495_v50  ;;  %11506 = vpow2.f32 %v5130_v37  ;;  %v5079_v53 = vsub.f32 0.0, %v15005_v22  ;;  %v4493_v16 = vpop.f32.mrf.mxu0 }
 0x415   : > { %v11497_v28 = vpop.eup %11496  ;;  %11508 = vrcp.f32 %v5184_v5  ;;  %v4999_v39 = vmul.f32 %v14826_v13, %v4955_v2  ;;  %v4662_v0 = vadd.f32 %v14797_v49, %v4618_v51  ;;  %v5544_v10 = vmul.f32 %v18058_v35, %v5285_v11  ;;  %v18061_v51 = vld [vmem:[#allocation94_spill] sm:$0xff] }
 0x416   : > { %11510 = vrcp.f32 %v5185_v8  ;;  %v5186_v52 = vadd.f32 1.0, %v11497_v28  ;;  %v5132_v14 = vmul.f32 1.442695, %v5079_v53  ;;  %v5545_v6 = vmul.f32 %v18059_v31, %v5286_v34  ;;  %v10732_v3 = vpop.f32.mrf.mxu0 }
 0x417   : > { %v15019_v40 = vadd.f32 %v14837_v60, %v4999_v39  ;;  %v4915_v37 = vmul.f32 %v14804_v7, %v4662_v0  ;;  %v4582_v50 = vmul.f32 %v4488_v36, %v18060_v30  ;;  %v15023_v5 = vpack.c.bf16 %v5547_v17, %v5546_v9  ;;  %v18062_v39 = vld [vmem:[#allocation135_spill] sm:$0xff] }
 0x418   : > { %v11499_v55 = vpop.eup %11498  ;;  %11512 = vrcp.f32 %v5186_v52  ;;  %v15025_v2 = vpack.c.bf16 %v5545_v6, %v5544_v10  ;;  %v15027_v11 = vpack.c.bf16 %v5549_v12, %v5548_v45  ;;  %v4583_v54 = vmul.f32 %v4493_v16, %v18061_v51  ;;  %v4496_v8 = vpop.f32.mrf.mxu0  ;;  %v18063_v51 = vld [vmem:[#allocation136_spill] sm:$0xff] }
 0x419   : > { %v5293_v34 = vmul.f32 %v11499_v55, %v14913_v56  ;;  %11514 = vpow2.f32 %v5132_v14  ;;  %v5080_v53 = vsub.f32 0.0, %v15019_v40  ;;  %v4956_v28 = vadd.f32 %v14821_v20, %v4915_v37 }
 0x41a   : > { %10814 = vmatprep.mubr.msk.bf16.mxu1 %vm5629_vm4, %v15025_v2  ;;  %v4619_v9 = vadd.f32 %v4582_v50, %v14679_v32  ;;  %v6512_v17 = vrot.slane %v15025_v2, 1  ;;  %v6513_v36 = vrot.slane %v15023_v5, 1  ;;  %v6515_v45 = vrot.slane %v15027_v11, 1  ;;  %v10733_v12 = vpop.f32.mrf.mxu0  ;;  %v11263_v32 = vld [vmem:[%s17279_s16 + $0x30] sm:$0xff]  }
 0x41b   : > { %v11501_v16 = vpop.eup %11500  ;;  %v5552_v56 = vmul.f32 %v18062_v39, %v5293_v34  ;;  %v5134_v0 = vmul.f32 1.442695, %v5080_v53  ;;  %v5000_v35 = vmul.f32 %v14826_v13, %v4956_v28  ;;  %10815 = vmatmul.mubr.msk.bf16.vlgmr.msra.gmra.mxu1 %vm5629_vm4, %v15023_v5  ;;  %v4620_v10 = vadd.f32 %v4583_v54, %v14684_v25  ;;  %v11267_v25 = vld [vmem:[%s17279_s16 + $0x90] sm:$0xff]  }
 0x41c   : > { %v11503_v52 = vpop.eup %11502  ;;  %v5294_v14 = vmul.f32 %v11501_v16, %v14924_v23  ;;  %v4663_v31 = vadd.f32 %v14797_v49, %v4619_v9  ;;  %10818 = vmatprep.mubr.msk.bf16.mxu1 %vm5629_vm4, %v15027_v11  ;;  %v6514_v6 = vsel %vm2381_vm3, %v6512_v17, %v6513_v36  ;;  %v15053_v3 = vsel %vm2381_vm3, %v6513_v36, %v6515_v45  ;;  %v4501_v37 = vpop.f32.mrf.mxu0  ;;  %v11264_v17 = vld [vmem:[%s17279_s16 + $0x28] sm:$0xff]  }
 0x41d   : > { %v5187_v30 = vadd.f32 1.0, %v11503_v52  ;;  %11516 = vpow2.f32 %v5134_v0  ;;  %v15059_v50 = vadd.f32 %v14837_v60, %v5000_v35  ;;  %10894 = vmatprep.mubr.msk.bf16.mxu0 %vm5629_vm4, %v6514_v6  ;;  %v4664_v23 = vadd.f32 %v14797_v49, %v4620_v10  ;;  %10847 = vmatpush3.bf16.msra.mxu1 %v14904_v61  ;;  %v11265_v6 = vld [vmem:[%s17279_s16 + $0x20] sm:$0xff]  }
 0x41e   : > { %v11505_v55 = vpop.eup %11504  ;;  %v5553_v54 = vmul.f32 %v18063_v51, %v5294_v14  ;;  %v4916_v34 = vmul.f32 %v14804_v7, %v4663_v31  ;;  %10895 = vmatmul.mubr.msk.bf16.vlgmr.msra.gmra.mxu0 %vm5629_vm4, %v15053_v3  ;;  %v4584_v53 = vmul.f32 %v4496_v8, %v17960_v63  ;;  %v15070_v28 = vpack.c.bf16 %v5551_v46, %v15008_v41  ;;  %v10736_v9 = vpop.f32.mrf.mxu0 }
 0x41f   : > { %11518 = vrcp.f32 %v5187_v30  ;;  %v5188_v61 = vadd.f32 1.0, %v11505_v55  ;;  %v5081_v36 = vsub.f32 0.0, %v15059_v50  ;;  %v4917_v12 = vmul.f32 %v14804_v7, %v4664_v23  ;;  %10848 = vmatprep.subr.bf16.mxu1 %v11263_v32  ;;  %10967 = vmatpush3.bf16.msra.mxu0 %v14946_v29 }
 0x420   : > { %v4957_v16 = vadd.f32 %v14821_v20, %v4916_v34  ;;  %v4621_v63 = vadd.f32 %v4584_v53, %v14696_v4  ;;  %v6517_v41 = vrot.slane %v15070_v28, 1  ;;  %v4585_v46 = vmul.f32 %v4501_v37, %v17962_v58  ;;  %v4504_v8 = vpop.f32.mrf.mxu0  ;;  %10968 = vmatprep.subr.bf16.mxu0 %v11267_v25  ;;  %v18064_v34 = vld [vmem:[#allocation139_spill] sm:$0xff] }
 0x421   : > { %v11507_v39 = vpop.eup %11506  ;;  %11520 = vrcp.f32 %v5188_v61  ;;  %v5136_v0 = vmul.f32 1.442695, %v5081_v36  ;;  %v4958_v35 = vadd.f32 %v14821_v20, %v4917_v12  ;;  %v15083_v10 = vpack.c.bf16 %v5553_v54, %v5552_v56  ;;  %10849 = vmatpush3.bf16.msra.mxu1 %v11263_v32  ;;  %v11269_v56 = vld [vmem:[%s17279_s16 + $0x88] sm:$0xff]   ;;  %v11270_v36 = vld [vmem:[%s17279_s16 + $0x80] sm:$0xff]  }
 0x422   : > { %v11509_v52 = vpop.eup %11508  ;;  %v5189_v29 = vadd.f32 1.0, %v11507_v39  ;;  %v5001_v14 = vmul.f32 %v14826_v13, %v4957_v16  ;;  %v4665_v4 = vadd.f32 %v14797_v49, %v4621_v63  ;;  %v15090_v58 = vsel %vm2381_vm3, %v6515_v45, %v6517_v41  ;;  %v10737_v31 = vpop.f32.mrf.mxu0  ;;  %10850 = vmatprep.subr.bf16.mxu1 %v11264_v17  ;;  %v18066_v16 = vld [vmem:[#allocation140_spill] sm:$0xff] }
 0x423   : > { %v11511_v32 = vpop.eup %11510  ;;  %v5295_v37 = vmul.f32 %v11509_v52, %v14927_v44  ;;  %11522 = vpow2.f32 %v5136_v0  ;;  %v5002_v30 = vmul.f32 %v14826_v13, %v4958_v35  ;;  %10819 = vmatmul.mubr.msk.bf16.gmra.mxu1 %vm5629_vm4, %v15070_v28  ;;  %10898 = vmatprep.mubr.msk.bf16.mxu0 %vm5629_vm4, %v15090_v58  ;;  %v4622_v45 = vadd.f32 %v4585_v46, %v14707_v47 }
 0x424   : > { %v5296_v23 = vmul.f32 %v11511_v32, %v14937_v38  ;;  %11524 = vrcp.f32 %v5189_v29  ;;  %v15107_v55 = vadd.f32 %v14837_v60, %v5001_v14  ;;  %v4918_v51 = vmul.f32 %v14804_v7, %v4665_v4  ;;  %10822 = vmatprep.mubr.msk.bf16.mxu1 %vm5629_vm4, %v15083_v10  ;;  %v4509_v44 = vpop.f32.mrf.mxu0  ;;  %10969 = vmatpush3.bf16.msra.mxu0 %v11267_v25  ;;  %v18065_v38 = vld [vmem:[#allocation99_spill] sm:$0xff] }
 0x425   : > { %v11513_v54 = vpop.eup %11512  ;;  %v5554_v53 = vmul.f32 %v18064_v34, %v5295_v37  ;;  %v15114_v9 = vadd.f32 %v14837_v60, %v5002_v30  ;;  %v4666_v47 = vadd.f32 %v14797_v49, %v4622_v45  ;;  %v4586_v61 = vmul.f32 %v4504_v8, %v18065_v38  ;;  %10851 = vmatpush3.bf16.msra.mxu1 %v11264_v17  ;;  %v15128_v8 = vld [vmem:[%s17279_s16 + $0x78] sm:$0xff]   ;;  %v18068_v34 = vld [vmem:[#allocation102_spill] sm:$0xff] }
 0x426   : > { %v11515_v12 = vpop.eup %11514  ;;  %v5555_v63 = vmul.f32 %v18066_v16, %v5296_v23  ;;  %v5297_v25 = vmul.f32 %v11513_v54, %v14954_v19  ;;  %v5082_v46 = vsub.f32 0.0, %v15107_v55  ;;  %v4959_v39 = vadd.f32 %v14821_v20, %v4918_v51  ;;  %v10740_v0 = vpop.f32.mrf.mxu0  ;;  %10852 = vmatprep.subr.bf16.mxu1 %v11265_v6  ;;  %10970 = vmatprep.subr.bf16.mxu0 %v11269_v56  ;;  %v18067_v19 = vld [vmem:[#allocation141_spill] sm:$0xff] }
 0x427   : > { %v5190_v17 = vadd.f32 1.0, %v11515_v12  ;;  %v5083_v35 = vsub.f32 0.0, %v15114_v9  ;;  %v4919_v52 = vmul.f32 %v14804_v7, %v4666_v47  ;;  %v4623_v29 = vadd.f32 %v4586_v61, %v14721_v43 }
 0x428   : > { %v15134_v14 = vmul.f32 %v18067_v19, %v5297_v25  ;;  %v5138_v4 = vmul.f32 1.442695, %v5082_v46  ;;  %v5003_v31 = vmul.f32 %v14826_v13, %v4959_v39  ;;  %v6519_v32 = vrot.slane %v15083_v10, 1  ;;  %v4512_v37 = vpop.f32.mrf.mxu0  ;;  %10971 = vmatpush3.bf16.msra.mxu0 %v11269_v56 }
 0x429   : > { %11526 = vrcp.f32 %v5190_v17  ;;  %v5140_v30 = vmul.f32 1.442695, %v5083_v35  ;;  %v4960_v45 = vadd.f32 %v14821_v20, %v4919_v52  ;;  %v4667_v23 = vadd.f32 %v14797_v49, %v4623_v29  ;;  %10853 = vmatpush3.bf16.msra.mxu1 %v11265_v6  ;;  %10972 = vmatprep.subr.bf16.mxu0 %v11270_v36 }
 0x42a   : > { %v11517_v51 = vpop.eup %11516  ;;  %11528 = vpow2.f32 %v5138_v4  ;;  %v15141_v43 = vadd.f32 %v14837_v60, %v5003_v31  ;;  %v15146_v54 = vsel %vm2381_vm3, %v6517_v41, %v6519_v32  ;;  %v4587_v56 = vmul.f32 %v4509_v44, %v18068_v34  ;;  %v10741_v47 = vpop.f32.mrf.mxu0  ;;  %10926 = vmatprep.subr.bf16.mxu1 %v15128_v8  ;;  %v18069_v44 = vld [vmem:[#allocation105_spill] sm:$0xff] }
 0x42b   : > { %v5191_v38 = vadd.f32 1.0, %v11517_v51  ;;  %11530 = vpow2.f32 %v5140_v30  ;;  %v5004_v6 = vmul.f32 %v14826_v13, %v4960_v45  ;;  %v4920_v61 = vmul.f32 %v14804_v7, %v4667_v23  ;;  %10899 = vmatmul.mubr.msk.bf16.gmra.mxu0 %vm5629_vm4, %v15146_v54 }
 0x42c   : > { %v11519_v12 = vpop.eup %11518  ;;  %v5084_v16 = vsub.f32 0.0, %v15141_v43  ;;  %v4624_v41 = vadd.f32 %v4587_v56, %v14731_v15  ;;  %v15156_v25 = vpack.c.bf16 %v5555_v63, %v5554_v53  ;;  %v4588_v46 = vmul.f32 %v4512_v37, %v18069_v44  ;;  %v4517_v39 = vpop.f32.mrf.mxu0  ;;  %10973 = vmatpush3.bf16.msra.mxu0 %v11270_v36  ;;  %v18070_v63 = vld [vmem:[#allocation143_spill] sm:$0xff]  ;;  %v18071_v56 = vld [vmem:[#allocation144_spill] sm:$0xff] }
 0x42d   : > { %v5298_v0 = vmul.f32 %v11519_v12, %v14969_v62  ;;  %11532 = vrcp.f32 %v5191_v38  ;;  %v15161_v17 = vadd.f32 %v14837_v60, %v5004_v6  ;;  %v4961_v35 = vadd.f32 %v14821_v20, %v4920_v61 }
 0x42e   : > { %v11521_v52 = vpop.eup %11520  ;;  %v5142_v29 = vmul.f32 1.442695, %v5084_v16  ;;  %v4668_v19 = vadd.f32 %v14797_v49, %v4624_v41  ;;  %10823 = vmatmul.mubr.msk.bf16.gmra.mxu1 %vm5629_vm4, %v15156_v25  ;;  %v4625_v15 = vadd.f32 %v4588_v46, %v14736_v21  ;;  %v6521_v53 = vrot.slane %v15156_v25, 1  ;;  %v10744_v36 = vpop.f32.mrf.mxu0 }
 0x42f   : > { %v5557_v62 = vmul.f32 %v18070_v63, %v5298_v0  ;;  %v5299_v4 = vmul.f32 %v11521_v52, %v14978_v57  ;;  %v5085_v31 = vsub.f32 0.0, %v15161_v17  ;;  %v5005_v37 = vmul.f32 %v14826_v13, %v4961_v35  ;;  %v18073_v35 = vld [vmem:[#allocation107_spill] sm:$0xff] }
 0x430   : > { %v11523_v30 = vpop.eup %11522  ;;  %11534 = vpow2.f32 %v5142_v29  ;;  %v4921_v45 = vmul.f32 %v14804_v7, %v4668_v19  ;;  %v4669_v23 = vadd.f32 %v14797_v49, %v4625_v15  ;;  %v15176_v51 = vsel %vm2381_vm3, %v6519_v32, %v6521_v53  ;;  %v4520_v21 = vpop.f32.mrf.mxu0  ;;  %v18072_v32 = vld [vmem:[#allocation106_spill] sm:$0xff]  ;;  %v18074_v29 = vld [vmem:[#allocation145_spill] sm:$0xff] }
 0x431   : > { %v11525_v34 = vpop.eup %11524  ;;  %v5558_v47 = vmul.f32 %v18071_v56, %v5299_v4  ;;  %v5192_v38 = vadd.f32 1.0, %v11523_v30  ;;  %v5144_v6 = vmul.f32 1.442695, %v5085_v31  ;;  %v15180_v57 = vadd.f32 %v14837_v60, %v5005_v37  ;;  %10902 = vmatprep.mubr.msk.bf16.mxu0 %vm5629_vm4, %v15176_v51  ;;  %v18075_v30 = vld [vmem:[#allocation115_spill] sm:$0xff] }
 0x432   : > { %v5300_v61 = vmul.f32 %v11525_v34, %v14987_v59  ;;  %v4962_v12 = vadd.f32 %v14821_v20, %v4921_v45  ;;  %v4922_v16 = vmul.f32 %v14804_v7, %v4669_v23  ;;  %v4589_v41 = vmul.f32 %v4517_v39, %v18072_v32  ;;  %v10745_v44 = vpop.f32.mrf.mxu0  ;;  %v18076_v32 = vld [vmem:[#allocation148_spill] sm:$0xff] }
 0x433   : > { %11536 = vrcp.f32 %v5192_v38  ;;  %v5086_v46 = vsub.f32 0.0, %v15180_v57  ;;  %v15190_v0 = vpack.c.bf16 %v5557_v62, %v15134_v14  ;;  %v4590_v52 = vmul.f32 %v4520_v21, %v18073_v35 }
 0x434   : > { %v5559_v19 = vmul.f32 %v18074_v29, %v5300_v61  ;;  %11538 = vpow2.f32 %v5144_v6  ;;  %v5006_v59 = vmul.f32 %v14826_v13, %v4962_v12  ;;  %v4963_v15 = vadd.f32 %v14821_v20, %v4922_v16  ;;  %v4525_v36 = vpop.f32.mrf.mxu0 }
 0x435   : > { %v5146_v63 = vmul.f32 1.442695, %v5086_v46  ;;  %v4626_v39 = vadd.f32 %v4589_v41, %v14743_v27  ;;  %10826 = vmatprep.mubr.msk.bf16.mxu1 %vm5629_vm4, %v15190_v0  ;;  %v4627_v4 = vadd.f32 %v4590_v52, %v14747_v48  ;;  %v6523_v14 = vrot.slane %v15190_v0, 1 }
 0x436   : > { %v11527_v62 = vpop.eup %11526  ;;  %v15202_v31 = vadd.f32 %v14837_v60, %v5006_v59  ;;  %v5007_v37 = vmul.f32 %v14826_v13, %v4963_v15  ;;  %v4591_v45 = vmul.f32 %v4525_v36, %v18075_v30  ;;  %v10748_v23 = vpop.f32.mrf.mxu0  ;;  %v15206_v21 = vpack.c.bf16 %v5559_v19, %v5558_v47 }
 0x437   : > { %v11529_v34 = vpop.eup %11528  ;;  %v5301_v27 = vmul.f32 %v11527_v62, %v15005_v22  ;;  %11540 = vpow2.f32 %v5146_v63  ;;  %v4670_v56 = vadd.f32 %v14797_v49, %v4626_v39  ;;  %v4671_v48 = vadd.f32 %v14797_v49, %v4627_v4  ;;  %v15223_v22 = vld [vmem:[%s17279_s16 + $0xd8] sm:$0xff]   ;;  %v18077_v62 = vld [vmem:[#allocation116_spill] sm:$0xff] }
 0x438   : > { %v11531_v38 = vpop.eup %11530  ;;  %v5193_v6 = vadd.f32 1.0, %v11529_v34  ;;  %v5087_v61 = vsub.f32 0.0, %v15202_v31  ;;  %v15213_v12 = vadd.f32 %v14837_v60, %v5007_v37  ;;  %v15216_v16 = vsel %vm2381_vm3, %v6521_v53, %v6523_v14  ;;  %10827 = vmatmul.mubr.msk.bf16.gmra.mxu1 %vm5629_vm4, %v15206_v21  ;;  %v4528_v47 = vpop.f32.mrf.mxu0  ;;  %11046 = vmatprep.subr.bf16.mxu0 %v15223_v22  ;;  %v18078_v34 = vld [vmem:[#allocation149_spill] sm:$0xff] }
 0x439   : > { %v5560_v41 = vmul.f32 %v18076_v32, %v5301_v27  ;;  %v5194_v44 = vadd.f32 1.0, %v11531_v38  ;;  %v4923_v46 = vmul.f32 %v14804_v7, %v4670_v56  ;;  %v4924_v35 = vmul.f32 %v14804_v7, %v4671_v48  ;;  %10903 = vmatmul.mubr.msk.bf16.gmra.mxu0 %vm5629_vm4, %v15216_v16  ;;  %v18079_v32 = vld [vmem:[#allocation118_spill] sm:$0xff] }
 0x43a   : > { %v11533_v53 = vpop.eup %11532  ;;  %11542 = vrcp.f32 %v5193_v6  ;;  %v5148_v52 = vmul.f32 1.442695, %v5087_v61  ;;  %v5088_v29 = vsub.f32 0.0, %v15213_v12  ;;  %v4628_v19 = vadd.f32 %v4591_v45, %v14751_v26  ;;  %v10749_v59 = vpop.f32.mrf.mxu0 }
 0x43b   : > { %v5302_v15 = vmul.f32 %v11533_v53, %v15019_v40  ;;  %11544 = vrcp.f32 %v5194_v44  ;;  %v4964_v36 = vadd.f32 %v14821_v20, %v4923_v46  ;;  %v4965_v63 = vadd.f32 %v14821_v20, %v4924_v35 }
 0x43c   : > { %11546 = vpow2.f32 %v5148_v52  ;;  %v5150_v39 = vmul.f32 1.442695, %v5088_v29  ;;  %v4672_v4 = vadd.f32 %v14797_v49, %v4628_v19  ;;  %v4592_v37 = vmul.f32 %v4528_v47, %v18077_v62  ;;  %v4533_v30 = vpop.f32.mrf.mxu0 }
 0x43d   : > { %v11535_v23 = vpop.eup %11534  ;;  %v5561_v26 = vmul.f32 %v18078_v34, %v5302_v15  ;;  %v5008_v45 = vmul.f32 %v14826_v13, %v4964_v36  ;;  %v5009_v27 = vmul.f32 %v14826_v13, %v4965_v63  ;;  %v6525_v40 = vrot.slane %v15206_v21, 1 }
 0x43e   : > { %v5195_v56 = vadd.f32 1.0, %v11535_v23  ;;  %11548 = vpow2.f32 %v5150_v39  ;;  %v4925_v48 = vmul.f32 %v14804_v7, %v4672_v4  ;;  %v4629_v38 = vadd.f32 %v4592_v37, %v14755_v33  ;;  %v10752_v6 = vpop.f32.mrf.mxu0  ;;  %v15258_v33 = vld [vmem:[%s17272_s9] ss:$0 sm:$0xff] }
 0x43f   : > { %v15245_v49 = vadd.f32 %v14837_v60, %v5008_v45  ;;  %v15248_v61 = vadd.f32 %v14837_v60, %v5009_v27  ;;  %v15251_v47 = vsel %vm2381_vm3, %v6523_v14, %v6525_v40  ;;  %v4593_v44 = vmul.f32 %v4533_v30, %v18079_v32  ;;  %v18081_v30 = vld [vmem:[#allocation152_spill] sm:$0xff] }
 0x440   : > { %v11537_v46 = vpop.eup %11536  ;;  %11550 = vrcp.f32 %v5195_v56  ;;  %v4966_v35 = vadd.f32 %v14821_v20, %v4925_v48  ;;  %v4673_v53 = vadd.f32 %v15258_v33, %v4629_v38  ;;  %10906 = vmatprep.mubr.msk.bf16.mxu0 %vm5629_vm4, %v15251_v47  ;;  %v15263_v52 = vpack.c.bf16 %v5561_v26, %v5560_v41  ;;  %v4536_v14 = vpop.f32.mrf.mxu0  ;;  %v18080_v41 = vld [vmem:[#allocation119_spill] sm:$0xff] }
 0x441   : > { %v11539_v29 = vpop.eup %11538  ;;  %v5303_v19 = vmul.f32 %v11537_v46, %v15059_v50  ;;  %v5089_v59 = vsub.f32 0.0, %v15245_v49  ;;  %v5090_v15 = vsub.f32 0.0, %v15248_v61  ;;  %v4630_v36 = vadd.f32 %v4593_v44, %v14759_v18  ;;  %v15287_v44 = vld [vmem:[%s17277_s14] ss:$0 sm:$0xff] }
 0x442   : > { %v5196_v63 = vadd.f32 1.0, %v11539_v29  ;;  %v5010_v39 = vmul.f32 %v14826_v13, %v4966_v35  ;;  %v4926_v4 = vmul.f32 %v14804_v7, %v4673_v53  ;;  %10830 = vmatprep.mubr.msk.bf16.mxu1 %vm5629_vm4, %v15263_v52  ;;  %v4594_v62 = vmul.f32 %v4536_v14, %v18080_v41  ;;  %v10753_v37 = vpop.f32.mrf.mxu0  ;;  %v18082_v29 = vld [vmem:[#allocation170_spill] sm:$0xff] }
 0x443   : > { %v5562_v23 = vmul.f32 %v18081_v30, %v5303_v19  ;;  %v5152_v50 = vmul.f32 1.442695, %v5089_v59  ;;  %v5154_v34 = vmul.f32 1.442695, %v5090_v15  ;;  %v4674_v26 = vadd.f32 %v15258_v33, %v4630_v36 }
 0x444   : > { %v11541_v45 = vpop.eup %11540  ;;  %11552 = vrcp.f32 %v5196_v63  ;;  %v15277_v18 = vadd.f32 %v14837_v60, %v5010_v39  ;;  %v4967_v13 = vadd.f32 %v14821_v20, %v4926_v4  ;;  %v4631_v27 = vadd.f32 %v4594_v62, %v14763_v24  ;;  %v4541_v56 = vpop.f32.mrf.mxu0  ;;  %v15300_v63 = vld [vmem:[%s17278_s15] ss:$0 sm:$0xff] }
 0x445   : > { %v5197_v48 = vadd.f32 1.0, %v11541_v45  ;;  %11554 = vpow2.f32 %v5152_v50  ;;  %v4927_v38 = vmul.f32 %v14804_v7, %v4674_v26  ;;  %v6527_v6 = vrot.slane %v15263_v52, 1  ;;  %v18083_v50 = vld [vmem:[#allocation153_spill] sm:$0xff] }
 0x446   : > { %11556 = vpow2.f32 %v5154_v34  ;;  %v5091_v32 = vsub.f32 0.0, %v15277_v18  ;;  %v5011_v60 = vmul.f32 %v15287_v44, %v4967_v13  ;;  %v4675_v46 = vadd.f32 %v15258_v33, %v4631_v27  ;;  %v10756_v24 = vpop.f32.mrf.mxu0 }
 0x447   : > { %v11543_v35 = vpop.eup %11542  ;;  %11558 = vrcp.f32 %v5197_v48  ;;  %v4968_v53 = vadd.f32 %v14821_v20, %v4927_v38  ;;  %v15293_v14 = vsel %vm2381_vm3, %v6525_v40, %v6527_v6  ;;  %v4595_v19 = vmul.f32 %v4541_v56, %v18082_v29  ;;  %v18084_v56 = vld [vmem:[#allocation154_spill] sm:$0xff] }
 0x448   : > { %v11545_v59 = vpop.eup %11544  ;;  %v5304_v15 = vmul.f32 %v11543_v35, %v15107_v55  ;;  %v5156_v36 = vmul.f32 1.442695, %v5091_v32  ;;  %v15303_v39 = vadd.f32 %v15300_v63, %v5011_v60  ;;  %v4928_v4 = vmul.f32 %v14804_v7, %v4675_v46  ;;  %10907 = vmatmul.mubr.msk.bf16.gmra.mxu0 %vm5629_vm4, %v15293_v14  ;;  %v4544_v40 = vpop.f32.mrf.mxu0 }
 0x449   : > { %v11547_v41 = vpop.eup %11546  ;;  %v5305_v62 = vmul.f32 %v11545_v59, %v15114_v9  ;;  %v5012_v55 = vmul.f32 %v15287_v44, %v4968_v53  ;;  %v4632_v37 = vadd.f32 %v4595_v19, %v14767_v1  ;;  %v4596_v30 = vmul.f32 %v4544_v40, %v17977_v42  ;;  %v18085_v19 = vld [vmem:[#allocation159_spill] sm:$0xff] }
 0x44a   : > { %v5563_v34 = vmul.f32 %v18083_v50, %v5304_v15  ;;  %v5198_v26 = vadd.f32 1.0, %v11547_v41  ;;  %11560 = vpow2.f32 %v5156_v36  ;;  %v5092_v45 = vsub.f32 0.0, %v15303_v39  ;;  %v10757_v13 = vpop.f32.mrf.mxu0 }
 0x44b   : > { %v11549_v27 = vpop.eup %11548  ;;  %v5564_v48 = vmul.f32 %v18084_v56, %v5305_v62  ;;  %v15316_v38 = vadd.f32 %v15300_v63, %v5012_v55  ;;  %v4969_v9 = vadd.f32 %v14821_v20, %v4928_v4  ;;  %v4676_v32 = vadd.f32 %v15258_v33, %v4632_v37  ;;  %v18087_v37 = vld [vmem:[#allocation156_spill] sm:$0xff] }
 0x44c   : > { %11562 = vrcp.f32 %v5198_v26  ;;  %v5199_v1 = vadd.f32 1.0, %v11549_v27  ;;  %v5158_v42 = vmul.f32 1.442695, %v5092_v45  ;;  %v15320_v60 = vpack.c.bf16 %v5563_v34, %v5562_v23  ;;  %v4549_v46 = vpop.f32.mrf.mxu0  ;;  %v18086_v23 = vld [vmem:[#allocation181_spill] sm:$0xff] }
 0x44d   : > { %v11551_v24 = vpop.eup %11550  ;;  %v5093_v35 = vsub.f32 0.0, %v15316_v38  ;;  %v5013_v53 = vmul.f32 %v15287_v44, %v4969_v9  ;;  %v4929_v29 = vmul.f32 %v14804_v7, %v4676_v32  ;;  %v4633_v59 = vadd.f32 %v4596_v30, %v18085_v19  ;;  %v18088_v34 = vld [vmem:[#allocation81_spill] sm:$0xff] }
 0x44e   : > { %v5306_v15 = vmul.f32 %v11551_v24, %v15141_v43  ;;  %11564 = vrcp.f32 %v5199_v1  ;;  %10831 = vmatmul.mubr.msk.bf16.gmra.mxu1 %vm5629_vm4, %v15320_v60  ;;  %v6529_v36 = vrot.slane %v15320_v60, 1  ;;  %v4597_v4 = vmul.f32 %v4549_v46, %v18086_v23  ;;  %v10760_v40 = vpop.f32.mrf.mxu0  ;;  %v18089_v9 = vld [vmem:[#allocation73_spill] sm:$0xff] }
 0x44f   : > { %11566 = vpow2.f32 %v5158_v42  ;;  %v5160_v41 = vmul.f32 1.442695, %v5093_v35  ;;  %v15332_v62 = vadd.f32 %v15300_v63, %v5013_v53  ;;  %v4970_v55 = vadd.f32 %v14821_v20, %v4929_v29  ;;  %v18091_v40 = vld [vmem:[#allocation157_spill] sm:$0xff] }
 0x450   : > { %v5565_v30 = vmul.f32 %v18087_v37, %v5306_v15  ;;  %v4677_v43 = vadd.f32 %v15258_v33, %v4633_v59  ;;  %v15338_v50 = vsel %vm2381_vm3, %v6527_v6, %v6529_v36  ;;  %v4634_v26 = vadd.f32 %v4597_v4, %v18088_v34  ;;  %v4552_v45 = vpop.f32.mrf.mxu0  ;;  %v18090_v15 = vld [vmem:[#allocation163_spill] sm:$0xff] }
 0x451   : > { %v11553_v13 = vpop.eup %11552  ;;  %11568 = vpow2.f32 %v5160_v41  ;;  %v5094_v27 = vsub.f32 0.0, %v15332_v62  ;;  %v5014_v56 = vmul.f32 %v15287_v44, %v4970_v55  ;;  %10910 = vmatprep.mubr.msk.bf16.mxu0 %vm5629_vm4, %v15338_v50  ;;  %v4598_v32 = vmul.f32 %v4552_v45, %v18089_v9  ;;  %v18092_v9 = vld [vmem:[#allocation158_spill] sm:$0xff] }
 0x452   : > { %v11555_v1 = vpop.eup %11554  ;;  %v5307_v42 = vmul.f32 %v11553_v13, %v15161_v17  ;;  %v4930_v6 = vmul.f32 %v14804_v7, %v4677_v43  ;;  %v4678_v46 = vadd.f32 %v15258_v33, %v4634_v26  ;;  %v15349_v24 = vpack.c.bf16 %v5565_v30, %v5564_v48  ;;  %v10761_v35 = vpop.f32.mrf.mxu0 }
 0x453   : > { %v11557_v53 = vpop.eup %11556  ;;  %v5200_v29 = vadd.f32 1.0, %v11555_v1  ;;  %v5162_v19 = vmul.f32 1.442695, %v5094_v27  ;;  %v15352_v59 = vadd.f32 %v15300_v63, %v5014_v56  ;;  %v4635_v23 = vadd.f32 %v4598_v32, %v18090_v15 }
 0x454   : > { %v11559_v4 = vpop.eup %11558  ;;  %v5566_v41 = vmul.f32 %v18091_v40, %v5307_v42  ;;  %v5201_v55 = vadd.f32 1.0, %v11557_v53  ;;  %v4971_v17 = vadd.f32 %v14821_v20, %v4930_v6  ;;  %v4931_v37 = vmul.f32 %v14804_v7, %v4678_v46  ;;  %10834 = vmatprep.mubr.msk.bf16.mxu1 %vm5629_vm4, %v15349_v24  ;;  %v4557_v48 = vpop.f32.mrf.mxu0 }
 0x455   : > { %v5308_v30 = vmul.f32 %v11559_v4, %v15180_v57  ;;  %11570 = vrcp.f32 %v5200_v29  ;;  %v5095_v43 = vsub.f32 0.0, %v15352_v59  ;;  %v4679_v34 = vadd.f32 %v15258_v33, %v4635_v23 }
 0x456   : > { %11572 = vrcp.f32 %v5201_v55  ;;  %v5015_v26 = vmul.f32 %v15287_v44, %v4971_v17  ;;  %v4972_v45 = vadd.f32 %v14821_v20, %v4931_v37  ;;  %v6531_v13 = vrot.slane %v15349_v24, 1  ;;  %v10764_v27 = vpop.f32.mrf.mxu0 }
 0x457   : > { %v11561_v56 = vpop.eup %11560  ;;  %v5567_v32 = vmul.f32 %v18092_v9, %v5308_v30  ;;  %11574 = vpow2.f32 %v5162_v19  ;;  %v5164_v1 = vmul.f32 1.442695, %v5095_v43  ;;  %v4932_v57 = vmul.f32 %v14804_v7, %v4679_v34  ;;  %v18093_v19 = vld [vmem:[#allocation78_spill] sm:$0xff]  ;;  %v18094_v43 = vld [vmem:[#allocation167_spill] sm:$0xff] }
 0x458   : > { %v5202_v42 = vadd.f32 1.0, %v11561_v56  ;;  %v15369_v6 = vadd.f32 %v15300_v63, %v5015_v26  ;;  %v5016_v46 = vmul.f32 %v15287_v44, %v4972_v45  ;;  %v15373_v35 = vsel %vm2381_vm3, %v6529_v36, %v6531_v13  ;;  %v4560_v53 = vpop.f32.mrf.mxu0 }
 0x459   : > { %v11563_v29 = vpop.eup %11562  ;;  %11576 = vpow2.f32 %v5164_v1  ;;  %v4973_v15 = vadd.f32 %v14821_v20, %v4932_v57  ;;  %10911 = vmatmul.mubr.msk.bf16.gmra.mxu0 %vm5629_vm4, %v15373_v35  ;;  %v4599_v23 = vmul.f32 %v4557_v48, %v18093_v19  ;;  %v15379_v4 = vpack.c.bf16 %v5567_v32, %v5566_v41  ;;  %v18095_v1 = vld [vmem:[#allocation161_spill] sm:$0xff] }
 0x45a   : > { %v5309_v40 = vmul.f32 %v11563_v29, %v15202_v31  ;;  %v5096_v55 = vsub.f32 0.0, %v15369_v6  ;;  %v15384_v17 = vadd.f32 %v15300_v63, %v5016_v46  ;;  %v10765_v36 = vpop.f32.mrf.mxu0  ;;  %11578 = vrcp.f32 %v5202_v42  ;;  %v18096_v42 = vld [vmem:[#allocation162_spill] sm:$0xff] }
 0x45b   : > { %v11565_v37 = vpop.eup %11564  ;;  %v5017_v30 = vmul.f32 %v15287_v44, %v4973_v15  ;;  %v15388_v34 = vadd.f32 %v4599_v23, %v18094_v43  ;;  %10835 = vmatmul.mubr.msk.bf16.gmra.mxu1 %vm5629_vm4, %v15379_v4  ;;  %v6533_v41 = vrot.slane %v15379_v4, 1 }
 0x45c   : > { %v11567_v48 = vpop.eup %11566  ;;  %v5310_v31 = vmul.f32 %v11565_v37, %v15213_v12  ;;  %v5166_v26 = vmul.f32 1.442695, %v5096_v55  ;;  %v5097_v45 = vsub.f32 0.0, %v15384_v17  ;;  %v5568_v57 = vmul.f32 %v18095_v1, %v5309_v40 }
 0x45d   : > { %v5203_v27 = vadd.f32 1.0, %v11567_v48  ;;  %v15396_v56 = vadd.f32 %v15300_v63, %v5017_v30  ;;  %v15399_v9 = vsel %vm2381_vm3, %v6531_v13, %v6533_v41 }
 0x45e   : > { %v11569_v32 = vpop.eup %11568  ;;  %v5569_v46 = vmul.f32 %v18096_v42, %v5310_v31  ;;  %11580 = vpow2.f32 %v5166_v26  ;;  %v5168_v53 = vmul.f32 1.442695, %v5097_v45  ;;  %10914 = vmatprep.mubr.msk.bf16.mxu0 %vm5629_vm4, %v15399_v9  ;;  %v18097_v31 = vld [vmem:[#allocation165_spill] sm:$0xff]  ;;  %v18098_v45 = vld [vmem:[#allocation166_spill] sm:$0xff] }
 0x45f   : > { %11582 = vrcp.f32 %v5203_v27  ;;  %v5204_v12 = vadd.f32 1.0, %v11569_v32  ;;  %v5098_v29 = vsub.f32 0.0, %v15396_v56 }
 0x460   : > { %11584 = vpow2.f32 %v5168_v53  ;;  %v15406_v15 = vpack.c.bf16 %v5569_v46, %v5568_v57 }
 0x461   : > { %v5170_v19 = vmul.f32 1.442695, %v5098_v29  ;;  %11586 = vrcp.f32 %v5204_v12 }
 0x462   : > { %v11571_v13 = vpop.eup %11570  ;;  %10838 = vmatprep.mubr.msk.bf16.mxu1 %vm5629_vm4, %v15406_v15  ;;  %v6535_v23 = vrot.slane %v15406_v15, 1 }
 0x463   : > { %v11573_v40 = vpop.eup %11572  ;;  %v5311_v55 = vmul.f32 %v11571_v13, %v15245_v49  ;;  %11588 = vpow2.f32 %v5170_v19 }
 0x464   : > { %v11575_v36 = vpop.eup %11574  ;;  %v5312_v37 = vmul.f32 %v11573_v40, %v15248_v61  ;;  %v15414_v30 = vsel %vm2381_vm3, %v6533_v41, %v6535_v23  ;;  %v18099_v40 = vld [vmem:[#allocation171_spill] sm:$0xff] }
 0x465   : > { %v5205_v43 = vadd.f32 1.0, %v11575_v36  ;;  %10915 = vmatmul.mubr.msk.bf16.gmra.mxu0 %vm5629_vm4, %v15414_v30  ;;  %v5570_v26 = vmul.f32 %v18097_v31, %v5311_v55  ;;  %v18100_v36 = vld [vmem:[#allocation172_spill] sm:$0xff] }
 0x466   : > { %v11577_v48 = vpop.eup %11576  ;;  %v5571_v27 = vmul.f32 %v18098_v45, %v5312_v37 }
 0x467   : > { %11590 = vrcp.f32 %v5205_v43  ;;  %v5206_v32 = vadd.f32 1.0, %v11577_v48  ;;  %v11579_v1 = vpop.eup %11578 }
 0x468   : > { %v15420_v49 = vpack.c.bf16 %v5571_v27, %v5570_v26  ;;  %v5313_v57 = vmul.f32 %v11579_v1, %v15277_v18  ;;  %v6107_v18 = vshll.u32 %v15025_v2, 16  ;;  %v6111_v27 = vshll.u32 %v15023_v5, 16 }
 0x469   : > { %11592 = vrcp.f32 %v5206_v32 }
 0x46a   : > { %10839 = vmatmul.mubr.msk.bf16.gmra.mxu1 %vm5629_vm4, %v15420_v49  ;;  %v6537_v61 = vrot.slane %v15420_v49, 1  ;;  %v5572_v55 = vmul.f32 %v18099_v40, %v5313_v57  ;;  %v6109_v26 = vrot.slane %v6107_v18, 1 }
 0x46b   : > { %v11581_v41 = vpop.eup %11580 }
 0x46c   : > { %v11583_v42 = vpop.eup %11582  ;;  %v5207_v46 = vadd.f32 1.0, %v11581_v41  ;;  %v15427_v53 = vsel %vm2381_vm3, %v6535_v23, %v6537_v61  ;;  %v6105_v41 = vshrl.u32 %v15025_v2, 16  ;;  %v6115_v2 = vshrl.u32 %v15023_v5, 16 }
 0x46d   : > { %v11585_v12 = vpop.eup %11584  ;;  %v5314_v29 = vmul.f32 %v11583_v42, %v15303_v39  ;;  %10918 = vmatprep.mubr.msk.bf16.mxu0 %vm5629_vm4, %v15427_v53 }
 0x46e   : > { %11594 = vrcp.f32 %v5207_v46  ;;  %v5208_v19 = vadd.f32 1.0, %v11585_v12  ;;  %v11587_v13 = vpop.eup %11586  ;;  %v18102_v46 = vld [vmem:[#allocation174_spill] sm:$0xff] }
 0x46f   : > { %v5573_v37 = vmul.f32 %v18100_v36, %v5314_v29  ;;  %v5315_v31 = vmul.f32 %v11587_v13, %v15316_v38  ;;  %v18101_v38 = vld [vmem:[#allocation173_spill] sm:$0xff]  ;;  %v6113_v13 = vrot.slane %v6111_v27, 1 }
 0x470   : > { %v11589_v43 = vpop.eup %11588  ;;  %11596 = vrcp.f32 %v5208_v19  ;;  %v6110_v19 = vor.u32 %v6109_v26, %v6105_v41  ;;  %v18104_v41 = vld [vmem:[#allocation182_spill] sm:$0xff] }
 0x471   : > { %v5209_v48 = vadd.f32 1.0, %v11589_v43  ;;  %v15435_v23 = vpack.c.bf16 %v5573_v37, %v5572_v55  ;;  %v5574_v42 = vmul.f32 %v18101_v38, %v5315_v31  ;;  %v6125_v43 = vshll.u32 %v15070_v28, 16 }
 0x472   : > { %v6114_v37 = vsel %vm1934_vm2, %v6110_v19, %v6113_v13  ;;  %v6117_v31 = vor.u32 %v6115_v2, %v6113_v13  ;;  %v6132_v19 = vshll.u32 %v15083_v10, 16 }
 0x473   : > { %11598 = vrcp.f32 %v5209_v48  ;;  %10842 = vmatprep.mubr.msk.bf16.mxu1 %vm5629_vm4, %v15435_v23  ;;  %v6539_v39 = vrot.slane %v15435_v23, 1 }
 0x474   : > { %v11591_v45 = vpop.eup %11590 }
 0x475   : > { %v5316_v32 = vmul.f32 %v11591_v45, %v15332_v62  ;;  %v15444_v1 = vsel %vm2381_vm3, %v6537_v61, %v6539_v39  ;;  %v18103_v62 = vld [vmem:[#allocation176_spill] sm:$0xff]  ;;  %v6118_v61 = vshll.u32 %v15027_v11, 16 }
 0x476   : > { %v11593_v57 = vpop.eup %11592  ;;  %10919 = vmatmul.mubr.msk.bf16.gmra.mxu0 %vm5629_vm4, %v15444_v1 }
 0x477   : > { %v5575_v12 = vmul.f32 %v18102_v46, %v5316_v32  ;;  %v5317_v29 = vmul.f32 %v11593_v57, %v15352_v59  ;;  %v6120_v32 = vrot.slane %v6118_v61, 1  ;;  %v6127_v46 = vrot.slane %v6125_v43, 1  ;;  %v5537_v61 = vpop.permute.xlu0 %5536 }
 0x479   : > { %v15452_v40 = vpack.c.bf16 %v5575_v12, %v5574_v42  ;;  %v5576_v55 = vmul.f32 %v18103_v62, %v5317_v29  ;;  %v6122_v42 = vshrl.u32 %v15027_v11, 16  ;;  %v6121_v29 = vsel %vm1934_vm2, %v6117_v31, %v6120_v32  ;;  %v11271_v62 = vld [vmem:[%s17279_s16 + $0x70] sm:$0xff]   ;;  %v11272_v31 = vld [vmem:[%s17279_s16 + $0x68] sm:$0xff]  }
 0x47b   : > { %v11595_v36 = vpop.eup %11594  ;;  %10843 = vmatmul.mubr.msk.bf16.gmra.mxu1 %vm5629_vm4, %v15452_v40  ;;  %v15461_v18 = vrot.slane %v15452_v40, 1  ;;  %v15463_v59 = vpack.c.bf16 %v5576_v55, %v5576_v55 }
 0x47c   : > { %v5318_v48 = vmul.f32 %v11595_v36, %v15369_v6  ;;  %10854 = vmatprep.mubr.msk.bf16.mxu1 %vm5629_vm4, %v6114_v37  ;;  %v18105_v36 = vld [vmem:[#allocation22_spill] sm:$0xff] }
 0x47d   : > { %v11597_v26 = vpop.eup %11596  ;;  %v15470_v45 = vsel %vm2381_vm3, %v6539_v39, %v15461_v18  ;;  %v6543_v27 = vrot.slane %v15463_v59, 1 }
 0x47e   : > { %v5577_v57 = vmul.f32 %v18104_v41, %v5318_v48  ;;  %10922 = vmatprep.mubr.msk.bf16.mxu0 %vm5629_vm4, %v15470_v45  ;;  %v5319_v38 = vmul.f32 %v11597_v26, %v15384_v17  ;;  %v6124_v17 = vor.u32 %v6122_v42, %v6120_v32  ;;  %v6134_v48 = vrot.slane %v6132_v19, 1  ;;  %v11273_v42 = vld [vmem:[%s17279_s16 + $0x60] sm:$0xff]  }
 0x47f   : > { %v6544_v6 = vsel %vm2381_vm3, %v15461_v18, %v6543_v27  ;;  %v6136_v32 = vshrl.u32 %v15083_v10, 16  ;;  %v6143_v19 = vshrl.u32 %v15156_v25, 16 }
 0x480   : > { %v11599_v12 = vpop.eup %11598  ;;  %10923 = vmatmul.mubr.msk.bf16.gmra.mxu0 %vm5629_vm4, %v6544_v6  ;;  %v15481_v39 = vpack.c.bf16 %v5577_v57, %v5576_v55  ;;  %v15492_v2 = vsel %vm1934_vm2, %v6124_v17, %v6127_v46  ;;  %v6139_v55 = vshll.u32 %v15156_v25, 16  ;;  %v15496_v37 = vmul.f32 %v18105_v36, %v5319_v38 }
 0x481   : > { %v5320_v13 = vmul.f32 %v11599_v12, %v15396_v56  ;;  %10974 = vmatprep.mubr.msk.bf16.mxu0 %vm5629_vm4, %v6121_v29  ;;  %v6129_v56 = vshrl.u32 %v15070_v28, 16  ;;  %v6146_v38 = vshll.u32 %v15190_v0, 16  ;;  %v6138_v6 = vor.u32 %v6136_v32, %v6134_v48 }
 0x482   : > { %v6141_v41 = vrot.slane %v6139_v55, 1  ;;  %v6153_v12 = vshll.u32 %v15206_v21, 16  ;;  %v11278_v55 = vld [vmem:[%s17279_s16 + $0xc0] sm:$0xff]   ;;  %v6157_v32 = vshrl.u32 %v15206_v21, 16 }
 0x483   : > { %10855 = vmatmul.mubr.msk.bf16.vlgmr.msra.gmra.mxu1 %vm5629_vm4, %v6121_v29  ;;  %v5579_v43 = vmul.f32 %v5537_v61, %v5320_v13  ;;  %v6131_v27 = vor.u32 %v6129_v56, %v6127_v46  ;;  %v11277_v29 = vld [vmem:[%s17279_s16 + $0xc8] sm:$0xff]   ;;  %v6148_v13 = vrot.slane %v6146_v38, 1  ;;  %v6164_v38 = vshrl.u32 %v15263_v52, 16 }
 0x484   : > { %10927 = vmatpush3.bf16.msra.mxu1 %v15128_v8  ;;  %10858 = vmatprep.mubr.msk.bf16.mxu1 %vm5629_vm4, %v15492_v2  ;;  %v11275_v8 = vld [vmem:[%s17279_s16 + $0xd0] sm:$0xff]   ;;  %v15527_v46 = vsel %vm1934_vm2, %v6138_v6, %v6141_v41  ;;  %v6145_v17 = vor.u32 %v6143_v19, %v6141_v41  ;;  %v6155_v61 = vrot.slane %v6153_v12, 1  ;;  %v6174_v12 = vshll.u32 %v15349_v24, 16 }
 0x485   : > { %10928 = vmatprep.subr.bf16.mxu1 %v11271_v62  ;;  %v15506_v26 = vpack.c.bf16 %v5579_v43, %v15496_v37  ;;  %v15515_v57 = vsel %vm1934_vm2, %v6131_v27, %v6134_v48  ;;  %v6160_v43 = vshll.u32 %v15263_v52, 16  ;;  %v15563_v27 = vld [vmem:[%s17279_s16 + $0x118] sm:$0xff]  }
 0x486   : > { %v15548_v36 = vsel %vm1934_vm2, %v6145_v17, %v6148_v13  ;;  %v6171_v17 = vshrl.u32 %v15320_v60, 16 }
 0x487   : > { %v6162_v41 = vrot.slane %v6160_v43, 1 }
 0x488   : > { %10975 = vmatmul.mubr.msk.bf16.vlgmr.msra.gmra.mxu0 %vm5629_vm4, %v15492_v2  ;;  %10929 = vmatpush3.bf16.msra.mxu1 %v11271_v62  ;;  %v6150_v62 = vshrl.u32 %v15190_v0, 16 }
 0x489   : > { %10978 = vmatprep.mubr.msk.bf16.mxu0 %vm5629_vm4, %v15515_v57  ;;  %10930 = vmatprep.subr.bf16.mxu1 %v11272_v31 }
 0x48a   : > { %11047 = vmatpush3.bf16.msra.mxu0 %v15223_v22  ;;  %v15539_v22 = vld [vmem:[%s17279_s16 + $0xb8] sm:$0xff]   ;;  %v6152_v56 = vor.u32 %v6150_v62, %v6148_v13  ;;  %v6181_v13 = vshll.u32 %v15379_v4, 16  ;;  %v6176_v62 = vrot.slane %v6174_v12, 1 }
 0x48b   : > { %10859 = vmatmul.mubr.msk.bf16.gmra.mxu1 %vm5629_vm4, %v15515_v57  ;;  %11048 = vmatprep.subr.bf16.mxu0 %v11275_v8 }
 0x48c   : > { %10862 = vmatprep.mubr.msk.bf16.mxu1 %vm5629_vm4, %v15527_v46  ;;  %10931 = vmatpush3.bf16.msra.mxu1 %v11272_v31  ;;  %v15557_v48 = vsel %vm1934_vm2, %v6152_v56, %v6155_v61  ;;  %v6167_v31 = vshll.u32 %v15320_v60, 16  ;;  %v6183_v43 = vrot.slane %v6181_v13, 1 }
 0x48d   : > { %10932 = vmatprep.subr.bf16.mxu1 %v11273_v42 }
 0x48e   : > { %11049 = vmatpush3.bf16.msra.mxu0 %v11275_v8  ;;  %v6159_v8 = vor.u32 %v6157_v32, %v6155_v61  ;;  %v6169_v6 = vrot.slane %v6167_v31, 1  ;;  %v6188_v31 = vshll.u32 %v15406_v15, 16 }
 0x48f   : > { %11050 = vmatprep.subr.bf16.mxu0 %v11277_v29 }
 0x490   : > { %10979 = vmatmul.mubr.msk.bf16.gmra.mxu0 %vm5629_vm4, %v15527_v46  ;;  %10933 = vmatpush3.bf16.msra.mxu1 %v11273_v42  ;;  %v15573_v42 = vsel %vm1934_vm2, %v6159_v8, %v6162_v41  ;;  %v6173_v61 = vor.u32 %v6171_v17, %v6169_v6  ;;  %v6195_v8 = vshll.u32 %v15420_v49, 16 }
 0x491   : > { %10982 = vmatprep.mubr.msk.bf16.mxu0 %vm5629_vm4, %v15548_v36  ;;  %11006 = vmatprep.subr.bf16.mxu1 %v15539_v22 }
 0x492   : > { %11051 = vmatpush3.bf16.msra.mxu0 %v11277_v29  ;;  %v6166_v29 = vor.u32 %v6164_v38, %v6162_v41  ;;  %v15591_v56 = vsel %vm1934_vm2, %v6173_v61, %v6176_v62  ;;  %v6185_v38 = vshrl.u32 %v15379_v4, 16  ;;  %v6197_v13 = vrot.slane %v6195_v8, 1 }
 0x493   : > { %10863 = vmatmul.mubr.msk.bf16.gmra.mxu1 %vm5629_vm4, %v15548_v36  ;;  %11052 = vmatprep.subr.bf16.mxu0 %v11278_v55  ;;  %18106 = vst [vmem:[#allocation169_spill] sm:$0xff] %v15591_v56 }
 0x494   : > { %10866 = vmatprep.mubr.msk.bf16.mxu1 %vm5629_vm4, %v15557_v48  ;;  %v15581_v19 = vsel %vm1934_vm2, %v6166_v29, %v6169_v6  ;;  %v6190_v6 = vrot.slane %v6188_v31, 1  ;;  %v6187_v12 = vor.u32 %v6185_v38, %v6183_v43  ;;  %v6192_v29 = vshrl.u32 %v15406_v15, 16 }
 0x495   : > { %v6199_v31 = vshrl.u32 %v15420_v49, 16  ;;  %v6206_v38 = vshrl.u32 %v15435_v23, 16 }
 0x496   : > { %11053 = vmatpush3.bf16.msra.mxu0 %v11278_v55  ;;  %v6178_v55 = vshrl.u32 %v15349_v24, 16  ;;  %v15609_v17 = vsel %vm1934_vm2, %v6187_v12, %v6190_v6  ;;  %v6194_v61 = vor.u32 %v6192_v29, %v6190_v6  ;;  %v7307_v29 = vshll.u32 %v15481_v39, 16 }
 0x497   : > { %11126 = vmatprep.subr.bf16.mxu0 %v15563_v27  ;;  %18108 = vst [vmem:[#allocation175_spill] sm:$0xff] %v15609_v17  ;;  %v6201_v8 = vor.u32 %v6199_v31, %v6197_v13 }
 0x498   : > { %10983 = vmatmul.mubr.msk.bf16.gmra.mxu0 %vm5629_vm4, %v15557_v48  ;;  %v6180_v32 = vor.u32 %v6178_v55, %v6176_v62  ;;  %v6202_v62 = vshll.u32 %v15435_v23, 16  ;;  %v15617_v55 = vsel %vm1934_vm2, %v6194_v61, %v6197_v13  ;;  %v7309_v31 = vrot.slane %v7307_v29, 1 }
 0x499   : > { %10986 = vmatprep.mubr.msk.bf16.mxu0 %vm5629_vm4, %v15573_v42  ;;  %18109 = vst [vmem:[#allocation17_spill] sm:$0xff] %v15617_v55 }
 0x49a   : > { %v15599_v41 = vsel %vm1934_vm2, %v6180_v32, %v6183_v43  ;;  %v6209_v43 = vshll.u32 %v15452_v40, 16  ;;  %v6204_v32 = vrot.slane %v6202_v62, 1  ;;  %v15640_v62 = vpack.c.bf16 %v15496_v37, %v15496_v37 }
 0x49b   : > { %10867 = vmatmul.mubr.msk.bf16.gmra.mxu1 %vm5629_vm4, %v15573_v42  ;;  %18107 = vst [vmem:[#allocation16_spill] sm:$0xff] %v15599_v41 }
 0x49c   : > { %10870 = vmatprep.mubr.msk.bf16.mxu1 %vm5629_vm4, %v15581_v19  ;;  %v6211_v12 = vrot.slane %v6209_v43, 1  ;;  %v15627_v6 = vsel %vm1934_vm2, %v6201_v8, %v6204_v32  ;;  %v6208_v61 = vor.u32 %v6206_v38, %v6204_v32  ;;  %v6213_v43 = vshrl.u32 %v15452_v40, 16 }
 0x49d   : > { %18110 = vst [vmem:[#allocation24_spill] sm:$0xff] %v15627_v6 }
 0x49e   : > { %v15636_v13 = vsel %vm1934_vm2, %v6208_v61, %v6211_v12  ;;  %v6215_v8 = vor.u32 %v6213_v43, %v6211_v12  ;;  %v7311_v61 = vshrl.u32 %v15481_v39, 16  ;;  %v15660_v12 = vpop.permute.xlu1 %5541 }
 0x49f   : > { %18111 = vst [vmem:[#allocation177_spill] sm:$0xff] %v15636_v13 }
 0x4a0   : > { %10987 = vmatmul.mubr.msk.bf16.gmra.mxu0 %vm5629_vm4, %v15581_v19  ;;  %v15649_v38 = vsel %vm1934_vm2, %v6215_v8, %v7309_v31 }
 0x4a1   : > { %10990 = vmatprep.mubr.msk.bf16.mxu0 %vm5629_vm4, %v15591_v56  ;;  %18112 = vst [vmem:[#allocation179_spill] sm:$0xff] %v15649_v38 }
 0x4a3   : > { %10871 = vmatmul.mubr.msk.bf16.gmra.mxu1 %vm5629_vm4, %v15591_v56 }
 0x4a4   : > { %10874 = vmatprep.mubr.msk.bf16.mxu1 %vm5629_vm4, %v15599_v41 }
 0x4a8   : > { %10991 = vmatmul.mubr.msk.bf16.gmra.mxu0 %vm5629_vm4, %v15599_v41 }
 0x4a9   : > { %10994 = vmatprep.mubr.msk.bf16.mxu0 %vm5629_vm4, %v15609_v17 }
 0x4ab   : > { %10875 = vmatmul.mubr.msk.bf16.gmra.mxu1 %vm5629_vm4, %v15609_v17  ;;  %v6217_v17 = vshll.u32 %v15463_v59, 16  ;;  %v7315_v59 = vshll.u32 %v15640_v62, 16 }
 0x4ac   : > { %10878 = vmatprep.mubr.msk.bf16.mxu1 %vm5629_vm4, %v15617_v55 }
 0x4ad   : > { %v6219_v32 = vrot.slane %v6217_v17, 1  ;;  %v7317_v29 = vrot.slane %v7315_v59, 1  ;;  %v15658_v17 = vor.u32 %v7311_v61, %v7309_v31  ;;  %v11280_v31 = vld [vmem:[%s17279_s16 + $0xa8] sm:$0xff]   ;;  %v11283_v59 = vld [vmem:[%s17279_s16 + $0x110] sm:$0xff]  }
 0x4af   : > { %v6220_v37 = vsel %vm1934_vm2, %v6215_v8, %v6219_v32  ;;  %18113 = vst [vmem:[#allocation19_spill] sm:$0xff] %v15658_v17  ;;  %v7318_v43 = vsel %vm1934_vm2, %v15658_v17, %v7317_v29  ;;  %v11279_v8 = vld [vmem:[%s17279_s16 + $0xb0] sm:$0xff]  }
 0x4b0   : > { %10995 = vmatmul.mubr.msk.bf16.gmra.mxu0 %vm5629_vm4, %v15617_v55  ;;  %v4680_v55 = vadd.f32 %v15258_v33, %v15388_v34 }
 0x4b1   : > { %10998 = vmatprep.mubr.msk.bf16.mxu0 %vm5629_vm4, %v15627_v6 }
 0x4b3   : > { %10879 = vmatmul.mubr.msk.bf16.gmra.mxu1 %vm5629_vm4, %v15627_v6 }
 0x4b4   : > { %10882 = vmatprep.mubr.msk.bf16.mxu1 %vm5629_vm4, %v15636_v13 }
 0x4b8   : > { %10999 = vmatmul.mubr.msk.bf16.gmra.mxu0 %vm5629_vm4, %v15636_v13 }
 0x4b9   : > { %11002 = vmatprep.mubr.msk.bf16.mxu0 %vm5629_vm4, %v15649_v38  ;;  %v15665_v38 = vpop.permute.xlu0 %5873 }
 0x4ba   : > { %18114 = vst [vmem:[#allocation26_spill] sm:$0xff] %v15665_v38 }
 0x4bb   : > { %10883 = vmatmul.mubr.msk.bf16.gmra.mxu1 %vm5629_vm4, %v6220_v37 }
 0x4bc   : > { %10934 = vmatprep.mubr.msk.bf16.mxu1 %vm5629_vm4, %v15023_v5  ;;  %v15677_v5 = vpop.permute.xlu1 %5878 }
 0x4bd   : > { %18115 = vst [vmem:[#allocation20_spill] sm:$0xff] %v15677_v5  ;;  %v15682_v32 = vpop.permute.xlu0 %5883 }
 0x4be   : > { %18116 = vst [vmem:[#allocation183_spill] sm:$0xff] %v15682_v32 }
 0x4c0   : > { %11003 = vmatmul.mubr.msk.bf16.gmra.mxu0 %vm5629_vm4, %v7318_v43 }
 0x4c1   : > { %11054 = vmatprep.mubr.msk.bf16.mxu0 %vm5629_vm4, %v15027_v11  ;;  %v15704_v37 = vpop.permute.xlu0 %5893 }
 0x4c2   : > { %18117 = vst [vmem:[#allocation21_spill] sm:$0xff] %v15704_v37 }
 0x4c3   : > { %10935 = vmatmul.mubr.msk.bf16.vlgmr.msra.gmra.mxu1 %vm5629_vm4, %v15027_v11  ;;  %v11281_v11 = vld [vmem:[%s17279_s16 + $0xa0] sm:$0xff]  }
 0x4c4   : > { %11007 = vmatpush3.bf16.msra.mxu1 %v15539_v22  ;;  %10938 = vmatprep.mubr.msk.bf16.mxu1 %vm5629_vm4, %v15070_v28  ;;  %v15695_v22 = vpop.permute.xlu1 %5888 }
 0x4c5   : > { %11008 = vmatprep.subr.bf16.mxu1 %v11279_v8  ;;  %v15721_v29 = vpop.permute.xlu0 %5903 }
 0x4c8   : > { %11055 = vmatmul.mubr.msk.bf16.vlgmr.msra.gmra.mxu0 %vm5629_vm4, %v15070_v28  ;;  %11009 = vmatpush3.bf16.msra.mxu1 %v11279_v8  ;;  %v11285_v28 = vld [vmem:[%s17279_s16 + $0x108] sm:$0xff]   ;;  %v15716_v61 = vpop.permute.xlu1 %5898 }
 0x4c9   : > { %11058 = vmatprep.mubr.msk.bf16.mxu0 %vm5629_vm4, %v15083_v10  ;;  %11010 = vmatprep.subr.bf16.mxu1 %v11280_v31  ;;  %18118 = vst [vmem:[#allocation28_spill] sm:$0xff] %v15716_v61  ;;  %v15731_v43 = vpop.permute.xlu0 %5913 }
 0x4ca   : > { %11127 = vmatpush3.bf16.msra.mxu0 %v15563_v27  ;;  %v15709_v27 = vld [vmem:[%s17279_s16 + $0xf8] sm:$0xff]   ;;  %18120 = vst [vmem:[#allocation186_spill] sm:$0xff] %v15731_v43 }
 0x4cb   : > { %10939 = vmatmul.mubr.msk.bf16.gmra.mxu1 %vm5629_vm4, %v15083_v10  ;;  %11128 = vmatprep.subr.bf16.mxu0 %v11283_v59  ;;  %v11286_v10 = vld [vmem:[%s17279_s16 + $0x100] sm:$0xff]  }
 0x4cc   : > { %10942 = vmatprep.mubr.msk.bf16.mxu1 %vm5629_vm4, %v15156_v25  ;;  %11011 = vmatpush3.bf16.msra.mxu1 %v11280_v31 }
 0x4cd   : > { %11012 = vmatprep.subr.bf16.mxu1 %v11281_v11 }
 0x4ce   : > { %11129 = vmatpush3.bf16.msra.mxu0 %v11283_v59  ;;  %v15745_v59 = vpop.permute.xlu0 %5923 }
 0x4cf   : > { %11130 = vmatprep.subr.bf16.mxu0 %v11285_v28  ;;  %18122 = vst [vmem:[#allocation188_spill] sm:$0xff] %v15745_v59 }
 0x4d0   : > { %11059 = vmatmul.mubr.msk.bf16.gmra.mxu0 %vm5629_vm4, %v15156_v25  ;;  %11013 = vmatpush3.bf16.msra.mxu1 %v11281_v11  ;;  %v15727_v25 = vpop.permute.xlu1 %5908 }
 0x4d1   : > { %11062 = vmatprep.mubr.msk.bf16.mxu0 %vm5629_vm4, %v15190_v0  ;;  %11086 = vmatprep.subr.bf16.mxu1 %v15709_v27  ;;  %18119 = vst [vmem:[#allocation184_spill] sm:$0xff] %v15727_v25 }
 0x4d2   : > { %11131 = vmatpush3.bf16.msra.mxu0 %v11285_v28 }
 0x4d3   : > { %10943 = vmatmul.mubr.msk.bf16.gmra.mxu1 %vm5629_vm4, %v15190_v0  ;;  %11132 = vmatprep.subr.bf16.mxu0 %v11286_v10 }
 0x4d4   : > { %10946 = vmatprep.mubr.msk.bf16.mxu1 %vm5629_vm4, %v15206_v21  ;;  %v15741_v0 = vpop.permute.xlu1 %5918 }
 0x4d5   : > { %18121 = vst [vmem:[#allocation23_spill] sm:$0xff] %v15741_v0 }
 0x4d6   : > { %11133 = vmatpush3.bf16.msra.mxu0 %v11286_v10  ;;  %v15763_v10 = vpop.permute.xlu0 %5933 }
 0x4d7   : > { %18125 = vst [vmem:[#allocation114_spill] sm:$0xff] %v15763_v10 }
 0x4d8   : > { %11063 = vmatmul.mubr.msk.bf16.gmra.mxu0 %vm5629_vm4, %v15206_v21 }
 0x4d9   : > { %11066 = vmatprep.mubr.msk.bf16.mxu0 %vm5629_vm4, %v15263_v52 }
 0x4db   : > { %v15735_v8 = vpop.f32.mrf.mxu1  ;;  %10947 = vmatmul.mubr.msk.bf16.gmra.mxu1 %vm5629_vm4, %v15263_v52  ;;  %v15755_v52 = vpop.permute.xlu1 %5928 }
 0x4dc   : > { %10950 = vmatprep.mubr.msk.bf16.mxu1 %vm5629_vm4, %v15320_v60  ;;  %18123 = vst [vmem:[#allocation25_spill] sm:$0xff] %v15755_v52 }
 0x4dd   : > { %v15743_v31 = vpop.f32.mrf.mxu1 }
 0x4de   : > { %v15753_v11 = vpop.f32.mrf.mxu0 }
 0x4df   : > { %v15747_v21 = vpop.f32.mrf.mxu1  ;;  %v15771_v17 = vpop.permute.xlu1 %5938 }
 0x4e0   : > { %11067 = vmatmul.mubr.msk.bf16.gmra.mxu0 %vm5629_vm4, %v15320_v60  ;;  %v15765_v5 = vpop.f32.mrf.mxu0  ;;  %18126 = vst [vmem:[#allocation27_spill] sm:$0xff] %v15771_v17 }
 0x4e1   : > { %11070 = vmatprep.mubr.msk.bf16.mxu0 %vm5629_vm4, %v15349_v24  ;;  %v15757_v28 = vpop.f32.mrf.mxu1 }
 0x4e2   : > { %18124 = vst [vmem:[#allocation41_spill] sm:$0xff] %v15757_v28  ;;  %v15775_v28 = vpop.f32.mrf.mxu0 }
 0x4e3   : > { %10951 = vmatmul.mubr.msk.bf16.gmra.mxu1 %vm5629_vm4, %v15349_v24  ;;  %v15767_v60 = vpop.f32.mrf.mxu1  ;;  %v15777_v24 = vpop.permute.xlu0 %5943 }
 0x4e4   : > { %10954 = vmatprep.mubr.msk.bf16.mxu1 %vm5629_vm4, %v15379_v4  ;;  %18127 = vst [vmem:[#allocation29_spill] sm:$0xff] %v15777_v24  ;;  %v15785_v6 = vpop.f32.mrf.mxu0 }
 0x4e5   : > { %v15779_v13 = vpop.f32.mrf.mxu1  ;;  %18128 = vst [vmem:[#allocation31_spill] sm:$0xff] %v15785_v6 }
 0x4e7   : > { %v15791_v17 = vpop.f32.mrf.mxu1  ;;  %v15797_v10 = vpop.permute.xlu0 %5953 }
 0x4e8   : > { %11071 = vmatmul.mubr.msk.bf16.gmra.mxu0 %vm5629_vm4, %v15379_v4  ;;  %v15787_v4 = vpop.permute.xlu1 %5948  ;;  %18130 = vst [vmem:[#allocation60_spill] sm:$0xff] %v15797_v10 }
 0x4e9   : > { %11074 = vmatprep.mubr.msk.bf16.mxu0 %vm5629_vm4, %v15406_v15  ;;  %18129 = vst [vmem:[#allocation30_spill] sm:$0xff] %v15787_v4  ;;  %v15802_v6 = vpop.f32.mrf.mxu1 }
 0x4eb   : > { %10955 = vmatmul.mubr.msk.bf16.gmra.mxu1 %vm5629_vm4, %v15406_v15  ;;  %v15793_v41 = vpop.f32.mrf.mxu0  ;;  %v4933_v15 = vmul.f32 %v14804_v7, %v4680_v55  ;;  %v15814_v10 = vpop.permute.xlu0 %5963 }
 0x4ec   : > { %10958 = vmatprep.mubr.msk.bf16.mxu1 %vm5629_vm4, %v15420_v49  ;;  %v15810_v34 = vpop.permute.xlu1 %5958  ;;  %18132 = vst [vmem:[#allocation40_spill] sm:$0xff] %v15814_v10 }
 0x4ed   : > { %v15806_v33 = vpop.f32.mrf.mxu0  ;;  %18131 = vst [vmem:[#allocation33_spill] sm:$0xff] %v15810_v34  ;;  %v4974_v4 = vadd.f32 %v14821_v20, %v4933_v15 }
 0x4ef   : > { %v15817_v56 = vpop.f32.mrf.mxu0  ;;  %v5018_v55 = vmul.f32 %v15287_v44, %v4974_v4  ;;  %v15834_v20 = vpop.permute.xlu0 %5973 }
 0x4f0   : > { %11075 = vmatmul.mubr.msk.bf16.gmra.mxu0 %vm5629_vm4, %v15420_v49  ;;  %v15812_v49 = vpop.f32.mrf.mxu1  ;;  %18134 = vst [vmem:[#allocation120_spill] sm:$0xff] %v15834_v20 }
 0x4f1   : > { %11078 = vmatprep.mubr.msk.bf16.mxu0 %vm5629_vm4, %v15435_v23  ;;  %v15830_v34 = vpop.f32.mrf.mxu0  ;;  %v15841_v10 = vadd.f32 %v15300_v63, %v5018_v55 }
 0x4f2   : > { %v15821_v7 = vpop.f32.mrf.mxu1 }
 0x4f3   : > { %10959 = vmatmul.mubr.msk.bf16.gmra.mxu1 %vm5629_vm4, %v15435_v23  ;;  %v15825_v23 = vpop.permute.xlu1 %5968  ;;  %v5099_v63 = vsub.f32 0.0, %v15841_v10 }
 0x4f4   : > { %10962 = vmatprep.mubr.msk.bf16.mxu1 %vm5629_vm4, %v15452_v40  ;;  %18133 = vst [vmem:[#allocation46_spill] sm:$0xff] %v15825_v23  ;;  %v15856_v23 = vpop.permute.xlu0 %5983 }
 0x4f5   : > { %18137 = vst [vmem:[#allocation36_spill] sm:$0xff] %v15856_v23  ;;  %v5172_v0 = vmul.f32 1.442695, %v5099_v63 }
 0x4f7   : > { %v15845_v44 = vpop.permute.xlu1 %5978  ;;  %11600 = vpow2.f32 %v5172_v0 }
 0x4f8   : > { %11079 = vmatmul.mubr.msk.bf16.gmra.mxu0 %vm5629_vm4, %v15452_v40  ;;  %v15836_v40 = vpop.f32.mrf.mxu1  ;;  %18135 = vst [vmem:[#allocation52_spill] sm:$0xff] %v15845_v44  ;;  %v11288_v44 = vld [vmem:[%s17279_s16 + $0xe8] sm:$0xff]  }
 0x4f9   : > { %11082 = vmatprep.mubr.msk.bf16.mxu0 %vm5629_vm4, %v15481_v39  ;;  %v15838_v15 = vpop.f32.mrf.mxu0 }
 0x4fa   : > { %v15847_v4 = vpop.f32.mrf.mxu1 }
 0x4fb   : > { %10963 = vmatmul.mubr.msk.bf16.gmra.mxu1 %vm5629_vm4, %v15481_v39  ;;  %18136 = vst [vmem:[#allocation58_spill] sm:$0xff] %v15847_v4  ;;  %v15854_v20 = vpop.f32.mrf.mxu0  ;;  %v15871_v23 = vpop.permute.xlu1 %5988 }
 0x4fc   : > { %11014 = vmatprep.mubr.msk.bf16.mxu1 %vm5629_vm4, %v15053_v3  ;;  %v11287_v3 = vld [vmem:[%s17279_s16 + $0xf0] sm:$0xff]   ;;  %v15859_v55 = vpop.f32.mrf.mxu1  ;;  %18139 = vst [vmem:[#allocation64_spill] sm:$0xff] %v15871_v23 }
 0x4fd   : > { %18138 = vst [vmem:[#allocation34_spill] sm:$0xff] %v15859_v55  ;;  %v15869_v24 = vpop.f32.mrf.mxu0 }
 0x4fe   : > { %v15873_v4 = vpop.f32.mrf.mxu1 }
 0x4ff   : > { %v15884_v55 = vpop.f32.mrf.mxu0 }
 0x500   : > { %11083 = vmatmul.mubr.msk.bf16.gmra.mxu0 %vm5629_vm4, %v15506_v26  ;;  %v15886_v63 = vpop.f32.mrf.mxu1 }
 0x501   : > { %11134 = vmatprep.mubr.msk.bf16.mxu0 %vm5629_vm4, %v15090_v58  ;;  %18141 = vst [vmem:[#allocation43_spill] sm:$0xff] %v15886_v63 }
 0x502   : > { %v15903_v23 = vpop.f32.mrf.mxu1 }
 0x503   : > { %11015 = vmatmul.mubr.msk.bf16.vlgmr.msra.gmra.mxu1 %vm5629_vm4, %v15090_v58  ;;  %v15877_v58 = vpop.permute.xlu0 %5993  ;;  %18144 = vst [vmem:[#allocation97_spill] sm:$0xff] %v15903_v23 }
 0x504   : > { %11087 = vmatpush3.bf16.msra.mxu1 %v15709_v27  ;;  %11018 = vmatprep.mubr.msk.bf16.mxu1 %vm5629_vm4, %v15146_v54  ;;  %18140 = vst [vmem:[#allocation124_spill] sm:$0xff] %v15877_v58  ;;  %v11289_v27 = vld [vmem:[%s17279_s16 + $0xe0] sm:$0xff]   ;;  %v15899_v58 = vld [vmem:[%s17281_s18 + $0x8] sm:$0xff]  }
 0x505   : > { %11088 = vmatprep.subr.bf16.mxu1 %v11287_v3 }
 0x507   : > { %v15901_v0 = vpop.permute.xlu0 %6003 }
 0x508   : > { %11135 = vmatmul.mubr.msk.bf16.vlgmr.msra.gmra.mxu0 %vm5629_vm4, %v15146_v54  ;;  %11089 = vmatpush3.bf16.msra.mxu1 %v11287_v3  ;;  %v15890_v54 = vpop.f32.mrf.mxu0  ;;  %v15894_v3 = vpop.permute.xlu1 %5998  ;;  %18143 = vst [vmem:[#allocation133_spill] sm:$0xff] %v15901_v0 }
 0x509   : > { %11138 = vmatprep.mubr.msk.bf16.mxu0 %vm5629_vm4, %v15176_v51  ;;  %11090 = vmatprep.subr.bf16.mxu1 %v11288_v44  ;;  %18142 = vst [vmem:[#allocation70_spill] sm:$0xff] %v15894_v3 }
 0x50a   : > { %v15905_v63 = vpop.f32.mrf.mxu0 }
 0x50b   : > { %11019 = vmatmul.mubr.msk.bf16.gmra.mxu1 %vm5629_vm4, %v15176_v51  ;;  %v15922_v0 = vpop.permute.xlu0 %6013 }
 0x50c   : > { %11022 = vmatprep.mubr.msk.bf16.mxu1 %vm5629_vm4, %v15216_v16  ;;  %11091 = vmatpush3.bf16.msra.mxu1 %v11288_v44  ;;  %v15914_v44 = vpop.permute.xlu1 %6008  ;;  %v15918_v3 = vpop.f32.mrf.mxu0  ;;  %18148 = vst [vmem:[#allocation137_spill] sm:$0xff] %v15922_v0 }
 0x50d   : > { %11092 = vmatprep.subr.bf16.mxu1 %v11289_v27  ;;  %18146 = vst [vmem:[#allocation96_spill] sm:$0xff] %v15914_v44  ;;  %18147 = vst [vmem:[#allocation104_spill] sm:$0xff] %v15918_v3 }
 0x50e   : > { %v15909_v51 = vpop.f32.mrf.mxu1 }
 0x50f   : > { %18145 = vst [vmem:[#allocation49_spill] sm:$0xff] %v15909_v51  ;;  %v15926_v51 = vpop.f32.mrf.mxu0  ;;  %v15938_v3 = vpop.permute.xlu0 %6023 }
 0x510   : > { %11139 = vmatmul.mubr.msk.bf16.gmra.mxu0 %vm5629_vm4, %v15216_v16  ;;  %11093 = vmatpush3.bf16.msra.mxu1 %v11289_v27  ;;  %v15924_v16 = vpop.f32.mrf.mxu1  ;;  %v11601_v27 = vpop.eup %11600  ;;  %18150 = vst [vmem:[#allocation108_spill] sm:$0xff] %v15926_v51  ;;  %18154 = vst [vmem:[#allocation67_spill] sm:$0xff] %v15938_v3 }
 0x511   : > { %11142 = vmatprep.mubr.msk.bf16.mxu0 %vm5629_vm4, %v15251_v47  ;;  %11166 = vmatprep.subr.bf16.mxu1 %v15899_v58  ;;  %18149 = vst [vmem:[#allocation55_spill] sm:$0xff] %v15924_v16  ;;  %v15930_v23 = vpop.permute.xlu1 %6018  ;;  %v5210_v0 = vadd.f32 1.0, %v11601_v27 }
 0x512   : > { %18151 = vst [vmem:[#allocation61_spill] sm:$0xff] %v15930_v23  ;;  %v15932_v44 = vpop.f32.mrf.mxu1 }
 0x513   : > { %11023 = vmatmul.mubr.msk.bf16.gmra.mxu1 %vm5629_vm4, %v15251_v47  ;;  %18152 = vst [vmem:[#allocation146_spill] sm:$0xff] %v15932_v44  ;;  %11602 = vrcp.f32 %v5210_v0  ;;  %v15954_v3 = vpop.permute.xlu0 %6813 }
 0x514   : > { %11026 = vmatprep.mubr.msk.bf16.mxu1 %vm5629_vm4, %v15293_v14  ;;  %v15944_v16 = vpop.f32.mrf.mxu1  ;;  %18159 = vst [vmem:[#allocation125_spill] sm:$0xff] %v15954_v3 }
 0x515   : > { %18155 = vst [vmem:[#allocation178_spill] sm:$0xff] %v15944_v16  ;;  %v15948_v23 = vpop.permute.xlu1 %6028 }
 0x516   : > { %18157 = vst [vmem:[#allocation117_spill] sm:$0xff] %v15948_v23 }
 0x518   : > { %11143 = vmatmul.mubr.msk.bf16.gmra.mxu0 %vm5629_vm4, %v15293_v14 }
 0x519   : > { %11146 = vmatprep.mubr.msk.bf16.mxu0 %vm5629_vm4, %v15338_v50  ;;  %v15936_v47 = vpop.f32.mrf.mxu0  ;;  %v15966_v0 = vpop.permute.xlu1 %6818 }
 0x51a   : > { %18153 = vst [vmem:[#allocation111_spill] sm:$0xff] %v15936_v47  ;;  %18162 = vst [vmem:[#allocation129_spill] sm:$0xff] %v15966_v0 }
 0x51b   : > { %11027 = vmatmul.mubr.msk.bf16.gmra.mxu1 %vm5629_vm4, %v15338_v50  ;;  %v15946_v14 = vpop.f32.mrf.mxu0  ;;  %v15950_v44 = vpop.f32.mrf.mxu1 }
 0x51c   : > { %11030 = vmatprep.mubr.msk.bf16.mxu1 %vm5629_vm4, %v15373_v35  ;;  %18156 = vst [vmem:[#allocation150_spill] sm:$0xff] %v15946_v14  ;;  %18158 = vst [vmem:[#allocation121_spill] sm:$0xff] %v15950_v44 }
 0x51d   : > { %v15958_v50 = vpop.f32.mrf.mxu0  ;;  %v15960_v27 = vpop.f32.mrf.mxu1 }
 0x51e   : > { %18160 = vst [vmem:[#allocation35_spill] sm:$0xff] %v15958_v50  ;;  %18161 = vst [vmem:[#allocation39_spill] sm:$0xff] %v15960_v27  ;;  %v7553_v50 = vrot.slane %v15481_v39, 1 }
 0x51f   : > { %v15968_v23 = vpop.f32.mrf.mxu0  ;;  %v15972_v44 = vpop.f32.mrf.mxu1 }
 0x520   : > { %11147 = vmatmul.mubr.msk.bf16.gmra.mxu0 %vm5629_vm4, %v15373_v35  ;;  %18163 = vst [vmem:[#allocation38_spill] sm:$0xff] %v15968_v23  ;;  %v15970_v35 = vpop.permute.xlu0 %6823  ;;  %18165 = vst [vmem:[#allocation134_spill] sm:$0xff] %v15972_v44  ;;  %v11603_v0 = vpop.eup %11602  ;;  %v7554_v39 = vsel %vm2381_vm3, %v15461_v18, %v7553_v50 }
 0x521   : > { %11150 = vmatprep.mubr.msk.bf16.mxu0 %vm5629_vm4, %v15399_v9  ;;  %18164 = vst [vmem:[#allocation42_spill] sm:$0xff] %v15970_v35  ;;  %v15982_v27 = vpop.f32.mrf.mxu1 }
 0x522   : > { %18168 = vst [vmem:[#allocation138_spill] sm:$0xff] %v15982_v27 }
 0x523   : > { %11031 = vmatmul.mubr.msk.bf16.gmra.mxu1 %vm5629_vm4, %v15399_v9  ;;  %v15980_v9 = vpop.permute.xlu1 %6828 }
 0x524   : > { %11034 = vmatprep.mubr.msk.bf16.mxu1 %vm5629_vm4, %v15414_v30  ;;  %18167 = vst [vmem:[#allocation51_spill] sm:$0xff] %v15980_v9  ;;  %v15990_v44 = vpop.permute.xlu0 %6833 }
 0x525   : > { %v15974_v16 = vpop.f32.mrf.mxu0  ;;  %18170 = vst [vmem:[#allocation54_spill] sm:$0xff] %v15990_v44 }
 0x526   : > { %18166 = vst [vmem:[#allocation47_spill] sm:$0xff] %v15974_v16 }
 0x527   : > { %v15986_v23 = vpop.f32.mrf.mxu0 }
 0x528   : > { %11151 = vmatmul.mubr.msk.bf16.gmra.mxu0 %vm5629_vm4, %v15414_v30  ;;  %18169 = vst [vmem:[#allocation50_spill] sm:$0xff] %v15986_v23  ;;  %v5321_v30 = vmul.f32 %v11603_v0, %v15841_v10  ;;  %v16006_v23 = vpop.permute.xlu0 %6843 }
 0x529   : > { %11154 = vmatprep.mubr.msk.bf16.mxu0 %vm5629_vm4, %v15427_v53  ;;  %v15996_v14 = vpop.f32.mrf.mxu0  ;;  %18175 = vst [vmem:[#allocation62_spill] sm:$0xff] %v16006_v23 }
 0x52a   : > { %v15992_v16 = vpop.f32.mrf.mxu1  ;;  %18172 = vst [vmem:[#allocation59_spill] sm:$0xff] %v15996_v14  ;;  %v5580_v10 = vmul.f32 %v15660_v12, %v5321_v30  ;;  %v7555_v14 = vrot.slane %v15640_v62, 1 }
 0x52b   : > { %11035 = vmatmul.mubr.msk.bf16.gmra.mxu1 %vm5629_vm4, %v15427_v53  ;;  %18171 = vst [vmem:[#allocation142_spill] sm:$0xff] %v15992_v16  ;;  %v16000_v53 = vpop.permute.xlu1 %6838  ;;  %v16013_v0 = vpop.f32.mrf.mxu0 }
 0x52c   : > { %11038 = vmatprep.mubr.msk.bf16.mxu1 %vm5629_vm4, %v15444_v1  ;;  %18173 = vst [vmem:[#allocation63_spill] sm:$0xff] %v16000_v53  ;;  %v16002_v27 = vpop.f32.mrf.mxu1  ;;  %v16030_v12 = vpop.permute.xlu0 %6853  ;;  %v7556_v62 = vsel %vm2381_vm3, %v7553_v50, %v7555_v14 }
 0x52d   : > { %18174 = vst [vmem:[#allocation147_spill] sm:$0xff] %v16002_v27  ;;  %18180 = vst [vmem:[#allocation155_spill] sm:$0xff] %v16030_v12 }
 0x52e   : > { %v16017_v27 = vpop.f32.mrf.mxu1 }
 0x52f   : > { %18176 = vst [vmem:[#allocation66_spill] sm:$0xff] %v16017_v27  ;;  %v16022_v47 = vpop.permute.xlu1 %6848 }
 0x530   : > { %11155 = vmatmul.mubr.msk.bf16.gmra.mxu0 %vm5629_vm4, %v15444_v1  ;;  %v8330_v1 = vrot.slane %v15506_v26, 1  ;;  %18178 = vst [vmem:[#allocation71_spill] sm:$0xff] %v16022_v47  ;;  %v16032_v30 = vpop.f32.mrf.mxu1 }
 0x531   : > { %11158 = vmatprep.mubr.msk.bf16.mxu0 %vm5629_vm4, %v15470_v45  ;;  %18181 = vst [vmem:[#allocation74_spill] sm:$0xff] %v16032_v30 }
 0x532   : > { %v8331_v18 = vsel %vm2381_vm3, %v7553_v50, %v8330_v1 }
 0x533   : > { %11039 = vmatmul.mubr.msk.bf16.gmra.mxu1 %vm5629_vm4, %v15470_v45  ;;  %v16024_v45 = vpack.c.bf16 %v5580_v10, %v5580_v10 }
 0x534   : > { %11042 = vmatprep.mubr.msk.bf16.mxu1 %vm5629_vm4, %v7554_v39 }
 0x535   : > { %v8332_v10 = vrot.slane %v16024_v45, 1 }
 0x536   : > { %v16019_v16 = vpop.f32.mrf.mxu0 }
 0x537   : > { %18177 = vst [vmem:[#allocation151_spill] sm:$0xff] %v16019_v16  ;;  %v8333_v14 = vsel %vm2381_vm3, %v8330_v1, %v8332_v10  ;;  %v6031_v1 = vmul.f32 %v15665_v38, %v15743_v31  ;;  %v6973_v10 = vmul.f32 %v15753_v11, %v15970_v35  ;;  %v6971_v31 = vmul.f32 %v15954_v3, %v15765_v5 }
 0x538   : > { %v16026_v51 = vpop.f32.mrf.mxu0  ;;  %11159 = vmatmul.mubr.msk.bf16.gmra.mxu0 %vm5629_vm4, %v7554_v39  ;;  %v16044_v39 = vpop.permute.xlu1 %6858  ;;  %v6037_v5 = vmul.f32 %v15767_v60, %v15721_v29 }
 0x539   : > { %18179 = vst [vmem:[#allocation75_spill] sm:$0xff] %v16026_v51  ;;  %11162 = vmatprep.mubr.msk.bf16.mxu0 %vm5629_vm4, %v8331_v18  ;;  %18184 = vst [vmem:[#allocation82_spill] sm:$0xff] %v16044_v39  ;;  %v16050_v18 = vpop.permute.xlu0 %6863 }
 0x53a   : > { %v16035_v27 = vpop.f32.mrf.mxu0  ;;  %18187 = vst [vmem:[#allocation84_spill] sm:$0xff] %v16050_v18 }
 0x53b   : > { %18182 = vst [vmem:[#allocation77_spill] sm:$0xff] %v16035_v27  ;;  %v16038_v16 = vpop.f32.mrf.mxu1  ;;  %11043 = vmatmul.mubr.msk.bf16.gmra.mxu1 %vm5629_vm4, %v7556_v62 }
 0x53c   : > { %18183 = vst [vmem:[#allocation160_spill] sm:$0xff] %v16038_v16  ;;  %11094 = vmatprep.mubr.msk.bf16.mxu1 %vm5629_vm4, %v15492_v2  ;;  %v16048_v30 = vpop.f32.mrf.mxu0  ;;  %v11291_v2 = vld [vmem:[%s17281_s18] sm:$0xff]   ;;  %v16067_v16 = vpop.permute.xlu1 %6868 }
 0x53d   : > { %v16046_v51 = vpop.f32.mrf.mxu1  ;;  %18186 = vst [vmem:[#allocation164_spill] sm:$0xff] %v16048_v30  ;;  %18191 = vst [vmem:[#allocation93_spill] sm:$0xff] %v16067_v16 }
 0x53e   : > { %18185 = vst [vmem:[#allocation85_spill] sm:$0xff] %v16046_v51  ;;  %v6033_v51 = vmul.f32 %v15735_v8, %v15682_v32  ;;  %v16080_v32 = vpop.permute.xlu0 %6873 }
 0x53f   : > { %v16052_v27 = vpop.f32.mrf.mxu1  ;;  %18193 = vst [vmem:[#allocation92_spill] sm:$0xff] %v16080_v32 }
 0x540   : > { %18188 = vst [vmem:[#allocation87_spill] sm:$0xff] %v16052_v27  ;;  %v16055_v50 = vpop.f32.mrf.mxu0  ;;  %11163 = vmatmul.mubr.msk.bf16.gmra.mxu0 %vm5629_vm4, %v8333_v14 }
 0x541   : > { %v16058_v62 = vpop.f32.mrf.mxu1 }
 0x542   : > { %18189 = vst [vmem:[#allocation37_spill] sm:$0xff] %v16058_v62  ;;  %v16065_v30 = vpop.f32.mrf.mxu0 }
 0x543   : > { %18190 = vst [vmem:[#allocation90_spill] sm:$0xff] %v16065_v30  ;;  %v10856_v27 = vpop.f32.mrf.mxu1  ;;  %11095 = vmatmul.mubr.msk.bf16.vlgmr.msra.gmra.mxu1 %vm5629_vm4, %v15515_v57  ;;  %v6034_v57 = vmul.f32 %v15747_v21, %v15695_v22  ;;  %v16096_v30 = vpop.permute.xlu1 %6878 }
 0x544   : > { %v6456_v14 = vadd.f32 %v10856_v27, %v6033_v51  ;;  %11167 = vmatpush3.bf16.msra.mxu1 %v15899_v58  ;;  %11098 = vmatprep.mubr.msk.bf16.mxu1 %vm5629_vm4, %v15527_v46  ;;  %v16078_v8 = vpop.f32.mrf.mxu0  ;;  %v6974_v46 = vmul.f32 %v15775_v28, %v15980_v9  ;;  %18194 = vst [vmem:[#allocation95_spill] sm:$0xff] %v16096_v30 }
 0x545   : > { %18192 = vst [vmem:[#allocation32_spill] sm:$0xff] %v16078_v8  ;;  %v6327_v62 = vpop.f32.mrf.mxu1  ;;  %11168 = vmatprep.subr.bf16.mxu1 %v11291_v2 }
 0x546   : > { %v16086_v38 = vadd.f32 %v6973_v10, %v6456_v14  ;;  %v6454_v11 = vadd.f32 %v6327_v62, %v6031_v1  ;;  %v16088_v51 = vpop.f32.mrf.mxu0  ;;  %v16106_v10 = vpop.permute.xlu0 %6883  ;;  %v6977_v14 = vmul.f32 %v15793_v41, %v16006_v23 }
 0x547   : > { %v10857_v58 = vpop.f32.mrf.mxu1  ;;  %18195 = vst [vmem:[#allocation98_spill] sm:$0xff] %v16106_v10 }
 0x548   : > { %v16092_v27 = vadd.f32 %v6971_v31, %v6454_v11  ;;  %v6457_v35 = vadd.f32 %v10857_v58, %v6034_v57  ;;  %v16094_v8 = vpop.f32.mrf.mxu0  ;;  %11169 = vmatpush3.bf16.msra.mxu1 %v11291_v2  ;;  %v6035_v2 = vmul.f32 %v15704_v37, %v15779_v13  ;;  %v6038_v31 = vmul.f32 %v15791_v17, %v15727_v25 }
 0x549   : > { %v16098_v21 = vpop.f32.mrf.mxu1  ;;  %v6975_v11 = vmul.f32 %v15990_v44, %v15806_v33 }
 0x54a   : > { %v16102_v62 = vadd.f32 %v6974_v46, %v6457_v35  ;;  %v16104_v1 = vpop.f32.mrf.mxu0  ;;  %v16126_v46 = vpop.permute.xlu1 %6888 }
 0x54b   : > { %v10860_v28 = vpop.f32.mrf.mxu1  ;;  %11099 = vmatmul.mubr.msk.bf16.gmra.mxu1 %vm5629_vm4, %v15548_v36  ;;  %18196 = vst [vmem:[#allocation101_spill] sm:$0xff] %v16126_v46  ;;  %v16136_v33 = vpop.permute.xlu0 %6893 }
 0x54c   : > { %v6460_v57 = vadd.f32 %v10860_v28, %v6037_v5  ;;  %11102 = vmatprep.mubr.msk.bf16.mxu1 %vm5629_vm4, %v15557_v48  ;;  %v16116_v60 = vpop.f32.mrf.mxu0  ;;  %v6036_v48 = vmul.f32 %v15716_v61, %v15802_v6  ;;  %v6978_v5 = vmul.f32 %v15817_v56, %v16022_v47  ;;  %18197 = vst [vmem:[#allocation100_spill] sm:$0xff] %v16136_v33 }
 0x54d   : > { %v6343_v35 = vpop.f32.mrf.mxu1 }
 0x54e   : > { %v16122_v36 = vadd.f32 %v6977_v14, %v6460_v57  ;;  %v6458_v58 = vadd.f32 %v6343_v35, %v6035_v2  ;;  %v16124_v13 = vpop.f32.mrf.mxu0  ;;  %v6041_v2 = vmul.f32 %v15812_v49, %v15745_v59  ;;  %v6976_v57 = vmul.f32 %v16000_v53, %v15830_v34 }
 0x54f   : > { %v10861_v41 = vpop.f32.mrf.mxu1 }
 0x550   : > { %v16132_v28 = vadd.f32 %v6975_v11, %v6458_v58  ;;  %v6461_v17 = vadd.f32 %v10861_v41, %v6038_v31  ;;  %v16134_v23 = vpop.f32.mrf.mxu0  ;;  %v6039_v31 = vmul.f32 %v15731_v43, %v15821_v7  ;;  %v6981_v11 = vmul.f32 %v15838_v15, %v16050_v18  ;;  %v16158_v41 = vpop.permute.xlu1 %6898 }
 0x551   : > { %v6346_v14 = vpop.f32.mrf.mxu1  ;;  %18198 = vst [vmem:[#allocation103_spill] sm:$0xff] %v16158_v41  ;;  %v6979_v7 = vmul.f32 %v16030_v12, %v15854_v20 }
 0x552   : > { %v16142_v35 = vadd.f32 %v6978_v5, %v6461_v17  ;;  %v6459_v6 = vadd.f32 %v6346_v14, %v6036_v48  ;;  %v16144_v44 = vpop.f32.mrf.mxu0  ;;  %v16168_v14 = vpop.permute.xlu0 %6903 }
 0x553   : > { %v10864_v56 = vpop.f32.mrf.mxu1  ;;  %11103 = vmatmul.mubr.msk.bf16.gmra.mxu1 %vm5629_vm4, %v15573_v42  ;;  %v6042_v42 = vmul.f32 %v15836_v40, %v15755_v52  ;;  %18199 = vst [vmem:[#allocation109_spill] sm:$0xff] %v16168_v14 }
 0x554   : > { %v16152_v58 = vadd.f32 %v6976_v57, %v6459_v6  ;;  %v6464_v49 = vadd.f32 %v10864_v56, %v6041_v2  ;;  %11106 = vmatprep.mubr.msk.bf16.mxu1 %vm5629_vm4, %v15581_v19  ;;  %v16156_v34 = vpop.f32.mrf.mxu0  ;;  %v18200_v19 = vld [vmem:[#allocation58_spill] sm:$0xff]  ;;  %v18201_v57 = vld [vmem:[#allocation23_spill] sm:$0xff]  ;;  %v6982_v56 = vmul.f32 %v15869_v24, %v16067_v16 }
 0x555   : > { %v6359_v48 = vpop.f32.mrf.mxu1  ;;  %v6040_v6 = vmul.f32 %v18201_v57, %v18200_v19  ;;  %v16186_v19 = vpop.permute.xlu1 %6908  ;;  %v18212_v16 = vld [vmem:[#allocation43_spill] sm:$0xff] }
 0x556   : > { %v16164_v5 = vadd.f32 %v6981_v11, %v6464_v49  ;;  %v6462_v15 = vadd.f32 %v6359_v48, %v6039_v31  ;;  %v16166_v17 = vpop.f32.mrf.mxu0  ;;  %v18202_v11 = vld [vmem:[#allocation29_spill] sm:$0xff]  ;;  %v18203_v49 = vld [vmem:[#allocation34_spill] sm:$0xff]  ;;  %v6980_v48 = vmul.f32 %v16044_v39, %v15884_v55  ;;  %18204 = vst [vmem:[#allocation110_spill] sm:$0xff] %v16186_v19 }
 0x557   : > { %v10865_v2 = vpop.f32.mrf.mxu1  ;;  %v6045_v31 = vmul.f32 %v18203_v49, %v18202_v11  ;;  %v18211_v39 = vld [vmem:[#allocation30_spill] sm:$0xff] }
 0x558   : > { %v16174_v18 = vadd.f32 %v6979_v7, %v6462_v15  ;;  %v6465_v40 = vadd.f32 %v10865_v2, %v6042_v42  ;;  %v16176_v53 = vpop.f32.mrf.mxu0  ;;  %v18205_v7 = vld [vmem:[#allocation169_spill] sm:$0xff]  ;;  %v18206_v42 = vld [vmem:[#allocation114_spill] sm:$0xff]  ;;  %v6985_v2 = vmul.f32 %v15890_v54, %v16106_v10  ;;  %v18216_v10 = vld [vmem:[#allocation104_spill] sm:$0xff] }
 0x559   : > { %v6362_v20 = vpop.f32.mrf.mxu1  ;;  %v6043_v15 = vmul.f32 %v18206_v42, %v15873_v4  ;;  %v6983_v4 = vmul.f32 %v16080_v32, %v15905_v63  ;;  %v6986_v42 = vmul.f32 %v18216_v10, %v16126_v46 }
 0x55a   : > { %v16182_v12 = vadd.f32 %v6982_v56, %v6465_v40  ;;  %v6463_v47 = vadd.f32 %v6362_v20, %v6040_v6  ;;  %v16184_v9 = vpop.f32.mrf.mxu0  ;;  %v18208_v56 = vld [vmem:[#allocation16_spill] sm:$0xff]  ;;  %v16200_v40 = vpop.permute.xlu0 %6913 }
 0x55b   : > { %v10868_v24 = vpop.f32.mrf.mxu1  ;;  %11107 = vmatmul.mubr.msk.bf16.gmra.mxu1 %vm5629_vm4, %v18205_v7  ;;  %18210 = vst [vmem:[#allocation168_spill] sm:$0xff] %v16200_v40  ;;  %v6046_v7 = vmul.f32 %v18212_v16, %v18211_v39  ;;  %v16218_v16 = vpop.permute.xlu1 %6918 }
 0x55c   : > { %v16194_v49 = vadd.f32 %v6980_v48, %v6463_v47  ;;  %v6468_v55 = vadd.f32 %v10868_v24, %v6045_v31  ;;  %11110 = vmatprep.mubr.msk.bf16.mxu1 %vm5629_vm4, %v18208_v56  ;;  %v16198_v6 = vpop.f32.mrf.mxu0  ;;  %v18214_v48 = vld [vmem:[#allocation97_spill] sm:$0xff]  ;;  %v18215_v24 = vld [vmem:[#allocation27_spill] sm:$0xff]  ;;  %18219 = vst [vmem:[#allocation187_spill] sm:$0xff] %v16218_v16 }
 0x55d   : > { %18209 = vst [vmem:[#allocation113_spill] sm:$0xff] %v16198_v6  ;;  %v6375_v20 = vpop.f32.mrf.mxu1  ;;  %v6044_v56 = vmul.f32 %v18215_v24, %v18214_v48 }
 0x55e   : > { %18207 = vst [vmem:[#allocation112_spill] sm:$0xff] %v16194_v49  ;;  %v16206_v3 = vadd.f32 %v6985_v2, %v6468_v55  ;;  %v6466_v54 = vadd.f32 %v6375_v20, %v6043_v15  ;;  %v16208_v47 = vpop.f32.mrf.mxu0  ;;  %v18220_v2 = vld [vmem:[#allocation40_spill] sm:$0xff]  ;;  %v18221_v55 = vld [vmem:[#allocation49_spill] sm:$0xff]  ;;  %v16228_v10 = vpop.permute.xlu0 %6923 }
 0x55f   : > { %18213 = vst [vmem:[#allocation18_spill] sm:$0xff] %v16208_v47  ;;  %v10869_v31 = vpop.f32.mrf.mxu1  ;;  %v6049_v15 = vmul.f32 %v18221_v55, %v18220_v2  ;;  %v18222_v20 = vld [vmem:[#allocation108_spill] sm:$0xff]  ;;  %18225 = vst [vmem:[#allocation48_spill] sm:$0xff] %v16228_v10  ;;  %v18269_v47 = vld [vmem:[#allocation142_spill] sm:$0xff] }
 0x560   : > { %v16214_v6 = vadd.f32 %v6983_v4, %v6466_v54  ;;  %v6469_v11 = vadd.f32 %v10869_v31, %v6046_v7  ;;  %v16216_v49 = vpop.f32.mrf.mxu0  ;;  %v6984_v32 = vmul.f32 %v16096_v30, %v18222_v20  ;;  %v18226_v7 = vld [vmem:[#allocation175_spill] sm:$0xff]  ;;  %v18228_v31 = vld [vmem:[#allocation60_spill] sm:$0xff]  ;;  %v18234_v30 = vld [vmem:[#allocation146_spill] sm:$0xff] }
 0x561   : > { %18218 = vst [vmem:[#allocation185_spill] sm:$0xff] %v16216_v49  ;;  %v6378_v63 = vpop.f32.mrf.mxu1  ;;  %v18227_v54 = vld [vmem:[#allocation55_spill] sm:$0xff] }
 0x562   : > { %18217 = vst [vmem:[#allocation180_spill] sm:$0xff] %v16214_v6  ;;  %v16224_v39 = vadd.f32 %v6986_v42, %v6469_v11  ;;  %v6467_v48 = vadd.f32 %v6378_v63, %v6044_v56  ;;  %v16226_v24 = vpop.f32.mrf.mxu0  ;;  %v6047_v46 = vmul.f32 %v18228_v31, %v18227_v54  ;;  %v18229_v49 = vld [vmem:[#allocation111_spill] sm:$0xff]  ;;  %v18231_v11 = vld [vmem:[#allocation17_spill] sm:$0xff]  ;;  %v18233_v63 = vld [vmem:[#allocation46_spill] sm:$0xff] }
 0x563   : > { %18224 = vst [vmem:[#allocation44_spill] sm:$0xff] %v16226_v24  ;;  %v10872_v4 = vpop.f32.mrf.mxu1  ;;  %11111 = vmatmul.mubr.msk.bf16.gmra.mxu1 %vm5629_vm4, %v18226_v7  ;;  %v6989_v55 = vmul.f32 %v18229_v49, %v16168_v14  ;;  %v6050_v24 = vmul.f32 %v18234_v30, %v18233_v63 }
 0x564   : > { %18223 = vst [vmem:[#allocation45_spill] sm:$0xff] %v16224_v39  ;;  %v16236_v2 = vadd.f32 %v6984_v32, %v6467_v48  ;;  %v6472_v20 = vadd.f32 %v10872_v4, %v6049_v15  ;;  %11114 = vmatprep.mubr.msk.bf16.mxu1 %vm5629_vm4, %v18231_v11  ;;  %v16240_v42 = vpop.f32.mrf.mxu0  ;;  %v18235_v39 = vld [vmem:[#allocation150_spill] sm:$0xff]  ;;  %v16250_v32 = vpop.permute.xlu1 %6928  ;;  %v18240_v48 = vld [vmem:[#allocation33_spill] sm:$0xff]  ;;  %v18241_v11 = vld [vmem:[#allocation35_spill] sm:$0xff] }
 0x565   : > { %18232 = vst [vmem:[#allocation57_spill] sm:$0xff] %v16240_v42  ;;  %v6391_v56 = vpop.f32.mrf.mxu1  ;;  %v6987_v7 = vmul.f32 %v16136_v33, %v18235_v39  ;;  %18238 = vst [vmem:[#allocation69_spill] sm:$0xff] %v16250_v32  ;;  %v18239_v15 = vld [vmem:[#allocation178_spill] sm:$0xff]  ;;  %v6990_v14 = vmul.f32 %v18241_v11, %v16186_v19  ;;  %v16260_v39 = vpop.permute.xlu0 %6933 }
 0x566   : > { %18230 = vst [vmem:[#allocation53_spill] sm:$0xff] %v16236_v2  ;;  %v16246_v6 = vadd.f32 %v6989_v55, %v6472_v20  ;;  %v6470_v54 = vadd.f32 %v6391_v56, %v6047_v46  ;;  %v16248_v31 = vpop.f32.mrf.mxu0  ;;  %v6048_v4 = vmul.f32 %v18240_v48, %v18239_v15  ;;  %18244 = vst [vmem:[#allocation76_spill] sm:$0xff] %v16260_v39  ;;  %v18245_v46 = vld [vmem:[#allocation36_spill] sm:$0xff]  ;;  %v18246_v20 = vld [vmem:[#allocation121_spill] sm:$0xff] }
 0x567   : > { %18237 = vst [vmem:[#allocation65_spill] sm:$0xff] %v16248_v31  ;;  %v10873_v49 = vpop.f32.mrf.mxu1  ;;  %v6053_v56 = vmul.f32 %v18246_v20, %v18245_v46  ;;  %v18247_v33 = vld [vmem:[#allocation38_spill] sm:$0xff]  ;;  %v18268_v2 = vld [vmem:[#allocation133_spill] sm:$0xff] }
 0x568   : > { %18236 = vst [vmem:[#allocation56_spill] sm:$0xff] %v16246_v6  ;;  %v16256_v42 = vadd.f32 %v6987_v7, %v6470_v54  ;;  %v6473_v30 = vadd.f32 %v10873_v49, %v6050_v24  ;;  %v16258_v63 = vpop.f32.mrf.mxu0  ;;  %v6988_v31 = vmul.f32 %v16158_v41, %v18247_v33  ;;  %v18250_v7 = vld [vmem:[#allocation24_spill] sm:$0xff]  ;;  %v8084_v24 = vshll.u32 %v15506_v26, 16  ;;  %v18251_v54 = vld [vmem:[#allocation39_spill] sm:$0xff]  ;;  %v18259_v41 = vld [vmem:[#allocation134_spill] sm:$0xff] }
 0x569   : > { %18243 = vst [vmem:[#allocation72_spill] sm:$0xff] %v16258_v63  ;;  %v6394_v55 = vpop.f32.mrf.mxu1  ;;  %v18252_v49 = vld [vmem:[#allocation120_spill] sm:$0xff]  ;;  %v18253_v63 = vld [vmem:[#allocation47_spill] sm:$0xff] }
 0x56a   : > { %18242 = vst [vmem:[#allocation68_spill] sm:$0xff] %v16256_v42  ;;  %v16266_v6 = vadd.f32 %v6990_v14, %v6473_v30  ;;  %v6471_v15 = vadd.f32 %v6394_v55, %v6048_v4  ;;  %v16268_v48 = vpop.f32.mrf.mxu0  ;;  %v6051_v19 = vmul.f32 %v18252_v49, %v18251_v54  ;;  %v6993_v20 = vmul.f32 %v18253_v63, %v16228_v10  ;;  %v18255_v14 = vld [vmem:[#allocation177_spill] sm:$0xff]  ;;  %v16283_v30 = vpop.permute.xlu1 %6938  ;;  %v18264_v10 = vld [vmem:[#allocation138_spill] sm:$0xff]  ;;  %v18265_v49 = vld [vmem:[#allocation52_spill] sm:$0xff] }
 0x56b   : > { %18249 = vst [vmem:[#allocation79_spill] sm:$0xff] %v16268_v48  ;;  %v10876_v11 = vpop.f32.mrf.mxu1  ;;  %11115 = vmatmul.mubr.msk.bf16.gmra.mxu1 %vm5629_vm4, %v18250_v7  ;;  %18257 = vst [vmem:[#allocation89_spill] sm:$0xff] %v16283_v30  ;;  %v18258_v7 = vld [vmem:[#allocation64_spill] sm:$0xff] }
 0x56c   : > { %18248 = vst [vmem:[#allocation80_spill] sm:$0xff] %v16266_v6  ;;  %v16277_v46 = vadd.f32 %v6988_v31, %v6471_v15  ;;  %v6476_v33 = vadd.f32 %v10876_v11, %v6053_v56  ;;  %11118 = vmatprep.mubr.msk.bf16.mxu1 %vm5629_vm4, %v18255_v14  ;;  %v16281_v4 = vpop.f32.mrf.mxu0  ;;  %v6054_v48 = vmul.f32 %v18259_v41, %v18258_v7  ;;  %v18260_v6 = vld [vmem:[#allocation50_spill] sm:$0xff]  ;;  %v16293_v15 = vpop.permute.xlu0 %6943  ;;  %v8086_v14 = vrot.slane %v8084_v24, 1  ;;  %v18266_v41 = vld [vmem:[#allocation59_spill] sm:$0xff]  ;;  %v11618_v42 = vld [vmem:[%s11847_s24 + $0x30] sm:$0xff] }
 0x56d   : > { %18256 = vst [vmem:[#allocation86_spill] sm:$0xff] %v16281_v4  ;;  %v6407_v55 = vpop.f32.mrf.mxu1  ;;  %v6991_v54 = vmul.f32 %v16200_v40, %v18260_v6  ;;  %18263 = vst [vmem:[#allocation127_spill] sm:$0xff] %v16293_v15  ;;  %v6052_v4 = vmul.f32 %v18265_v49, %v18264_v10  ;;  %v6994_v7 = vmul.f32 %v18266_v41, %v16250_v32  ;;  %v11616_v40 = vld [vmem:[%s11847_s24 + $0x20] sm:$0xff]  ;;  %v18273_v32 = vld [vmem:[#allocation179_spill] sm:$0xff] }
 0x56e   : > { %18254 = vst [vmem:[#allocation83_spill] sm:$0xff] %v16277_v46  ;;  %v16289_v63 = vadd.f32 %v6993_v20, %v6476_v33  ;;  %v6474_v31 = vadd.f32 %v6407_v55, %v6051_v19  ;;  %v16291_v56 = vpop.f32.mrf.mxu0  ;;  %v8092_v19 = vshll.u32 %v16024_v45, 16  ;;  %v11615_v55 = vld [vmem:[%s11847_s24 + $0x28] sm:$0xff]  ;;  %v6057_v10 = vmul.f32 %v18269_v47, %v18268_v2 }
 0x56f   : > { %18262 = vst [vmem:[#allocation126_spill] sm:$0xff] %v16291_v56  ;;  %v10877_v11 = vpop.f32.mrf.mxu1  ;;  %v8628_v56 = vpack.c.bf16 %v11615_v55, %v11616_v40  ;;  %v6992_v41 = vmul.f32 %v16218_v16, %v16013_v0  ;;  %v18274_v40 = vld [vmem:[#allocation19_spill] sm:$0xff]  ;;  %v18276_v55 = vld [vmem:[#allocation124_spill] sm:$0xff] }
 0x570   : > { %18261 = vst [vmem:[#allocation88_spill] sm:$0xff] %v16289_v63  ;;  %v16299_v46 = vadd.f32 %v6991_v54, %v6474_v31  ;;  %v6477_v6 = vadd.f32 %v10877_v11, %v6054_v48  ;;  %v16301_v20 = vpop.f32.mrf.mxu0  ;;  %v11617_v63 = vld [vmem:[%s11847_s24 + $0x38] sm:$0xff]  ;;  %v16316_v11 = vpop.permute.xlu1 %6948  ;;  %v18277_v2 = vld [vmem:[#allocation151_spill] sm:$0xff] }
 0x571   : > { %18267 = vst [vmem:[#allocation128_spill] sm:$0xff] %v16301_v20  ;;  %v6410_v33 = vpop.f32.mrf.mxu1  ;;  %v8629_v24 = vpack.c.bf16 %v11617_v63, %v11618_v42  ;;  %18272 = vst [vmem:[#allocation132_spill] sm:$0xff] %v16316_v11  ;;  %v8087_v42 = vsel %vm1934_vm2, %v18274_v40, %v8086_v14  ;;  %v18275_v63 = vld [vmem:[#allocation147_spill] sm:$0xff]  ;;  %v6997_v0 = vmul.f32 %v18277_v2, %v16293_v15  ;;  %v8673_v40 = vrot.slane %v8628_v56, 1  ;;  %v18285_v15 = vld [vmem:[#allocation70_spill] sm:$0xff] }
 0x572   : > { %v16312_v54 = vadd.f32 %v6994_v7, %v6477_v6  ;;  %v6475_v48 = vadd.f32 %v6410_v33, %v6052_v4  ;;  %v16314_v31 = vpop.f32.mrf.mxu0  ;;  %v6055_v47 = vmul.f32 %v18276_v55, %v18275_v63  ;;  %v16331_v33 = vpop.permute.xlu0 %6953  ;;  %v18281_v63 = vld [vmem:[#allocation66_spill] sm:$0xff]  ;;  %v18282_v20 = vld [vmem:[#allocation75_spill] sm:$0xff]  ;;  %v18286_v56 = vld [vmem:[#allocation77_spill] sm:$0xff] }
 0x573   : > { %18271 = vst [vmem:[#allocation131_spill] sm:$0xff] %v16314_v31  ;;  %v10880_v45 = vpop.f32.mrf.mxu1  ;;  %11119 = vmatmul.mubr.msk.bf16.gmra.mxu1 %vm5629_vm4, %v18273_v32  ;;  %18279 = vst [vmem:[#allocation123_spill] sm:$0xff] %v16331_v33  ;;  %v8088_v32 = vshrl.u32 %v15506_v26, 16  ;;  %v8094_v31 = vrot.slane %v8092_v19, 1  ;;  %v8674_v49 = vrot.slane %v8629_v24, 1  ;;  %v6995_v2 = vmul.f32 %v16260_v39, %v18282_v20  ;;  %v18284_v26 = vld [vmem:[#allocation74_spill] sm:$0xff] }
 0x574   : > { %18270 = vst [vmem:[#allocation130_spill] sm:$0xff] %v16312_v54  ;;  %v16326_v7 = vadd.f32 %v6992_v41, %v6475_v48  ;;  %v6480_v4 = vadd.f32 %v10880_v45, %v6057_v10  ;;  %11122 = vmatprep.mubr.msk.bf16.mxu1 %vm5629_vm4, %v8087_v42  ;;  %v16329_v6 = vpop.f32.mrf.mxu0  ;;  %v18280_v54 = vld [vmem:[#allocation96_spill] sm:$0xff]  ;;  %v6056_v19 = vmul.f32 %v18285_v15, %v18284_v26  ;;  %v16350_v20 = vpop.permute.xlu1 %6958  ;;  %v18289_v39 = vld [vmem:[#allocation67_spill] sm:$0xff] }
 0x575   : > { %18278 = vst [vmem:[#allocation122_spill] sm:$0xff] %v16329_v6  ;;  %v6423_v16 = vpop.f32.mrf.mxu1  ;;  %v6058_v55 = vmul.f32 %v18281_v63, %v18280_v54  ;;  %v8090_v45 = vor.u32 %v8088_v32, %v8086_v14  ;;  %v6998_v24 = vmul.f32 %v18286_v56, %v16316_v11  ;;  %18288 = vst [vmem:[#allocation135_spill] sm:$0xff] %v16350_v20  ;;  %v11619_v14 = vld [vmem:[%s11847_s24 + $0x58] sm:$0xff]  ;;  %v18290_v26 = vld [vmem:[#allocation160_spill] sm:$0xff] }
 0x576   : > { %v16338_v10 = vadd.f32 %v6997_v0, %v6480_v4  ;;  %v6478_v41 = vadd.f32 %v6423_v16, %v6055_v47  ;;  %v16340_v48 = vpop.f32.mrf.mxu0  ;;  %v8675_v47 = vsel %vm2381_vm3, %v8673_v40, %v8674_v49  ;;  %v11620_v4 = vld [vmem:[%s11847_s24 + $0x50] sm:$0xff]  ;;  %v6061_v15 = vmul.f32 %v18290_v26, %v18289_v39  ;;  %v18292_v56 = vld [vmem:[#allocation2_spill] sm:$0xff]  ;;  %v18293_v11 = vld [vmem:[#allocation3_spill] sm:$0xff] }
 0x577   : > { %18283 = vst [vmem:[#allocation91_spill] sm:$0xff] %v16340_v48  ;;  %v10881_v42 = vpop.f32.mrf.mxu1  ;;  %v8095_v16 = vsel %vm1934_vm2, %v8090_v45, %v8094_v31  ;;  %v8631_v32 = vpack.c.bf16 %v11619_v14, %v11620_v4  ;;  %v18291_v48 = vld [vmem:[#allocation164_spill] sm:$0xff]  ;;  %v16367_v45 = vpop.permute.xlu0 %6963  ;;  %v18296_v14 = vld [vmem:[#allocation85_spill] sm:$0xff] }
 0x578   : > { %v16346_v6 = vadd.f32 %v6995_v2, %v6478_v41  ;;  %v6481_v63 = vadd.f32 %v10881_v42, %v6058_v55  ;;  %v16348_v54 = vpop.f32.mrf.mxu0  ;;  %v6996_v2 = vmul.f32 %v16283_v30, %v18291_v48  ;;  %18295 = vst [vmem:[#allocation136_spill] sm:$0xff] %v16367_v45  ;;  %v18297_v4 = vld [vmem:[#allocation137_spill] sm:$0xff]  ;;  %v7001_v48 = vmul.f32 %v16055_v50, %v16367_v45 }
 0x579   : > { %18287 = vst [vmem:[#allocation94_spill] sm:$0xff] %v16348_v54  ;;  %v6426_v0 = vpop.f32.mrf.mxu1  ;;  %v18294_v54 = vpack.c.bf16 %v18292_v56, %v18293_v11  ;;  %v6059_v26 = vmul.f32 %v18297_v4, %v18296_v14  ;;  %v18300_v56 = vld [vmem:[#allocation87_spill] sm:$0xff] }
 0x57a   : > { %v16360_v41 = vadd.f32 %v6998_v24, %v6481_v63  ;;  %v6479_v55 = vadd.f32 %v6426_v0, %v6056_v19  ;;  %v16362_v42 = vpop.f32.mrf.mxu0  ;;  %v18299_v0 = vld [vmem:[#allocation117_spill] sm:$0xff] }
 0x57b   : > { %v8676_v31 = vrot.slane %v18294_v54, 1  ;;  %v10884_v40 = vpop.f32.mrf.mxu1  ;;  %11123 = vmatmul.mubr.msk.bf16.gmra.mxu1 %vm5629_vm4, %v8095_v16  ;;  %v8678_v54 = vrot.slane %v8631_v32, 1  ;;  %v6062_v30 = vmul.f32 %v18300_v56, %v18299_v0  ;;  %v18301_v16 = vld [vmem:[#allocation90_spill] sm:$0xff]  ;;  %v18305_v32 = vld [vmem:[#allocation61_spill] sm:$0xff] }
 0x57c   : > { %v16374_v24 = vadd.f32 %v6996_v2, %v6479_v55  ;;  %v6484_v19 = vadd.f32 %v10884_v40, %v6061_v15  ;;  %v16376_v63 = vpop.f32.mrf.mxu0  ;;  %11170 = vmatprep.mubr.msk.bf16.mxu1 %vm1391_vm1, %v8675_v47  ;;  %v6999_v14 = vmul.f32 %v16331_v33, %v18301_v16  ;;  %v16387_v15 = vpop.permute.xlu1 %6968  ;;  %v18304_v40 = vld [vmem:[#allocation37_spill] sm:$0xff] }
 0x57d   : > { %18298 = vst [vmem:[#allocation139_spill] sm:$0xff] %v16376_v63  ;;  %v6439_v11 = vpop.f32.mrf.mxu1  ;;  %18303 = vst [vmem:[#allocation140_spill] sm:$0xff] %v16387_v15  ;;  %v8677_v47 = vsel %vm2381_vm3, %v8674_v49, %v8676_v31  ;;  %v6060_v45 = vmul.f32 %v18305_v32, %v18304_v40  ;;  %v18306_v63 = vld [vmem:[#allocation32_spill] sm:$0xff]  ;;  %v7000_v49 = vmul.f32 %v16350_v20, %v16088_v51 }
 0x57e   : > { %v16383_v4 = vadd.f32 %v7001_v48, %v6484_v19  ;;  %v6482_v50 = vadd.f32 %v6439_v11, %v6059_v26  ;;  %v16385_v2 = vpop.f32.mrf.mxu0  ;;  %v7002_v56 = vmul.f32 %v18306_v63, %v16387_v15  ;;  %v8679_v26 = vsel %vm2381_vm3, %v8676_v31, %v8678_v54  ;;  %v11621_v19 = vld [vmem:[%s11847_s24 + $0x78] sm:$0xff]  ;;  %v11622_v11 = vld [vmem:[%s11847_s24 + $0x70] sm:$0xff]  ;;  %v18310_v31 = vld [vmem:[#allocation183_spill] sm:$0xff] }
 0x57f   : > { %18302 = vst [vmem:[#allocation99_spill] sm:$0xff] %v16385_v2  ;;  %v10885_v55 = vpop.f32.mrf.mxu1  ;;  %v8633_v33 = vpack.c.bf16 %v11621_v19, %v11622_v11  ;;  %v18312_v51 = vld [vmem:[#allocation4_spill] sm:$0xff] }
 0x580   : > { %v16394_v0 = vadd.f32 %v6999_v14, %v6482_v50  ;;  %v6485_v39 = vadd.f32 %v10885_v55, %v6062_v30  ;;  %v16396_v16 = vpop.f32.mrf.mxu0  ;;  %v18308_v30 = vld [vmem:[#allocation41_spill] sm:$0xff]  ;;  %v18309_v14 = vld [vmem:[#allocation20_spill] sm:$0xff] }
 0x581   : > { %18307 = vst [vmem:[#allocation141_spill] sm:$0xff] %v16396_v16  ;;  %v6442_v48 = vpop.f32.mrf.mxu1  ;;  %v6032_v50 = vmul.f32 %v18309_v14, %v18308_v30  ;;  %v8682_v19 = vrot.slane %v8633_v33, 1 }
 0x582   : > { %v16403_v2 = vadd.f32 %v7002_v56, %v6485_v39  ;;  %v6483_v40 = vadd.f32 %v6442_v48, %v6060_v45  ;;  %v16405_v32 = vpop.f32.mrf.mxu0  ;;  %v18313_v39 = vld [vmem:[#allocation5_spill] sm:$0xff] }
 0x583   : > { %v10936_v63 = vpop.f32.mrf.mxu1  ;;  %11171 = vmatmul.mubr.msk.bf16.vlgmr.msra.gmra.mxu1 %vm1391_vm1, %v8677_v47  ;;  %v18314_v56 = vpack.c.bf16 %v18312_v51, %v18313_v39  ;;  %v6455_v47 = vadd.f32 %v16098_v21, %v6032_v50  ;;  %v11623_v50 = vld [vmem:[%s11847_s24 + $0x98] sm:$0xff] }
 0x584   : > { %v16410_v55 = vadd.f32 %v7000_v49, %v6483_v40  ;;  %v7235_v15 = vmul.f32 %v10936_v63, %v18310_v31  ;;  %v16413_v16 = vpop.f32.mrf.mxu0  ;;  %11174 = vmatprep.mubr.msk.bf16.mxu1 %vm1391_vm1, %v8679_v26  ;;  %v18315_v49 = vld [vmem:[#allocation26_spill] sm:$0xff]  ;;  %v18316_v63 = vld [vmem:[#allocation31_spill] sm:$0xff]  ;;  %v18317_v31 = vld [vmem:[#allocation129_spill] sm:$0xff] }
 0x585   : > { %18311 = vst [vmem:[#allocation102_spill] sm:$0xff] %v16413_v16  ;;  %v8680_v45 = vrot.slane %v18314_v56, 1  ;;  %v7106_v48 = vpop.f32.mrf.mxu1  ;;  %v6972_v20 = vmul.f32 %v18317_v31, %v18316_v63  ;;  %v11624_v56 = vld [vmem:[%s11847_s24 + $0x90] sm:$0xff] }
 0x586   : > { %v7267_v11 = vadd.f32 %v7235_v15, %v16086_v38  ;;  %v7233_v40 = vmul.f32 %v7106_v48, %v18315_v49  ;;  %v16422_v30 = vpop.f32.mrf.mxu0  ;;  %v8635_v48 = vpack.c.bf16 %v11623_v50, %v11624_v56 }
 0x587   : > { %v10937_v26 = vpop.f32.mrf.mxu1  ;;  %v8681_v33 = vsel %vm2381_vm3, %v8678_v54, %v8680_v45  ;;  %v8683_v15 = vsel %vm2381_vm3, %v8680_v45, %v8682_v19  ;;  %v7004_v49 = vadd.f32 %v6972_v20, %v6455_v47  ;;  %v18318_v20 = vld [vmem:[#allocation6_spill] sm:$0xff]  ;;  %v18319_v47 = vld [vmem:[#allocation7_spill] sm:$0xff] }
 0x588   : > { %v7265_v16 = vadd.f32 %v7233_v40, %v16092_v27  ;;  %v7236_v51 = vmul.f32 %v10937_v26, %v15695_v22  ;;  %v16428_v39 = vpop.f32.mrf.mxu0  ;;  %v16432_v21 = vadd.f32 %v16094_v8, %v7267_v11 }
 0x589   : > { %v7109_v38 = vpop.f32.mrf.mxu1 }
 0x58a   : > { %v7268_v63 = vadd.f32 %v7236_v51, %v16102_v62  ;;  %v7234_v27 = vmul.f32 %v7109_v38, %v18309_v14  ;;  %v16439_v40 = vpop.f32.mrf.mxu0  ;;  %v16442_v26 = vadd.f32 %v16104_v1, %v7265_v16  ;;  %v18320_v62 = vpack.c.bf16 %v18318_v20, %v18319_v47  ;;  %v11626_v47 = vld [vmem:[%s11847_s24 + $0xb0] sm:$0xff] }
 0x58b   : > { %v10940_v54 = vpop.f32.mrf.mxu1  ;;  %11175 = vmatmul.mubr.msk.bf16.gmra.mxu1 %vm1391_vm1, %v8681_v33  ;;  %v8686_v16 = vrot.slane %v8635_v48, 1 }
 0x58c   : > { %v7266_v8 = vadd.f32 %v7234_v27, %v7004_v49  ;;  %v7239_v11 = vmul.f32 %v10940_v54, %v15721_v29  ;;  %v16446_v45 = vpop.f32.mrf.mxu0  ;;  %11178 = vmatprep.mubr.msk.bf16.mxu1 %vm1391_vm1, %v8683_v15  ;;  %v8684_v51 = vrot.slane %v18320_v62, 1  ;;  %v16453_v38 = vadd.f32 %v16116_v60, %v7268_v63 }
 0x58d   : > { %v7122_v1 = vpop.f32.mrf.mxu1 }
 0x58e   : > { %v7271_v33 = vadd.f32 %v7239_v11, %v16122_v36  ;;  %v7237_v49 = vmul.f32 %v7122_v1, %v15704_v37  ;;  %v16457_v50 = vpop.f32.mrf.mxu0  ;;  %v16460_v56 = vadd.f32 %v16124_v13, %v7266_v8  ;;  %v8685_v60 = vsel %vm2381_vm3, %v8682_v19, %v8684_v51  ;;  %v11625_v11 = vld [vmem:[%s11847_s24 + $0xb8] sm:$0xff] }
 0x58f   : > { %v10941_v15 = vpop.f32.mrf.mxu1  ;;  %v8687_v63 = vsel %vm2381_vm3, %v8684_v51, %v8686_v16  ;;  %v8637_v62 = vpack.c.bf16 %v11625_v11, %v11626_v47 }
 0x590   : > { %v7269_v27 = vadd.f32 %v7237_v49, %v16132_v28  ;;  %v7240_v54 = vmul.f32 %v10941_v15, %v15727_v25  ;;  %v16464_v20 = vpop.f32.mrf.mxu0  ;;  %v16468_v48 = vadd.f32 %v16134_v23, %v7271_v33  ;;  %v18323_v33 = vld [vmem:[#allocation8_spill] sm:$0xff] }
 0x591   : > { %v7125_v36 = vpop.f32.mrf.mxu1 }
 0x592   : > { %v7272_v13 = vadd.f32 %v7240_v54, %v16142_v35  ;;  %v7238_v8 = vmul.f32 %v7125_v36, %v15716_v61  ;;  %v16475_v28 = vpop.f32.mrf.mxu0  ;;  %v16478_v1 = vadd.f32 %v16144_v44, %v7269_v27  ;;  %v18324_v35 = vld [vmem:[#allocation9_spill] sm:$0xff]  ;;  %v8690_v36 = vrot.slane %v8637_v62, 1 }
 0x593   : > { %18321 = vst [vmem:[#allocation105_spill] sm:$0xff] %v16475_v28  ;;  %v10944_v49 = vpop.f32.mrf.mxu1  ;;  %11179 = vmatmul.mubr.msk.bf16.gmra.mxu1 %vm1391_vm1, %v8685_v60  ;;  %v18325_v15 = vpack.c.bf16 %v18323_v33, %v18324_v35  ;;  %v18358_v61 = vld [vmem:[#allocation33_spill] sm:$0xff] }
 0x594   : > { %v7270_v23 = vadd.f32 %v7238_v8, %v16152_v58  ;;  %v7243_v19 = vmul.f32 %v10944_v49, %v15745_v59  ;;  %v16483_v51 = vpop.f32.mrf.mxu0  ;;  %11182 = vmatprep.mubr.msk.bf16.mxu1 %vm1391_vm1, %v8687_v63  ;;  %v16490_v44 = vadd.f32 %v16156_v34, %v7272_v13  ;;  %v11627_v13 = vld [vmem:[%s11847_s24 + $0xd8] sm:$0xff] }
 0x595   : > { %18322 = vst [vmem:[#allocation143_spill] sm:$0xff] %v16483_v51  ;;  %v8688_v54 = vrot.slane %v18325_v15, 1  ;;  %v7138_v27 = vpop.f32.mrf.mxu1  ;;  %v18359_v51 = vld [vmem:[#allocation79_spill] sm:$0xff] }
 0x596   : > { %v7275_v60 = vadd.f32 %v7243_v19, %v16164_v5  ;;  %v7241_v58 = vmul.f32 %v7138_v27, %v15731_v43  ;;  %v16495_v11 = vadd.f32 %v16166_v17, %v7270_v23  ;;  %v16499_v49 = vpop.f32.mrf.mxu0  ;;  %v11628_v19 = vld [vmem:[%s11847_s24 + $0xd0] sm:$0xff]  ;;  %v18341_v43 = vld [vmem:[#allocation27_spill] sm:$0xff] }
 0x597   : > { %v10945_v47 = vpop.f32.mrf.mxu1  ;;  %18326 = vst [vmem:[#allocation144_spill] sm:$0xff] %v16499_v49  ;;  %v8689_v33 = vsel %vm2381_vm3, %v8686_v16, %v8688_v54  ;;  %v8691_v5 = vsel %vm2381_vm3, %v8688_v54, %v8690_v36  ;;  %v8639_v35 = vpack.c.bf16 %v11627_v13, %v11628_v19  ;;  %v18327_v16 = vld [vmem:[#allocation112_spill] sm:$0xff]  ;;  %v18330_v54 = vld [vmem:[#allocation10_spill] sm:$0xff] }
 0x598   : > { %v7273_v63 = vadd.f32 %v7241_v58, %v16174_v18  ;;  %v7244_v8 = vmul.f32 %v10945_v47, %v15755_v52  ;;  %v16503_v34 = vadd.f32 %v16176_v53, %v7275_v60  ;;  %v16515_v53 = vpop.f32.mrf.mxu0  ;;  %v18329_v60 = vld [vmem:[#allocation29_spill] sm:$0xff]  ;;  %v18331_v47 = vld [vmem:[#allocation11_spill] sm:$0xff]  ;;  %v18334_v19 = vld [vmem:[#allocation114_spill] sm:$0xff] }
 0x599   : > { %v7141_v62 = vpop.f32.mrf.mxu1  ;;  %18328 = vst [vmem:[#allocation106_spill] sm:$0xff] %v16515_v53  ;;  %v18332_v13 = vpack.c.bf16 %v18330_v54, %v18331_v47  ;;  %v18338_v47 = vld [vmem:[#allocation30_spill] sm:$0xff] }
 0x59a   : > { %v7276_v17 = vadd.f32 %v7244_v8, %v16182_v12  ;;  %v7242_v23 = vmul.f32 %v7141_v62, %v18201_v57  ;;  %v16511_v18 = vadd.f32 %v16184_v9, %v7273_v63  ;;  %v18333_v8 = vld [vmem:[#allocation113_spill] sm:$0xff]  ;;  %v8694_v62 = vrot.slane %v8639_v35, 1 }
 0x59b   : > { %v10948_v15 = vpop.f32.mrf.mxu1  ;;  %11183 = vmatmul.mubr.msk.bf16.gmra.mxu1 %vm1391_vm1, %v8689_v33  ;;  %v8692_v12 = vrot.slane %v18332_v13, 1 }
 0x59c   : > { %v7274_v27 = vadd.f32 %v7242_v23, %v18327_v16  ;;  %v7247_v58 = vmul.f32 %v10948_v15, %v18329_v60  ;;  %11186 = vmatprep.mubr.msk.bf16.mxu1 %vm1391_vm1, %v8691_v5  ;;  %v16523_v9 = vadd.f32 %v18333_v8, %v7276_v17  ;;  %v18335_v16 = vld [vmem:[#allocation18_spill] sm:$0xff]  ;;  %v16530_v5 = vpop.f32.mrf.mxu0  ;;  %v18337_v60 = vld [vmem:[#allocation180_spill] sm:$0xff]  ;;  %v18339_v17 = vld [vmem:[#allocation185_spill] sm:$0xff] }
 0x59d   : > { %v7154_v63 = vpop.f32.mrf.mxu1  ;;  %18336 = vst [vmem:[#allocation107_spill] sm:$0xff] %v16530_v5  ;;  %v8693_v52 = vsel %vm2381_vm3, %v8690_v36, %v8692_v12  ;;  %v18342_v5 = vld [vmem:[#allocation44_spill] sm:$0xff] }
 0x59e   : > { %v7279_v33 = vadd.f32 %v7247_v58, %v16206_v3  ;;  %v7245_v23 = vmul.f32 %v7154_v63, %v18334_v19  ;;  %v16528_v57 = vadd.f32 %v18335_v16, %v7274_v27  ;;  %v8695_v3 = vsel %vm2381_vm3, %v8692_v12, %v8694_v62  ;;  %v11629_v58 = vld [vmem:[%s11847_s24 + $0xf8] sm:$0xff]  ;;  %v11630_v63 = vld [vmem:[%s11847_s24 + $0xf0] sm:$0xff]  ;;  %v16547_v36 = vpop.f32.mrf.mxu0 }
 0x59f   : > { %v10949_v15 = vpop.f32.mrf.mxu1  ;;  %v8641_v19 = vpack.c.bf16 %v11629_v58, %v11630_v63  ;;  %v18340_v27 = vld [vmem:[#allocation45_spill] sm:$0xff]  ;;  %18343 = vst [vmem:[#allocation145_spill] sm:$0xff] %v16547_v36  ;;  %v18346_v12 = vld [vmem:[#allocation12_spill] sm:$0xff] }
 0x5a0   : > { %v7277_v54 = vadd.f32 %v7245_v23, %v18337_v60  ;;  %v7248_v13 = vmul.f32 %v10949_v15, %v18338_v47  ;;  %v16536_v8 = vadd.f32 %v18339_v17, %v7279_v33  ;;  %v18344_v33 = vld [vmem:[#allocation53_spill] sm:$0xff]  ;;  %v18345_v15 = vld [vmem:[#allocation40_spill] sm:$0xff] }
 0x5a1   : > { %v7157_v35 = vpop.f32.mrf.mxu1  ;;  %v18347_v58 = vld [vmem:[#allocation13_spill] sm:$0xff]  ;;  %v18351_v47 = vld [vmem:[#allocation60_spill] sm:$0xff] }
 0x5a2   : > { %v7280_v16 = vadd.f32 %v7248_v13, %v18340_v27  ;;  %v7246_v53 = vmul.f32 %v7157_v35, %v18341_v43  ;;  %v16544_v59 = vadd.f32 %v18342_v5, %v7277_v54  ;;  %v18348_v63 = vpack.c.bf16 %v18346_v12, %v18347_v58  ;;  %v18349_v35 = vld [vmem:[#allocation57_spill] sm:$0xff]  ;;  %v18355_v58 = vld [vmem:[#allocation46_spill] sm:$0xff] }
 0x5a3   : > { %v10952_v60 = vpop.f32.mrf.mxu1  ;;  %11187 = vmatmul.mubr.msk.bf16.gmra.mxu1 %vm1391_vm1, %v8693_v52  ;;  %v8698_v27 = vrot.slane %v8641_v19, 1  ;;  %v18350_v52 = vld [vmem:[#allocation56_spill] sm:$0xff] }
 0x5a4   : > { %v7278_v23 = vadd.f32 %v7246_v53, %v18344_v33  ;;  %v7251_v17 = vmul.f32 %v10952_v60, %v18345_v15  ;;  %11190 = vmatprep.mubr.msk.bf16.mxu1 %vm1391_vm1, %v8695_v3  ;;  %v8696_v13 = vrot.slane %v18348_v63, 1  ;;  %v16556_v5 = vadd.f32 %v18349_v35, %v7280_v16  ;;  %v18352_v53 = vld [vmem:[#allocation65_spill] sm:$0xff]  ;;  %v16563_v3 = vpop.f32.mrf.mxu0  ;;  %v18354_v15 = vld [vmem:[#allocation68_spill] sm:$0xff] }
 0x5a5   : > { %v7170_v54 = vpop.f32.mrf.mxu1  ;;  %18353 = vst [vmem:[#allocation115_spill] sm:$0xff] %v16563_v3  ;;  %v18356_v16 = vld [vmem:[#allocation72_spill] sm:$0xff] }
 0x5a6   : > { %v7283_v43 = vadd.f32 %v7251_v17, %v18350_v52  ;;  %v7249_v36 = vmul.f32 %v7170_v54, %v18351_v47  ;;  %v16561_v33 = vadd.f32 %v18352_v53, %v7278_v23  ;;  %v8697_v49 = vsel %vm2381_vm3, %v8694_v62, %v8696_v13  ;;  %v11631_v52 = vld [vmem:[%s11847_s24 + $0x118] sm:$0xff]  ;;  %v11632_v54 = vld [vmem:[%s11847_s24 + $0x110] sm:$0xff]  ;;  %v16580_v62 = vpop.f32.mrf.mxu0 }
 0x5a7   : > { %v10953_v60 = vpop.f32.mrf.mxu1  ;;  %v8699_v17 = vsel %vm2381_vm3, %v8696_v13, %v8698_v27  ;;  %v8643_v47 = vpack.c.bf16 %v11631_v52, %v11632_v54  ;;  %v18357_v23 = vld [vmem:[#allocation80_spill] sm:$0xff]  ;;  %18360 = vst [vmem:[#allocation148_spill] sm:$0xff] %v16580_v62  ;;  %v18363_v52 = vld [vmem:[#allocation14_spill] sm:$0xff]  ;;  %v18364_v54 = vld [vmem:[#allocation15_spill] sm:$0xff] }
 0x5a8   : > { %v7281_v12 = vadd.f32 %v7249_v36, %v18354_v15  ;;  %v7252_v63 = vmul.f32 %v10953_v60, %v18355_v58  ;;  %v16569_v35 = vadd.f32 %v18356_v16, %v7283_v43  ;;  %v18361_v43 = vld [vmem:[#allocation83_spill] sm:$0xff]  ;;  %v18362_v16 = vld [vmem:[#allocation36_spill] sm:$0xff]  ;;  %v18366_v58 = vld [vmem:[#allocation86_spill] sm:$0xff] }
 0x5a9   : > { %v7173_v19 = vpop.f32.mrf.mxu1  ;;  %v18369_v62 = vld [vmem:[#allocation126_spill] sm:$0xff] }
 0x5aa   : > { %v7284_v53 = vadd.f32 %v7252_v63, %v18357_v23  ;;  %v7250_v3 = vmul.f32 %v7173_v19, %v18358_v61  ;;  %v16577_v36 = vadd.f32 %v18359_v51, %v7281_v12  ;;  %v18365_v63 = vpack.c.bf16 %v18363_v52, %v18364_v54  ;;  %v18367_v61 = vld [vmem:[#allocation88_spill] sm:$0xff] }
 0x5ab   : > { %v10956_v15 = vpop.f32.mrf.mxu1  ;;  %11191 = vmatmul.mubr.msk.bf16.gmra.mxu1 %vm1391_vm1, %v8697_v49  ;;  %v8702_v12 = vrot.slane %v8643_v47, 1  ;;  %v18368_v49 = vld [vmem:[#allocation120_spill] sm:$0xff] }
 0x5ac   : > { %v7282_v60 = vadd.f32 %v7250_v3, %v18361_v43  ;;  %v7255_v13 = vmul.f32 %v10956_v15, %v18362_v16  ;;  %11194 = vmatprep.mubr.msk.bf16.mxu1 %vm1391_vm1, %v8699_v17  ;;  %v8700_v23 = vrot.slane %v18365_v63, 1  ;;  %v16589_v19 = vadd.f32 %v18366_v58, %v7284_v53  ;;  %v11633_v3 = vld [vmem:[%s11847_s24 + $0x120] sm:$0xff]  ;;  %v16597_v17 = vpop.f32.mrf.mxu0  ;;  %v18371_v54 = vld [vmem:[#allocation64_spill] sm:$0xff] }
 0x5ad   : > { %v7186_v51 = vpop.f32.mrf.mxu1  ;;  %v8644_v15 = vpack.c.bf16 %v11633_v3, %v11633_v3  ;;  %18370 = vst [vmem:[#allocation116_spill] sm:$0xff] %v16597_v17  ;;  %v18372_v53 = vld [vmem:[#allocation128_spill] sm:$0xff]  ;;  %v18375_v3 = vld [vmem:[#allocation131_spill] sm:$0xff] }
 0x5ae   : > { %v7287_v25 = vadd.f32 %v7255_v13, %v18367_v61  ;;  %v7253_v28 = vmul.f32 %v7186_v51, %v18368_v49  ;;  %v16594_v37 = vadd.f32 %v18369_v62, %v7282_v60  ;;  %v8701_v58 = vsel %vm2381_vm3, %v8698_v27, %v8700_v23  ;;  %v18373_v51 = vld [vmem:[#allocation130_spill] sm:$0xff]  ;;  %v18374_v60 = vld [vmem:[#allocation52_spill] sm:$0xff]  ;;  %v18377_v27 = vld [vmem:[#allocation133_spill] sm:$0xff] }
 0x5af   : > { %v10957_v43 = vpop.f32.mrf.mxu1  ;;  %v8703_v13 = vsel %vm2381_vm3, %v8700_v23, %v8702_v12  ;;  %v18378_v23 = vld [vmem:[#allocation122_spill] sm:$0xff] }
 0x5b0   : > { %v7285_v52 = vadd.f32 %v7253_v28, %v16299_v46  ;;  %v7256_v63 = vmul.f32 %v10957_v43, %v18371_v54  ;;  %v16603_v47 = vadd.f32 %v18372_v53, %v7287_v25  ;;  %v16612_v46 = vpop.f32.mrf.mxu0  ;;  %v8704_v43 = vrot.slane %v8644_v15, 1 }
 0x5b1   : > { %v7189_v61 = vpop.f32.mrf.mxu1  ;;  %18376 = vst [vmem:[#allocation149_spill] sm:$0xff] %v16612_v46 }
 0x5b2   : > { %v7288_v62 = vadd.f32 %v7256_v63, %v18373_v51  ;;  %v7254_v49 = vmul.f32 %v7189_v61, %v18374_v60  ;;  %v16609_v16 = vadd.f32 %v18375_v3, %v7285_v52  ;;  %v18379_v52 = vld [vmem:[#allocation124_spill] sm:$0xff]  ;;  %v18380_v3 = vld [vmem:[#allocation91_spill] sm:$0xff]  ;;  %v16625_v54 = vpop.f32.mrf.mxu0  ;;  %v8705_v15 = vsel %vm2381_vm3, %v8702_v12, %v8704_v43 }
 0x5b3   : > { %v10960_v17 = vpop.f32.mrf.mxu1  ;;  %11195 = vmatmul.mubr.msk.bf16.gmra.mxu1 %vm1391_vm1, %v8701_v58  ;;  %18381 = vst [vmem:[#allocation118_spill] sm:$0xff] %v16625_v54  ;;  %v18387_v43 = vld [vmem:[#allocation139_spill] sm:$0xff] }
 0x5b4   : > { %v7286_v28 = vadd.f32 %v7254_v49, %v16326_v7  ;;  %v7259_v25 = vmul.f32 %v10960_v17, %v18377_v27  ;;  %11198 = vmatprep.mubr.msk.bf16.mxu1 %vm1391_vm1, %v8703_v13  ;;  %v16618_v53 = vadd.f32 %v18378_v23, %v7288_v62  ;;  %v18382_v49 = vld [vmem:[#allocation96_spill] sm:$0xff]  ;;  %v18383_v13 = vld [vmem:[#allocation94_spill] sm:$0xff] }
 0x5b5   : > { %v7202_v63 = vpop.f32.mrf.mxu1 }
 0x5b6   : > { %v7291_v61 = vadd.f32 %v7259_v25, %v16338_v10  ;;  %v7257_v51 = vmul.f32 %v7202_v63, %v18379_v52  ;;  %v16623_v60 = vadd.f32 %v18380_v3, %v7286_v28  ;;  %v18384_v25 = vld [vmem:[#allocation70_spill] sm:$0xff]  ;;  %v16639_v52 = vpop.f32.mrf.mxu0 }
 0x5b7   : > { %v10961_v58 = vpop.f32.mrf.mxu1  ;;  %18385 = vst [vmem:[#allocation119_spill] sm:$0xff] %v16639_v52 }
 0x5b8   : > { %v7289_v7 = vadd.f32 %v7257_v51, %v16346_v6  ;;  %v7260_v17 = vmul.f32 %v10961_v58, %v18382_v49  ;;  %v16631_v62 = vadd.f32 %v18383_v13, %v7291_v61  ;;  %v18386_v51 = vld [vmem:[#allocation67_spill] sm:$0xff]  ;;  %v18391_v49 = vld [vmem:[#allocation117_spill] sm:$0xff] }
 0x5b9   : > { %v7205_v23 = vpop.f32.mrf.mxu1 }
 0x5ba   : > { %v7292_v10 = vadd.f32 %v7260_v17, %v16360_v41  ;;  %v7258_v63 = vmul.f32 %v7205_v23, %v18384_v25  ;;  %v16636_v28 = vadd.f32 %v16362_v42, %v7289_v7  ;;  %v18388_v17 = vld [vmem:[#allocation137_spill] sm:$0xff]  ;;  %v18389_v23 = vld [vmem:[#allocation99_spill] sm:$0xff]  ;;  %v16651_v25 = vpop.f32.mrf.mxu0 }
 0x5bb   : > { %v10964_v3 = vpop.f32.mrf.mxu1  ;;  %11199 = vmatmul.mubr.msk.bf16.gmra.mxu1 %vm1391_vm1, %v8705_v15  ;;  %18390 = vst [vmem:[#allocation152_spill] sm:$0xff] %v16651_v25 }
 0x5bc   : > { %v7290_v6 = vadd.f32 %v7258_v63, %v16374_v24  ;;  %v7263_v12 = vmul.f32 %v10964_v3, %v18386_v51  ;;  %v16644_v61 = vadd.f32 %v18387_v43, %v7292_v10  ;;  %v18392_v63 = vld [vmem:[#allocation141_spill] sm:$0xff] }
 0x5bd   : > { %v7218_v58 = vpop.f32.mrf.mxu1  ;;  %v18393_v51 = vld [vmem:[#allocation61_spill] sm:$0xff] }
 0x5be   : > { %v7295_v41 = vadd.f32 %v7263_v12, %v16383_v4  ;;  %v7261_v13 = vmul.f32 %v7218_v58, %v18388_v17  ;;  %v16649_v42 = vadd.f32 %v18389_v23, %v7290_v6  ;;  %v16663_v58 = vpop.f32.mrf.mxu0  ;;  %v18395_v17 = vld [vmem:[#allocation42_spill] sm:$0xff] }
 0x5bf   : > { %v10965_v7 = vpop.f32.mrf.mxu1  ;;  %18394 = vst [vmem:[#allocation170_spill] sm:$0xff] %v16663_v58 }
 0x5c0   : > { %v7293_v15 = vadd.f32 %v7261_v13, %v16394_v0  ;;  %v7264_v24 = vmul.f32 %v10965_v7, %v18391_v49  ;;  %v16656_v3 = vadd.f32 %v18392_v63, %v7295_v41  ;;  %v18396_v13 = vld [vmem:[#allocation102_spill] sm:$0xff] }
 0x5c1   : > { %v7221_v10 = vpop.f32.mrf.mxu1 }
 0x5c2   : > { %v7296_v43 = vadd.f32 %v7264_v24, %v16403_v2  ;;  %v7262_v4 = vmul.f32 %v7221_v10, %v18393_v51  ;;  %v16661_v12 = vadd.f32 %v16405_v32, %v7293_v15  ;;  %v18397_v2 = vld [vmem:[#allocation125_spill] sm:$0xff]  ;;  %v16677_v15 = vpop.f32.mrf.mxu0 }
 0x5c3   : > { %v11016_v6 = vpop.f32.mrf.mxu1  ;;  %18398 = vst [vmem:[#allocation153_spill] sm:$0xff] %v16677_v15 }
 0x5c4   : > { %v7294_v23 = vadd.f32 %v7262_v4, %v16410_v55  ;;  %v7750_v0 = vmul.f32 %v11016_v6, %v18395_v17  ;;  %v16668_v7 = vadd.f32 %v18396_v13, %v7296_v43  ;;  %v18399_v55 = vld [vmem:[#allocation51_spill] sm:$0xff]  ;;  %v16687_v13 = vpop.f32.mrf.mxu0 }
 0x5c5   : > { %v7621_v41 = vpop.f32.mrf.mxu1  ;;  %18400 = vst [vmem:[#allocation154_spill] sm:$0xff] %v16687_v13 }
 0x5c6   : > { %v16671_v63 = vadd.f32 %v7750_v0, %v16432_v21  ;;  %v7748_v24 = vmul.f32 %v7621_v41, %v18397_v2  ;;  %v16675_v10 = vadd.f32 %v16422_v30, %v7294_v23  ;;  %v18401_v23 = vld [vmem:[#allocation62_spill] sm:$0xff]  ;;  %v16697_v15 = vpop.f32.mrf.mxu0 }
 0x5c7   : > { %v11017_v32 = vpop.f32.mrf.mxu1  ;;  %18403 = vst [vmem:[#allocation159_spill] sm:$0xff] %v16697_v15 }
 0x5c8   : > { %v16680_v51 = vadd.f32 %v7748_v24, %v16442_v26  ;;  %v7751_v4 = vmul.f32 %v11017_v32, %v18399_v55  ;;  %v18402_v24 = vld [vmem:[#allocation54_spill] sm:$0xff]  ;;  %v16707_v25 = vpop.f32.mrf.mxu0 }
 0x5c9   : > { %v7624_v6 = vpop.f32.mrf.mxu1  ;;  %18406 = vst [vmem:[#allocation181_spill] sm:$0xff] %v16707_v25 }
 0x5ca   : > { %v16684_v43 = vadd.f32 %v7751_v4, %v16453_v38  ;;  %v7749_v21 = vmul.f32 %v7624_v6, %v18317_v31  ;;  %v18404_v4 = vld [vmem:[#allocation71_spill] sm:$0xff]  ;;  %v16717_v54 = vpop.f32.mrf.mxu0 }
 0x5cb   : > { %v11020_v0 = vpop.f32.mrf.mxu1  ;;  %18409 = vst [vmem:[#allocation156_spill] sm:$0xff] %v16717_v54 }
 0x5cc   : > { %v16690_v30 = vadd.f32 %v7749_v21, %v16460_v56  ;;  %v7754_v41 = vmul.f32 %v11020_v0, %v18401_v23  ;;  %v18405_v21 = vld [vmem:[#allocation63_spill] sm:$0xff] }
 0x5cd   : > { %v7637_v49 = vpop.f32.mrf.mxu1 }
 0x5ce   : > { %v16694_v26 = vadd.f32 %v7754_v41, %v16468_v48  ;;  %v7752_v32 = vmul.f32 %v7637_v49, %v18402_v24  ;;  %v18407_v49 = vld [vmem:[#allocation84_spill] sm:$0xff] }
 0x5cf   : > { %v11021_v27 = vpop.f32.mrf.mxu1 }
 0x5d0   : > { %v16700_v38 = vadd.f32 %v7752_v32, %v16478_v1  ;;  %v7755_v6 = vmul.f32 %v11021_v27, %v18404_v4  ;;  %v18408_v32 = vld [vmem:[#allocation155_spill] sm:$0xff] }
 0x5d1   : > { %v7640_v13 = vpop.f32.mrf.mxu1 }
 0x5d2   : > { %v16704_v56 = vadd.f32 %v7755_v6, %v16490_v44  ;;  %v7753_v0 = vmul.f32 %v7640_v13, %v18405_v21  ;;  %v18410_v13 = vld [vmem:[#allocation93_spill] sm:$0xff] }
 0x5d3   : > { %v11024_v58 = vpop.f32.mrf.mxu1 }
 0x5d4   : > { %v16710_v48 = vadd.f32 %v7753_v0, %v16495_v11  ;;  %v7758_v41 = vmul.f32 %v11024_v58, %v18407_v49  ;;  %v18411_v0 = vld [vmem:[#allocation82_spill] sm:$0xff]  ;;  %v16727_v49 = vpop.f32.mrf.mxu0 }
 0x5d5   : > { %v7653_v15 = vpop.f32.mrf.mxu1  ;;  %18412 = vst [vmem:[#allocation81_spill] sm:$0xff] %v16727_v49 }
 0x5d6   : > { %v16714_v1 = vadd.f32 %v7758_v41, %v16503_v34  ;;  %v7756_v27 = vmul.f32 %v7653_v15, %v18408_v32  ;;  %v18413_v15 = vld [vmem:[#allocation98_spill] sm:$0xff]  ;;  %v16737_v32 = vpop.f32.mrf.mxu0 }
 0x5d7   : > { %v11025_v52 = vpop.f32.mrf.mxu1  ;;  %18415 = vst [vmem:[#allocation73_spill] sm:$0xff] %v16737_v32 }
 0x5d8   : > { %v16720_v44 = vadd.f32 %v7756_v27, %v16511_v18  ;;  %v7759_v6 = vmul.f32 %v11025_v52, %v18410_v13  ;;  %v18414_v27 = vld [vmem:[#allocation92_spill] sm:$0xff] }
 0x5d9   : > { %v7656_v25 = vpop.f32.mrf.mxu1 }
 0x5da   : > { %v16724_v11 = vadd.f32 %v7759_v6, %v16523_v9  ;;  %v7757_v58 = vmul.f32 %v7656_v25, %v18411_v0  ;;  %v18417_v25 = vld [vmem:[#allocation101_spill] sm:$0xff]  ;;  %v16747_v0 = vpop.f32.mrf.mxu0 }
 0x5db   : > { %v11028_v46 = vpop.f32.mrf.mxu1  ;;  %18420 = vst [vmem:[#allocation158_spill] sm:$0xff] %v16747_v0 }
 0x5dc   : > { %v16730_v34 = vadd.f32 %v7757_v58, %v16528_v57  ;;  %v7762_v41 = vmul.f32 %v11028_v46, %v18413_v15  ;;  %v18419_v58 = vld [vmem:[#allocation95_spill] sm:$0xff] }
 0x5dd   : > { %v7669_v54 = vpop.f32.mrf.mxu1 }
 0x5de   : > { %v16734_v18 = vadd.f32 %v7762_v41, %v16536_v8  ;;  %v7760_v52 = vmul.f32 %v7669_v54, %v18414_v27  ;;  %v18422_v54 = vld [vmem:[#allocation109_spill] sm:$0xff]  ;;  %v16757_v27 = vpop.f32.mrf.mxu0 }
 0x5df   : > { %v11029_v13 = vpop.f32.mrf.mxu1  ;;  %18425 = vst [vmem:[#allocation161_spill] sm:$0xff] %v16757_v27 }
 0x5e0   : > { %v16740_v9 = vadd.f32 %v7760_v52, %v16544_v59  ;;  %v7763_v6 = vmul.f32 %v11029_v13, %v18417_v25  ;;  %v18424_v52 = vld [vmem:[#allocation100_spill] sm:$0xff] }
 0x5e1   : > { %v7672_v49 = vpop.f32.mrf.mxu1 }
 0x5e2   : > { %18416 = vst [vmem:[#allocation163_spill] sm:$0xff] %v16740_v9  ;;  %v16744_v57 = vadd.f32 %v7763_v6, %v16556_v5  ;;  %v7761_v46 = vmul.f32 %v7672_v49, %v18419_v58  ;;  %v18427_v49 = vld [vmem:[#allocation110_spill] sm:$0xff]  ;;  %v16767_v58 = vpop.f32.mrf.mxu0 }
 0x5e3   : > { %v11032_v15 = vpop.f32.mrf.mxu1  ;;  %18430 = vst [vmem:[#allocation166_spill] sm:$0xff] %v16767_v58 }
 0x5e4   : > { %18418 = vst [vmem:[#allocation157_spill] sm:$0xff] %v16744_v57  ;;  %v16750_v8 = vadd.f32 %v7761_v46, %v16561_v33  ;;  %v7766_v41 = vmul.f32 %v11032_v15, %v18422_v54  ;;  %v18429_v46 = vld [vmem:[#allocation103_spill] sm:$0xff] }
 0x5e5   : > { %v7685_v32 = vpop.f32.mrf.mxu1 }
 0x5e6   : > { %18421 = vst [vmem:[#allocation78_spill] sm:$0xff] %v16750_v8  ;;  %v16754_v59 = vadd.f32 %v7766_v41, %v16569_v35  ;;  %v7764_v13 = vmul.f32 %v7685_v32, %v18424_v52  ;;  %v18432_v32 = vld [vmem:[#allocation48_spill] sm:$0xff]  ;;  %v16777_v52 = vpop.f32.mrf.mxu0 }
 0x5e7   : > { %v11033_v25 = vpop.f32.mrf.mxu1  ;;  %18435 = vst [vmem:[#allocation173_spill] sm:$0xff] %v16777_v52 }
 0x5e8   : > { %18423 = vst [vmem:[#allocation167_spill] sm:$0xff] %v16754_v59  ;;  %v16760_v5 = vadd.f32 %v7764_v13, %v16577_v36  ;;  %v7767_v6 = vmul.f32 %v11033_v25, %v18427_v49  ;;  %v18434_v13 = vld [vmem:[#allocation168_spill] sm:$0xff] }
 0x5e9   : > { %v7688_v0 = vpop.f32.mrf.mxu1 }
 0x5ea   : > { %18426 = vst [vmem:[#allocation162_spill] sm:$0xff] %v16760_v5  ;;  %v16764_v33 = vadd.f32 %v7767_v6, %v16589_v19  ;;  %v7765_v15 = vmul.f32 %v7688_v0, %v18429_v46  ;;  %v18437_v0 = vld [vmem:[#allocation69_spill] sm:$0xff]  ;;  %v16787_v46 = vpop.f32.mrf.mxu0 }
 0x5eb   : > { %v11036_v54 = vpop.f32.mrf.mxu1  ;;  %18440 = vst [vmem:[#allocation182_spill] sm:$0xff] %v16787_v46 }
 0x5ec   : > { %18428 = vst [vmem:[#allocation165_spill] sm:$0xff] %v16764_v33  ;;  %v16770_v35 = vadd.f32 %v7765_v15, %v16594_v37  ;;  %v7770_v41 = vmul.f32 %v11036_v54, %v18432_v32  ;;  %v18439_v15 = vld [vmem:[#allocation187_spill] sm:$0xff] }
 0x5ed   : > { %v7701_v27 = vpop.f32.mrf.mxu1 }
 0x5ee   : > { %18431 = vst [vmem:[#allocation171_spill] sm:$0xff] %v16770_v35  ;;  %v16774_v36 = vadd.f32 %v7770_v41, %v16603_v47  ;;  %v7768_v25 = vmul.f32 %v7701_v27, %v18434_v13  ;;  %v18442_v27 = vld [vmem:[#allocation127_spill] sm:$0xff]  ;;  %v16797_v13 = vpop.f32.mrf.mxu0 }
 0x5ef   : > { %v11037_v49 = vpop.f32.mrf.mxu1  ;;  %18445 = vst [vmem:[#allocation34_spill] sm:$0xff] %v16797_v13 }
 0x5f0   : > { %18433 = vst [vmem:[#allocation172_spill] sm:$0xff] %v16774_v36  ;;  %v16780_v19 = vadd.f32 %v7768_v25, %v16609_v16  ;;  %v7771_v6 = vmul.f32 %v11037_v49, %v18437_v0  ;;  %v18444_v25 = vld [vmem:[#allocation76_spill] sm:$0xff] }
 0x5f1   : > { %v7704_v58 = vpop.f32.mrf.mxu1 }
 0x5f2   : > { %18436 = vst [vmem:[#allocation174_spill] sm:$0xff] %v16780_v19  ;;  %v16784_v37 = vadd.f32 %v7771_v6, %v16618_v53  ;;  %v7769_v54 = vmul.f32 %v7704_v58, %v18439_v15  ;;  %v18447_v58 = vld [vmem:[#allocation132_spill] sm:$0xff]  ;;  %v16807_v15 = vpop.f32.mrf.mxu0 }
 0x5f3   : > { %v11040_v32 = vpop.f32.mrf.mxu1 }
 0x5f4   : > { %18438 = vst [vmem:[#allocation176_spill] sm:$0xff] %v16784_v37  ;;  %v16790_v47 = vadd.f32 %v7769_v54, %v16623_v60  ;;  %v7774_v41 = vmul.f32 %v11040_v32, %v18442_v27  ;;  %v18449_v54 = vld [vmem:[#allocation89_spill] sm:$0xff] }
 0x5f5   : > { %v7717_v52 = vpop.f32.mrf.mxu1 }
 0x5f6   : > { %18441 = vst [vmem:[#allocation22_spill] sm:$0xff] %v16790_v47  ;;  %v16794_v16 = vadd.f32 %v7774_v41, %v16631_v62  ;;  %v7772_v49 = vmul.f32 %v7717_v52, %v18444_v25  ;;  %v18451_v52 = vld [vmem:[#allocation136_spill] sm:$0xff]  ;;  %v16817_v25 = vpop.f32.mrf.mxu0 }
 0x5f7   : > { %v11041_v0 = vpop.f32.mrf.mxu1 }
 0x5f8   : > { %18443 = vst [vmem:[#allocation58_spill] sm:$0xff] %v16794_v16  ;;  %v16800_v53 = vadd.f32 %v7772_v49, %v16636_v28  ;;  %v7775_v6 = vmul.f32 %v11041_v0, %v18447_v58  ;;  %v18453_v49 = vld [vmem:[#allocation123_spill] sm:$0xff] }
 0x5f9   : > { %v7720_v46 = vpop.f32.mrf.mxu1 }
 0x5fa   : > { %18446 = vst [vmem:[#allocation169_spill] sm:$0xff] %v16800_v53  ;;  %v16804_v60 = vadd.f32 %v7775_v6, %v16644_v61  ;;  %v7773_v32 = vmul.f32 %v7720_v46, %v18449_v54  ;;  %v18455_v46 = vld [vmem:[#allocation140_spill] sm:$0xff] }
 0x5fb   : > { %v11044_v27 = vpop.f32.mrf.mxu1 }
 0x5fc   : > { %18448 = vst [vmem:[#allocation16_spill] sm:$0xff] %v16804_v60  ;;  %v16810_v62 = vadd.f32 %v7773_v32, %v16649_v42  ;;  %v7778_v41 = vmul.f32 %v11044_v27, %v18451_v52  ;;  %v18457_v32 = vld [vmem:[#allocation135_spill] sm:$0xff] }
 0x5fd   : > { %v7733_v13 = vpop.f32.mrf.mxu1 }
 0x5fe   : > { %18450 = vst [vmem:[#allocation43_spill] sm:$0xff] %v16810_v62  ;;  %v16814_v28 = vadd.f32 %v7778_v41, %v16656_v3  ;;  %v7776_v0 = vmul.f32 %v7733_v13, %v18453_v49  ;;  %v11137_v62 = vpop.f32.mrf.mxu0 }
 0x5ff   : > { %v11045_v58 = vpop.f32.mrf.mxu1 }
 0x600   : > { %18452 = vst [vmem:[#allocation97_spill] sm:$0xff] %v16814_v28  ;;  %v16820_v61 = vadd.f32 %v7776_v0, %v16661_v12  ;;  %v7779_v6 = vmul.f32 %v11045_v58, %v18455_v46  ;;  %v16830_v49 = vpop.f32.mrf.mxu0 }
 0x601   : > { %v7736_v54 = vpop.f32.mrf.mxu1 }
 0x602   : > { %18454 = vst [vmem:[#allocation104_spill] sm:$0xff] %v16820_v61  ;;  %v16824_v42 = vadd.f32 %v7779_v6, %v16668_v7  ;;  %v7777_v27 = vmul.f32 %v7736_v54, %v18457_v32  ;;  %v16834_v0 = vpop.f32.mrf.mxu0 }
 0x603   : > { %v11096_v52 = vpop.f32.mrf.mxu1 }
 0x604   : > { %18456 = vst [vmem:[#allocation49_spill] sm:$0xff] %v16824_v42  ;;  %v16828_v3 = vadd.f32 %v7777_v27, %v16675_v10  ;;  %v16840_v6 = vpop.f32.mrf.mxu0 }
 0x605   : > { %v8160_v13 = vpop.f32.mrf.mxu1 }
 0x606   : > { %18458 = vst [vmem:[#allocation108_spill] sm:$0xff] %v16828_v3  ;;  %v16846_v10 = vpop.f32.mrf.mxu0 }
 0x607   : > { %v11097_v41 = vpop.f32.mrf.mxu1 }
 0x608   : > { %v16852_v3 = vpop.f32.mrf.mxu0 }
 0x609   : > { %v8163_v28 = vpop.f32.mrf.mxu1 }
 0x60a   : > { %v16858_v60 = vpop.f32.mrf.mxu0 }
 0x60b   : > { %v16832_v12 = vpop.f32.mrf.mxu1 }
 0x60c   : > { %v16864_v47 = vpop.f32.mrf.mxu0 }
 0x60d   : > { %v16836_v58 = vpop.f32.mrf.mxu1 }
 0x60e   : > { %v16870_v36 = vpop.f32.mrf.mxu0 }
 0x60f   : > { %v16838_v7 = vpop.f32.mrf.mxu1 }
 0x610   : > { %v16876_v5 = vpop.f32.mrf.mxu0 }
 0x611   : > { %v16842_v54 = vpop.f32.mrf.mxu1  ;;  %18466 = vst [vmem:[#allocation35_spill] sm:$0xff] %v16876_v5 }
 0x613   : > { %v16844_v32 = vpop.f32.mrf.mxu1 }
 0x615   : > { %v16848_v27 = vpop.f32.mrf.mxu1 }
 0x617   : > { %v16850_v46 = vpop.f32.mrf.mxu1 }
 0x619   : > { %v16854_v42 = vpop.f32.mrf.mxu1 }
 0x61b   : > { %v16856_v61 = vpop.f32.mrf.mxu1 }
 0x61c   : > { %18459 = vst [vmem:[#allocation175_spill] sm:$0xff] %v16856_v61 }
 0x61d   : > { %v16860_v53 = vpop.f32.mrf.mxu1 }
 0x61e   : > { %18460 = vst [vmem:[#allocation55_spill] sm:$0xff] %v16860_v53  ;;  %v16882_v53 = vpop.f32.mrf.mxu0 }
 0x61f   : > { %v16862_v16 = vpop.f32.mrf.mxu1  ;;  %18469 = vst [vmem:[#allocation24_spill] sm:$0xff] %v16882_v53 }
 0x620   : > { %18461 = vst [vmem:[#allocation111_spill] sm:$0xff] %v16862_v16 }
 0x621   : > { %v16866_v37 = vpop.f32.mrf.mxu1 }
 0x622   : > { %18462 = vst [vmem:[#allocation17_spill] sm:$0xff] %v16866_v37  ;;  %v16888_v37 = vpop.f32.mrf.mxu0 }
 0x623   : > { %v16868_v19 = vpop.f32.mrf.mxu1  ;;  %18472 = vst [vmem:[#allocation177_spill] sm:$0xff] %v16888_v37 }
 0x624   : > { %18463 = vst [vmem:[#allocation146_spill] sm:$0xff] %v16868_v19 }
 0x625   : > { %v16872_v35 = vpop.f32.mrf.mxu1 }
 0x626   : > { %18464 = vst [vmem:[#allocation150_spill] sm:$0xff] %v16872_v35  ;;  %v16894_v35 = vpop.f32.mrf.mxu0 }
 0x627   : > { %v16874_v33 = vpop.f32.mrf.mxu1  ;;  %18475 = vst [vmem:[#allocation138_spill] sm:$0xff] %v16894_v35 }
 0x628   : > { %18465 = vst [vmem:[#allocation178_spill] sm:$0xff] %v16874_v33  ;;  %v16902_v53 = vpop.f32.mrf.mxu0 }
 0x629   : > { %v16878_v59 = vpop.f32.mrf.mxu1 }
 0x62a   : > { %18467 = vst [vmem:[#allocation121_spill] sm:$0xff] %v16878_v59  ;;  %v18478_v59 = vld [vmem:[#allocation183_spill] sm:$0xff] }
 0x62b   : > { %v16880_v8 = vpop.f32.mrf.mxu1 }
 0x62c   : > { %18468 = vst [vmem:[#allocation38_spill] sm:$0xff] %v16880_v8  ;;  %v8012_v8 = vmul.f32 %v16428_v39, %v18478_v59  ;;  %v8011_v39 = vmul.f32 %v16457_v50, %v18309_v14  ;;  %v8525_v14 = vmul.f32 %v16817_v25, %v18397_v2  ;;  %v18482_v2 = vld [vmem:[#allocation105_spill] sm:$0xff] }
 0x62d   : > { %v16884_v16 = vpop.f32.mrf.mxu1 }
 0x62e   : > { %18470 = vst [vmem:[#allocation39_spill] sm:$0xff] %v16884_v16 }
 0x62f   : > { %v16886_v57 = vpop.f32.mrf.mxu1 }
 0x630   : > { %18471 = vst [vmem:[#allocation47_spill] sm:$0xff] %v16886_v57  ;;  %v18480_v57 = vld [vmem:[#allocation26_spill] sm:$0xff] }
 0x631   : > { %v16890_v19 = vpop.f32.mrf.mxu1  ;;  %v8010_v37 = vmul.f32 %v16439_v40, %v18480_v57  ;;  %v8527_v40 = vmul.f32 %v16807_v15, %v18395_v17  ;;  %v18484_v15 = vld [vmem:[#allocation143_spill] sm:$0xff] }
 0x632   : > { %18473 = vst [vmem:[#allocation134_spill] sm:$0xff] %v16890_v19  ;;  %v8044_v19 = vadd.f32 %v8012_v8, %v16671_v63  ;;  %v8528_v8 = vmul.f32 %v11137_v62, %v18399_v55  ;;  %v18483_v55 = vld [vmem:[#allocation184_spill] sm:$0xff]  ;;  %v8526_v62 = vmul.f32 %v16830_v49, %v18317_v31 }
 0x633   : > { %v16892_v61 = vpop.f32.mrf.mxu1  ;;  %v8042_v5 = vadd.f32 %v8010_v37, %v16680_v51  ;;  %v8016_v51 = vmul.f32 %v16464_v20, %v15721_v29  ;;  %v16943_v29 = vld [vmem:[%s17282_s19] ss:$0 sm:$0xff]  ;;  %v18481_v20 = vld [vmem:[#allocation21_spill] sm:$0xff]  ;;  %v8017_v25 = vmul.f32 %v18484_v15, %v18483_v55  ;;  %v18490_v15 = vld [vmem:[#allocation107_spill] sm:$0xff] }
 0x634   : > { %18474 = vst [vmem:[#allocation50_spill] sm:$0xff] %v16892_v61  ;;  %v8013_v61 = vmul.f32 %v16446_v45, %v15695_v22  ;;  %v8043_v45 = vadd.f32 %v8011_v39, %v16690_v30  ;;  %v16938_v30 = vld [vmem:[%s17280_s17] ss:$0 sm:$0xff] }
 0x635   : > { %v16896_v33 = vpop.f32.mrf.mxu1  ;;  %v8287_v63 = vadd.f32 %v8160_v13, %v8042_v5  ;;  %v8014_v5 = vmul.f32 %v18482_v2, %v18481_v20  ;;  %v8049_v31 = vadd.f32 %v8017_v25, %v16704_v56  ;;  %v8529_v56 = vmul.f32 %v16840_v6, %v18402_v24  ;;  %v18489_v55 = vld [vmem:[#allocation186_spill] sm:$0xff] }
 0x636   : > { %18476 = vst [vmem:[#allocation59_spill] sm:$0xff] %v16896_v33  ;;  %v16913_v33 = vpop.f32.mrf.mxu0  ;;  %v8045_v59 = vadd.f32 %v8013_v61, %v16684_v43  ;;  %v8018_v25 = vmul.f32 %v18490_v15, %v18489_v55  ;;  %v8532_v24 = vmul.f32 %v16846_v10, %v18404_v4  ;;  %v8530_v4 = vmul.f32 %v16852_v3, %v18405_v21  ;;  %v18495_v21 = vld [vmem:[#allocation84_spill] sm:$0xff]  ;;  %v18499_v15 = vld [vmem:[#allocation114_spill] sm:$0xff] }
 0x637   : > { %v16898_v9 = vpop.f32.mrf.mxu1  ;;  %v8557_v37 = vadd.f32 %v8525_v14, %v8287_v63  ;;  %v8535_v3 = vmul.f32 %v16858_v60, %v18495_v21 }
 0x638   : > { %18477 = vst [vmem:[#allocation142_spill] sm:$0xff] %v16898_v9  ;;  %v8289_v9 = vadd.f32 %v11096_v52, %v8044_v19  ;;  %v8290_v22 = vadd.f32 %v11097_v41, %v8045_v59  ;;  %v16930_v50 = vpop.f32.mrf.mxu0  ;;  %v8288_v19 = vadd.f32 %v8163_v28, %v8043_v45  ;;  %v8046_v41 = vadd.f32 %v8014_v5, %v16700_v38 }
 0x639   : > { %v16904_v16 = vpop.f32.mrf.mxu1  ;;  %v8531_v45 = vmul.f32 %v16834_v0, %v18401_v23  ;;  %v8294_v5 = vadd.f32 %v16838_v7, %v8049_v31  ;;  %v8050_v10 = vadd.f32 %v8018_v25, %v16720_v44  ;;  %v18493_v31 = vld [vmem:[#allocation23_spill] sm:$0xff]  ;;  %v18500_v25 = vld [vmem:[#allocation116_spill] sm:$0xff] }
 0x63a   : > { %18479 = vst [vmem:[#allocation179_spill] sm:$0xff] %v16904_v16  ;;  %v8559_v43 = vadd.f32 %v8527_v40, %v8289_v9  ;;  %v8048_v9 = vadd.f32 %v8016_v51, %v16694_v26  ;;  %v8560_v52 = vadd.f32 %v8528_v8, %v8290_v22  ;;  %v16953_v61 = vpop.f32.mrf.mxu0  ;;  %v18485_v26 = vld [vmem:[#allocation28_spill] sm:$0xff]  ;;  %v8558_v51 = vadd.f32 %v8526_v62, %v8288_v19  ;;  %v18488_v8 = vld [vmem:[#allocation106_spill] sm:$0xff] }
 0x63b   : > { %v16911_v35 = vpop.f32.mrf.mxu1  ;;  %v18486_v40 = vld [vmem:[#allocation144_spill] sm:$0xff]  ;;  %v8291_v49 = vadd.f32 %v16836_v58, %v8046_v41  ;;  %v8596_v22 = vadd.f32 %v16938_v30, %v8557_v37  ;;  %v18491_v41 = vld [vmem:[#allocation25_spill] sm:$0xff]  ;;  %v8295_v44 = vadd.f32 %v16848_v27, %v8050_v10 }
 0x63c   : > { %v8293_v13 = vadd.f32 %v16832_v12, %v8048_v9  ;;  %v8598_v39 = vadd.f32 %v16938_v30, %v8559_v43  ;;  %v8015_v63 = vmul.f32 %v18486_v40, %v18485_v26  ;;  %v18487_v43 = vld [vmem:[#allocation188_spill] sm:$0xff]  ;;  %v8599_v19 = vadd.f32 %v16938_v30, %v8560_v52  ;;  %v16978_v2 = vpop.f32.mrf.mxu0 }
 0x63d   : > { %v16919_v16 = vpop.f32.mrf.mxu1  ;;  %v8020_v23 = vmul.f32 %v18488_v8, %v18487_v43  ;;  %v8597_v6 = vadd.f32 %v16938_v30, %v8558_v51  ;;  %v8561_v52 = vadd.f32 %v8529_v56, %v8291_v49  ;;  %v18497_v56 = vld [vmem:[#allocation148_spill] sm:$0xff] }
 0x63e   : > { %v8047_v0 = vadd.f32 %v8015_v63, %v16710_v48  ;;  %v8563_v58 = vadd.f32 %v8531_v45, %v8293_v13  ;;  %v17000_v40 = vpop.f32.mrf.mxu0 }
 0x63f   : > { %v16924_v57 = vpop.f32.mrf.mxu1  ;;  %v8052_v48 = vadd.f32 %v8020_v23, %v16714_v1  ;;  %v8600_v43 = vadd.f32 %v16938_v30, %v8561_v52  ;;  %v18496_v23 = vld [vmem:[#allocation29_spill] sm:$0xff] }
 0x640   : > { %v8292_v7 = vadd.f32 %v16842_v54, %v8047_v0  ;;  %v8564_v54 = vadd.f32 %v8532_v24, %v8294_v5  ;;  %v8602_v45 = vadd.f32 %v16938_v30, %v8563_v58  ;;  %v8024_v0 = vmul.f32 %v18497_v56, %v18496_v23  ;;  %v17021_v58 = vpop.f32.mrf.mxu0  ;;  %v18513_v23 = vld [vmem:[#allocation55_spill] sm:$0xff] }
 0x641   : > { %v16933_v17 = vpop.f32.mrf.mxu1  ;;  %v8297_v1 = vadd.f32 %v16844_v32, %v8052_v48  ;;  %v8022_v24 = vmul.f32 %v18500_v25, %v18499_v15  ;;  %v18519_v15 = vld [vmem:[#allocation78_spill] sm:$0xff] }
 0x643   : > { %v11172_v28 = vpop.f32.mrf.mxu1 }
 0x644   : > { %v8809_v59 = vadd.f32 %v11172_v28, %v16943_v29 }
 0x645   : > { %v8800_v38 = vpop.f32.mrf.mxu1 }
 0x646   : > { %v8929_v12 = vadd.f32 %v8809_v59, %v8598_v39  ;;  %v8801_v14 = vadd.f32 %v16943_v29, %v8800_v38  ;;  %v18492_v39 = vld [vmem:[#allocation145_spill] sm:$0xff]  ;;  %v18494_v38 = vld [vmem:[#allocation115_spill] sm:$0xff] }
 0x647   : > { %v11173_v20 = vpop.f32.mrf.mxu1  ;;  %v8021_v59 = vmul.f32 %v18492_v39, %v18491_v41  ;;  %v8019_v49 = vmul.f32 %v18494_v38, %v18493_v31  ;;  %v18503_v41 = vld [vmem:[#allocation149_spill] sm:$0xff]  ;;  %v18508_v38 = vld [vmem:[#allocation27_spill] sm:$0xff] }
 0x648   : > { %8961 = vst.msk [vmem:[%s16967_s0 + $0x10] sm:$0xff] %vm5629_vm4, %v8929_v12  ;;  %v8927_v37 = vadd.f32 %v8801_v14, %v8596_v22  ;;  %v8812_v9 = vadd.f32 %v11173_v20, %v16943_v29  ;;  %v8562_v22 = vadd.f32 %v8530_v4, %v8292_v7  ;;  %v8567_v20 = vadd.f32 %v8535_v3, %v8297_v1  ;;  %v18505_v4 = vld [vmem:[#allocation35_spill] sm:$0xff]  ;;  %v18510_v3 = vld [vmem:[#allocation98_spill] sm:$0xff] }
 0x649   : > { %v8803_v62 = vpop.f32.mrf.mxu1  ;;  %v8053_v32 = vadd.f32 %v8021_v59, %v16724_v11  ;;  %v8051_v27 = vadd.f32 %v8019_v49, %v16730_v34  ;;  %v8056_v34 = vadd.f32 %v8024_v0, %v16734_v18  ;;  %v18504_v59 = vld [vmem:[#allocation82_spill] sm:$0xff]  ;;  %v18506_v1 = vld [vmem:[#allocation163_spill] sm:$0xff] }
 0x64a   : > { %8959 = vst.msk [vmem:[%s16967_s0] sm:$0xff] %vm5629_vm4, %v8927_v37  ;;  %v8930_v28 = vadd.f32 %v8812_v9, %v8599_v19  ;;  %v8804_v13 = vadd.f32 %v16943_v29, %v8803_v62  ;;  %v18498_v19 = vld [vmem:[#allocation155_spill] sm:$0xff]  ;;  %v8603_v9 = vadd.f32 %v16938_v30, %v8564_v54  ;;  %v8601_v7 = vadd.f32 %v16938_v30, %v8562_v22  ;;  %v18509_v49 = vld [vmem:[#allocation118_spill] sm:$0xff] }
 0x64b   : > { %v11176_v26 = vpop.f32.mrf.mxu1  ;;  %v8533_v60 = vmul.f32 %v16864_v47, %v18498_v19  ;;  %v8298_v5 = vadd.f32 %v16850_v46, %v8053_v32  ;;  %v18501_v47 = vld [vmem:[#allocation93_spill] sm:$0xff]  ;;  %v8296_v46 = vadd.f32 %v16854_v42, %v8051_v27  ;;  %v8054_v10 = vadd.f32 %v8022_v24, %v18506_v1  ;;  %v17044_v42 = vpop.f32.mrf.mxu0 }
 0x64c   : > { %8962 = vst.msk [vmem:[%s16967_s0 + $0x18] sm:$0xff] %vm5629_vm4, %v8930_v28  ;;  %v8928_v63 = vadd.f32 %v8804_v13, %v8597_v6  ;;  %v8825_v51 = vadd.f32 %v11176_v26, %v16943_v29  ;;  %v8536_v48 = vmul.f32 %v16870_v36, %v18501_v47  ;;  %v18502_v13 = vld [vmem:[#allocation30_spill] sm:$0xff]  ;;  %v8534_v36 = vmul.f32 %v18505_v4, %v18504_v59  ;;  %v18525_v4 = vld [vmem:[#allocation167_spill] sm:$0xff] }
 0x64d   : > { %v8816_v12 = vpop.f32.mrf.mxu1  ;;  %v8565_v6 = vadd.f32 %v8533_v60, %v8295_v44  ;;  %v8025_v39 = vmul.f32 %v18503_v41, %v18502_v13  ;;  %v8606_v18 = vadd.f32 %v16938_v30, %v8567_v20  ;;  %v8023_v21 = vmul.f32 %v18509_v49, %v18508_v38  ;;  %v18511_v44 = vld [vmem:[#allocation24_spill] sm:$0xff]  ;;  %v18515_v20 = vld [vmem:[#allocation119_spill] sm:$0xff]  ;;  %v17066_v47 = vpop.f32.mrf.mxu0  ;;  %v18523_v13 = vld [vmem:[#allocation138_spill] sm:$0xff] }
 0x64e   : > { %8960 = vst.msk [vmem:[%s16967_s0 + $0x8] sm:$0xff] %vm5629_vm4, %v8928_v63  ;;  %v8933_v14 = vadd.f32 %v8825_v51, %v8602_v45  ;;  %v8817_v8 = vadd.f32 %v16943_v29, %v8816_v12  ;;  %v8568_v54 = vadd.f32 %v8536_v48, %v8298_v5  ;;  %v18507_v63 = vld [vmem:[#allocation175_spill] sm:$0xff]  ;;  %v8539_v32 = vmul.f32 %v18511_v44, %v18510_v3  ;;  %v18512_v12 = vld [vmem:[#allocation157_spill] sm:$0xff]  ;;  %v18514_v60 = vld [vmem:[#allocation40_spill] sm:$0xff] }
 0x64f   : > { %v11177_v11 = vpop.f32.mrf.mxu1  ;;  %v8301_v45 = vadd.f32 %v18507_v63, %v8056_v34  ;;  %v8057_v22 = vadd.f32 %v8025_v39, %v18512_v12  ;;  %v8299_v56 = vadd.f32 %v18513_v23, %v8054_v10  ;;  %v8028_v27 = vmul.f32 %v18515_v20, %v18514_v60  ;;  %v18517_v5 = vld [vmem:[#allocation177_spill] sm:$0xff]  ;;  %v18526_v63 = vld [vmem:[#allocation46_spill] sm:$0xff] }
 0x650   : > { %8965 = vst.msk [vmem:[%s16967_s0 + $0x30] sm:$0xff] %vm5629_vm4, %v8933_v14  ;;  %v8931_v37 = vadd.f32 %v8817_v8, %v8600_v43  ;;  %v8828_v55 = vadd.f32 %v11177_v11, %v16943_v29  ;;  %v8604_v14 = vadd.f32 %v16938_v30, %v8565_v6  ;;  %v8566_v8 = vadd.f32 %v8534_v36, %v8296_v46  ;;  %v18516_v11 = vld [vmem:[#allocation92_spill] sm:$0xff]  ;;  %v18524_v39 = vld [vmem:[#allocation17_spill] sm:$0xff]  ;;  %v18530_v12 = vld [vmem:[#allocation146_spill] sm:$0xff] }
 0x651   : > { %v8819_v62 = vpop.f32.mrf.mxu1  ;;  %v8055_v25 = vadd.f32 %v8023_v21, %v18519_v15  ;;  %v8571_v48 = vadd.f32 %v8539_v32, %v8301_v45  ;;  %v8607_v34 = vadd.f32 %v16938_v30, %v8568_v54  ;;  %v18520_v46 = vld [vmem:[#allocation60_spill] sm:$0xff]  ;;  %v8060_v36 = vadd.f32 %v8028_v27, %v18525_v4  ;;  %v18527_v45 = vld [vmem:[#allocation170_spill] sm:$0xff]  ;;  %v17087_v32 = vpop.f32.mrf.mxu0  ;;  %v18531_v23 = vld [vmem:[#allocation33_spill] sm:$0xff] }
 0x652   : > { %8963 = vst.msk [vmem:[%s16967_s0 + $0x20] sm:$0xff] %vm5629_vm4, %v8931_v37  ;;  %v8934_v52 = vadd.f32 %v8828_v55, %v8603_v9  ;;  %v8820_v28 = vadd.f32 %v16943_v29, %v8819_v62  ;;  %v8537_v37 = vmul.f32 %v18517_v5, %v18516_v11  ;;  %v18518_v9 = vld [vmem:[#allocation111_spill] sm:$0xff]  ;;  %v18529_v21 = vld [vmem:[#allocation162_spill] sm:$0xff]  ;;  %v18534_v20 = vld [vmem:[#allocation165_spill] sm:$0xff] }
 0x653   : > { %v11180_v26 = vpop.f32.mrf.mxu1  ;;  %v8302_v55 = vadd.f32 %v18518_v9, %v8057_v22  ;;  %v8300_v59 = vadd.f32 %v18524_v39, %v8055_v25  ;;  %v8305_v22 = vadd.f32 %v18530_v12, %v8060_v36  ;;  %v18535_v5 = vld [vmem:[#allocation150_spill] sm:$0xff]  ;;  %v18536_v25 = vld [vmem:[#allocation36_spill] sm:$0xff]  ;;  %v18542_v36 = vld [vmem:[#allocation159_spill] sm:$0xff] }
 0x654   : > { %8966 = vst.msk [vmem:[%s16967_s0 + $0x38] sm:$0xff] %vm5629_vm4, %v8934_v52  ;;  %v8932_v51 = vadd.f32 %v8820_v28, %v8601_v7  ;;  %v8841_v31 = vadd.f32 %v11180_v26, %v16943_v29  ;;  %v18521_v52 = vld [vmem:[#allocation152_spill] sm:$0xff]  ;;  %v18522_v28 = vld [vmem:[#allocation101_spill] sm:$0xff]  ;;  %v8569_v10 = vadd.f32 %v8537_v37, %v8299_v56  ;;  %v8605_v26 = vadd.f32 %v16938_v30, %v8566_v8  ;;  %v18548_v12 = vld [vmem:[#allocation103_spill] sm:$0xff] }
 0x655   : > { %v8832_v43 = vpop.f32.mrf.mxu1  ;;  %v8026_v7 = vmul.f32 %v18521_v52, %v18520_v46  ;;  %v8540_v41 = vmul.f32 %v18523_v13, %v18522_v28  ;;  %v18532_v56 = vld [vmem:[#allocation153_spill] sm:$0xff]  ;;  %v18540_v13 = vld [vmem:[#allocation178_spill] sm:$0xff]  ;;  %v18541_v4 = vld [vmem:[#allocation120_spill] sm:$0xff] }
 0x656   : > { %8964 = vst.msk [vmem:[%s16967_s0 + $0x28] sm:$0xff] %vm5629_vm4, %v8932_v51  ;;  %v8937_v0 = vadd.f32 %v8841_v31, %v8606_v18  ;;  %v8833_v19 = vadd.f32 %v16943_v29, %v8832_v43  ;;  %v8029_v51 = vmul.f32 %v18527_v45, %v18526_v63  ;;  %v18528_v31 = vld [vmem:[#allocation95_spill] sm:$0xff]  ;;  %v8610_v43 = vadd.f32 %v16938_v30, %v8571_v48 }
 0x657   : > { %v11181_v24 = vpop.f32.mrf.mxu1  ;;  %v8538_v38 = vmul.f32 %v16902_v53, %v18528_v31  ;;  %v8572_v49 = vadd.f32 %v8540_v41, %v8302_v55  ;;  %v8058_v3 = vadd.f32 %v8026_v7, %v18529_v21  ;;  %v18533_v53 = vld [vmem:[#allocation109_spill] sm:$0xff]  ;;  %v8608_v55 = vadd.f32 %v16938_v30, %v8569_v10  ;;  %v17110_v7 = vpop.f32.mrf.mxu0  ;;  %v18546_v21 = vld [vmem:[#allocation64_spill] sm:$0xff] }
 0x658   : > { %8969 = vst.msk [vmem:[%s16967_s0 + $0x50] sm:$0xff] %vm5629_vm4, %v8937_v0  ;;  %v8935_v6 = vadd.f32 %v8833_v19, %v8604_v14  ;;  %v8844_v62 = vadd.f32 %v11181_v24, %v16943_v29  ;;  %v8027_v0 = vmul.f32 %v18532_v56, %v18531_v23  ;;  %v8543_v19 = vmul.f32 %v16913_v33, %v18533_v53  ;;  %v18537_v24 = vld [vmem:[#allocation154_spill] sm:$0xff] }
 0x659   : > { %v8835_v1 = vpop.f32.mrf.mxu1  ;;  %v8570_v60 = vadd.f32 %v8538_v38, %v8300_v59  ;;  %v8061_v27 = vadd.f32 %v8029_v51, %v18534_v20  ;;  %v8303_v37 = vadd.f32 %v18535_v5, %v8058_v3  ;;  %v8032_v48 = vmul.f32 %v18537_v24, %v18536_v25  ;;  %v18545_v51 = vld [vmem:[#allocation121_spill] sm:$0xff]  ;;  %v17132_v56 = vpop.f32.mrf.mxu0  ;;  %v18551_v20 = vld [vmem:[#allocation52_spill] sm:$0xff] }
 0x65a   : > { %8967 = vst.msk [vmem:[%s16967_s0 + $0x40] sm:$0xff] %vm5629_vm4, %v8935_v6  ;;  %v8938_v18 = vadd.f32 %v8844_v62, %v8607_v34  ;;  %v8836_v54 = vadd.f32 %v16943_v29, %v8835_v1  ;;  %v18538_v6 = vld [vmem:[#allocation100_spill] sm:$0xff]  ;;  %v18539_v34 = vld [vmem:[#allocation171_spill] sm:$0xff]  ;;  %v8611_v46 = vadd.f32 %v16938_v30, %v8572_v49  ;;  %v8575_v28 = vadd.f32 %v8543_v19, %v8305_v22  ;;  %v18547_v3 = vld [vmem:[#allocation181_spill] sm:$0xff] }
 0x65b   : > { %v11184_v44 = vpop.f32.mrf.mxu1  ;;  %v8541_v33 = vmul.f32 %v16930_v50, %v18538_v6  ;;  %v8059_v62 = vadd.f32 %v8027_v0, %v18539_v34  ;;  %v8306_v41 = vadd.f32 %v18540_v13, %v8061_v27  ;;  %v8030_v1 = vmul.f32 %v18542_v36, %v18541_v4  ;;  %v18543_v50 = vld [vmem:[#allocation110_spill] sm:$0xff]  ;;  %v18552_v27 = vld [vmem:[#allocation156_spill] sm:$0xff]  ;;  %v18556_v34 = vld [vmem:[#allocation133_spill] sm:$0xff] }
 0x65c   : > { %8970 = vst.msk [vmem:[%s16967_s0 + $0x58] sm:$0xff] %vm5629_vm4, %v8938_v18  ;;  %v8936_v14 = vadd.f32 %v8836_v54, %v8605_v26  ;;  %v8857_v8 = vadd.f32 %v11184_v44, %v16943_v29  ;;  %v8544_v10 = vmul.f32 %v16953_v61, %v18543_v50  ;;  %v18544_v18 = vld [vmem:[#allocation172_spill] sm:$0xff]  ;;  %v8609_v54 = vadd.f32 %v16938_v30, %v8570_v60  ;;  %v18549_v22 = vld [vmem:[#allocation38_spill] sm:$0xff]  ;;  %v18560_v4 = vld [vmem:[#allocation47_spill] sm:$0xff] }
 0x65d   : > { %v8848_v11 = vpop.f32.mrf.mxu1  ;;  %v8064_v26 = vadd.f32 %v8032_v48, %v18544_v18  ;;  %v8573_v45 = vadd.f32 %v8541_v33, %v8303_v37  ;;  %v8304_v31 = vadd.f32 %v18545_v51, %v8059_v62  ;;  %v8033_v44 = vmul.f32 %v18547_v3, %v18546_v21  ;;  %v18554_v37 = vld [vmem:[#allocation39_spill] sm:$0xff]  ;;  %v18557_v62 = vld [vmem:[#allocation81_spill] sm:$0xff]  ;;  %v18559_v13 = vld [vmem:[#allocation22_spill] sm:$0xff] }
 0x65e   : > { %8968 = vst.msk [vmem:[%s16967_s0 + $0x48] sm:$0xff] %vm5629_vm4, %v8936_v14  ;;  %v8941_v9 = vadd.f32 %v8857_v8, %v8610_v43  ;;  %v8849_v15 = vadd.f32 %v16943_v29, %v8848_v11  ;;  %v8542_v61 = vmul.f32 %v16978_v2, %v18548_v12  ;;  %v18550_v43 = vld [vmem:[#allocation174_spill] sm:$0xff]  ;;  %v8576_v0 = vadd.f32 %v8544_v10, %v8306_v41  ;;  %v18553_v2 = vld [vmem:[#allocation48_spill] sm:$0xff] }
 0x65f   : > { %v11185_v52 = vpop.f32.mrf.mxu1  ;;  %v8309_v14 = vadd.f32 %v18549_v22, %v8064_v26  ;;  %v8062_v8 = vadd.f32 %v8030_v1, %v18550_v43  ;;  %v8614_v19 = vadd.f32 %v16938_v30, %v8575_v28  ;;  %v8031_v11 = vmul.f32 %v18552_v27, %v18551_v20  ;;  %v18561_v18 = vld [vmem:[#allocation124_spill] sm:$0xff]  ;;  %v18562_v26 = vld [vmem:[#allocation73_spill] sm:$0xff]  ;;  %v18564_v51 = vld [vmem:[#allocation58_spill] sm:$0xff] }
 0x660   : > { %8973 = vst.msk [vmem:[%s16967_s0 + $0x70] sm:$0xff] %vm5629_vm4, %v8941_v9  ;;  %v8939_v39 = vadd.f32 %v8849_v15, %v8608_v55  ;;  %v8860_v59 = vadd.f32 %v11185_v52, %v16943_v29  ;;  %v8547_v5 = vmul.f32 %v17000_v40, %v18553_v2  ;;  %v18555_v55 = vld [vmem:[#allocation176_spill] sm:$0xff]  ;;  %v8574_v24 = vadd.f32 %v8542_v61, %v8304_v31  ;;  %v18567_v22 = vld [vmem:[#allocation158_spill] sm:$0xff]  ;;  %v18568_v43 = vld [vmem:[#allocation187_spill] sm:$0xff] }
 0x661   : > { %v8851_v63 = vpop.f32.mrf.mxu1  ;;  %v8307_v9 = vadd.f32 %v18554_v37, %v8062_v8  ;;  %v8065_v15 = vadd.f32 %v8033_v44, %v18555_v55  ;;  %v8612_v6 = vadd.f32 %v16938_v30, %v8573_v45  ;;  %v18558_v52 = vld [vmem:[#allocation168_spill] sm:$0xff]  ;;  %v8063_v41 = vadd.f32 %v8031_v11, %v18559_v13  ;;  %v18569_v8 = vld [vmem:[#allocation169_spill] sm:$0xff]  ;;  %v18570_v20 = vld [vmem:[#allocation50_spill] sm:$0xff] }
 0x662   : > { %8971 = vst.msk [vmem:[%s16967_s0 + $0x60] sm:$0xff] %vm5629_vm4, %v8939_v39  ;;  %v8942_v38 = vadd.f32 %v8860_v59, %v8611_v46  ;;  %v8852_v49 = vadd.f32 %v16943_v29, %v8851_v63  ;;  %v8036_v46 = vmul.f32 %v18557_v62, %v18556_v34  ;;  %v8545_v40 = vmul.f32 %v17021_v58, %v18558_v52  ;;  %v8497_v59 = vpop.f32.mrf.mxu0  ;;  %v18563_v63 = vld [vmem:[#allocation69_spill] sm:$0xff]  ;;  %v18566_v61 = vld [vmem:[#allocation96_spill] sm:$0xff]  ;;  %v18573_v55 = vld [vmem:[#allocation127_spill] sm:$0xff] }
 0x663   : > { %v11188_v23 = vpop.f32.mrf.mxu1  ;;  %v8579_v28 = vadd.f32 %v8547_v5, %v8309_v14  ;;  %v8310_v36 = vadd.f32 %v18560_v4, %v8065_v15  ;;  %v8615_v50 = vadd.f32 %v16938_v30, %v8576_v0  ;;  %v8548_v58 = vmul.f32 %v17044_v42, %v18563_v63  ;;  %v18571_v5 = vld [vmem:[#allocation70_spill] sm:$0xff]  ;;  %v18572_v37 = vld [vmem:[#allocation161_spill] sm:$0xff]  ;;  %v18574_v15 = vld [vmem:[#allocation16_spill] sm:$0xff] }
 0x664   : > { %8974 = vst.msk [vmem:[%s16967_s0 + $0x78] sm:$0xff] %vm5629_vm4, %v8942_v38  ;;  %v8940_v53 = vadd.f32 %v8852_v49, %v8609_v54  ;;  %v8873_v60 = vadd.f32 %v11188_v23, %v16943_v29  ;;  %v8034_v54 = vmul.f32 %v18562_v26, %v18561_v18  ;;  %v8577_v45 = vadd.f32 %v8545_v40, %v8307_v9  ;;  %v18565_v49 = vld [vmem:[#allocation134_spill] sm:$0xff]  ;;  %v18576_v52 = vld [vmem:[#allocation67_spill] sm:$0xff]  ;;  %v18578_v13 = vld [vmem:[#allocation76_spill] sm:$0xff] }
 0x665   : > { %v8864_v25 = vpop.f32.mrf.mxu1  ;;  %v8068_v31 = vadd.f32 %v8036_v46, %v18564_v51  ;;  %v8308_v21 = vadd.f32 %v18565_v49, %v8063_v41  ;;  %v8613_v44 = vadd.f32 %v16938_v30, %v8574_v24  ;;  %v8037_v14 = vmul.f32 %v18567_v22, %v18566_v61  ;;  %v18577_v40 = vld [vmem:[#allocation166_spill] sm:$0xff]  ;;  %v18580_v4 = vld [vmem:[#allocation43_spill] sm:$0xff]  ;;  %v18581_v63 = vld [vmem:[#allocation137_spill] sm:$0xff] }
 0x666   : > { %8972 = vst.msk [vmem:[%s16967_s0 + $0x68] sm:$0xff] %vm5629_vm4, %v8940_v53  ;;  %v8945_v48 = vadd.f32 %v8873_v60, %v8614_v19  ;;  %v8865_v33 = vadd.f32 %v16943_v29, %v8864_v25  ;;  %v8546_v42 = vmul.f32 %v17066_v47, %v18568_v43  ;;  %v8066_v23 = vadd.f32 %v8034_v54, %v18569_v8  ;;  %v11164_v19 = vpop.f32.mrf.mxu0  ;;  %v18579_v41 = vld [vmem:[#allocation142_spill] sm:$0xff]  ;;  %v18583_v51 = vld [vmem:[#allocation132_spill] sm:$0xff]  ;;  %v18585_v49 = vld [vmem:[#allocation97_spill] sm:$0xff] }
 0x667   : > { %v11189_v39 = vpop.f32.mrf.mxu1  ;;  %v8618_v0 = vadd.f32 %v16938_v30, %v8579_v28  ;;  %v8580_v60 = vadd.f32 %v8548_v58, %v8310_v36  ;;  %v8313_v27 = vadd.f32 %v18570_v20, %v8068_v31  ;;  %v8035_v9 = vmul.f32 %v18572_v37, %v18571_v5  ;;  %v18582_v58 = vld [vmem:[#allocation173_spill] sm:$0xff]  ;;  %v18584_v31 = vld [vmem:[#allocation179_spill] sm:$0xff]  ;;  %v18587_v43 = vld [vmem:[#allocation182_spill] sm:$0xff] }
 0x668   : > { %8977 = vst.msk [vmem:[%s16967_s0 + $0x90] sm:$0xff] %vm5629_vm4, %v8945_v48  ;;  %v8943_v1 = vadd.f32 %v8865_v33, %v8612_v6  ;;  %v8876_v10 = vadd.f32 %v11189_v39, %v16943_v29  ;;  %v8551_v47 = vmul.f32 %v17087_v32, %v18573_v55  ;;  %v8069_v25 = vadd.f32 %v8037_v14, %v18574_v15  ;;  %v18575_v33 = vld [vmem:[#allocation59_spill] sm:$0xff]  ;;  %v18586_v14 = vld [vmem:[#allocation117_spill] sm:$0xff] }
 0x669   : > { %v8867_v38 = vpop.f32.mrf.mxu1  ;;  %v8616_v24 = vadd.f32 %v16938_v30, %v8577_v45  ;;  %v8578_v6 = vadd.f32 %v8546_v42, %v8308_v21  ;;  %v8311_v34 = vadd.f32 %v18575_v33, %v8066_v23  ;;  %v8040_v28 = vmul.f32 %v18577_v40, %v18576_v52  ;;  %v18588_v8 = vld [vmem:[#allocation89_spill] sm:$0xff]  ;;  %v18595_v52 = vld [vmem:[#allocation108_spill] sm:$0xff] }
 0x66a   : > { %8975 = vst.msk [vmem:[%s16967_s0 + $0x80] sm:$0xff] %vm5629_vm4, %v8943_v1  ;;  %v8946_v3 = vadd.f32 %v8876_v10, %v8615_v50  ;;  %v8868_v12 = vadd.f32 %v16943_v29, %v8867_v38  ;;  %v8549_v32 = vmul.f32 %v17110_v7, %v18578_v13  ;;  %v8314_v39 = vadd.f32 %v18579_v41, %v8069_v25  ;;  %v8510_v50 = vpop.f32.mrf.mxu0  ;;  %v18590_v37 = vld [vmem:[#allocation61_spill] sm:$0xff] }
 0x66b   : > { %v11192_v53 = vpop.f32.mrf.mxu1  ;;  %v8067_v36 = vadd.f32 %v8035_v9, %v18580_v4  ;;  %v8583_v10 = vadd.f32 %v8551_v47, %v8313_v27  ;;  %v8619_v26 = vadd.f32 %v16938_v30, %v8580_v60  ;;  %v8038_v45 = vmul.f32 %v18582_v58, %v18581_v63  ;;  %v18591_v9 = vld [vmem:[#allocation34_spill] sm:$0xff]  ;;  %v18592_v47 = vld [vmem:[#allocation136_spill] sm:$0xff]  ;;  %v18593_v25 = vld [vmem:[#allocation49_spill] sm:$0xff] }
 0x66c   : > { %8978 = vst.msk [vmem:[%s16967_s0 + $0x98] sm:$0xff] %vm5629_vm4, %v8946_v3  ;;  %v8944_v11 = vadd.f32 %v8868_v12, %v8613_v44  ;;  %v8889_v2 = vadd.f32 %v11192_v53, %v16943_v29  ;;  %v8552_v7 = vmul.f32 %v17132_v56, %v18583_v51  ;;  %v8072_v21 = vadd.f32 %v8040_v28, %v18585_v49  ;;  %v11165_v20 = vpop.f32.mrf.mxu0  ;;  %v18596_v4 = vld [vmem:[#allocation140_spill] sm:$0xff] }
 0x66d   : > { %v8880_v48 = vpop.f32.mrf.mxu1  ;;  %v8312_v38 = vadd.f32 %v18584_v31, %v8067_v36  ;;  %v8581_v44 = vadd.f32 %v8549_v32, %v8311_v34  ;;  %v8617_v61 = vadd.f32 %v16938_v30, %v8578_v6  ;;  %v8041_v42 = vmul.f32 %v18587_v43, %v18586_v14 }
 0x66e   : > { %8976 = vst.msk [vmem:[%s16967_s0 + $0x88] sm:$0xff] %vm5629_vm4, %v8944_v11  ;;  %v8949_v62 = vadd.f32 %v8889_v2, %v8618_v0  ;;  %v8881_v46 = vadd.f32 %v16943_v29, %v8880_v48  ;;  %v8550_v23 = vmul.f32 %v8497_v59, %v18588_v8  ;;  %v8584_v56 = vadd.f32 %v8552_v7, %v8314_v39  ;;  %v18589_v0 = vld [vmem:[#allocation104_spill] sm:$0xff]  ;;  %v8513_v13 = vpop.f32.mrf.mxu0 }
 0x66f   : > { %v11193_v1 = vpop.f32.mrf.mxu1  ;;  %v8070_v53 = vadd.f32 %v8038_v45, %v18589_v0  ;;  %v8317_v27 = vadd.f32 %v16911_v35, %v8072_v21  ;;  %v8622_v2 = vadd.f32 %v16938_v30, %v8583_v10  ;;  %v8039_v55 = vmul.f32 %v18591_v9, %v18590_v37 }
 0x670   : > { %8981 = vst.msk [vmem:[%s16967_s0 + $0xb0] sm:$0xff] %vm5629_vm4, %v8949_v62  ;;  %v8947_v18 = vadd.f32 %v8881_v46, %v8616_v24  ;;  %v8892_v54 = vadd.f32 %v11193_v1, %v16943_v29  ;;  %v8555_v59 = vmul.f32 %v11164_v19, %v18592_v47  ;;  %v8582_v15 = vadd.f32 %v8550_v23, %v8312_v38  ;;  %v18594_v62 = vld [vmem:[#allocation123_spill] sm:$0xff] }
 0x671   : > { %v8883_v3 = vpop.f32.mrf.mxu1  ;;  %v8073_v24 = vadd.f32 %v8041_v42, %v18593_v25  ;;  %v8315_v6 = vadd.f32 %v16919_v16, %v8070_v53  ;;  %v8620_v33 = vadd.f32 %v16938_v30, %v8581_v44  ;;  %v8553_v46 = vmul.f32 %v8510_v50, %v18594_v62 }
 0x672   : > { %8979 = vst.msk [vmem:[%s16967_s0 + $0xa0] sm:$0xff] %vm5629_vm4, %v8947_v18  ;;  %v8950_v12 = vadd.f32 %v8892_v54, %v8619_v26  ;;  %v8884_v22 = vadd.f32 %v16943_v29, %v8883_v3  ;;  %v8071_v40 = vadd.f32 %v8039_v55, %v18595_v52  ;;  %v8623_v19 = vadd.f32 %v16938_v30, %v8584_v56  ;;  %v18597_v54 = vld [vmem:[#allocation135_spill] sm:$0xff] }
 0x673   : > { %v11196_v60 = vpop.f32.mrf.mxu1  ;;  %v8587_v32 = vadd.f32 %v8555_v59, %v8317_v27  ;;  %v8318_v16 = vadd.f32 %v16924_v57, %v8073_v24  ;;  %v8556_v36 = vmul.f32 %v11165_v20, %v18596_v4  ;;  %v8621_v1 = vadd.f32 %v16938_v30, %v8582_v15 }
 0x674   : > { %8982 = vst.msk [vmem:[%s16967_s0 + $0xb8] sm:$0xff] %vm5629_vm4, %v8950_v12  ;;  %v8948_v11 = vadd.f32 %v8884_v22, %v8617_v61  ;;  %v8905_v5 = vadd.f32 %v11196_v60, %v16943_v29  ;;  %v8585_v10 = vadd.f32 %v8553_v46, %v8315_v6  ;;  %v8316_v18 = vadd.f32 %v16933_v17, %v8071_v40 }
 0x675   : > { %v8896_v48 = vpop.f32.mrf.mxu1  ;;  %v8554_v63 = vmul.f32 %v8513_v13, %v18597_v54  ;;  %v8588_v45 = vadd.f32 %v8556_v36, %v8318_v16  ;;  %v8626_v7 = vadd.f32 %v16938_v30, %v8587_v32 }
 0x676   : > { %8980 = vst.msk [vmem:[%s16967_s0 + $0xa8] sm:$0xff] %vm5629_vm4, %v8948_v11  ;;  %v8953_v35 = vadd.f32 %v8905_v5, %v8622_v2  ;;  %v8897_v34 = vadd.f32 %v16943_v29, %v8896_v48  ;;  %v8624_v21 = vadd.f32 %v16938_v30, %v8585_v10 }
 0x677   : > { %v11197_v28 = vpop.f32.mrf.mxu1  ;;  %v8586_v17 = vadd.f32 %v8554_v63, %v8316_v18  ;;  %v8627_v61 = vadd.f32 %v16938_v30, %v8588_v45 }
 0x678   : > { %8985 = vst.msk [vmem:[%s16967_s0 + $0xd0] sm:$0xff] %vm5629_vm4, %v8953_v35  ;;  %v8951_v41 = vadd.f32 %v8897_v34, %v8620_v33  ;;  %v8908_v39 = vadd.f32 %v11197_v28, %v16943_v29 }
 0x679   : > { %v8899_v50 = vpop.f32.mrf.mxu1  ;;  %v8625_v42 = vadd.f32 %v16938_v30, %v8586_v17 }
 0x67a   : > { %8983 = vst.msk [vmem:[%s16967_s0 + $0xc0] sm:$0xff] %vm5629_vm4, %v8951_v41  ;;  %v8954_v26 = vadd.f32 %v8908_v39, %v8623_v19  ;;  %v8900_v57 = vadd.f32 %v16943_v29, %v8899_v50 }
 0x67b   : > { %v11200_v58 = vpop.f32.mrf.mxu1 }
 0x67c   : > { %8986 = vst.msk [vmem:[%s16967_s0 + $0xd8] sm:$0xff] %vm5629_vm4, %v8954_v26  ;;  %v8952_v51 = vadd.f32 %v8900_v57, %v8621_v1  ;;  %v8921_v31 = vadd.f32 %v11200_v58, %v16943_v29 }
 0x67d   : > { %v8912_v38 = vpop.f32.mrf.mxu1 }
 0x67e   : > { %8984 = vst.msk [vmem:[%s16967_s0 + $0xc8] sm:$0xff] %vm5629_vm4, %v8952_v51  ;;  %v8957_v49 = vadd.f32 %v8921_v31, %v8626_v7  ;;  %v8913_v3 = vadd.f32 %v16943_v29, %v8912_v38 }
 0x67f   : > { %v11201_v44 = vpop.f32.mrf.mxu1 }
 0x680   : > { %8989 = vst.msk [vmem:[%s16967_s0 + $0xf0] sm:$0xff] %vm5629_vm4, %v8957_v49  ;;  %v8955_v12 = vadd.f32 %v8913_v3, %v8624_v21  ;;  %v8924_v22 = vadd.f32 %v11201_v44, %v16943_v29 }
 0x681   : > { %v8915_v14 = vpop.f32.mrf.mxu1 }
 0x682   : > { %8987 = vst.msk [vmem:[%s16967_s0 + $0xe0] sm:$0xff] %vm5629_vm4, %v8955_v12  ;;  %v8958_v43 = vadd.f32 %v8924_v22, %v8627_v61  ;;  %v8916_v8 = vadd.f32 %v16943_v29, %v8915_v14 }
 0x684   : > { %8990 = vst.msk [vmem:[%s16967_s0 + $0xf8] sm:$0xff] %vm5629_vm4, %v8958_v43  ;;  %v8956_v23 = vadd.f32 %v8916_v8, %v8625_v42 }
 0x686   : > { %8988 = vst.msk [vmem:[%s16967_s0 + $0xe8] sm:$0xff] %vm5629_vm4, %v8956_v23 }
 0x687 PF: > { %s30_s1 = sadd.s32 1, %s11640_s1  }
 0x688   : > { %p27_p4 = scmp.ge.s32.totalorder %s30_s1, 4  }
 0x68a   :  { %29 = sbr.rel (!%p27_p4) target bundleno = 6 (0x6), region = 151 }

</bundles_post_ra>
